<compile_context>
chip_gen: v7x
topology: tpu7x:2x2x1
jax: 0.10.0
libtpu: 0.0.40
codegen_flags: <defaults>
</compile_context>

<pallas_src>
import functools
import math

import jax
import jax.numpy as jnp
from jax import lax
from jax.experimental import pallas as pl
from jax.experimental.pallas import tpu as pltpu

_NEG_INF = -1e20
_LANE = 128


def _round_up(x, m):
    return -(-x // m) * m


# ------------------------- in-kernel math helpers (register-resident values) -------------------------

def _layernorm(h, g, b, eps=1e-5):
    mean = jnp.mean(h, axis=-1, keepdims=True)
    var = jnp.mean(jnp.square(h - mean), axis=-1, keepdims=True)
    return (h - mean) * lax.rsqrt(var + eps) * g + b


def _mm(x_f32, w_bf16):
    """f32 activations x bf16 weights -> f32 accumulation on the MXU."""
    return jnp.dot(x_f32.astype(jnp.bfloat16), w_bf16,
                   preferred_element_type=jnp.float32)


def _batched_attention(q_all, k_all, v_all, wo, bo, biases, heads, nb, lq, lk):
    """Multi-head attention over a batch of sequences packed along the row axis.

    q_all: (nb*lq, D) f32, already scaled by 1/sqrt(embed).
    k_all, v_all: (nb*lk, D) f32.
    wo: (D, D) bf16, bo: (1, D) f32.
    biases: list of nb additive (lq, lk) f32 biases (pre-broadcast, reused every head).
    Returns (nb*lq, D) f32.

    Each head's context is accumulated directly through the matching row block of wo,
    so there is no lane-axis concatenate of heads.
    """
    D = q_all.shape[-1]
    dh = D // heads
    outs = []
    for b in range(nb):                            # static unroll; sublane (row) slices
        qb = q_all[b * lq:(b + 1) * lq]
        kb = k_all[b * lk:(b + 1) * lk]
        vb = v_all[b * lk:(b + 1) * lk]
        bias = biases[b]
        acc = None
        for h in range(heads):                     # static unroll over heads
            sl = slice(h * dh, (h + 1) * dh)
            qh = qb[:, sl].astype(jnp.bfloat16)
            kh = kb[:, sl].astype(jnp.bfloat16)
            vh = vb[:, sl].astype(jnp.bfloat16)
            s = lax.dot_general(qh, kh, (((1,), (1,)), ((), ())),
                                preferred_element_type=jnp.float32) + bias
            m = jnp.max(s, axis=-1, keepdims=True)
            p = jnp.exp(s - m)
            p = p * pl.reciprocal(jnp.sum(p, axis=-1, keepdims=True), approx=True)
            ctx = jnp.dot(p.astype(jnp.bfloat16), vh,
                          preferred_element_type=jnp.float32)          # (lq, dh)
            contrib = jnp.dot(ctx.astype(jnp.bfloat16), wo[sl, :],
                              preferred_element_type=jnp.float32)      # (lq, D)
            acc = contrib if acc is None else acc + contrib
        outs.append(acc + bo)
    return outs[0] if nb == 1 else jnp.concatenate(outs, axis=0)


def _ffn_block(resid, attn_out, ln1g, ln1b, ff1w, ff1b, ff2w, ff2b, ln2g, ln2b):
    """Post-norm block tail: LN(attn + resid) -> FFN(relu) -> LN(ff + h)."""
    h = _layernorm(attn_out + resid, ln1g, ln1b)
    ff = jnp.dot(h.astype(jnp.bfloat16), ff1w, preferred_element_type=jnp.float32) + ff1b
    ff = jnp.maximum(ff, 0.0)
    ff = jnp.dot(ff.astype(jnp.bfloat16), ff2w, preferred_element_type=jnp.float32) + ff2b
    return _layernorm(ff + h, ln2g, ln2b)


# ------------------------- single fused Pallas kernel (encoder + decoder + fc_out) -------------------------

def _transformer_kernel(xs_ref, xt_ref, sid_ref,
                        # encoder stacked weights
                        e_wqkv, e_bqkv, e_wo, e_bo, e_ln1g, e_ln1b,
                        e_ff1w, e_ff1b, e_ff2w, e_ff2b, e_ln2g, e_ln2b,
                        # decoder stacked weights
                        d_wqkv, d_bqkv, d_wo, d_bo, d_lnsg, d_lnsb,
                        d_wqc, d_bqc, d_wkvc, d_bkvc, d_woc, d_boc,
                        d_ln1g, d_ln1b, d_ff1w, d_ff1b, d_ff2w, d_ff2b,
                        d_ln2g, d_ln2b,
                        fc_w, fc_b,
                        o_ref, *, heads, n_enc, n_dec, nb, ls, lt, scale, pad_idx):
    D = xs_ref.shape[-1]

    x = xs_ref[...]                  # (nb*ls, D) f32 — whole batch in the matmul M dim
    y = xt_ref[...]                  # (nb*lt, D) f32

    # ---- additive biases, built in-kernel and pre-broadcast ONCE (reused every layer & head) ----
    pad_row = jnp.where(sid_ref[...] == pad_idx,
                        jnp.float32(_NEG_INF), jnp.float32(0.0))        # (nb, ls)
    enc_bias = [jnp.broadcast_to(pad_row[b:b + 1, :], (ls, ls)) for b in range(nb)]
    crs_bias = [jnp.broadcast_to(pad_row[b:b + 1, :], (lt, ls)) for b in range(nb)]
    row_i = lax.broadcasted_iota(jnp.int32, (lt, lt), 0)
    col_i = lax.broadcasted_iota(jnp.int32, (lt, lt), 1)
    causal = jnp.where(col_i <= row_i, jnp.float32(0.0), jnp.float32(_NEG_INF))
    causal_bias = [causal] * nb

    # ---------------- encoder stack (activations stay VMEM/register resident) ----------------
    for l in range(n_enc):           # static unroll; stacked weights indexed per layer
        qkv = _mm(x, e_wqkv[l]) + e_bqkv[l]
        a = _batched_attention(qkv[:, :D] * scale, qkv[:, D:2 * D], qkv[:, 2 * D:],
                               e_wo[l], e_bo[l], enc_bias, heads, nb, ls, ls)
        x = _ffn_block(x, a, e_ln1g[l], e_ln1b[l], e_ff1w[l], e_ff1b[l],
                       e_ff2w[l], e_ff2b[l], e_ln2g[l], e_ln2b[l])

    enc_bf = x.astype(jnp.bfloat16)  # cast once; consumed by every decoder layer (never hits HBM)

    # ---------------- decoder stack + fused final projection ----------------
    for l in range(n_dec):
        # masked self-attention (fused QKV projection)
        qkv = _mm(y, d_wqkv[l]) + d_bqkv[l]
        a = _batched_attention(qkv[:, :D] * scale, qkv[:, D:2 * D], qkv[:, 2 * D:],
                               d_wo[l], d_bo[l], causal_bias, heads, nb, lt, lt)
        q1 = _layernorm(a + y, d_lnsg[l], d_lnsb[l])
        # cross-attention (K/V from resident encoder output) + FFN tail
        qc = (_mm(q1, d_wqc[l]) + d_bqc[l]) * scale
        kvc = jnp.dot(enc_bf, d_wkvc[l],
                      preferred_element_type=jnp.float32) + d_bkvc[l]
        ac = _batched_attention(qc, kvc[:, :D], kvc[:, D:],
                                d_woc[l], d_boc[l], crs_bias, heads, nb, lt, ls)
        y = _ffn_block(q1, ac, d_ln1g[l], d_ln1b[l], d_ff1w[l], d_ff1b[l],
                       d_ff2w[l], d_ff2b[l], d_ln2g[l], d_ln2b[l])

    # padded vocab is a multiple of 128 -> the kernel's only HBM store is lane-dense
    logits = _mm(y, fc_w[...]) + fc_b[...]
    o_ref[...] = logits.astype(o_ref.dtype)


# ------------------------- pallas_call wrapper -------------------------

def _const_spec(shape):
    rank = len(shape)
    return pl.BlockSpec(shape, lambda c, _r=rank: (0,) * _r)


def run_transformer(x_src_flat, x_trg_flat, src_ids, enc, dec, *,
                    N, Ls, Lt, heads, scale, pad_idx):
    D = x_src_flat.shape[-1]
    nE = enc["wqkv"].shape[0]
    nD = dec["wqkv_s"].shape[0]
    F = enc["ff1_w"].shape[-1]
    Vp = dec["fc_w"].shape[-1]

    # Chunk the batch over the grid only when each chunk still feeds the MXU well
    # (keeps both v7x TensorCores busy for large batches without shrinking M to 8).
    n_chunks = 1
    if N % 2 == 0:
        half = N // 2
        if half % 8 == 0 and half * max(Ls, Lt) >= 256:
            n_chunks = 2
    NB = N // n_chunks

    in_specs = [
        pl.BlockSpec((NB * Ls, D), lambda c: (c, 0)),   # flattened src embeddings
        pl.BlockSpec((NB * Lt, D), lambda c: (c, 0)),   # flattened trg embeddings
        pl.BlockSpec((NB, Ls), lambda c: (c, 0)),       # src token ids (int32)
        # encoder stacks (constant block index -> DMA'd once, stay VMEM resident)
        _const_spec((nE, D, 3 * D)), _const_spec((nE, 1, 3 * D)),
        _const_spec((nE, D, D)), _const_spec((nE, 1, D)),
        _const_spec((nE, 1, D)), _const_spec((nE, 1, D)),
        _const_spec((nE, D, F)), _const_spec((nE, 1, F)),
        _const_spec((nE, F, D)), _const_spec((nE, 1, D)),
        _const_spec((nE, 1, D)), _const_spec((nE, 1, D)),
        # decoder stacks
        _const_spec((nD, D, 3 * D)), _const_spec((nD, 1, 3 * D)),
        _const_spec((nD, D, D)), _const_spec((nD, 1, D)),
        _const_spec((nD, 1, D)), _const_spec((nD, 1, D)),
        _const_spec((nD, D, D)), _const_spec((nD, 1, D)),
        _const_spec((nD, D, 2 * D)), _const_spec((nD, 1, 2 * D)),
        _const_spec((nD, D, D)), _const_spec((nD, 1, D)),
        _const_spec((nD, 1, D)), _const_spec((nD, 1, D)),
        _const_spec((nD, D, F)), _const_spec((nD, 1, F)),
        _const_spec((nD, F, D)), _const_spec((nD, 1, D)),
        _const_spec((nD, 1, D)), _const_spec((nD, 1, D)),
        # final projection
        _const_spec((D, Vp)), _const_spec((1, Vp)),
    ]

    kernel = functools.partial(
        _transformer_kernel, heads=heads, n_enc=nE, n_dec=nD,
        nb=NB, ls=Ls, lt=Lt, scale=scale, pad_idx=pad_idx)

    return pl.pallas_call(
        kernel,
        out_shape=jax.ShapeDtypeStruct((N * Lt, Vp), jnp.float32),
        grid=(n_chunks,),
        in_specs=in_specs,
        out_specs=pl.BlockSpec((NB * Lt, Vp), lambda c: (c, 0)),
        compiler_params=pltpu.CompilerParams(
            dimension_semantics=("parallel",),
            vmem_limit_bytes=48 * 1024 * 1024,  # explicit; safe on v5e/v6e/v7x
        ),
    )(x_src_flat, x_trg_flat, src_ids,
      enc["wqkv"], enc["bqkv"], enc["wo"], enc["bo"], enc["ln1_g"], enc["ln1_b"],
      enc["ff1_w"], enc["ff1_b"], enc["ff2_w"], enc["ff2_b"], enc["ln2_g"], enc["ln2_b"],
      dec["wqkv_s"], dec["bqkv_s"], dec["wo_s"], dec["bo_s"], dec["lns_g"], dec["lns_b"],
      dec["wq_c"], dec["bq_c"], dec["wkv_c"], dec["bkv_c"], dec["wo_c"], dec["bo_c"],
      dec["ln1_g"], dec["ln1_b"], dec["ff1_w"], dec["ff1_b"], dec["ff2_w"], dec["ff2_b"],
      dec["ln2_g"], dec["ln2_b"], dec["fc_w"], dec["fc_b"])


# ------------------------- model forward -------------------------

def transformer_forward(params, src, trg, cfg):
    N, Ls = src.shape
    _, Lt = trg.shape
    D, heads = cfg["embed"], cfg["heads"]
    scale = 1.0 / math.sqrt(D)      # reference: softmax(QK^T / sqrt(embed_size))
    Vp = params["decoder"]["fc_w"].shape[-1]

    # embeddings (gather kept in plain JAX glue); dropout = identity (inference);
    # flatten to (N*L, D) so every dense matmul in the kernel sees M = N*L rows.
    x_src = (jnp.take(params["src_word_emb"], src, axis=0)
             + params["src_pos_emb"][None, :Ls]).reshape(N * Ls, D)
    x_trg = (jnp.take(params["trg_word_emb"], trg, axis=0)
             + params["trg_pos_emb"][None, :Lt]).reshape(N * Lt, D)

    logits = run_transformer(x_src, x_trg, src.astype(jnp.int32),
                             params["encoder"], params["decoder"],
                             N=N, Ls=Ls, Lt=Lt, heads=heads, scale=scale,
                             pad_idx=cfg["src_pad_idx"])
    logits = logits.reshape(N, Lt, Vp)
    return logits[:, :, :cfg["trg_vocab"]]   # strip lane padding of fc_out


# ------------------------- deterministic parameter init (stacked / fused layout) -------------------------

def _dense(key, fan_in, fan_out):
    kw, kb = jax.random.split(key)
    w = jax.random.normal(kw, (fan_in, fan_out), jnp.float32) * 0.02
    b = jax.random.normal(kb, (fan_out,), jnp.float32) * 0.02
    return w, b


def _stack_dense(key, n, fan_in, fan_out):
    ks = jax.random.split(key, n)
    pairs = [_dense(k, fan_in, fan_out) for k in ks]
    w = jnp.stack([p[0] for p in pairs]).astype(jnp.bfloat16)      # MXU operands in bf16
    b = jnp.stack([p[1] for p in pairs]).reshape(n, 1, fan_out)    # biases kept f32
    return w, b


def init_encoder_params(key, n, D, F):
    ks = jax.random.split(key, 4)
    wqkv, bqkv = _stack_dense(ks[0], n, D, 3 * D)
    wo, bo = _stack_dense(ks[1], n, D, D)
    ff1_w, ff1_b = _stack_dense(ks[2], n, D, F)
    ff2_w, ff2_b = _stack_dense(ks[3], n, F, D)
    ones = jnp.ones((n, 1, D), jnp.float32)
    zeros = jnp.zeros((n, 1, D), jnp.float32)
    return dict(wqkv=wqkv, bqkv=bqkv, wo=wo, bo=bo,
                ln1_g=ones, ln1_b=zeros, ln2_g=ones, ln2_b=zeros,
                ff1_w=ff1_w, ff1_b=ff1_b, ff2_w=ff2_w, ff2_b=ff2_b)


def init_decoder_params(key, n, D, F):
    ks = jax.random.split(key, 7)
    wqkv_s, bqkv_s = _stack_dense(ks[0], n, D, 3 * D)
    wo_s, bo_s = _stack_dense(ks[1], n, D, D)
    wq_c, bq_c = _stack_dense(ks[2], n, D, D)
    wkv_c, bkv_c = _stack_dense(ks[3], n, D, 2 * D)
    wo_c, bo_c = _stack_dense(ks[4], n, D, D)
    ff1_w, ff1_b = _stack_dense(ks[5], n, D, F)
    ff2_w, ff2_b = _stack_dense(ks[6], n, F, D)
    ones = jnp.ones((n, 1, D), jnp.float32)
    zeros = jnp.zeros((n, 1, D), jnp.float32)
    return dict(wqkv_s=wqkv_s, bqkv_s=bqkv_s, wo_s=wo_s, bo_s=bo_s,
                lns_g=ones, lns_b=zeros,
                wq_c=wq_c, bq_c=bq_c, wkv_c=wkv_c, bkv_c=bkv_c,
                wo_c=wo_c, bo_c=bo_c,
                ln1_g=ones, ln1_b=zeros, ln2_g=ones, ln2_b=zeros,
                ff1_w=ff1_w, ff1_b=ff1_b, ff2_w=ff2_w, ff2_b=ff2_b)


def init_params(key, cfg):
    D = cfg["embed"]
    F = cfg["fe"] * D
    Vp = _round_up(cfg["trg_vocab"], _LANE)
    keys = jax.random.split(key, 7)
    emb = lambda k, n: jax.random.normal(k, (n, D), jnp.float32) * 0.02
    src_word = emb(keys[0], cfg["src_vocab"])
    src_pos = emb(keys[1], cfg["max_len"])
    trg_word = emb(keys[2], cfg["trg_vocab"])
    trg_pos = emb(keys[3], cfg["max_len"])
    fc_w, fc_b = _dense(keys[4], D, cfg["trg_vocab"])
    fc_w = jnp.pad(fc_w, ((0, 0), (0, Vp - cfg["trg_vocab"]))).astype(jnp.bfloat16)
    fc_b = jnp.pad(fc_b, (0, Vp - cfg["trg_vocab"])).reshape(1, Vp)
    dec = init_decoder_params(keys[6], cfg["n_dec"], D, F)
    dec = dict(dec, fc_w=fc_w, fc_b=fc_b)
    return dict(src_word_emb=src_word, src_pos_emb=src_pos,
                trg_word_emb=trg_word, trg_pos_emb=trg_pos,
                encoder=init_encoder_params(keys[5], cfg["n_enc"], D, F),
                decoder=dec)


if __name__ == "__main__":
    cfg = dict(src_vocab=50, trg_vocab=48, src_pad_idx=0, trg_pad_idx=0,
               embed=64, heads=4, fe=4, n_enc=2, n_dec=2, max_len=100)

    key = jax.random.PRNGKey(0)
    k_src, k_trg, k_par = jax.random.split(key, 3)
    N, Ls, Lt = 2, 8, 8
    src = jax.random.randint(k_src, (N, Ls), 1, cfg["src_vocab"], dtype=jnp.int32)
    trg = jax.random.randint(k_trg, (N, Lt), 1, cfg["trg_vocab"], dtype=jnp.int32)

    params = init_params(k_par, cfg)
    fwd = jax.jit(functools.partial(transformer_forward, cfg=cfg))
    out = fwd(params, src, trg)
    out = jax.block_until_ready(out)

    assert out.shape == (N, Lt, cfg["trg_vocab"]), out.shape
    assert bool(jnp.all(jnp.isfinite(out)))
    print("KERNEL_OK")
</pallas_src>

<mosaic_0001>
module attributes {stable_mosaic.version = 11 : i64} {
  func.func @_transformer_kernel(%arg0: i32, %arg1: memref<16x64xf32, #tpu.memory_space<vmem>>, %arg2: memref<16x64xf32, #tpu.memory_space<vmem>>, %arg3: memref<2x8xi32, #tpu.memory_space<vmem>>, %arg4: memref<2x64x192xbf16, #tpu.memory_space<vmem>>, %arg5: memref<2x1x192xf32, #tpu.memory_space<vmem>>, %arg6: memref<2x64x64xbf16, #tpu.memory_space<vmem>>, %arg7: memref<2x1x64xf32, #tpu.memory_space<vmem>>, %arg8: memref<2x1x64xf32, #tpu.memory_space<vmem>>, %arg9: memref<2x1x64xf32, #tpu.memory_space<vmem>>, %arg10: memref<2x64x256xbf16, #tpu.memory_space<vmem>>, %arg11: memref<2x1x256xf32, #tpu.memory_space<vmem>>, %arg12: memref<2x256x64xbf16, #tpu.memory_space<vmem>>, %arg13: memref<2x1x64xf32, #tpu.memory_space<vmem>>, %arg14: memref<2x1x64xf32, #tpu.memory_space<vmem>>, %arg15: memref<2x1x64xf32, #tpu.memory_space<vmem>>, %arg16: memref<2x64x192xbf16, #tpu.memory_space<vmem>>, %arg17: memref<2x1x192xf32, #tpu.memory_space<vmem>>, %arg18: memref<2x64x64xbf16, #tpu.memory_space<vmem>>, %arg19: memref<2x1x64xf32, #tpu.memory_space<vmem>>, %arg20: memref<2x1x64xf32, #tpu.memory_space<vmem>>, %arg21: memref<2x1x64xf32, #tpu.memory_space<vmem>>, %arg22: memref<2x64x64xbf16, #tpu.memory_space<vmem>>, %arg23: memref<2x1x64xf32, #tpu.memory_space<vmem>>, %arg24: memref<2x64x128xbf16, #tpu.memory_space<vmem>>, %arg25: memref<2x1x128xf32, #tpu.memory_space<vmem>>, %arg26: memref<2x64x64xbf16, #tpu.memory_space<vmem>>, %arg27: memref<2x1x64xf32, #tpu.memory_space<vmem>>, %arg28: memref<2x1x64xf32, #tpu.memory_space<vmem>>, %arg29: memref<2x1x64xf32, #tpu.memory_space<vmem>>, %arg30: memref<2x64x256xbf16, #tpu.memory_space<vmem>>, %arg31: memref<2x1x256xf32, #tpu.memory_space<vmem>>, %arg32: memref<2x256x64xbf16, #tpu.memory_space<vmem>>, %arg33: memref<2x1x64xf32, #tpu.memory_space<vmem>>, %arg34: memref<2x1x64xf32, #tpu.memory_space<vmem>>, %arg35: memref<2x1x64xf32, #tpu.memory_space<vmem>>, %arg36: memref<64x128xbf16, #tpu.memory_space<vmem>>, %arg37: memref<1x128xf32, #tpu.memory_space<vmem>>, %arg38: memref<16x128xf32, #tpu.memory_space<vmem>>) attributes {dimension_semantics = [#tpu.dimension_semantics<parallel>], iteration_bounds = array<i64: 1>, scalar_prefetch = 0 : i64, scratch_operands = 0 : i64, tpu.core_type = #tpu.core_type<tc>, window_params = [{transform_indices = @transform_0, window_bounds = array<i64: 16, 64>}, {transform_indices = @transform_1, window_bounds = array<i64: 16, 64>}, {transform_indices = @transform_2, window_bounds = array<i64: 2, 8>}, {pipeline_mode = #tpu.pipeline_mode<synchronous>, transform_indices = @transform_3, window_bounds = array<i64: 2, 64, 192>}, {pipeline_mode = #tpu.pipeline_mode<synchronous>, transform_indices = @transform_4, window_bounds = array<i64: 2, 1, 192>}, {pipeline_mode = #tpu.pipeline_mode<synchronous>, transform_indices = @transform_5, window_bounds = array<i64: 2, 64, 64>}, {pipeline_mode = #tpu.pipeline_mode<synchronous>, transform_indices = @transform_6, window_bounds = array<i64: 2, 1, 64>}, {pipeline_mode = #tpu.pipeline_mode<synchronous>, transform_indices = @transform_7, window_bounds = array<i64: 2, 1, 64>}, {pipeline_mode = #tpu.pipeline_mode<synchronous>, transform_indices = @transform_8, window_bounds = array<i64: 2, 1, 64>}, {pipeline_mode = #tpu.pipeline_mode<synchronous>, transform_indices = @transform_9, window_bounds = array<i64: 2, 64, 256>}, {pipeline_mode = #tpu.pipeline_mode<synchronous>, transform_indices = @transform_10, window_bounds = array<i64: 2, 1, 256>}, {pipeline_mode = #tpu.pipeline_mode<synchronous>, transform_indices = @transform_11, window_bounds = array<i64: 2, 256, 64>}, {pipeline_mode = #tpu.pipeline_mode<synchronous>, transform_indices = @transform_12, window_bounds = array<i64: 2, 1, 64>}, {pipeline_mode = #tpu.pipeline_mode<synchronous>, transform_indices = @transform_13, window_bounds = array<i64: 2, 1, 64>}, {pipeline_mode = #tpu.pipeline_mode<synchronous>, transform_indices = @transform_14, window_bounds = array<i64: 2, 1, 64>}, {pipeline_mode = #tpu.pipeline_mode<synchronous>, transform_indices = @transform_15, window_bounds = array<i64: 2, 64, 192>}, {pipeline_mode = #tpu.pipeline_mode<synchronous>, transform_indices = @transform_16, window_bounds = array<i64: 2, 1, 192>}, {pipeline_mode = #tpu.pipeline_mode<synchronous>, transform_indices = @transform_17, window_bounds = array<i64: 2, 64, 64>}, {pipeline_mode = #tpu.pipeline_mode<synchronous>, transform_indices = @transform_18, window_bounds = array<i64: 2, 1, 64>}, {pipeline_mode = #tpu.pipeline_mode<synchronous>, transform_indices = @transform_19, window_bounds = array<i64: 2, 1, 64>}, {pipeline_mode = #tpu.pipeline_mode<synchronous>, transform_indices = @transform_20, window_bounds = array<i64: 2, 1, 64>}, {pipeline_mode = #tpu.pipeline_mode<synchronous>, transform_indices = @transform_21, window_bounds = array<i64: 2, 64, 64>}, {pipeline_mode = #tpu.pipeline_mode<synchronous>, transform_indices = @transform_22, window_bounds = array<i64: 2, 1, 64>}, {pipeline_mode = #tpu.pipeline_mode<synchronous>, transform_indices = @transform_23, window_bounds = array<i64: 2, 64, 128>}, {pipeline_mode = #tpu.pipeline_mode<synchronous>, transform_indices = @transform_24, window_bounds = array<i64: 2, 1, 128>}, {pipeline_mode = #tpu.pipeline_mode<synchronous>, transform_indices = @transform_25, window_bounds = array<i64: 2, 64, 64>}, {pipeline_mode = #tpu.pipeline_mode<synchronous>, transform_indices = @transform_26, window_bounds = array<i64: 2, 1, 64>}, {pipeline_mode = #tpu.pipeline_mode<synchronous>, transform_indices = @transform_27, window_bounds = array<i64: 2, 1, 64>}, {pipeline_mode = #tpu.pipeline_mode<synchronous>, transform_indices = @transform_28, window_bounds = array<i64: 2, 1, 64>}, {pipeline_mode = #tpu.pipeline_mode<synchronous>, transform_indices = @transform_29, window_bounds = array<i64: 2, 64, 256>}, {pipeline_mode = #tpu.pipeline_mode<synchronous>, transform_indices = @transform_30, window_bounds = array<i64: 2, 1, 256>}, {pipeline_mode = #tpu.pipeline_mode<synchronous>, transform_indices = @transform_31, window_bounds = array<i64: 2, 256, 64>}, {pipeline_mode = #tpu.pipeline_mode<synchronous>, transform_indices = @transform_32, window_bounds = array<i64: 2, 1, 64>}, {pipeline_mode = #tpu.pipeline_mode<synchronous>, transform_indices = @transform_33, window_bounds = array<i64: 2, 1, 64>}, {pipeline_mode = #tpu.pipeline_mode<synchronous>, transform_indices = @transform_34, window_bounds = array<i64: 2, 1, 64>}, {pipeline_mode = #tpu.pipeline_mode<synchronous>, transform_indices = @transform_35, window_bounds = array<i64: 64, 128>}, {pipeline_mode = #tpu.pipeline_mode<synchronous>, transform_indices = @transform_36, window_bounds = array<i64: 1, 128>}, {transform_indices = @transform_37, window_bounds = array<i64: 16, 128>}]} {
    %c0 = arith.constant 0 : index
    %c0_0 = arith.constant 0 : index
    %0 = vector.load %arg1[%c0, %c0_0] : memref<16x64xf32, #tpu.memory_space<vmem>>, vector<16x64xf32>
    %c0_1 = arith.constant 0 : index
    %c0_2 = arith.constant 0 : index
    %1 = vector.load %arg2[%c0_1, %c0_2] : memref<16x64xf32, #tpu.memory_space<vmem>>, vector<16x64xf32>
    %c0_3 = arith.constant 0 : index
    %c0_4 = arith.constant 0 : index
    %2 = vector.load %arg3[%c0_3, %c0_4] : memref<2x8xi32, #tpu.memory_space<vmem>>, vector<2x8xi32>
    %c0_i32 = arith.constant 0 : i32
    %3 = vector.broadcast %c0_i32 : i32 to vector<2x8xi32>
    %4 = arith.cmpi eq, %2, %3 : vector<2x8xi32>
    %cst = arith.constant -1.000000e+20 : f32
    %cst_5 = arith.constant 0.000000e+00 : f32
    %5 = vector.broadcast %cst : f32 to vector<2x8xf32>
    %6 = vector.broadcast %cst_5 : f32 to vector<2x8xf32>
    %7 = arith.select %4, %5, %6 : vector<2x8xi1>, vector<2x8xf32>
    %8 = vector.extract_strided_slice %7 {offsets = [0, 0], sizes = [1, 8], strides = [1, 1]} : vector<2x8xf32> to vector<1x8xf32>
    %9 = vector.shape_cast %8 : vector<1x8xf32> to vector<1x8xf32>
    %10 = vector.broadcast %9 : vector<1x8xf32> to vector<8x8xf32>
    %11 = vector.extract_strided_slice %7 {offsets = [1, 0], sizes = [1, 8], strides = [1, 1]} : vector<2x8xf32> to vector<1x8xf32>
    %12 = vector.shape_cast %11 : vector<1x8xf32> to vector<1x8xf32>
    %13 = vector.broadcast %12 : vector<1x8xf32> to vector<8x8xf32>
    %14 = vector.extract_strided_slice %7 {offsets = [0, 0], sizes = [1, 8], strides = [1, 1]} : vector<2x8xf32> to vector<1x8xf32>
    %15 = vector.shape_cast %14 : vector<1x8xf32> to vector<1x8xf32>
    %16 = vector.broadcast %15 : vector<1x8xf32> to vector<8x8xf32>
    %17 = vector.extract_strided_slice %7 {offsets = [1, 0], sizes = [1, 8], strides = [1, 1]} : vector<2x8xf32> to vector<1x8xf32>
    %18 = vector.shape_cast %17 : vector<1x8xf32> to vector<1x8xf32>
    %19 = vector.broadcast %18 : vector<1x8xf32> to vector<8x8xf32>
    %20 = tpu.iota {dimensions = array<i32: 0>} : vector<8x8xi32>
    %21 = tpu.iota {dimensions = array<i32: 1>} : vector<8x8xi32>
    %22 = arith.cmpi sle, %21, %20 : vector<8x8xi32>
    %cst_6 = arith.constant 0.000000e+00 : f32
    %cst_7 = arith.constant -1.000000e+20 : f32
    %23 = vector.broadcast %cst_6 : f32 to vector<8x8xf32>
    %24 = vector.broadcast %cst_7 : f32 to vector<8x8xf32>
    %25 = arith.select %22, %23, %24 : vector<8x8xi1>, vector<8x8xf32>
    %c0_8 = arith.constant 0 : index
    %c0_9 = arith.constant 0 : index
    %c0_10 = arith.constant 0 : index
    %26 = vector.load %arg4[%c0_8, %c0_9, %c0_10] : memref<2x64x192xbf16, #tpu.memory_space<vmem>>, vector<1x64x192xbf16>
    %27 = vector.shape_cast %26 : vector<1x64x192xbf16> to vector<64x192xbf16>
    %28 = arith.truncf %0 : vector<16x64xf32> to vector<16x64xbf16>
    %cst_11 = arith.constant dense<0.000000e+00> : vector<16x192xf32>
    %29 = tpu.matmul %28, %27, %cst_11 {dimension_numbers = #tpu.dot_dimension_numbers<[1], [0], [0], [1], [0, 0, 1, 1], [], []>} : vector<16x64xbf16>, vector<64x192xbf16>, vector<16x192xf32> -> vector<16x192xf32>
    %c0_12 = arith.constant 0 : index
    %c0_13 = arith.constant 0 : index
    %c0_14 = arith.constant 0 : index
    %30 = vector.load %arg5[%c0_12, %c0_13, %c0_14] : memref<2x1x192xf32, #tpu.memory_space<vmem>>, vector<1x1x192xf32>
    %31 = vector.shape_cast %30 : vector<1x1x192xf32> to vector<1x192xf32>
    %32 = vector.broadcast %31 : vector<1x192xf32> to vector<16x192xf32>
    %33 = arith.addf %29, %32 : vector<16x192xf32>
    %34 = vector.extract_strided_slice %33 {offsets = [0, 0], sizes = [16, 64], strides = [1, 1]} : vector<16x192xf32> to vector<16x64xf32>
    %cst_15 = arith.constant 1.250000e-01 : f32
    %35 = vector.broadcast %cst_15 : f32 to vector<16x64xf32>
    %36 = arith.mulf %34, %35 : vector<16x64xf32>
    %37 = vector.extract_strided_slice %33 {offsets = [0, 64], sizes = [16, 64], strides = [1, 1]} : vector<16x192xf32> to vector<16x64xf32>
    %38 = vector.extract_strided_slice %33 {offsets = [0, 128], sizes = [16, 64], strides = [1, 1]} : vector<16x192xf32> to vector<16x64xf32>
    %c0_16 = arith.constant 0 : index
    %c0_17 = arith.constant 0 : index
    %c0_18 = arith.constant 0 : index
    %39 = vector.load %arg6[%c0_16, %c0_17, %c0_18] : memref<2x64x64xbf16, #tpu.memory_space<vmem>>, vector<1x64x64xbf16>
    %40 = vector.shape_cast %39 : vector<1x64x64xbf16> to vector<64x64xbf16>
    %c0_19 = arith.constant 0 : index
    %c0_20 = arith.constant 0 : index
    %c0_21 = arith.constant 0 : index
    %41 = vector.load %arg7[%c0_19, %c0_20, %c0_21] : memref<2x1x64xf32, #tpu.memory_space<vmem>>, vector<1x1x64xf32>
    %42 = vector.shape_cast %41 : vector<1x1x64xf32> to vector<1x64xf32>
    %43 = vector.extract_strided_slice %36 {offsets = [0, 0], sizes = [8, 64], strides = [1, 1]} : vector<16x64xf32> to vector<8x64xf32>
    %44 = vector.extract_strided_slice %37 {offsets = [0, 0], sizes = [8, 64], strides = [1, 1]} : vector<16x64xf32> to vector<8x64xf32>
    %45 = vector.extract_strided_slice %38 {offsets = [0, 0], sizes = [8, 64], strides = [1, 1]} : vector<16x64xf32> to vector<8x64xf32>
    %46 = vector.extract_strided_slice %43 {offsets = [0, 0], sizes = [8, 16], strides = [1, 1]} : vector<8x64xf32> to vector<8x16xf32>
    %47 = arith.truncf %46 : vector<8x16xf32> to vector<8x16xbf16>
    %48 = vector.extract_strided_slice %44 {offsets = [0, 0], sizes = [8, 16], strides = [1, 1]} : vector<8x64xf32> to vector<8x16xf32>
    %49 = arith.truncf %48 : vector<8x16xf32> to vector<8x16xbf16>
    %50 = vector.extract_strided_slice %45 {offsets = [0, 0], sizes = [8, 16], strides = [1, 1]} : vector<8x64xf32> to vector<8x16xf32>
    %51 = arith.truncf %50 : vector<8x16xf32> to vector<8x16xbf16>
    %cst_22 = arith.constant dense<0.000000e+00> : vector<8x8xf32>
    %52 = tpu.matmul %47, %49, %cst_22 {dimension_numbers = #tpu.dot_dimension_numbers<[1], [1], [0], [0], [0, 0, 1, 0], [], []>} : vector<8x16xbf16>, vector<8x16xbf16>, vector<8x8xf32> -> vector<8x8xf32>
    %53 = arith.addf %52, %10 : vector<8x8xf32>
    %cst_23 = arith.constant dense<0xFF800000> : vector<8xf32>
    %54 = vector.multi_reduction <maximumf>, %53, %cst_23 [1] : vector<8x8xf32> to vector<8xf32>
    %55 = vector.shape_cast %54 : vector<8xf32> to vector<8x1xf32>
    %56 = vector.broadcast %55 : vector<8x1xf32> to vector<8x8xf32>
    %57 = arith.subf %53, %56 : vector<8x8xf32>
    %58 = math.exp %57 : vector<8x8xf32>
    %cst_24 = arith.constant dense<0.000000e+00> : vector<8xf32>
    %59 = vector.multi_reduction <add>, %58, %cst_24 [1] : vector<8x8xf32> to vector<8xf32>
    %60 = vector.shape_cast %59 : vector<8xf32> to vector<8x1xf32>
    %61 = tpu.reciprocal %60 {approx = true} : vector<8x1xf32> -> vector<8x1xf32>
    %62 = vector.broadcast %61 : vector<8x1xf32> to vector<8x8xf32>
    %63 = arith.mulf %58, %62 : vector<8x8xf32>
    %64 = arith.truncf %63 : vector<8x8xf32> to vector<8x8xbf16>
    %cst_25 = arith.constant dense<0.000000e+00> : vector<8x16xf32>
    %65 = tpu.matmul %64, %51, %cst_25 {dimension_numbers = #tpu.dot_dimension_numbers<[1], [0], [0], [1], [0, 0, 1, 1], [], []>} : vector<8x8xbf16>, vector<8x16xbf16>, vector<8x16xf32> -> vector<8x16xf32>
    %66 = arith.truncf %65 : vector<8x16xf32> to vector<8x16xbf16>
    %67 = vector.extract_strided_slice %40 {offsets = [0, 0], sizes = [16, 64], strides = [1, 1]} : vector<64x64xbf16> to vector<16x64xbf16>
    %cst_26 = arith.constant dense<0.000000e+00> : vector<8x64xf32>
    %68 = tpu.matmul %66, %67, %cst_26 {dimension_numbers = #tpu.dot_dimension_numbers<[1], [0], [0], [1], [0, 0, 1, 1], [], []>} : vector<8x16xbf16>, vector<16x64xbf16>, vector<8x64xf32> -> vector<8x64xf32>
    %69 = vector.extract_strided_slice %43 {offsets = [0, 16], sizes = [8, 16], strides = [1, 1]} : vector<8x64xf32> to vector<8x16xf32>
    %70 = arith.truncf %69 : vector<8x16xf32> to vector<8x16xbf16>
    %71 = vector.extract_strided_slice %44 {offsets = [0, 16], sizes = [8, 16], strides = [1, 1]} : vector<8x64xf32> to vector<8x16xf32>
    %72 = arith.truncf %71 : vector<8x16xf32> to vector<8x16xbf16>
    %73 = vector.extract_strided_slice %45 {offsets = [0, 16], sizes = [8, 16], strides = [1, 1]} : vector<8x64xf32> to vector<8x16xf32>
    %74 = arith.truncf %73 : vector<8x16xf32> to vector<8x16xbf16>
    %cst_27 = arith.constant dense<0.000000e+00> : vector<8x8xf32>
    %75 = tpu.matmul %70, %72, %cst_27 {dimension_numbers = #tpu.dot_dimension_numbers<[1], [1], [0], [0], [0, 0, 1, 0], [], []>} : vector<8x16xbf16>, vector<8x16xbf16>, vector<8x8xf32> -> vector<8x8xf32>
    %76 = arith.addf %75, %10 : vector<8x8xf32>
    %cst_28 = arith.constant dense<0xFF800000> : vector<8xf32>
    %77 = vector.multi_reduction <maximumf>, %76, %cst_28 [1] : vector<8x8xf32> to vector<8xf32>
    %78 = vector.shape_cast %77 : vector<8xf32> to vector<8x1xf32>
    %79 = vector.broadcast %78 : vector<8x1xf32> to vector<8x8xf32>
    %80 = arith.subf %76, %79 : vector<8x8xf32>
    %81 = math.exp %80 : vector<8x8xf32>
    %cst_29 = arith.constant dense<0.000000e+00> : vector<8xf32>
    %82 = vector.multi_reduction <add>, %81, %cst_29 [1] : vector<8x8xf32> to vector<8xf32>
    %83 = vector.shape_cast %82 : vector<8xf32> to vector<8x1xf32>
    %84 = tpu.reciprocal %83 {approx = true} : vector<8x1xf32> -> vector<8x1xf32>
    %85 = vector.broadcast %84 : vector<8x1xf32> to vector<8x8xf32>
    %86 = arith.mulf %81, %85 : vector<8x8xf32>
    %87 = arith.truncf %86 : vector<8x8xf32> to vector<8x8xbf16>
    %cst_30 = arith.constant dense<0.000000e+00> : vector<8x16xf32>
    %88 = tpu.matmul %87, %74, %cst_30 {dimension_numbers = #tpu.dot_dimension_numbers<[1], [0], [0], [1], [0, 0, 1, 1], [], []>} : vector<8x8xbf16>, vector<8x16xbf16>, vector<8x16xf32> -> vector<8x16xf32>
    %89 = arith.truncf %88 : vector<8x16xf32> to vector<8x16xbf16>
    %90 = vector.extract_strided_slice %40 {offsets = [16, 0], sizes = [16, 64], strides = [1, 1]} : vector<64x64xbf16> to vector<16x64xbf16>
    %cst_31 = arith.constant dense<0.000000e+00> : vector<8x64xf32>
    %91 = tpu.matmul %89, %90, %cst_31 {dimension_numbers = #tpu.dot_dimension_numbers<[1], [0], [0], [1], [0, 0, 1, 1], [], []>} : vector<8x16xbf16>, vector<16x64xbf16>, vector<8x64xf32> -> vector<8x64xf32>
    %92 = arith.addf %68, %91 : vector<8x64xf32>
    %93 = vector.extract_strided_slice %43 {offsets = [0, 32], sizes = [8, 16], strides = [1, 1]} : vector<8x64xf32> to vector<8x16xf32>
    %94 = arith.truncf %93 : vector<8x16xf32> to vector<8x16xbf16>
    %95 = vector.extract_strided_slice %44 {offsets = [0, 32], sizes = [8, 16], strides = [1, 1]} : vector<8x64xf32> to vector<8x16xf32>
    %96 = arith.truncf %95 : vector<8x16xf32> to vector<8x16xbf16>
    %97 = vector.extract_strided_slice %45 {offsets = [0, 32], sizes = [8, 16], strides = [1, 1]} : vector<8x64xf32> to vector<8x16xf32>
    %98 = arith.truncf %97 : vector<8x16xf32> to vector<8x16xbf16>
    %cst_32 = arith.constant dense<0.000000e+00> : vector<8x8xf32>
    %99 = tpu.matmul %94, %96, %cst_32 {dimension_numbers = #tpu.dot_dimension_numbers<[1], [1], [0], [0], [0, 0, 1, 0], [], []>} : vector<8x16xbf16>, vector<8x16xbf16>, vector<8x8xf32> -> vector<8x8xf32>
    %100 = arith.addf %99, %10 : vector<8x8xf32>
    %cst_33 = arith.constant dense<0xFF800000> : vector<8xf32>
    %101 = vector.multi_reduction <maximumf>, %100, %cst_33 [1] : vector<8x8xf32> to vector<8xf32>
    %102 = vector.shape_cast %101 : vector<8xf32> to vector<8x1xf32>
    %103 = vector.broadcast %102 : vector<8x1xf32> to vector<8x8xf32>
    %104 = arith.subf %100, %103 : vector<8x8xf32>
    %105 = math.exp %104 : vector<8x8xf32>
    %cst_34 = arith.constant dense<0.000000e+00> : vector<8xf32>
    %106 = vector.multi_reduction <add>, %105, %cst_34 [1] : vector<8x8xf32> to vector<8xf32>
    %107 = vector.shape_cast %106 : vector<8xf32> to vector<8x1xf32>
    %108 = tpu.reciprocal %107 {approx = true} : vector<8x1xf32> -> vector<8x1xf32>
    %109 = vector.broadcast %108 : vector<8x1xf32> to vector<8x8xf32>
    %110 = arith.mulf %105, %109 : vector<8x8xf32>
    %111 = arith.truncf %110 : vector<8x8xf32> to vector<8x8xbf16>
    %cst_35 = arith.constant dense<0.000000e+00> : vector<8x16xf32>
    %112 = tpu.matmul %111, %98, %cst_35 {dimension_numbers = #tpu.dot_dimension_numbers<[1], [0], [0], [1], [0, 0, 1, 1], [], []>} : vector<8x8xbf16>, vector<8x16xbf16>, vector<8x16xf32> -> vector<8x16xf32>
    %113 = arith.truncf %112 : vector<8x16xf32> to vector<8x16xbf16>
    %114 = vector.extract_strided_slice %40 {offsets = [32, 0], sizes = [16, 64], strides = [1, 1]} : vector<64x64xbf16> to vector<16x64xbf16>
    %cst_36 = arith.constant dense<0.000000e+00> : vector<8x64xf32>
    %115 = tpu.matmul %113, %114, %cst_36 {dimension_numbers = #tpu.dot_dimension_numbers<[1], [0], [0], [1], [0, 0, 1, 1], [], []>} : vector<8x16xbf16>, vector<16x64xbf16>, vector<8x64xf32> -> vector<8x64xf32>
    %116 = arith.addf %92, %115 : vector<8x64xf32>
    %117 = vector.extract_strided_slice %43 {offsets = [0, 48], sizes = [8, 16], strides = [1, 1]} : vector<8x64xf32> to vector<8x16xf32>
    %118 = arith.truncf %117 : vector<8x16xf32> to vector<8x16xbf16>
    %119 = vector.extract_strided_slice %44 {offsets = [0, 48], sizes = [8, 16], strides = [1, 1]} : vector<8x64xf32> to vector<8x16xf32>
    %120 = arith.truncf %119 : vector<8x16xf32> to vector<8x16xbf16>
    %121 = vector.extract_strided_slice %45 {offsets = [0, 48], sizes = [8, 16], strides = [1, 1]} : vector<8x64xf32> to vector<8x16xf32>
    %122 = arith.truncf %121 : vector<8x16xf32> to vector<8x16xbf16>
    %cst_37 = arith.constant dense<0.000000e+00> : vector<8x8xf32>
    %123 = tpu.matmul %118, %120, %cst_37 {dimension_numbers = #tpu.dot_dimension_numbers<[1], [1], [0], [0], [0, 0, 1, 0], [], []>} : vector<8x16xbf16>, vector<8x16xbf16>, vector<8x8xf32> -> vector<8x8xf32>
    %124 = arith.addf %123, %10 : vector<8x8xf32>
    %cst_38 = arith.constant dense<0xFF800000> : vector<8xf32>
    %125 = vector.multi_reduction <maximumf>, %124, %cst_38 [1] : vector<8x8xf32> to vector<8xf32>
    %126 = vector.shape_cast %125 : vector<8xf32> to vector<8x1xf32>
    %127 = vector.broadcast %126 : vector<8x1xf32> to vector<8x8xf32>
    %128 = arith.subf %124, %127 : vector<8x8xf32>
    %129 = math.exp %128 : vector<8x8xf32>
    %cst_39 = arith.constant dense<0.000000e+00> : vector<8xf32>
    %130 = vector.multi_reduction <add>, %129, %cst_39 [1] : vector<8x8xf32> to vector<8xf32>
    %131 = vector.shape_cast %130 : vector<8xf32> to vector<8x1xf32>
    %132 = tpu.reciprocal %131 {approx = true} : vector<8x1xf32> -> vector<8x1xf32>
    %133 = vector.broadcast %132 : vector<8x1xf32> to vector<8x8xf32>
    %134 = arith.mulf %129, %133 : vector<8x8xf32>
    %135 = arith.truncf %134 : vector<8x8xf32> to vector<8x8xbf16>
    %cst_40 = arith.constant dense<0.000000e+00> : vector<8x16xf32>
    %136 = tpu.matmul %135, %122, %cst_40 {dimension_numbers = #tpu.dot_dimension_numbers<[1], [0], [0], [1], [0, 0, 1, 1], [], []>} : vector<8x8xbf16>, vector<8x16xbf16>, vector<8x16xf32> -> vector<8x16xf32>
    %137 = arith.truncf %136 : vector<8x16xf32> to vector<8x16xbf16>
    %138 = vector.extract_strided_slice %40 {offsets = [48, 0], sizes = [16, 64], strides = [1, 1]} : vector<64x64xbf16> to vector<16x64xbf16>
    %cst_41 = arith.constant dense<0.000000e+00> : vector<8x64xf32>
    %139 = tpu.matmul %137, %138, %cst_41 {dimension_numbers = #tpu.dot_dimension_numbers<[1], [0], [0], [1], [0, 0, 1, 1], [], []>} : vector<8x16xbf16>, vector<16x64xbf16>, vector<8x64xf32> -> vector<8x64xf32>
    %140 = arith.addf %116, %139 : vector<8x64xf32>
    %141 = vector.broadcast %42 : vector<1x64xf32> to vector<8x64xf32>
    %142 = arith.addf %140, %141 : vector<8x64xf32>
    %143 = vector.extract_strided_slice %36 {offsets = [8, 0], sizes = [8, 64], strides = [1, 1]} : vector<16x64xf32> to vector<8x64xf32>
    %144 = vector.extract_strided_slice %37 {offsets = [8, 0], sizes = [8, 64], strides = [1, 1]} : vector<16x64xf32> to vector<8x64xf32>
    %145 = vector.extract_strided_slice %38 {offsets = [8, 0], sizes = [8, 64], strides = [1, 1]} : vector<16x64xf32> to vector<8x64xf32>
    %146 = vector.extract_strided_slice %143 {offsets = [0, 0], sizes = [8, 16], strides = [1, 1]} : vector<8x64xf32> to vector<8x16xf32>
    %147 = arith.truncf %146 : vector<8x16xf32> to vector<8x16xbf16>
    %148 = vector.extract_strided_slice %144 {offsets = [0, 0], sizes = [8, 16], strides = [1, 1]} : vector<8x64xf32> to vector<8x16xf32>
    %149 = arith.truncf %148 : vector<8x16xf32> to vector<8x16xbf16>
    %150 = vector.extract_strided_slice %145 {offsets = [0, 0], sizes = [8, 16], strides = [1, 1]} : vector<8x64xf32> to vector<8x16xf32>
    %151 = arith.truncf %150 : vector<8x16xf32> to vector<8x16xbf16>
    %cst_42 = arith.constant dense<0.000000e+00> : vector<8x8xf32>
    %152 = tpu.matmul %147, %149, %cst_42 {dimension_numbers = #tpu.dot_dimension_numbers<[1], [1], [0], [0], [0, 0, 1, 0], [], []>} : vector<8x16xbf16>, vector<8x16xbf16>, vector<8x8xf32> -> vector<8x8xf32>
    %153 = arith.addf %152, %13 : vector<8x8xf32>
    %cst_43 = arith.constant dense<0xFF800000> : vector<8xf32>
    %154 = vector.multi_reduction <maximumf>, %153, %cst_43 [1] : vector<8x8xf32> to vector<8xf32>
    %155 = vector.shape_cast %154 : vector<8xf32> to vector<8x1xf32>
    %156 = vector.broadcast %155 : vector<8x1xf32> to vector<8x8xf32>
    %157 = arith.subf %153, %156 : vector<8x8xf32>
    %158 = math.exp %157 : vector<8x8xf32>
    %cst_44 = arith.constant dense<0.000000e+00> : vector<8xf32>
    %159 = vector.multi_reduction <add>, %158, %cst_44 [1] : vector<8x8xf32> to vector<8xf32>
    %160 = vector.shape_cast %159 : vector<8xf32> to vector<8x1xf32>
    %161 = tpu.reciprocal %160 {approx = true} : vector<8x1xf32> -> vector<8x1xf32>
    %162 = vector.broadcast %161 : vector<8x1xf32> to vector<8x8xf32>
    %163 = arith.mulf %158, %162 : vector<8x8xf32>
    %164 = arith.truncf %163 : vector<8x8xf32> to vector<8x8xbf16>
    %cst_45 = arith.constant dense<0.000000e+00> : vector<8x16xf32>
    %165 = tpu.matmul %164, %151, %cst_45 {dimension_numbers = #tpu.dot_dimension_numbers<[1], [0], [0], [1], [0, 0, 1, 1], [], []>} : vector<8x8xbf16>, vector<8x16xbf16>, vector<8x16xf32> -> vector<8x16xf32>
    %166 = arith.truncf %165 : vector<8x16xf32> to vector<8x16xbf16>
    %167 = vector.extract_strided_slice %40 {offsets = [0, 0], sizes = [16, 64], strides = [1, 1]} : vector<64x64xbf16> to vector<16x64xbf16>
    %cst_46 = arith.constant dense<0.000000e+00> : vector<8x64xf32>
    %168 = tpu.matmul %166, %167, %cst_46 {dimension_numbers = #tpu.dot_dimension_numbers<[1], [0], [0], [1], [0, 0, 1, 1], [], []>} : vector<8x16xbf16>, vector<16x64xbf16>, vector<8x64xf32> -> vector<8x64xf32>
    %169 = vector.extract_strided_slice %143 {offsets = [0, 16], sizes = [8, 16], strides = [1, 1]} : vector<8x64xf32> to vector<8x16xf32>
    %170 = arith.truncf %169 : vector<8x16xf32> to vector<8x16xbf16>
    %171 = vector.extract_strided_slice %144 {offsets = [0, 16], sizes = [8, 16], strides = [1, 1]} : vector<8x64xf32> to vector<8x16xf32>
    %172 = arith.truncf %171 : vector<8x16xf32> to vector<8x16xbf16>
    %173 = vector.extract_strided_slice %145 {offsets = [0, 16], sizes = [8, 16], strides = [1, 1]} : vector<8x64xf32> to vector<8x16xf32>
    %174 = arith.truncf %173 : vector<8x16xf32> to vector<8x16xbf16>
    %cst_47 = arith.constant dense<0.000000e+00> : vector<8x8xf32>
    %175 = tpu.matmul %170, %172, %cst_47 {dimension_numbers = #tpu.dot_dimension_numbers<[1], [1], [0], [0], [0, 0, 1, 0], [], []>} : vector<8x16xbf16>, vector<8x16xbf16>, vector<8x8xf32> -> vector<8x8xf32>
    %176 = arith.addf %175, %13 : vector<8x8xf32>
    %cst_48 = arith.constant dense<0xFF800000> : vector<8xf32>
    %177 = vector.multi_reduction <maximumf>, %176, %cst_48 [1] : vector<8x8xf32> to vector<8xf32>
    %178 = vector.shape_cast %177 : vector<8xf32> to vector<8x1xf32>
    %179 = vector.broadcast %178 : vector<8x1xf32> to vector<8x8xf32>
    %180 = arith.subf %176, %179 : vector<8x8xf32>
    %181 = math.exp %180 : vector<8x8xf32>
    %cst_49 = arith.constant dense<0.000000e+00> : vector<8xf32>
    %182 = vector.multi_reduction <add>, %181, %cst_49 [1] : vector<8x8xf32> to vector<8xf32>
    %183 = vector.shape_cast %182 : vector<8xf32> to vector<8x1xf32>
    %184 = tpu.reciprocal %183 {approx = true} : vector<8x1xf32> -> vector<8x1xf32>
    %185 = vector.broadcast %184 : vector<8x1xf32> to vector<8x8xf32>
    %186 = arith.mulf %181, %185 : vector<8x8xf32>
    %187 = arith.truncf %186 : vector<8x8xf32> to vector<8x8xbf16>
    %cst_50 = arith.constant dense<0.000000e+00> : vector<8x16xf32>
    %188 = tpu.matmul %187, %174, %cst_50 {dimension_numbers = #tpu.dot_dimension_numbers<[1], [0], [0], [1], [0, 0, 1, 1], [], []>} : vector<8x8xbf16>, vector<8x16xbf16>, vector<8x16xf32> -> vector<8x16xf32>
    %189 = arith.truncf %188 : vector<8x16xf32> to vector<8x16xbf16>
    %190 = vector.extract_strided_slice %40 {offsets = [16, 0], sizes = [16, 64], strides = [1, 1]} : vector<64x64xbf16> to vector<16x64xbf16>
    %cst_51 = arith.constant dense<0.000000e+00> : vector<8x64xf32>
    %191 = tpu.matmul %189, %190, %cst_51 {dimension_numbers = #tpu.dot_dimension_numbers<[1], [0], [0], [1], [0, 0, 1, 1], [], []>} : vector<8x16xbf16>, vector<16x64xbf16>, vector<8x64xf32> -> vector<8x64xf32>
    %192 = arith.addf %168, %191 : vector<8x64xf32>
    %193 = vector.extract_strided_slice %143 {offsets = [0, 32], sizes = [8, 16], strides = [1, 1]} : vector<8x64xf32> to vector<8x16xf32>
    %194 = arith.truncf %193 : vector<8x16xf32> to vector<8x16xbf16>
    %195 = vector.extract_strided_slice %144 {offsets = [0, 32], sizes = [8, 16], strides = [1, 1]} : vector<8x64xf32> to vector<8x16xf32>
    %196 = arith.truncf %195 : vector<8x16xf32> to vector<8x16xbf16>
    %197 = vector.extract_strided_slice %145 {offsets = [0, 32], sizes = [8, 16], strides = [1, 1]} : vector<8x64xf32> to vector<8x16xf32>
    %198 = arith.truncf %197 : vector<8x16xf32> to vector<8x16xbf16>
    %cst_52 = arith.constant dense<0.000000e+00> : vector<8x8xf32>
    %199 = tpu.matmul %194, %196, %cst_52 {dimension_numbers = #tpu.dot_dimension_numbers<[1], [1], [0], [0], [0, 0, 1, 0], [], []>} : vector<8x16xbf16>, vector<8x16xbf16>, vector<8x8xf32> -> vector<8x8xf32>
    %200 = arith.addf %199, %13 : vector<8x8xf32>
    %cst_53 = arith.constant dense<0xFF800000> : vector<8xf32>
    %201 = vector.multi_reduction <maximumf>, %200, %cst_53 [1] : vector<8x8xf32> to vector<8xf32>
    %202 = vector.shape_cast %201 : vector<8xf32> to vector<8x1xf32>
    %203 = vector.broadcast %202 : vector<8x1xf32> to vector<8x8xf32>
    %204 = arith.subf %200, %203 : vector<8x8xf32>
    %205 = math.exp %204 : vector<8x8xf32>
    %cst_54 = arith.constant dense<0.000000e+00> : vector<8xf32>
    %206 = vector.multi_reduction <add>, %205, %cst_54 [1] : vector<8x8xf32> to vector<8xf32>
    %207 = vector.shape_cast %206 : vector<8xf32> to vector<8x1xf32>
    %208 = tpu.reciprocal %207 {approx = true} : vector<8x1xf32> -> vector<8x1xf32>
    %209 = vector.broadcast %208 : vector<8x1xf32> to vector<8x8xf32>
    %210 = arith.mulf %205, %209 : vector<8x8xf32>
    %211 = arith.truncf %210 : vector<8x8xf32> to vector<8x8xbf16>
    %cst_55 = arith.constant dense<0.000000e+00> : vector<8x16xf32>
    %212 = tpu.matmul %211, %198, %cst_55 {dimension_numbers = #tpu.dot_dimension_numbers<[1], [0], [0], [1], [0, 0, 1, 1], [], []>} : vector<8x8xbf16>, vector<8x16xbf16>, vector<8x16xf32> -> vector<8x16xf32>
    %213 = arith.truncf %212 : vector<8x16xf32> to vector<8x16xbf16>
    %214 = vector.extract_strided_slice %40 {offsets = [32, 0], sizes = [16, 64], strides = [1, 1]} : vector<64x64xbf16> to vector<16x64xbf16>
    %cst_56 = arith.constant dense<0.000000e+00> : vector<8x64xf32>
    %215 = tpu.matmul %213, %214, %cst_56 {dimension_numbers = #tpu.dot_dimension_numbers<[1], [0], [0], [1], [0, 0, 1, 1], [], []>} : vector<8x16xbf16>, vector<16x64xbf16>, vector<8x64xf32> -> vector<8x64xf32>
    %216 = arith.addf %192, %215 : vector<8x64xf32>
    %217 = vector.extract_strided_slice %143 {offsets = [0, 48], sizes = [8, 16], strides = [1, 1]} : vector<8x64xf32> to vector<8x16xf32>
    %218 = arith.truncf %217 : vector<8x16xf32> to vector<8x16xbf16>
    %219 = vector.extract_strided_slice %144 {offsets = [0, 48], sizes = [8, 16], strides = [1, 1]} : vector<8x64xf32> to vector<8x16xf32>
    %220 = arith.truncf %219 : vector<8x16xf32> to vector<8x16xbf16>
    %221 = vector.extract_strided_slice %145 {offsets = [0, 48], sizes = [8, 16], strides = [1, 1]} : vector<8x64xf32> to vector<8x16xf32>
    %222 = arith.truncf %221 : vector<8x16xf32> to vector<8x16xbf16>
    %cst_57 = arith.constant dense<0.000000e+00> : vector<8x8xf32>
    %223 = tpu.matmul %218, %220, %cst_57 {dimension_numbers = #tpu.dot_dimension_numbers<[1], [1], [0], [0], [0, 0, 1, 0], [], []>} : vector<8x16xbf16>, vector<8x16xbf16>, vector<8x8xf32> -> vector<8x8xf32>
    %224 = arith.addf %223, %13 : vector<8x8xf32>
    %cst_58 = arith.constant dense<0xFF800000> : vector<8xf32>
    %225 = vector.multi_reduction <maximumf>, %224, %cst_58 [1] : vector<8x8xf32> to vector<8xf32>
    %226 = vector.shape_cast %225 : vector<8xf32> to vector<8x1xf32>
    %227 = vector.broadcast %226 : vector<8x1xf32> to vector<8x8xf32>
    %228 = arith.subf %224, %227 : vector<8x8xf32>
    %229 = math.exp %228 : vector<8x8xf32>
    %cst_59 = arith.constant dense<0.000000e+00> : vector<8xf32>
    %230 = vector.multi_reduction <add>, %229, %cst_59 [1] : vector<8x8xf32> to vector<8xf32>
    %231 = vector.shape_cast %230 : vector<8xf32> to vector<8x1xf32>
    %232 = tpu.reciprocal %231 {approx = true} : vector<8x1xf32> -> vector<8x1xf32>
    %233 = vector.broadcast %232 : vector<8x1xf32> to vector<8x8xf32>
    %234 = arith.mulf %229, %233 : vector<8x8xf32>
    %235 = arith.truncf %234 : vector<8x8xf32> to vector<8x8xbf16>
    %cst_60 = arith.constant dense<0.000000e+00> : vector<8x16xf32>
    %236 = tpu.matmul %235, %222, %cst_60 {dimension_numbers = #tpu.dot_dimension_numbers<[1], [0], [0], [1], [0, 0, 1, 1], [], []>} : vector<8x8xbf16>, vector<8x16xbf16>, vector<8x16xf32> -> vector<8x16xf32>
    %237 = arith.truncf %236 : vector<8x16xf32> to vector<8x16xbf16>
    %238 = vector.extract_strided_slice %40 {offsets = [48, 0], sizes = [16, 64], strides = [1, 1]} : vector<64x64xbf16> to vector<16x64xbf16>
    %cst_61 = arith.constant dense<0.000000e+00> : vector<8x64xf32>
    %239 = tpu.matmul %237, %238, %cst_61 {dimension_numbers = #tpu.dot_dimension_numbers<[1], [0], [0], [1], [0, 0, 1, 1], [], []>} : vector<8x16xbf16>, vector<16x64xbf16>, vector<8x64xf32> -> vector<8x64xf32>
    %240 = arith.addf %216, %239 : vector<8x64xf32>
    %241 = vector.broadcast %42 : vector<1x64xf32> to vector<8x64xf32>
    %242 = arith.addf %240, %241 : vector<8x64xf32>
    %243 = tpu.concatenate %142, %242 in 0 : vector<8x64xf32>, vector<8x64xf32> -> vector<16x64xf32>
    %c0_62 = arith.constant 0 : index
    %c0_63 = arith.constant 0 : index
    %c0_64 = arith.constant 0 : index
    %244 = vector.load %arg8[%c0_62, %c0_63, %c0_64] : memref<2x1x64xf32, #tpu.memory_space<vmem>>, vector<1x1x64xf32>
    %245 = vector.shape_cast %244 : vector<1x1x64xf32> to vector<1x64xf32>
    %c0_65 = arith.constant 0 : index
    %c0_66 = arith.constant 0 : index
    %c0_67 = arith.constant 0 : index
    %246 = vector.load %arg9[%c0_65, %c0_66, %c0_67] : memref<2x1x64xf32, #tpu.memory_space<vmem>>, vector<1x1x64xf32>
    %247 = vector.shape_cast %246 : vector<1x1x64xf32> to vector<1x64xf32>
    %c0_68 = arith.constant 0 : index
    %c0_69 = arith.constant 0 : index
    %c0_70 = arith.constant 0 : index
    %248 = vector.load %arg10[%c0_68, %c0_69, %c0_70] : memref<2x64x256xbf16, #tpu.memory_space<vmem>>, vector<1x64x256xbf16>
    %249 = vector.shape_cast %248 : vector<1x64x256xbf16> to vector<64x256xbf16>
    %c0_71 = arith.constant 0 : index
    %c0_72 = arith.constant 0 : index
    %c0_73 = arith.constant 0 : index
    %250 = vector.load %arg11[%c0_71, %c0_72, %c0_73] : memref<2x1x256xf32, #tpu.memory_space<vmem>>, vector<1x1x256xf32>
    %251 = vector.shape_cast %250 : vector<1x1x256xf32> to vector<1x256xf32>
    %c0_74 = arith.constant 0 : index
    %c0_75 = arith.constant 0 : index
    %c0_76 = arith.constant 0 : index
    %252 = vector.load %arg12[%c0_74, %c0_75, %c0_76] : memref<2x256x64xbf16, #tpu.memory_space<vmem>>, vector<1x256x64xbf16>
    %253 = vector.shape_cast %252 : vector<1x256x64xbf16> to vector<256x64xbf16>
    %c0_77 = arith.constant 0 : index
    %c0_78 = arith.constant 0 : index
    %c0_79 = arith.constant 0 : index
    %254 = vector.load %arg13[%c0_77, %c0_78, %c0_79] : memref<2x1x64xf32, #tpu.memory_space<vmem>>, vector<1x1x64xf32>
    %255 = vector.shape_cast %254 : vector<1x1x64xf32> to vector<1x64xf32>
    %c0_80 = arith.constant 0 : index
    %c0_81 = arith.constant 0 : index
    %c0_82 = arith.constant 0 : index
    %256 = vector.load %arg14[%c0_80, %c0_81, %c0_82] : memref<2x1x64xf32, #tpu.memory_space<vmem>>, vector<1x1x64xf32>
    %257 = vector.shape_cast %256 : vector<1x1x64xf32> to vector<1x64xf32>
    %c0_83 = arith.constant 0 : index
    %c0_84 = arith.constant 0 : index
    %c0_85 = arith.constant 0 : index
    %258 = vector.load %arg15[%c0_83, %c0_84, %c0_85] : memref<2x1x64xf32, #tpu.memory_space<vmem>>, vector<1x1x64xf32>
    %259 = vector.shape_cast %258 : vector<1x1x64xf32> to vector<1x64xf32>
    %260 = arith.addf %243, %0 : vector<16x64xf32>
    %cst_86 = arith.constant dense<0.000000e+00> : vector<16xf32>
    %261 = vector.multi_reduction <add>, %260, %cst_86 [1] : vector<16x64xf32> to vector<16xf32>
    %262 = vector.shape_cast %261 : vector<16xf32> to vector<16x1xf32>
    %cst_87 = arith.constant 6.400000e+01 : f32
    %263 = vector.broadcast %cst_87 : f32 to vector<16x1xf32>
    %264 = arith.divf %262, %263 : vector<16x1xf32>
    %265 = vector.broadcast %264 : vector<16x1xf32> to vector<16x64xf32>
    %266 = arith.subf %260, %265 : vector<16x64xf32>
    %267 = arith.mulf %266, %266 : vector<16x64xf32>
    %cst_88 = arith.constant dense<0.000000e+00> : vector<16xf32>
    %268 = vector.multi_reduction <add>, %267, %cst_88 [1] : vector<16x64xf32> to vector<16xf32>
    %269 = vector.shape_cast %268 : vector<16xf32> to vector<16x1xf32>
    %cst_89 = arith.constant 6.400000e+01 : f32
    %270 = vector.broadcast %cst_89 : f32 to vector<16x1xf32>
    %271 = arith.divf %269, %270 : vector<16x1xf32>
    %272 = vector.broadcast %264 : vector<16x1xf32> to vector<16x64xf32>
    %273 = arith.subf %260, %272 : vector<16x64xf32>
    %cst_90 = arith.constant 9.99999974E-6 : f32
    %274 = vector.broadcast %cst_90 : f32 to vector<16x1xf32>
    %275 = arith.addf %271, %274 : vector<16x1xf32>
    %276 = math.rsqrt %275 : vector<16x1xf32>
    %277 = vector.broadcast %276 : vector<16x1xf32> to vector<16x64xf32>
    %278 = arith.mulf %273, %277 : vector<16x64xf32>
    %279 = vector.broadcast %245 : vector<1x64xf32> to vector<16x64xf32>
    %280 = arith.mulf %278, %279 : vector<16x64xf32>
    %281 = vector.broadcast %247 : vector<1x64xf32> to vector<16x64xf32>
    %282 = arith.addf %280, %281 : vector<16x64xf32>
    %283 = arith.truncf %282 : vector<16x64xf32> to vector<16x64xbf16>
    %cst_91 = arith.constant dense<0.000000e+00> : vector<16x256xf32>
    %284 = tpu.matmul %283, %249, %cst_91 {dimension_numbers = #tpu.dot_dimension_numbers<[1], [0], [0], [1], [0, 0, 1, 1], [], []>} : vector<16x64xbf16>, vector<64x256xbf16>, vector<16x256xf32> -> vector<16x256xf32>
    %285 = vector.broadcast %251 : vector<1x256xf32> to vector<16x256xf32>
    %286 = arith.addf %284, %285 : vector<16x256xf32>
    %cst_92 = arith.constant 0.000000e+00 : f32
    %287 = vector.broadcast %cst_92 : f32 to vector<16x256xf32>
    %288 = arith.maximumf %286, %287 : vector<16x256xf32>
    %289 = arith.truncf %288 : vector<16x256xf32> to vector<16x256xbf16>
    %cst_93 = arith.constant dense<0.000000e+00> : vector<16x64xf32>
    %290 = tpu.matmul %289, %253, %cst_93 {dimension_numbers = #tpu.dot_dimension_numbers<[1], [0], [0], [1], [0, 0, 1, 1], [], []>} : vector<16x256xbf16>, vector<256x64xbf16>, vector<16x64xf32> -> vector<16x64xf32>
    %291 = vector.broadcast %255 : vector<1x64xf32> to vector<16x64xf32>
    %292 = arith.addf %290, %291 : vector<16x64xf32>
    %293 = arith.addf %292, %282 : vector<16x64xf32>
    %cst_94 = arith.constant dense<0.000000e+00> : vector<16xf32>
    %294 = vector.multi_reduction <add>, %293, %cst_94 [1] : vector<16x64xf32> to vector<16xf32>
    %295 = vector.shape_cast %294 : vector<16xf32> to vector<16x1xf32>
    %cst_95 = arith.constant 6.400000e+01 : f32
    %296 = vector.broadcast %cst_95 : f32 to vector<16x1xf32>
    %297 = arith.divf %295, %296 : vector<16x1xf32>
    %298 = vector.broadcast %297 : vector<16x1xf32> to vector<16x64xf32>
    %299 = arith.subf %293, %298 : vector<16x64xf32>
    %300 = arith.mulf %299, %299 : vector<16x64xf32>
    %cst_96 = arith.constant dense<0.000000e+00> : vector<16xf32>
    %301 = vector.multi_reduction <add>, %300, %cst_96 [1] : vector<16x64xf32> to vector<16xf32>
    %302 = vector.shape_cast %301 : vector<16xf32> to vector<16x1xf32>
    %cst_97 = arith.constant 6.400000e+01 : f32
    %303 = vector.broadcast %cst_97 : f32 to vector<16x1xf32>
    %304 = arith.divf %302, %303 : vector<16x1xf32>
    %305 = vector.broadcast %297 : vector<16x1xf32> to vector<16x64xf32>
    %306 = arith.subf %293, %305 : vector<16x64xf32>
    %cst_98 = arith.constant 9.99999974E-6 : f32
    %307 = vector.broadcast %cst_98 : f32 to vector<16x1xf32>
    %308 = arith.addf %304, %307 : vector<16x1xf32>
    %309 = math.rsqrt %308 : vector<16x1xf32>
    %310 = vector.broadcast %309 : vector<16x1xf32> to vector<16x64xf32>
    %311 = arith.mulf %306, %310 : vector<16x64xf32>
    %312 = vector.broadcast %257 : vector<1x64xf32> to vector<16x64xf32>
    %313 = arith.mulf %311, %312 : vector<16x64xf32>
    %314 = vector.broadcast %259 : vector<1x64xf32> to vector<16x64xf32>
    %315 = arith.addf %313, %314 : vector<16x64xf32>
    %c1 = arith.constant 1 : index
    %c0_99 = arith.constant 0 : index
    %c0_100 = arith.constant 0 : index
    %316 = vector.load %arg4[%c1, %c0_99, %c0_100] : memref<2x64x192xbf16, #tpu.memory_space<vmem>>, vector<1x64x192xbf16>
    %317 = vector.shape_cast %316 : vector<1x64x192xbf16> to vector<64x192xbf16>
    %318 = arith.truncf %315 : vector<16x64xf32> to vector<16x64xbf16>
    %cst_101 = arith.constant dense<0.000000e+00> : vector<16x192xf32>
    %319 = tpu.matmul %318, %317, %cst_101 {dimension_numbers = #tpu.dot_dimension_numbers<[1], [0], [0], [1], [0, 0, 1, 1], [], []>} : vector<16x64xbf16>, vector<64x192xbf16>, vector<16x192xf32> -> vector<16x192xf32>
    %c1_102 = arith.constant 1 : index
    %c0_103 = arith.constant 0 : index
    %c0_104 = arith.constant 0 : index
    %320 = vector.load %arg5[%c1_102, %c0_103, %c0_104] : memref<2x1x192xf32, #tpu.memory_space<vmem>>, vector<1x1x192xf32>
    %321 = vector.shape_cast %320 : vector<1x1x192xf32> to vector<1x192xf32>
    %322 = vector.broadcast %321 : vector<1x192xf32> to vector<16x192xf32>
    %323 = arith.addf %319, %322 : vector<16x192xf32>
    %324 = vector.extract_strided_slice %323 {offsets = [0, 0], sizes = [16, 64], strides = [1, 1]} : vector<16x192xf32> to vector<16x64xf32>
    %cst_105 = arith.constant 1.250000e-01 : f32
    %325 = vector.broadcast %cst_105 : f32 to vector<16x64xf32>
    %326 = arith.mulf %324, %325 : vector<16x64xf32>
    %327 = vector.extract_strided_slice %323 {offsets = [0, 64], sizes = [16, 64], strides = [1, 1]} : vector<16x192xf32> to vector<16x64xf32>
    %328 = vector.extract_strided_slice %323 {offsets = [0, 128], sizes = [16, 64], strides = [1, 1]} : vector<16x192xf32> to vector<16x64xf32>
    %c1_106 = arith.constant 1 : index
    %c0_107 = arith.constant 0 : index
    %c0_108 = arith.constant 0 : index
    %329 = vector.load %arg6[%c1_106, %c0_107, %c0_108] : memref<2x64x64xbf16, #tpu.memory_space<vmem>>, vector<1x64x64xbf16>
    %330 = vector.shape_cast %329 : vector<1x64x64xbf16> to vector<64x64xbf16>
    %c1_109 = arith.constant 1 : index
    %c0_110 = arith.constant 0 : index
    %c0_111 = arith.constant 0 : index
    %331 = vector.load %arg7[%c1_109, %c0_110, %c0_111] : memref<2x1x64xf32, #tpu.memory_space<vmem>>, vector<1x1x64xf32>
    %332 = vector.shape_cast %331 : vector<1x1x64xf32> to vector<1x64xf32>
    %333 = vector.extract_strided_slice %326 {offsets = [0, 0], sizes = [8, 64], strides = [1, 1]} : vector<16x64xf32> to vector<8x64xf32>
    %334 = vector.extract_strided_slice %327 {offsets = [0, 0], sizes = [8, 64], strides = [1, 1]} : vector<16x64xf32> to vector<8x64xf32>
    %335 = vector.extract_strided_slice %328 {offsets = [0, 0], sizes = [8, 64], strides = [1, 1]} : vector<16x64xf32> to vector<8x64xf32>
    %336 = vector.extract_strided_slice %333 {offsets = [0, 0], sizes = [8, 16], strides = [1, 1]} : vector<8x64xf32> to vector<8x16xf32>
    %337 = arith.truncf %336 : vector<8x16xf32> to vector<8x16xbf16>
    %338 = vector.extract_strided_slice %334 {offsets = [0, 0], sizes = [8, 16], strides = [1, 1]} : vector<8x64xf32> to vector<8x16xf32>
    %339 = arith.truncf %338 : vector<8x16xf32> to vector<8x16xbf16>
    %340 = vector.extract_strided_slice %335 {offsets = [0, 0], sizes = [8, 16], strides = [1, 1]} : vector<8x64xf32> to vector<8x16xf32>
    %341 = arith.truncf %340 : vector<8x16xf32> to vector<8x16xbf16>
    %cst_112 = arith.constant dense<0.000000e+00> : vector<8x8xf32>
    %342 = tpu.matmul %337, %339, %cst_112 {dimension_numbers = #tpu.dot_dimension_numbers<[1], [1], [0], [0], [0, 0, 1, 0], [], []>} : vector<8x16xbf16>, vector<8x16xbf16>, vector<8x8xf32> -> vector<8x8xf32>
    %343 = arith.addf %342, %10 : vector<8x8xf32>
    %cst_113 = arith.constant dense<0xFF800000> : vector<8xf32>
    %344 = vector.multi_reduction <maximumf>, %343, %cst_113 [1] : vector<8x8xf32> to vector<8xf32>
    %345 = vector.shape_cast %344 : vector<8xf32> to vector<8x1xf32>
    %346 = vector.broadcast %345 : vector<8x1xf32> to vector<8x8xf32>
    %347 = arith.subf %343, %346 : vector<8x8xf32>
    %348 = math.exp %347 : vector<8x8xf32>
    %cst_114 = arith.constant dense<0.000000e+00> : vector<8xf32>
    %349 = vector.multi_reduction <add>, %348, %cst_114 [1] : vector<8x8xf32> to vector<8xf32>
    %350 = vector.shape_cast %349 : vector<8xf32> to vector<8x1xf32>
    %351 = tpu.reciprocal %350 {approx = true} : vector<8x1xf32> -> vector<8x1xf32>
    %352 = vector.broadcast %351 : vector<8x1xf32> to vector<8x8xf32>
    %353 = arith.mulf %348, %352 : vector<8x8xf32>
    %354 = arith.truncf %353 : vector<8x8xf32> to vector<8x8xbf16>
    %cst_115 = arith.constant dense<0.000000e+00> : vector<8x16xf32>
    %355 = tpu.matmul %354, %341, %cst_115 {dimension_numbers = #tpu.dot_dimension_numbers<[1], [0], [0], [1], [0, 0, 1, 1], [], []>} : vector<8x8xbf16>, vector<8x16xbf16>, vector<8x16xf32> -> vector<8x16xf32>
    %356 = arith.truncf %355 : vector<8x16xf32> to vector<8x16xbf16>
    %357 = vector.extract_strided_slice %330 {offsets = [0, 0], sizes = [16, 64], strides = [1, 1]} : vector<64x64xbf16> to vector<16x64xbf16>
    %cst_116 = arith.constant dense<0.000000e+00> : vector<8x64xf32>
    %358 = tpu.matmul %356, %357, %cst_116 {dimension_numbers = #tpu.dot_dimension_numbers<[1], [0], [0], [1], [0, 0, 1, 1], [], []>} : vector<8x16xbf16>, vector<16x64xbf16>, vector<8x64xf32> -> vector<8x64xf32>
    %359 = vector.extract_strided_slice %333 {offsets = [0, 16], sizes = [8, 16], strides = [1, 1]} : vector<8x64xf32> to vector<8x16xf32>
    %360 = arith.truncf %359 : vector<8x16xf32> to vector<8x16xbf16>
    %361 = vector.extract_strided_slice %334 {offsets = [0, 16], sizes = [8, 16], strides = [1, 1]} : vector<8x64xf32> to vector<8x16xf32>
    %362 = arith.truncf %361 : vector<8x16xf32> to vector<8x16xbf16>
    %363 = vector.extract_strided_slice %335 {offsets = [0, 16], sizes = [8, 16], strides = [1, 1]} : vector<8x64xf32> to vector<8x16xf32>
    %364 = arith.truncf %363 : vector<8x16xf32> to vector<8x16xbf16>
    %cst_117 = arith.constant dense<0.000000e+00> : vector<8x8xf32>
    %365 = tpu.matmul %360, %362, %cst_117 {dimension_numbers = #tpu.dot_dimension_numbers<[1], [1], [0], [0], [0, 0, 1, 0], [], []>} : vector<8x16xbf16>, vector<8x16xbf16>, vector<8x8xf32> -> vector<8x8xf32>
    %366 = arith.addf %365, %10 : vector<8x8xf32>
    %cst_118 = arith.constant dense<0xFF800000> : vector<8xf32>
    %367 = vector.multi_reduction <maximumf>, %366, %cst_118 [1] : vector<8x8xf32> to vector<8xf32>
    %368 = vector.shape_cast %367 : vector<8xf32> to vector<8x1xf32>
    %369 = vector.broadcast %368 : vector<8x1xf32> to vector<8x8xf32>
    %370 = arith.subf %366, %369 : vector<8x8xf32>
    %371 = math.exp %370 : vector<8x8xf32>
    %cst_119 = arith.constant dense<0.000000e+00> : vector<8xf32>
    %372 = vector.multi_reduction <add>, %371, %cst_119 [1] : vector<8x8xf32> to vector<8xf32>
    %373 = vector.shape_cast %372 : vector<8xf32> to vector<8x1xf32>
    %374 = tpu.reciprocal %373 {approx = true} : vector<8x1xf32> -> vector<8x1xf32>
    %375 = vector.broadcast %374 : vector<8x1xf32> to vector<8x8xf32>
    %376 = arith.mulf %371, %375 : vector<8x8xf32>
    %377 = arith.truncf %376 : vector<8x8xf32> to vector<8x8xbf16>
    %cst_120 = arith.constant dense<0.000000e+00> : vector<8x16xf32>
    %378 = tpu.matmul %377, %364, %cst_120 {dimension_numbers = #tpu.dot_dimension_numbers<[1], [0], [0], [1], [0, 0, 1, 1], [], []>} : vector<8x8xbf16>, vector<8x16xbf16>, vector<8x16xf32> -> vector<8x16xf32>
    %379 = arith.truncf %378 : vector<8x16xf32> to vector<8x16xbf16>
    %380 = vector.extract_strided_slice %330 {offsets = [16, 0], sizes = [16, 64], strides = [1, 1]} : vector<64x64xbf16> to vector<16x64xbf16>
    %cst_121 = arith.constant dense<0.000000e+00> : vector<8x64xf32>
    %381 = tpu.matmul %379, %380, %cst_121 {dimension_numbers = #tpu.dot_dimension_numbers<[1], [0], [0], [1], [0, 0, 1, 1], [], []>} : vector<8x16xbf16>, vector<16x64xbf16>, vector<8x64xf32> -> vector<8x64xf32>
    %382 = arith.addf %358, %381 : vector<8x64xf32>
    %383 = vector.extract_strided_slice %333 {offsets = [0, 32], sizes = [8, 16], strides = [1, 1]} : vector<8x64xf32> to vector<8x16xf32>
    %384 = arith.truncf %383 : vector<8x16xf32> to vector<8x16xbf16>
    %385 = vector.extract_strided_slice %334 {offsets = [0, 32], sizes = [8, 16], strides = [1, 1]} : vector<8x64xf32> to vector<8x16xf32>
    %386 = arith.truncf %385 : vector<8x16xf32> to vector<8x16xbf16>
    %387 = vector.extract_strided_slice %335 {offsets = [0, 32], sizes = [8, 16], strides = [1, 1]} : vector<8x64xf32> to vector<8x16xf32>
    %388 = arith.truncf %387 : vector<8x16xf32> to vector<8x16xbf16>
    %cst_122 = arith.constant dense<0.000000e+00> : vector<8x8xf32>
    %389 = tpu.matmul %384, %386, %cst_122 {dimension_numbers = #tpu.dot_dimension_numbers<[1], [1], [0], [0], [0, 0, 1, 0], [], []>} : vector<8x16xbf16>, vector<8x16xbf16>, vector<8x8xf32> -> vector<8x8xf32>
    %390 = arith.addf %389, %10 : vector<8x8xf32>
    %cst_123 = arith.constant dense<0xFF800000> : vector<8xf32>
    %391 = vector.multi_reduction <maximumf>, %390, %cst_123 [1] : vector<8x8xf32> to vector<8xf32>
    %392 = vector.shape_cast %391 : vector<8xf32> to vector<8x1xf32>
    %393 = vector.broadcast %392 : vector<8x1xf32> to vector<8x8xf32>
    %394 = arith.subf %390, %393 : vector<8x8xf32>
    %395 = math.exp %394 : vector<8x8xf32>
    %cst_124 = arith.constant dense<0.000000e+00> : vector<8xf32>
    %396 = vector.multi_reduction <add>, %395, %cst_124 [1] : vector<8x8xf32> to vector<8xf32>
    %397 = vector.shape_cast %396 : vector<8xf32> to vector<8x1xf32>
    %398 = tpu.reciprocal %397 {approx = true} : vector<8x1xf32> -> vector<8x1xf32>
    %399 = vector.broadcast %398 : vector<8x1xf32> to vector<8x8xf32>
    %400 = arith.mulf %395, %399 : vector<8x8xf32>
    %401 = arith.truncf %400 : vector<8x8xf32> to vector<8x8xbf16>
    %cst_125 = arith.constant dense<0.000000e+00> : vector<8x16xf32>
    %402 = tpu.matmul %401, %388, %cst_125 {dimension_numbers = #tpu.dot_dimension_numbers<[1], [0], [0], [1], [0, 0, 1, 1], [], []>} : vector<8x8xbf16>, vector<8x16xbf16>, vector<8x16xf32> -> vector<8x16xf32>
    %403 = arith.truncf %402 : vector<8x16xf32> to vector<8x16xbf16>
    %404 = vector.extract_strided_slice %330 {offsets = [32, 0], sizes = [16, 64], strides = [1, 1]} : vector<64x64xbf16> to vector<16x64xbf16>
    %cst_126 = arith.constant dense<0.000000e+00> : vector<8x64xf32>
    %405 = tpu.matmul %403, %404, %cst_126 {dimension_numbers = #tpu.dot_dimension_numbers<[1], [0], [0], [1], [0, 0, 1, 1], [], []>} : vector<8x16xbf16>, vector<16x64xbf16>, vector<8x64xf32> -> vector<8x64xf32>
    %406 = arith.addf %382, %405 : vector<8x64xf32>
    %407 = vector.extract_strided_slice %333 {offsets = [0, 48], sizes = [8, 16], strides = [1, 1]} : vector<8x64xf32> to vector<8x16xf32>
    %408 = arith.truncf %407 : vector<8x16xf32> to vector<8x16xbf16>
    %409 = vector.extract_strided_slice %334 {offsets = [0, 48], sizes = [8, 16], strides = [1, 1]} : vector<8x64xf32> to vector<8x16xf32>
    %410 = arith.truncf %409 : vector<8x16xf32> to vector<8x16xbf16>
    %411 = vector.extract_strided_slice %335 {offsets = [0, 48], sizes = [8, 16], strides = [1, 1]} : vector<8x64xf32> to vector<8x16xf32>
    %412 = arith.truncf %411 : vector<8x16xf32> to vector<8x16xbf16>
    %cst_127 = arith.constant dense<0.000000e+00> : vector<8x8xf32>
    %413 = tpu.matmul %408, %410, %cst_127 {dimension_numbers = #tpu.dot_dimension_numbers<[1], [1], [0], [0], [0, 0, 1, 0], [], []>} : vector<8x16xbf16>, vector<8x16xbf16>, vector<8x8xf32> -> vector<8x8xf32>
    %414 = arith.addf %413, %10 : vector<8x8xf32>
    %cst_128 = arith.constant dense<0xFF800000> : vector<8xf32>
    %415 = vector.multi_reduction <maximumf>, %414, %cst_128 [1] : vector<8x8xf32> to vector<8xf32>
    %416 = vector.shape_cast %415 : vector<8xf32> to vector<8x1xf32>
    %417 = vector.broadcast %416 : vector<8x1xf32> to vector<8x8xf32>
    %418 = arith.subf %414, %417 : vector<8x8xf32>
    %419 = math.exp %418 : vector<8x8xf32>
    %cst_129 = arith.constant dense<0.000000e+00> : vector<8xf32>
    %420 = vector.multi_reduction <add>, %419, %cst_129 [1] : vector<8x8xf32> to vector<8xf32>
    %421 = vector.shape_cast %420 : vector<8xf32> to vector<8x1xf32>
    %422 = tpu.reciprocal %421 {approx = true} : vector<8x1xf32> -> vector<8x1xf32>
    %423 = vector.broadcast %422 : vector<8x1xf32> to vector<8x8xf32>
    %424 = arith.mulf %419, %423 : vector<8x8xf32>
    %425 = arith.truncf %424 : vector<8x8xf32> to vector<8x8xbf16>
    %cst_130 = arith.constant dense<0.000000e+00> : vector<8x16xf32>
    %426 = tpu.matmul %425, %412, %cst_130 {dimension_numbers = #tpu.dot_dimension_numbers<[1], [0], [0], [1], [0, 0, 1, 1], [], []>} : vector<8x8xbf16>, vector<8x16xbf16>, vector<8x16xf32> -> vector<8x16xf32>
    %427 = arith.truncf %426 : vector<8x16xf32> to vector<8x16xbf16>
    %428 = vector.extract_strided_slice %330 {offsets = [48, 0], sizes = [16, 64], strides = [1, 1]} : vector<64x64xbf16> to vector<16x64xbf16>
    %cst_131 = arith.constant dense<0.000000e+00> : vector<8x64xf32>
    %429 = tpu.matmul %427, %428, %cst_131 {dimension_numbers = #tpu.dot_dimension_numbers<[1], [0], [0], [1], [0, 0, 1, 1], [], []>} : vector<8x16xbf16>, vector<16x64xbf16>, vector<8x64xf32> -> vector<8x64xf32>
    %430 = arith.addf %406, %429 : vector<8x64xf32>
    %431 = vector.broadcast %332 : vector<1x64xf32> to vector<8x64xf32>
    %432 = arith.addf %430, %431 : vector<8x64xf32>
    %433 = vector.extract_strided_slice %326 {offsets = [8, 0], sizes = [8, 64], strides = [1, 1]} : vector<16x64xf32> to vector<8x64xf32>
    %434 = vector.extract_strided_slice %327 {offsets = [8, 0], sizes = [8, 64], strides = [1, 1]} : vector<16x64xf32> to vector<8x64xf32>
    %435 = vector.extract_strided_slice %328 {offsets = [8, 0], sizes = [8, 64], strides = [1, 1]} : vector<16x64xf32> to vector<8x64xf32>
    %436 = vector.extract_strided_slice %433 {offsets = [0, 0], sizes = [8, 16], strides = [1, 1]} : vector<8x64xf32> to vector<8x16xf32>
    %437 = arith.truncf %436 : vector<8x16xf32> to vector<8x16xbf16>
    %438 = vector.extract_strided_slice %434 {offsets = [0, 0], sizes = [8, 16], strides = [1, 1]} : vector<8x64xf32> to vector<8x16xf32>
    %439 = arith.truncf %438 : vector<8x16xf32> to vector<8x16xbf16>
    %440 = vector.extract_strided_slice %435 {offsets = [0, 0], sizes = [8, 16], strides = [1, 1]} : vector<8x64xf32> to vector<8x16xf32>
    %441 = arith.truncf %440 : vector<8x16xf32> to vector<8x16xbf16>
    %cst_132 = arith.constant dense<0.000000e+00> : vector<8x8xf32>
    %442 = tpu.matmul %437, %439, %cst_132 {dimension_numbers = #tpu.dot_dimension_numbers<[1], [1], [0], [0], [0, 0, 1, 0], [], []>} : vector<8x16xbf16>, vector<8x16xbf16>, vector<8x8xf32> -> vector<8x8xf32>
    %443 = arith.addf %442, %13 : vector<8x8xf32>
    %cst_133 = arith.constant dense<0xFF800000> : vector<8xf32>
    %444 = vector.multi_reduction <maximumf>, %443, %cst_133 [1] : vector<8x8xf32> to vector<8xf32>
    %445 = vector.shape_cast %444 : vector<8xf32> to vector<8x1xf32>
    %446 = vector.broadcast %445 : vector<8x1xf32> to vector<8x8xf32>
    %447 = arith.subf %443, %446 : vector<8x8xf32>
    %448 = math.exp %447 : vector<8x8xf32>
    %cst_134 = arith.constant dense<0.000000e+00> : vector<8xf32>
    %449 = vector.multi_reduction <add>, %448, %cst_134 [1] : vector<8x8xf32> to vector<8xf32>
    %450 = vector.shape_cast %449 : vector<8xf32> to vector<8x1xf32>
    %451 = tpu.reciprocal %450 {approx = true} : vector<8x1xf32> -> vector<8x1xf32>
    %452 = vector.broadcast %451 : vector<8x1xf32> to vector<8x8xf32>
    %453 = arith.mulf %448, %452 : vector<8x8xf32>
    %454 = arith.truncf %453 : vector<8x8xf32> to vector<8x8xbf16>
    %cst_135 = arith.constant dense<0.000000e+00> : vector<8x16xf32>
    %455 = tpu.matmul %454, %441, %cst_135 {dimension_numbers = #tpu.dot_dimension_numbers<[1], [0], [0], [1], [0, 0, 1, 1], [], []>} : vector<8x8xbf16>, vector<8x16xbf16>, vector<8x16xf32> -> vector<8x16xf32>
    %456 = arith.truncf %455 : vector<8x16xf32> to vector<8x16xbf16>
    %457 = vector.extract_strided_slice %330 {offsets = [0, 0], sizes = [16, 64], strides = [1, 1]} : vector<64x64xbf16> to vector<16x64xbf16>
    %cst_136 = arith.constant dense<0.000000e+00> : vector<8x64xf32>
    %458 = tpu.matmul %456, %457, %cst_136 {dimension_numbers = #tpu.dot_dimension_numbers<[1], [0], [0], [1], [0, 0, 1, 1], [], []>} : vector<8x16xbf16>, vector<16x64xbf16>, vector<8x64xf32> -> vector<8x64xf32>
    %459 = vector.extract_strided_slice %433 {offsets = [0, 16], sizes = [8, 16], strides = [1, 1]} : vector<8x64xf32> to vector<8x16xf32>
    %460 = arith.truncf %459 : vector<8x16xf32> to vector<8x16xbf16>
    %461 = vector.extract_strided_slice %434 {offsets = [0, 16], sizes = [8, 16], strides = [1, 1]} : vector<8x64xf32> to vector<8x16xf32>
    %462 = arith.truncf %461 : vector<8x16xf32> to vector<8x16xbf16>
    %463 = vector.extract_strided_slice %435 {offsets = [0, 16], sizes = [8, 16], strides = [1, 1]} : vector<8x64xf32> to vector<8x16xf32>
    %464 = arith.truncf %463 : vector<8x16xf32> to vector<8x16xbf16>
    %cst_137 = arith.constant dense<0.000000e+00> : vector<8x8xf32>
    %465 = tpu.matmul %460, %462, %cst_137 {dimension_numbers = #tpu.dot_dimension_numbers<[1], [1], [0], [0], [0, 0, 1, 0], [], []>} : vector<8x16xbf16>, vector<8x16xbf16>, vector<8x8xf32> -> vector<8x8xf32>
    %466 = arith.addf %465, %13 : vector<8x8xf32>
    %cst_138 = arith.constant dense<0xFF800000> : vector<8xf32>
    %467 = vector.multi_reduction <maximumf>, %466, %cst_138 [1] : vector<8x8xf32> to vector<8xf32>
    %468 = vector.shape_cast %467 : vector<8xf32> to vector<8x1xf32>
    %469 = vector.broadcast %468 : vector<8x1xf32> to vector<8x8xf32>
    %470 = arith.subf %466, %469 : vector<8x8xf32>
    %471 = math.exp %470 : vector<8x8xf32>
    %cst_139 = arith.constant dense<0.000000e+00> : vector<8xf32>
    %472 = vector.multi_reduction <add>, %471, %cst_139 [1] : vector<8x8xf32> to vector<8xf32>
    %473 = vector.shape_cast %472 : vector<8xf32> to vector<8x1xf32>
    %474 = tpu.reciprocal %473 {approx = true} : vector<8x1xf32> -> vector<8x1xf32>
    %475 = vector.broadcast %474 : vector<8x1xf32> to vector<8x8xf32>
    %476 = arith.mulf %471, %475 : vector<8x8xf32>
    %477 = arith.truncf %476 : vector<8x8xf32> to vector<8x8xbf16>
    %cst_140 = arith.constant dense<0.000000e+00> : vector<8x16xf32>
    %478 = tpu.matmul %477, %464, %cst_140 {dimension_numbers = #tpu.dot_dimension_numbers<[1], [0], [0], [1], [0, 0, 1, 1], [], []>} : vector<8x8xbf16>, vector<8x16xbf16>, vector<8x16xf32> -> vector<8x16xf32>
    %479 = arith.truncf %478 : vector<8x16xf32> to vector<8x16xbf16>
    %480 = vector.extract_strided_slice %330 {offsets = [16, 0], sizes = [16, 64], strides = [1, 1]} : vector<64x64xbf16> to vector<16x64xbf16>
    %cst_141 = arith.constant dense<0.000000e+00> : vector<8x64xf32>
    %481 = tpu.matmul %479, %480, %cst_141 {dimension_numbers = #tpu.dot_dimension_numbers<[1], [0], [0], [1], [0, 0, 1, 1], [], []>} : vector<8x16xbf16>, vector<16x64xbf16>, vector<8x64xf32> -> vector<8x64xf32>
    %482 = arith.addf %458, %481 : vector<8x64xf32>
    %483 = vector.extract_strided_slice %433 {offsets = [0, 32], sizes = [8, 16], strides = [1, 1]} : vector<8x64xf32> to vector<8x16xf32>
    %484 = arith.truncf %483 : vector<8x16xf32> to vector<8x16xbf16>
    %485 = vector.extract_strided_slice %434 {offsets = [0, 32], sizes = [8, 16], strides = [1, 1]} : vector<8x64xf32> to vector<8x16xf32>
    %486 = arith.truncf %485 : vector<8x16xf32> to vector<8x16xbf16>
    %487 = vector.extract_strided_slice %435 {offsets = [0, 32], sizes = [8, 16], strides = [1, 1]} : vector<8x64xf32> to vector<8x16xf32>
    %488 = arith.truncf %487 : vector<8x16xf32> to vector<8x16xbf16>
    %cst_142 = arith.constant dense<0.000000e+00> : vector<8x8xf32>
    %489 = tpu.matmul %484, %486, %cst_142 {dimension_numbers = #tpu.dot_dimension_numbers<[1], [1], [0], [0], [0, 0, 1, 0], [], []>} : vector<8x16xbf16>, vector<8x16xbf16>, vector<8x8xf32> -> vector<8x8xf32>
    %490 = arith.addf %489, %13 : vector<8x8xf32>
    %cst_143 = arith.constant dense<0xFF800000> : vector<8xf32>
    %491 = vector.multi_reduction <maximumf>, %490, %cst_143 [1] : vector<8x8xf32> to vector<8xf32>
    %492 = vector.shape_cast %491 : vector<8xf32> to vector<8x1xf32>
    %493 = vector.broadcast %492 : vector<8x1xf32> to vector<8x8xf32>
    %494 = arith.subf %490, %493 : vector<8x8xf32>
    %495 = math.exp %494 : vector<8x8xf32>
    %cst_144 = arith.constant dense<0.000000e+00> : vector<8xf32>
    %496 = vector.multi_reduction <add>, %495, %cst_144 [1] : vector<8x8xf32> to vector<8xf32>
    %497 = vector.shape_cast %496 : vector<8xf32> to vector<8x1xf32>
    %498 = tpu.reciprocal %497 {approx = true} : vector<8x1xf32> -> vector<8x1xf32>
    %499 = vector.broadcast %498 : vector<8x1xf32> to vector<8x8xf32>
    %500 = arith.mulf %495, %499 : vector<8x8xf32>
    %501 = arith.truncf %500 : vector<8x8xf32> to vector<8x8xbf16>
    %cst_145 = arith.constant dense<0.000000e+00> : vector<8x16xf32>
    %502 = tpu.matmul %501, %488, %cst_145 {dimension_numbers = #tpu.dot_dimension_numbers<[1], [0], [0], [1], [0, 0, 1, 1], [], []>} : vector<8x8xbf16>, vector<8x16xbf16>, vector<8x16xf32> -> vector<8x16xf32>
    %503 = arith.truncf %502 : vector<8x16xf32> to vector<8x16xbf16>
    %504 = vector.extract_strided_slice %330 {offsets = [32, 0], sizes = [16, 64], strides = [1, 1]} : vector<64x64xbf16> to vector<16x64xbf16>
    %cst_146 = arith.constant dense<0.000000e+00> : vector<8x64xf32>
    %505 = tpu.matmul %503, %504, %cst_146 {dimension_numbers = #tpu.dot_dimension_numbers<[1], [0], [0], [1], [0, 0, 1, 1], [], []>} : vector<8x16xbf16>, vector<16x64xbf16>, vector<8x64xf32> -> vector<8x64xf32>
    %506 = arith.addf %482, %505 : vector<8x64xf32>
    %507 = vector.extract_strided_slice %433 {offsets = [0, 48], sizes = [8, 16], strides = [1, 1]} : vector<8x64xf32> to vector<8x16xf32>
    %508 = arith.truncf %507 : vector<8x16xf32> to vector<8x16xbf16>
    %509 = vector.extract_strided_slice %434 {offsets = [0, 48], sizes = [8, 16], strides = [1, 1]} : vector<8x64xf32> to vector<8x16xf32>
    %510 = arith.truncf %509 : vector<8x16xf32> to vector<8x16xbf16>
    %511 = vector.extract_strided_slice %435 {offsets = [0, 48], sizes = [8, 16], strides = [1, 1]} : vector<8x64xf32> to vector<8x16xf32>
    %512 = arith.truncf %511 : vector<8x16xf32> to vector<8x16xbf16>
    %cst_147 = arith.constant dense<0.000000e+00> : vector<8x8xf32>
    %513 = tpu.matmul %508, %510, %cst_147 {dimension_numbers = #tpu.dot_dimension_numbers<[1], [1], [0], [0], [0, 0, 1, 0], [], []>} : vector<8x16xbf16>, vector<8x16xbf16>, vector<8x8xf32> -> vector<8x8xf32>
    %514 = arith.addf %513, %13 : vector<8x8xf32>
    %cst_148 = arith.constant dense<0xFF800000> : vector<8xf32>
    %515 = vector.multi_reduction <maximumf>, %514, %cst_148 [1] : vector<8x8xf32> to vector<8xf32>
    %516 = vector.shape_cast %515 : vector<8xf32> to vector<8x1xf32>
    %517 = vector.broadcast %516 : vector<8x1xf32> to vector<8x8xf32>
    %518 = arith.subf %514, %517 : vector<8x8xf32>
    %519 = math.exp %518 : vector<8x8xf32>
    %cst_149 = arith.constant dense<0.000000e+00> : vector<8xf32>
    %520 = vector.multi_reduction <add>, %519, %cst_149 [1] : vector<8x8xf32> to vector<8xf32>
    %521 = vector.shape_cast %520 : vector<8xf32> to vector<8x1xf32>
    %522 = tpu.reciprocal %521 {approx = true} : vector<8x1xf32> -> vector<8x1xf32>
    %523 = vector.broadcast %522 : vector<8x1xf32> to vector<8x8xf32>
    %524 = arith.mulf %519, %523 : vector<8x8xf32>
    %525 = arith.truncf %524 : vector<8x8xf32> to vector<8x8xbf16>
    %cst_150 = arith.constant dense<0.000000e+00> : vector<8x16xf32>
    %526 = tpu.matmul %525, %512, %cst_150 {dimension_numbers = #tpu.dot_dimension_numbers<[1], [0], [0], [1], [0, 0, 1, 1], [], []>} : vector<8x8xbf16>, vector<8x16xbf16>, vector<8x16xf32> -> vector<8x16xf32>
    %527 = arith.truncf %526 : vector<8x16xf32> to vector<8x16xbf16>
    %528 = vector.extract_strided_slice %330 {offsets = [48, 0], sizes = [16, 64], strides = [1, 1]} : vector<64x64xbf16> to vector<16x64xbf16>
    %cst_151 = arith.constant dense<0.000000e+00> : vector<8x64xf32>
    %529 = tpu.matmul %527, %528, %cst_151 {dimension_numbers = #tpu.dot_dimension_numbers<[1], [0], [0], [1], [0, 0, 1, 1], [], []>} : vector<8x16xbf16>, vector<16x64xbf16>, vector<8x64xf32> -> vector<8x64xf32>
    %530 = arith.addf %506, %529 : vector<8x64xf32>
    %531 = vector.broadcast %332 : vector<1x64xf32> to vector<8x64xf32>
    %532 = arith.addf %530, %531 : vector<8x64xf32>
    %533 = tpu.concatenate %432, %532 in 0 : vector<8x64xf32>, vector<8x64xf32> -> vector<16x64xf32>
    %c1_152 = arith.constant 1 : index
    %c0_153 = arith.constant 0 : index
    %c0_154 = arith.constant 0 : index
    %534 = vector.load %arg8[%c1_152, %c0_153, %c0_154] : memref<2x1x64xf32, #tpu.memory_space<vmem>>, vector<1x1x64xf32>
    %535 = vector.shape_cast %534 : vector<1x1x64xf32> to vector<1x64xf32>
    %c1_155 = arith.constant 1 : index
    %c0_156 = arith.constant 0 : index
    %c0_157 = arith.constant 0 : index
    %536 = vector.load %arg9[%c1_155, %c0_156, %c0_157] : memref<2x1x64xf32, #tpu.memory_space<vmem>>, vector<1x1x64xf32>
    %537 = vector.shape_cast %536 : vector<1x1x64xf32> to vector<1x64xf32>
    %c1_158 = arith.constant 1 : index
    %c0_159 = arith.constant 0 : index
    %c0_160 = arith.constant 0 : index
    %538 = vector.load %arg10[%c1_158, %c0_159, %c0_160] : memref<2x64x256xbf16, #tpu.memory_space<vmem>>, vector<1x64x256xbf16>
    %539 = vector.shape_cast %538 : vector<1x64x256xbf16> to vector<64x256xbf16>
    %c1_161 = arith.constant 1 : index
    %c0_162 = arith.constant 0 : index
    %c0_163 = arith.constant 0 : index
    %540 = vector.load %arg11[%c1_161, %c0_162, %c0_163] : memref<2x1x256xf32, #tpu.memory_space<vmem>>, vector<1x1x256xf32>
    %541 = vector.shape_cast %540 : vector<1x1x256xf32> to vector<1x256xf32>
    %c1_164 = arith.constant 1 : index
    %c0_165 = arith.constant 0 : index
    %c0_166 = arith.constant 0 : index
    %542 = vector.load %arg12[%c1_164, %c0_165, %c0_166] : memref<2x256x64xbf16, #tpu.memory_space<vmem>>, vector<1x256x64xbf16>
    %543 = vector.shape_cast %542 : vector<1x256x64xbf16> to vector<256x64xbf16>
    %c1_167 = arith.constant 1 : index
    %c0_168 = arith.constant 0 : index
    %c0_169 = arith.constant 0 : index
    %544 = vector.load %arg13[%c1_167, %c0_168, %c0_169] : memref<2x1x64xf32, #tpu.memory_space<vmem>>, vector<1x1x64xf32>
    %545 = vector.shape_cast %544 : vector<1x1x64xf32> to vector<1x64xf32>
    %c1_170 = arith.constant 1 : index
    %c0_171 = arith.constant 0 : index
    %c0_172 = arith.constant 0 : index
    %546 = vector.load %arg14[%c1_170, %c0_171, %c0_172] : memref<2x1x64xf32, #tpu.memory_space<vmem>>, vector<1x1x64xf32>
    %547 = vector.shape_cast %546 : vector<1x1x64xf32> to vector<1x64xf32>
    %c1_173 = arith.constant 1 : index
    %c0_174 = arith.constant 0 : index
    %c0_175 = arith.constant 0 : index
    %548 = vector.load %arg15[%c1_173, %c0_174, %c0_175] : memref<2x1x64xf32, #tpu.memory_space<vmem>>, vector<1x1x64xf32>
    %549 = vector.shape_cast %548 : vector<1x1x64xf32> to vector<1x64xf32>
    %550 = arith.addf %533, %315 : vector<16x64xf32>
    %cst_176 = arith.constant dense<0.000000e+00> : vector<16xf32>
    %551 = vector.multi_reduction <add>, %550, %cst_176 [1] : vector<16x64xf32> to vector<16xf32>
    %552 = vector.shape_cast %551 : vector<16xf32> to vector<16x1xf32>
    %cst_177 = arith.constant 6.400000e+01 : f32
    %553 = vector.broadcast %cst_177 : f32 to vector<16x1xf32>
    %554 = arith.divf %552, %553 : vector<16x1xf32>
    %555 = vector.broadcast %554 : vector<16x1xf32> to vector<16x64xf32>
    %556 = arith.subf %550, %555 : vector<16x64xf32>
    %557 = arith.mulf %556, %556 : vector<16x64xf32>
    %cst_178 = arith.constant dense<0.000000e+00> : vector<16xf32>
    %558 = vector.multi_reduction <add>, %557, %cst_178 [1] : vector<16x64xf32> to vector<16xf32>
    %559 = vector.shape_cast %558 : vector<16xf32> to vector<16x1xf32>
    %cst_179 = arith.constant 6.400000e+01 : f32
    %560 = vector.broadcast %cst_179 : f32 to vector<16x1xf32>
    %561 = arith.divf %559, %560 : vector<16x1xf32>
    %562 = vector.broadcast %554 : vector<16x1xf32> to vector<16x64xf32>
    %563 = arith.subf %550, %562 : vector<16x64xf32>
    %cst_180 = arith.constant 9.99999974E-6 : f32
    %564 = vector.broadcast %cst_180 : f32 to vector<16x1xf32>
    %565 = arith.addf %561, %564 : vector<16x1xf32>
    %566 = math.rsqrt %565 : vector<16x1xf32>
    %567 = vector.broadcast %566 : vector<16x1xf32> to vector<16x64xf32>
    %568 = arith.mulf %563, %567 : vector<16x64xf32>
    %569 = vector.broadcast %535 : vector<1x64xf32> to vector<16x64xf32>
    %570 = arith.mulf %568, %569 : vector<16x64xf32>
    %571 = vector.broadcast %537 : vector<1x64xf32> to vector<16x64xf32>
    %572 = arith.addf %570, %571 : vector<16x64xf32>
    %573 = arith.truncf %572 : vector<16x64xf32> to vector<16x64xbf16>
    %cst_181 = arith.constant dense<0.000000e+00> : vector<16x256xf32>
    %574 = tpu.matmul %573, %539, %cst_181 {dimension_numbers = #tpu.dot_dimension_numbers<[1], [0], [0], [1], [0, 0, 1, 1], [], []>} : vector<16x64xbf16>, vector<64x256xbf16>, vector<16x256xf32> -> vector<16x256xf32>
    %575 = vector.broadcast %541 : vector<1x256xf32> to vector<16x256xf32>
    %576 = arith.addf %574, %575 : vector<16x256xf32>
    %cst_182 = arith.constant 0.000000e+00 : f32
    %577 = vector.broadcast %cst_182 : f32 to vector<16x256xf32>
    %578 = arith.maximumf %576, %577 : vector<16x256xf32>
    %579 = arith.truncf %578 : vector<16x256xf32> to vector<16x256xbf16>
    %cst_183 = arith.constant dense<0.000000e+00> : vector<16x64xf32>
    %580 = tpu.matmul %579, %543, %cst_183 {dimension_numbers = #tpu.dot_dimension_numbers<[1], [0], [0], [1], [0, 0, 1, 1], [], []>} : vector<16x256xbf16>, vector<256x64xbf16>, vector<16x64xf32> -> vector<16x64xf32>
    %581 = vector.broadcast %545 : vector<1x64xf32> to vector<16x64xf32>
    %582 = arith.addf %580, %581 : vector<16x64xf32>
    %583 = arith.addf %582, %572 : vector<16x64xf32>
    %cst_184 = arith.constant dense<0.000000e+00> : vector<16xf32>
    %584 = vector.multi_reduction <add>, %583, %cst_184 [1] : vector<16x64xf32> to vector<16xf32>
    %585 = vector.shape_cast %584 : vector<16xf32> to vector<16x1xf32>
    %cst_185 = arith.constant 6.400000e+01 : f32
    %586 = vector.broadcast %cst_185 : f32 to vector<16x1xf32>
    %587 = arith.divf %585, %586 : vector<16x1xf32>
    %588 = vector.broadcast %587 : vector<16x1xf32> to vector<16x64xf32>
    %589 = arith.subf %583, %588 : vector<16x64xf32>
    %590 = arith.mulf %589, %589 : vector<16x64xf32>
    %cst_186 = arith.constant dense<0.000000e+00> : vector<16xf32>
    %591 = vector.multi_reduction <add>, %590, %cst_186 [1] : vector<16x64xf32> to vector<16xf32>
    %592 = vector.shape_cast %591 : vector<16xf32> to vector<16x1xf32>
    %cst_187 = arith.constant 6.400000e+01 : f32
    %593 = vector.broadcast %cst_187 : f32 to vector<16x1xf32>
    %594 = arith.divf %592, %593 : vector<16x1xf32>
    %595 = vector.broadcast %587 : vector<16x1xf32> to vector<16x64xf32>
    %596 = arith.subf %583, %595 : vector<16x64xf32>
    %cst_188 = arith.constant 9.99999974E-6 : f32
    %597 = vector.broadcast %cst_188 : f32 to vector<16x1xf32>
    %598 = arith.addf %594, %597 : vector<16x1xf32>
    %599 = math.rsqrt %598 : vector<16x1xf32>
    %600 = vector.broadcast %599 : vector<16x1xf32> to vector<16x64xf32>
    %601 = arith.mulf %596, %600 : vector<16x64xf32>
    %602 = vector.broadcast %547 : vector<1x64xf32> to vector<16x64xf32>
    %603 = arith.mulf %601, %602 : vector<16x64xf32>
    %604 = vector.broadcast %549 : vector<1x64xf32> to vector<16x64xf32>
    %605 = arith.addf %603, %604 : vector<16x64xf32>
    %606 = arith.truncf %605 : vector<16x64xf32> to vector<16x64xbf16>
    %c0_189 = arith.constant 0 : index
    %c0_190 = arith.constant 0 : index
    %c0_191 = arith.constant 0 : index
    %607 = vector.load %arg16[%c0_189, %c0_190, %c0_191] : memref<2x64x192xbf16, #tpu.memory_space<vmem>>, vector<1x64x192xbf16>
    %608 = vector.shape_cast %607 : vector<1x64x192xbf16> to vector<64x192xbf16>
    %609 = arith.truncf %1 : vector<16x64xf32> to vector<16x64xbf16>
    %cst_192 = arith.constant dense<0.000000e+00> : vector<16x192xf32>
    %610 = tpu.matmul %609, %608, %cst_192 {dimension_numbers = #tpu.dot_dimension_numbers<[1], [0], [0], [1], [0, 0, 1, 1], [], []>} : vector<16x64xbf16>, vector<64x192xbf16>, vector<16x192xf32> -> vector<16x192xf32>
    %c0_193 = arith.constant 0 : index
    %c0_194 = arith.constant 0 : index
    %c0_195 = arith.constant 0 : index
    %611 = vector.load %arg17[%c0_193, %c0_194, %c0_195] : memref<2x1x192xf32, #tpu.memory_space<vmem>>, vector<1x1x192xf32>
    %612 = vector.shape_cast %611 : vector<1x1x192xf32> to vector<1x192xf32>
    %613 = vector.broadcast %612 : vector<1x192xf32> to vector<16x192xf32>
    %614 = arith.addf %610, %613 : vector<16x192xf32>
    %615 = vector.extract_strided_slice %614 {offsets = [0, 0], sizes = [16, 64], strides = [1, 1]} : vector<16x192xf32> to vector<16x64xf32>
    %cst_196 = arith.constant 1.250000e-01 : f32
    %616 = vector.broadcast %cst_196 : f32 to vector<16x64xf32>
    %617 = arith.mulf %615, %616 : vector<16x64xf32>
    %618 = vector.extract_strided_slice %614 {offsets = [0, 64], sizes = [16, 64], strides = [1, 1]} : vector<16x192xf32> to vector<16x64xf32>
    %619 = vector.extract_strided_slice %614 {offsets = [0, 128], sizes = [16, 64], strides = [1, 1]} : vector<16x192xf32> to vector<16x64xf32>
    %c0_197 = arith.constant 0 : index
    %c0_198 = arith.constant 0 : index
    %c0_199 = arith.constant 0 : index
    %620 = vector.load %arg18[%c0_197, %c0_198, %c0_199] : memref<2x64x64xbf16, #tpu.memory_space<vmem>>, vector<1x64x64xbf16>
    %621 = vector.shape_cast %620 : vector<1x64x64xbf16> to vector<64x64xbf16>
    %c0_200 = arith.constant 0 : index
    %c0_201 = arith.constant 0 : index
    %c0_202 = arith.constant 0 : index
    %622 = vector.load %arg19[%c0_200, %c0_201, %c0_202] : memref<2x1x64xf32, #tpu.memory_space<vmem>>, vector<1x1x64xf32>
    %623 = vector.shape_cast %622 : vector<1x1x64xf32> to vector<1x64xf32>
    %624 = vector.extract_strided_slice %617 {offsets = [0, 0], sizes = [8, 64], strides = [1, 1]} : vector<16x64xf32> to vector<8x64xf32>
    %625 = vector.extract_strided_slice %618 {offsets = [0, 0], sizes = [8, 64], strides = [1, 1]} : vector<16x64xf32> to vector<8x64xf32>
    %626 = vector.extract_strided_slice %619 {offsets = [0, 0], sizes = [8, 64], strides = [1, 1]} : vector<16x64xf32> to vector<8x64xf32>
    %627 = vector.extract_strided_slice %624 {offsets = [0, 0], sizes = [8, 16], strides = [1, 1]} : vector<8x64xf32> to vector<8x16xf32>
    %628 = arith.truncf %627 : vector<8x16xf32> to vector<8x16xbf16>
    %629 = vector.extract_strided_slice %625 {offsets = [0, 0], sizes = [8, 16], strides = [1, 1]} : vector<8x64xf32> to vector<8x16xf32>
    %630 = arith.truncf %629 : vector<8x16xf32> to vector<8x16xbf16>
    %631 = vector.extract_strided_slice %626 {offsets = [0, 0], sizes = [8, 16], strides = [1, 1]} : vector<8x64xf32> to vector<8x16xf32>
    %632 = arith.truncf %631 : vector<8x16xf32> to vector<8x16xbf16>
    %cst_203 = arith.constant dense<0.000000e+00> : vector<8x8xf32>
    %633 = tpu.matmul %628, %630, %cst_203 {dimension_numbers = #tpu.dot_dimension_numbers<[1], [1], [0], [0], [0, 0, 1, 0], [], []>} : vector<8x16xbf16>, vector<8x16xbf16>, vector<8x8xf32> -> vector<8x8xf32>
    %634 = arith.addf %633, %25 : vector<8x8xf32>
    %cst_204 = arith.constant dense<0xFF800000> : vector<8xf32>
    %635 = vector.multi_reduction <maximumf>, %634, %cst_204 [1] : vector<8x8xf32> to vector<8xf32>
    %636 = vector.shape_cast %635 : vector<8xf32> to vector<8x1xf32>
    %637 = vector.broadcast %636 : vector<8x1xf32> to vector<8x8xf32>
    %638 = arith.subf %634, %637 : vector<8x8xf32>
    %639 = math.exp %638 : vector<8x8xf32>
    %cst_205 = arith.constant dense<0.000000e+00> : vector<8xf32>
    %640 = vector.multi_reduction <add>, %639, %cst_205 [1] : vector<8x8xf32> to vector<8xf32>
    %641 = vector.shape_cast %640 : vector<8xf32> to vector<8x1xf32>
    %642 = tpu.reciprocal %641 {approx = true} : vector<8x1xf32> -> vector<8x1xf32>
    %643 = vector.broadcast %642 : vector<8x1xf32> to vector<8x8xf32>
    %644 = arith.mulf %639, %643 : vector<8x8xf32>
    %645 = arith.truncf %644 : vector<8x8xf32> to vector<8x8xbf16>
    %cst_206 = arith.constant dense<0.000000e+00> : vector<8x16xf32>
    %646 = tpu.matmul %645, %632, %cst_206 {dimension_numbers = #tpu.dot_dimension_numbers<[1], [0], [0], [1], [0, 0, 1, 1], [], []>} : vector<8x8xbf16>, vector<8x16xbf16>, vector<8x16xf32> -> vector<8x16xf32>
    %647 = arith.truncf %646 : vector<8x16xf32> to vector<8x16xbf16>
    %648 = vector.extract_strided_slice %621 {offsets = [0, 0], sizes = [16, 64], strides = [1, 1]} : vector<64x64xbf16> to vector<16x64xbf16>
    %cst_207 = arith.constant dense<0.000000e+00> : vector<8x64xf32>
    %649 = tpu.matmul %647, %648, %cst_207 {dimension_numbers = #tpu.dot_dimension_numbers<[1], [0], [0], [1], [0, 0, 1, 1], [], []>} : vector<8x16xbf16>, vector<16x64xbf16>, vector<8x64xf32> -> vector<8x64xf32>
    %650 = vector.extract_strided_slice %624 {offsets = [0, 16], sizes = [8, 16], strides = [1, 1]} : vector<8x64xf32> to vector<8x16xf32>
    %651 = arith.truncf %650 : vector<8x16xf32> to vector<8x16xbf16>
    %652 = vector.extract_strided_slice %625 {offsets = [0, 16], sizes = [8, 16], strides = [1, 1]} : vector<8x64xf32> to vector<8x16xf32>
    %653 = arith.truncf %652 : vector<8x16xf32> to vector<8x16xbf16>
    %654 = vector.extract_strided_slice %626 {offsets = [0, 16], sizes = [8, 16], strides = [1, 1]} : vector<8x64xf32> to vector<8x16xf32>
    %655 = arith.truncf %654 : vector<8x16xf32> to vector<8x16xbf16>
    %cst_208 = arith.constant dense<0.000000e+00> : vector<8x8xf32>
    %656 = tpu.matmul %651, %653, %cst_208 {dimension_numbers = #tpu.dot_dimension_numbers<[1], [1], [0], [0], [0, 0, 1, 0], [], []>} : vector<8x16xbf16>, vector<8x16xbf16>, vector<8x8xf32> -> vector<8x8xf32>
    %657 = arith.addf %656, %25 : vector<8x8xf32>
    %cst_209 = arith.constant dense<0xFF800000> : vector<8xf32>
    %658 = vector.multi_reduction <maximumf>, %657, %cst_209 [1] : vector<8x8xf32> to vector<8xf32>
    %659 = vector.shape_cast %658 : vector<8xf32> to vector<8x1xf32>
    %660 = vector.broadcast %659 : vector<8x1xf32> to vector<8x8xf32>
    %661 = arith.subf %657, %660 : vector<8x8xf32>
    %662 = math.exp %661 : vector<8x8xf32>
    %cst_210 = arith.constant dense<0.000000e+00> : vector<8xf32>
    %663 = vector.multi_reduction <add>, %662, %cst_210 [1] : vector<8x8xf32> to vector<8xf32>
    %664 = vector.shape_cast %663 : vector<8xf32> to vector<8x1xf32>
    %665 = tpu.reciprocal %664 {approx = true} : vector<8x1xf32> -> vector<8x1xf32>
    %666 = vector.broadcast %665 : vector<8x1xf32> to vector<8x8xf32>
    %667 = arith.mulf %662, %666 : vector<8x8xf32>
    %668 = arith.truncf %667 : vector<8x8xf32> to vector<8x8xbf16>
    %cst_211 = arith.constant dense<0.000000e+00> : vector<8x16xf32>
    %669 = tpu.matmul %668, %655, %cst_211 {dimension_numbers = #tpu.dot_dimension_numbers<[1], [0], [0], [1], [0, 0, 1, 1], [], []>} : vector<8x8xbf16>, vector<8x16xbf16>, vector<8x16xf32> -> vector<8x16xf32>
    %670 = arith.truncf %669 : vector<8x16xf32> to vector<8x16xbf16>
    %671 = vector.extract_strided_slice %621 {offsets = [16, 0], sizes = [16, 64], strides = [1, 1]} : vector<64x64xbf16> to vector<16x64xbf16>
    %cst_212 = arith.constant dense<0.000000e+00> : vector<8x64xf32>
    %672 = tpu.matmul %670, %671, %cst_212 {dimension_numbers = #tpu.dot_dimension_numbers<[1], [0], [0], [1], [0, 0, 1, 1], [], []>} : vector<8x16xbf16>, vector<16x64xbf16>, vector<8x64xf32> -> vector<8x64xf32>
    %673 = arith.addf %649, %672 : vector<8x64xf32>
    %674 = vector.extract_strided_slice %624 {offsets = [0, 32], sizes = [8, 16], strides = [1, 1]} : vector<8x64xf32> to vector<8x16xf32>
    %675 = arith.truncf %674 : vector<8x16xf32> to vector<8x16xbf16>
    %676 = vector.extract_strided_slice %625 {offsets = [0, 32], sizes = [8, 16], strides = [1, 1]} : vector<8x64xf32> to vector<8x16xf32>
    %677 = arith.truncf %676 : vector<8x16xf32> to vector<8x16xbf16>
    %678 = vector.extract_strided_slice %626 {offsets = [0, 32], sizes = [8, 16], strides = [1, 1]} : vector<8x64xf32> to vector<8x16xf32>
    %679 = arith.truncf %678 : vector<8x16xf32> to vector<8x16xbf16>
    %cst_213 = arith.constant dense<0.000000e+00> : vector<8x8xf32>
    %680 = tpu.matmul %675, %677, %cst_213 {dimension_numbers = #tpu.dot_dimension_numbers<[1], [1], [0], [0], [0, 0, 1, 0], [], []>} : vector<8x16xbf16>, vector<8x16xbf16>, vector<8x8xf32> -> vector<8x8xf32>
    %681 = arith.addf %680, %25 : vector<8x8xf32>
    %cst_214 = arith.constant dense<0xFF800000> : vector<8xf32>
    %682 = vector.multi_reduction <maximumf>, %681, %cst_214 [1] : vector<8x8xf32> to vector<8xf32>
    %683 = vector.shape_cast %682 : vector<8xf32> to vector<8x1xf32>
    %684 = vector.broadcast %683 : vector<8x1xf32> to vector<8x8xf32>
    %685 = arith.subf %681, %684 : vector<8x8xf32>
    %686 = math.exp %685 : vector<8x8xf32>
    %cst_215 = arith.constant dense<0.000000e+00> : vector<8xf32>
    %687 = vector.multi_reduction <add>, %686, %cst_215 [1] : vector<8x8xf32> to vector<8xf32>
    %688 = vector.shape_cast %687 : vector<8xf32> to vector<8x1xf32>
    %689 = tpu.reciprocal %688 {approx = true} : vector<8x1xf32> -> vector<8x1xf32>
    %690 = vector.broadcast %689 : vector<8x1xf32> to vector<8x8xf32>
    %691 = arith.mulf %686, %690 : vector<8x8xf32>
    %692 = arith.truncf %691 : vector<8x8xf32> to vector<8x8xbf16>
    %cst_216 = arith.constant dense<0.000000e+00> : vector<8x16xf32>
    %693 = tpu.matmul %692, %679, %cst_216 {dimension_numbers = #tpu.dot_dimension_numbers<[1], [0], [0], [1], [0, 0, 1, 1], [], []>} : vector<8x8xbf16>, vector<8x16xbf16>, vector<8x16xf32> -> vector<8x16xf32>
    %694 = arith.truncf %693 : vector<8x16xf32> to vector<8x16xbf16>
    %695 = vector.extract_strided_slice %621 {offsets = [32, 0], sizes = [16, 64], strides = [1, 1]} : vector<64x64xbf16> to vector<16x64xbf16>
    %cst_217 = arith.constant dense<0.000000e+00> : vector<8x64xf32>
    %696 = tpu.matmul %694, %695, %cst_217 {dimension_numbers = #tpu.dot_dimension_numbers<[1], [0], [0], [1], [0, 0, 1, 1], [], []>} : vector<8x16xbf16>, vector<16x64xbf16>, vector<8x64xf32> -> vector<8x64xf32>
    %697 = arith.addf %673, %696 : vector<8x64xf32>
    %698 = vector.extract_strided_slice %624 {offsets = [0, 48], sizes = [8, 16], strides = [1, 1]} : vector<8x64xf32> to vector<8x16xf32>
    %699 = arith.truncf %698 : vector<8x16xf32> to vector<8x16xbf16>
    %700 = vector.extract_strided_slice %625 {offsets = [0, 48], sizes = [8, 16], strides = [1, 1]} : vector<8x64xf32> to vector<8x16xf32>
    %701 = arith.truncf %700 : vector<8x16xf32> to vector<8x16xbf16>
    %702 = vector.extract_strided_slice %626 {offsets = [0, 48], sizes = [8, 16], strides = [1, 1]} : vector<8x64xf32> to vector<8x16xf32>
    %703 = arith.truncf %702 : vector<8x16xf32> to vector<8x16xbf16>
    %cst_218 = arith.constant dense<0.000000e+00> : vector<8x8xf32>
    %704 = tpu.matmul %699, %701, %cst_218 {dimension_numbers = #tpu.dot_dimension_numbers<[1], [1], [0], [0], [0, 0, 1, 0], [], []>} : vector<8x16xbf16>, vector<8x16xbf16>, vector<8x8xf32> -> vector<8x8xf32>
    %705 = arith.addf %704, %25 : vector<8x8xf32>
    %cst_219 = arith.constant dense<0xFF800000> : vector<8xf32>
    %706 = vector.multi_reduction <maximumf>, %705, %cst_219 [1] : vector<8x8xf32> to vector<8xf32>
    %707 = vector.shape_cast %706 : vector<8xf32> to vector<8x1xf32>
    %708 = vector.broadcast %707 : vector<8x1xf32> to vector<8x8xf32>
    %709 = arith.subf %705, %708 : vector<8x8xf32>
    %710 = math.exp %709 : vector<8x8xf32>
    %cst_220 = arith.constant dense<0.000000e+00> : vector<8xf32>
    %711 = vector.multi_reduction <add>, %710, %cst_220 [1] : vector<8x8xf32> to vector<8xf32>
    %712 = vector.shape_cast %711 : vector<8xf32> to vector<8x1xf32>
    %713 = tpu.reciprocal %712 {approx = true} : vector<8x1xf32> -> vector<8x1xf32>
    %714 = vector.broadcast %713 : vector<8x1xf32> to vector<8x8xf32>
    %715 = arith.mulf %710, %714 : vector<8x8xf32>
    %716 = arith.truncf %715 : vector<8x8xf32> to vector<8x8xbf16>
    %cst_221 = arith.constant dense<0.000000e+00> : vector<8x16xf32>
    %717 = tpu.matmul %716, %703, %cst_221 {dimension_numbers = #tpu.dot_dimension_numbers<[1], [0], [0], [1], [0, 0, 1, 1], [], []>} : vector<8x8xbf16>, vector<8x16xbf16>, vector<8x16xf32> -> vector<8x16xf32>
    %718 = arith.truncf %717 : vector<8x16xf32> to vector<8x16xbf16>
    %719 = vector.extract_strided_slice %621 {offsets = [48, 0], sizes = [16, 64], strides = [1, 1]} : vector<64x64xbf16> to vector<16x64xbf16>
    %cst_222 = arith.constant dense<0.000000e+00> : vector<8x64xf32>
    %720 = tpu.matmul %718, %719, %cst_222 {dimension_numbers = #tpu.dot_dimension_numbers<[1], [0], [0], [1], [0, 0, 1, 1], [], []>} : vector<8x16xbf16>, vector<16x64xbf16>, vector<8x64xf32> -> vector<8x64xf32>
    %721 = arith.addf %697, %720 : vector<8x64xf32>
    %722 = vector.broadcast %623 : vector<1x64xf32> to vector<8x64xf32>
    %723 = arith.addf %721, %722 : vector<8x64xf32>
    %724 = vector.extract_strided_slice %617 {offsets = [8, 0], sizes = [8, 64], strides = [1, 1]} : vector<16x64xf32> to vector<8x64xf32>
    %725 = vector.extract_strided_slice %618 {offsets = [8, 0], sizes = [8, 64], strides = [1, 1]} : vector<16x64xf32> to vector<8x64xf32>
    %726 = vector.extract_strided_slice %619 {offsets = [8, 0], sizes = [8, 64], strides = [1, 1]} : vector<16x64xf32> to vector<8x64xf32>
    %727 = vector.extract_strided_slice %724 {offsets = [0, 0], sizes = [8, 16], strides = [1, 1]} : vector<8x64xf32> to vector<8x16xf32>
    %728 = arith.truncf %727 : vector<8x16xf32> to vector<8x16xbf16>
    %729 = vector.extract_strided_slice %725 {offsets = [0, 0], sizes = [8, 16], strides = [1, 1]} : vector<8x64xf32> to vector<8x16xf32>
    %730 = arith.truncf %729 : vector<8x16xf32> to vector<8x16xbf16>
    %731 = vector.extract_strided_slice %726 {offsets = [0, 0], sizes = [8, 16], strides = [1, 1]} : vector<8x64xf32> to vector<8x16xf32>
    %732 = arith.truncf %731 : vector<8x16xf32> to vector<8x16xbf16>
    %cst_223 = arith.constant dense<0.000000e+00> : vector<8x8xf32>
    %733 = tpu.matmul %728, %730, %cst_223 {dimension_numbers = #tpu.dot_dimension_numbers<[1], [1], [0], [0], [0, 0, 1, 0], [], []>} : vector<8x16xbf16>, vector<8x16xbf16>, vector<8x8xf32> -> vector<8x8xf32>
    %734 = arith.addf %733, %25 : vector<8x8xf32>
    %cst_224 = arith.constant dense<0xFF800000> : vector<8xf32>
    %735 = vector.multi_reduction <maximumf>, %734, %cst_224 [1] : vector<8x8xf32> to vector<8xf32>
    %736 = vector.shape_cast %735 : vector<8xf32> to vector<8x1xf32>
    %737 = vector.broadcast %736 : vector<8x1xf32> to vector<8x8xf32>
    %738 = arith.subf %734, %737 : vector<8x8xf32>
    %739 = math.exp %738 : vector<8x8xf32>
    %cst_225 = arith.constant dense<0.000000e+00> : vector<8xf32>
    %740 = vector.multi_reduction <add>, %739, %cst_225 [1] : vector<8x8xf32> to vector<8xf32>
    %741 = vector.shape_cast %740 : vector<8xf32> to vector<8x1xf32>
    %742 = tpu.reciprocal %741 {approx = true} : vector<8x1xf32> -> vector<8x1xf32>
    %743 = vector.broadcast %742 : vector<8x1xf32> to vector<8x8xf32>
    %744 = arith.mulf %739, %743 : vector<8x8xf32>
    %745 = arith.truncf %744 : vector<8x8xf32> to vector<8x8xbf16>
    %cst_226 = arith.constant dense<0.000000e+00> : vector<8x16xf32>
    %746 = tpu.matmul %745, %732, %cst_226 {dimension_numbers = #tpu.dot_dimension_numbers<[1], [0], [0], [1], [0, 0, 1, 1], [], []>} : vector<8x8xbf16>, vector<8x16xbf16>, vector<8x16xf32> -> vector<8x16xf32>
    %747 = arith.truncf %746 : vector<8x16xf32> to vector<8x16xbf16>
    %748 = vector.extract_strided_slice %621 {offsets = [0, 0], sizes = [16, 64], strides = [1, 1]} : vector<64x64xbf16> to vector<16x64xbf16>
    %cst_227 = arith.constant dense<0.000000e+00> : vector<8x64xf32>
    %749 = tpu.matmul %747, %748, %cst_227 {dimension_numbers = #tpu.dot_dimension_numbers<[1], [0], [0], [1], [0, 0, 1, 1], [], []>} : vector<8x16xbf16>, vector<16x64xbf16>, vector<8x64xf32> -> vector<8x64xf32>
    %750 = vector.extract_strided_slice %724 {offsets = [0, 16], sizes = [8, 16], strides = [1, 1]} : vector<8x64xf32> to vector<8x16xf32>
    %751 = arith.truncf %750 : vector<8x16xf32> to vector<8x16xbf16>
    %752 = vector.extract_strided_slice %725 {offsets = [0, 16], sizes = [8, 16], strides = [1, 1]} : vector<8x64xf32> to vector<8x16xf32>
    %753 = arith.truncf %752 : vector<8x16xf32> to vector<8x16xbf16>
    %754 = vector.extract_strided_slice %726 {offsets = [0, 16], sizes = [8, 16], strides = [1, 1]} : vector<8x64xf32> to vector<8x16xf32>
    %755 = arith.truncf %754 : vector<8x16xf32> to vector<8x16xbf16>
    %cst_228 = arith.constant dense<0.000000e+00> : vector<8x8xf32>
    %756 = tpu.matmul %751, %753, %cst_228 {dimension_numbers = #tpu.dot_dimension_numbers<[1], [1], [0], [0], [0, 0, 1, 0], [], []>} : vector<8x16xbf16>, vector<8x16xbf16>, vector<8x8xf32> -> vector<8x8xf32>
    %757 = arith.addf %756, %25 : vector<8x8xf32>
    %cst_229 = arith.constant dense<0xFF800000> : vector<8xf32>
    %758 = vector.multi_reduction <maximumf>, %757, %cst_229 [1] : vector<8x8xf32> to vector<8xf32>
    %759 = vector.shape_cast %758 : vector<8xf32> to vector<8x1xf32>
    %760 = vector.broadcast %759 : vector<8x1xf32> to vector<8x8xf32>
    %761 = arith.subf %757, %760 : vector<8x8xf32>
    %762 = math.exp %761 : vector<8x8xf32>
    %cst_230 = arith.constant dense<0.000000e+00> : vector<8xf32>
    %763 = vector.multi_reduction <add>, %762, %cst_230 [1] : vector<8x8xf32> to vector<8xf32>
    %764 = vector.shape_cast %763 : vector<8xf32> to vector<8x1xf32>
    %765 = tpu.reciprocal %764 {approx = true} : vector<8x1xf32> -> vector<8x1xf32>
    %766 = vector.broadcast %765 : vector<8x1xf32> to vector<8x8xf32>
    %767 = arith.mulf %762, %766 : vector<8x8xf32>
    %768 = arith.truncf %767 : vector<8x8xf32> to vector<8x8xbf16>
    %cst_231 = arith.constant dense<0.000000e+00> : vector<8x16xf32>
    %769 = tpu.matmul %768, %755, %cst_231 {dimension_numbers = #tpu.dot_dimension_numbers<[1], [0], [0], [1], [0, 0, 1, 1], [], []>} : vector<8x8xbf16>, vector<8x16xbf16>, vector<8x16xf32> -> vector<8x16xf32>
    %770 = arith.truncf %769 : vector<8x16xf32> to vector<8x16xbf16>
    %771 = vector.extract_strided_slice %621 {offsets = [16, 0], sizes = [16, 64], strides = [1, 1]} : vector<64x64xbf16> to vector<16x64xbf16>
    %cst_232 = arith.constant dense<0.000000e+00> : vector<8x64xf32>
    %772 = tpu.matmul %770, %771, %cst_232 {dimension_numbers = #tpu.dot_dimension_numbers<[1], [0], [0], [1], [0, 0, 1, 1], [], []>} : vector<8x16xbf16>, vector<16x64xbf16>, vector<8x64xf32> -> vector<8x64xf32>
    %773 = arith.addf %749, %772 : vector<8x64xf32>
    %774 = vector.extract_strided_slice %724 {offsets = [0, 32], sizes = [8, 16], strides = [1, 1]} : vector<8x64xf32> to vector<8x16xf32>
    %775 = arith.truncf %774 : vector<8x16xf32> to vector<8x16xbf16>
    %776 = vector.extract_strided_slice %725 {offsets = [0, 32], sizes = [8, 16], strides = [1, 1]} : vector<8x64xf32> to vector<8x16xf32>
    %777 = arith.truncf %776 : vector<8x16xf32> to vector<8x16xbf16>
    %778 = vector.extract_strided_slice %726 {offsets = [0, 32], sizes = [8, 16], strides = [1, 1]} : vector<8x64xf32> to vector<8x16xf32>
    %779 = arith.truncf %778 : vector<8x16xf32> to vector<8x16xbf16>
    %cst_233 = arith.constant dense<0.000000e+00> : vector<8x8xf32>
    %780 = tpu.matmul %775, %777, %cst_233 {dimension_numbers = #tpu.dot_dimension_numbers<[1], [1], [0], [0], [0, 0, 1, 0], [], []>} : vector<8x16xbf16>, vector<8x16xbf16>, vector<8x8xf32> -> vector<8x8xf32>
    %781 = arith.addf %780, %25 : vector<8x8xf32>
    %cst_234 = arith.constant dense<0xFF800000> : vector<8xf32>
    %782 = vector.multi_reduction <maximumf>, %781, %cst_234 [1] : vector<8x8xf32> to vector<8xf32>
    %783 = vector.shape_cast %782 : vector<8xf32> to vector<8x1xf32>
    %784 = vector.broadcast %783 : vector<8x1xf32> to vector<8x8xf32>
    %785 = arith.subf %781, %784 : vector<8x8xf32>
    %786 = math.exp %785 : vector<8x8xf32>
    %cst_235 = arith.constant dense<0.000000e+00> : vector<8xf32>
    %787 = vector.multi_reduction <add>, %786, %cst_235 [1] : vector<8x8xf32> to vector<8xf32>
    %788 = vector.shape_cast %787 : vector<8xf32> to vector<8x1xf32>
    %789 = tpu.reciprocal %788 {approx = true} : vector<8x1xf32> -> vector<8x1xf32>
    %790 = vector.broadcast %789 : vector<8x1xf32> to vector<8x8xf32>
    %791 = arith.mulf %786, %790 : vector<8x8xf32>
    %792 = arith.truncf %791 : vector<8x8xf32> to vector<8x8xbf16>
    %cst_236 = arith.constant dense<0.000000e+00> : vector<8x16xf32>
    %793 = tpu.matmul %792, %779, %cst_236 {dimension_numbers = #tpu.dot_dimension_numbers<[1], [0], [0], [1], [0, 0, 1, 1], [], []>} : vector<8x8xbf16>, vector<8x16xbf16>, vector<8x16xf32> -> vector<8x16xf32>
    %794 = arith.truncf %793 : vector<8x16xf32> to vector<8x16xbf16>
    %795 = vector.extract_strided_slice %621 {offsets = [32, 0], sizes = [16, 64], strides = [1, 1]} : vector<64x64xbf16> to vector<16x64xbf16>
    %cst_237 = arith.constant dense<0.000000e+00> : vector<8x64xf32>
    %796 = tpu.matmul %794, %795, %cst_237 {dimension_numbers = #tpu.dot_dimension_numbers<[1], [0], [0], [1], [0, 0, 1, 1], [], []>} : vector<8x16xbf16>, vector<16x64xbf16>, vector<8x64xf32> -> vector<8x64xf32>
    %797 = arith.addf %773, %796 : vector<8x64xf32>
    %798 = vector.extract_strided_slice %724 {offsets = [0, 48], sizes = [8, 16], strides = [1, 1]} : vector<8x64xf32> to vector<8x16xf32>
    %799 = arith.truncf %798 : vector<8x16xf32> to vector<8x16xbf16>
    %800 = vector.extract_strided_slice %725 {offsets = [0, 48], sizes = [8, 16], strides = [1, 1]} : vector<8x64xf32> to vector<8x16xf32>
    %801 = arith.truncf %800 : vector<8x16xf32> to vector<8x16xbf16>
    %802 = vector.extract_strided_slice %726 {offsets = [0, 48], sizes = [8, 16], strides = [1, 1]} : vector<8x64xf32> to vector<8x16xf32>
    %803 = arith.truncf %802 : vector<8x16xf32> to vector<8x16xbf16>
    %cst_238 = arith.constant dense<0.000000e+00> : vector<8x8xf32>
    %804 = tpu.matmul %799, %801, %cst_238 {dimension_numbers = #tpu.dot_dimension_numbers<[1], [1], [0], [0], [0, 0, 1, 0], [], []>} : vector<8x16xbf16>, vector<8x16xbf16>, vector<8x8xf32> -> vector<8x8xf32>
    %805 = arith.addf %804, %25 : vector<8x8xf32>
    %cst_239 = arith.constant dense<0xFF800000> : vector<8xf32>
    %806 = vector.multi_reduction <maximumf>, %805, %cst_239 [1] : vector<8x8xf32> to vector<8xf32>
    %807 = vector.shape_cast %806 : vector<8xf32> to vector<8x1xf32>
    %808 = vector.broadcast %807 : vector<8x1xf32> to vector<8x8xf32>
    %809 = arith.subf %805, %808 : vector<8x8xf32>
    %810 = math.exp %809 : vector<8x8xf32>
    %cst_240 = arith.constant dense<0.000000e+00> : vector<8xf32>
    %811 = vector.multi_reduction <add>, %810, %cst_240 [1] : vector<8x8xf32> to vector<8xf32>
    %812 = vector.shape_cast %811 : vector<8xf32> to vector<8x1xf32>
    %813 = tpu.reciprocal %812 {approx = true} : vector<8x1xf32> -> vector<8x1xf32>
    %814 = vector.broadcast %813 : vector<8x1xf32> to vector<8x8xf32>
    %815 = arith.mulf %810, %814 : vector<8x8xf32>
    %816 = arith.truncf %815 : vector<8x8xf32> to vector<8x8xbf16>
    %cst_241 = arith.constant dense<0.000000e+00> : vector<8x16xf32>
    %817 = tpu.matmul %816, %803, %cst_241 {dimension_numbers = #tpu.dot_dimension_numbers<[1], [0], [0], [1], [0, 0, 1, 1], [], []>} : vector<8x8xbf16>, vector<8x16xbf16>, vector<8x16xf32> -> vector<8x16xf32>
    %818 = arith.truncf %817 : vector<8x16xf32> to vector<8x16xbf16>
    %819 = vector.extract_strided_slice %621 {offsets = [48, 0], sizes = [16, 64], strides = [1, 1]} : vector<64x64xbf16> to vector<16x64xbf16>
    %cst_242 = arith.constant dense<0.000000e+00> : vector<8x64xf32>
    %820 = tpu.matmul %818, %819, %cst_242 {dimension_numbers = #tpu.dot_dimension_numbers<[1], [0], [0], [1], [0, 0, 1, 1], [], []>} : vector<8x16xbf16>, vector<16x64xbf16>, vector<8x64xf32> -> vector<8x64xf32>
    %821 = arith.addf %797, %820 : vector<8x64xf32>
    %822 = vector.broadcast %623 : vector<1x64xf32> to vector<8x64xf32>
    %823 = arith.addf %821, %822 : vector<8x64xf32>
    %824 = tpu.concatenate %723, %823 in 0 : vector<8x64xf32>, vector<8x64xf32> -> vector<16x64xf32>
    %825 = arith.addf %824, %1 : vector<16x64xf32>
    %c0_243 = arith.constant 0 : index
    %c0_244 = arith.constant 0 : index
    %c0_245 = arith.constant 0 : index
    %826 = vector.load %arg20[%c0_243, %c0_244, %c0_245] : memref<2x1x64xf32, #tpu.memory_space<vmem>>, vector<1x1x64xf32>
    %827 = vector.shape_cast %826 : vector<1x1x64xf32> to vector<1x64xf32>
    %c0_246 = arith.constant 0 : index
    %c0_247 = arith.constant 0 : index
    %c0_248 = arith.constant 0 : index
    %828 = vector.load %arg21[%c0_246, %c0_247, %c0_248] : memref<2x1x64xf32, #tpu.memory_space<vmem>>, vector<1x1x64xf32>
    %829 = vector.shape_cast %828 : vector<1x1x64xf32> to vector<1x64xf32>
    %cst_249 = arith.constant dense<0.000000e+00> : vector<16xf32>
    %830 = vector.multi_reduction <add>, %825, %cst_249 [1] : vector<16x64xf32> to vector<16xf32>
    %831 = vector.shape_cast %830 : vector<16xf32> to vector<16x1xf32>
    %cst_250 = arith.constant 6.400000e+01 : f32
    %832 = vector.broadcast %cst_250 : f32 to vector<16x1xf32>
    %833 = arith.divf %831, %832 : vector<16x1xf32>
    %834 = vector.broadcast %833 : vector<16x1xf32> to vector<16x64xf32>
    %835 = arith.subf %825, %834 : vector<16x64xf32>
    %836 = arith.mulf %835, %835 : vector<16x64xf32>
    %cst_251 = arith.constant dense<0.000000e+00> : vector<16xf32>
    %837 = vector.multi_reduction <add>, %836, %cst_251 [1] : vector<16x64xf32> to vector<16xf32>
    %838 = vector.shape_cast %837 : vector<16xf32> to vector<16x1xf32>
    %cst_252 = arith.constant 6.400000e+01 : f32
    %839 = vector.broadcast %cst_252 : f32 to vector<16x1xf32>
    %840 = arith.divf %838, %839 : vector<16x1xf32>
    %841 = vector.broadcast %833 : vector<16x1xf32> to vector<16x64xf32>
    %842 = arith.subf %825, %841 : vector<16x64xf32>
    %cst_253 = arith.constant 9.99999974E-6 : f32
    %843 = vector.broadcast %cst_253 : f32 to vector<16x1xf32>
    %844 = arith.addf %840, %843 : vector<16x1xf32>
    %845 = math.rsqrt %844 : vector<16x1xf32>
    %846 = vector.broadcast %845 : vector<16x1xf32> to vector<16x64xf32>
    %847 = arith.mulf %842, %846 : vector<16x64xf32>
    %848 = vector.broadcast %827 : vector<1x64xf32> to vector<16x64xf32>
    %849 = arith.mulf %847, %848 : vector<16x64xf32>
    %850 = vector.broadcast %829 : vector<1x64xf32> to vector<16x64xf32>
    %851 = arith.addf %849, %850 : vector<16x64xf32>
    %c0_254 = arith.constant 0 : index
    %c0_255 = arith.constant 0 : index
    %c0_256 = arith.constant 0 : index
    %852 = vector.load %arg22[%c0_254, %c0_255, %c0_256] : memref<2x64x64xbf16, #tpu.memory_space<vmem>>, vector<1x64x64xbf16>
    %853 = vector.shape_cast %852 : vector<1x64x64xbf16> to vector<64x64xbf16>
    %854 = arith.truncf %851 : vector<16x64xf32> to vector<16x64xbf16>
    %cst_257 = arith.constant dense<0.000000e+00> : vector<16x64xf32>
    %855 = tpu.matmul %854, %853, %cst_257 {dimension_numbers = #tpu.dot_dimension_numbers<[1], [0], [0], [1], [0, 0, 1, 1], [], []>} : vector<16x64xbf16>, vector<64x64xbf16>, vector<16x64xf32> -> vector<16x64xf32>
    %c0_258 = arith.constant 0 : index
    %c0_259 = arith.constant 0 : index
    %c0_260 = arith.constant 0 : index
    %856 = vector.load %arg23[%c0_258, %c0_259, %c0_260] : memref<2x1x64xf32, #tpu.memory_space<vmem>>, vector<1x1x64xf32>
    %857 = vector.shape_cast %856 : vector<1x1x64xf32> to vector<1x64xf32>
    %858 = vector.broadcast %857 : vector<1x64xf32> to vector<16x64xf32>
    %859 = arith.addf %855, %858 : vector<16x64xf32>
    %cst_261 = arith.constant 1.250000e-01 : f32
    %860 = vector.broadcast %cst_261 : f32 to vector<16x64xf32>
    %861 = arith.mulf %859, %860 : vector<16x64xf32>
    %c0_262 = arith.constant 0 : index
    %c0_263 = arith.constant 0 : index
    %c0_264 = arith.constant 0 : index
    %862 = vector.load %arg24[%c0_262, %c0_263, %c0_264] : memref<2x64x128xbf16, #tpu.memory_space<vmem>>, vector<1x64x128xbf16>
    %863 = vector.shape_cast %862 : vector<1x64x128xbf16> to vector<64x128xbf16>
    %cst_265 = arith.constant dense<0.000000e+00> : vector<16x128xf32>
    %864 = tpu.matmul %606, %863, %cst_265 {dimension_numbers = #tpu.dot_dimension_numbers<[1], [0], [0], [1], [0, 0, 1, 1], [], []>} : vector<16x64xbf16>, vector<64x128xbf16>, vector<16x128xf32> -> vector<16x128xf32>
    %c0_266 = arith.constant 0 : index
    %c0_267 = arith.constant 0 : index
    %c0_268 = arith.constant 0 : index
    %865 = vector.load %arg25[%c0_266, %c0_267, %c0_268] : memref<2x1x128xf32, #tpu.memory_space<vmem>>, vector<1x1x128xf32>
    %866 = vector.shape_cast %865 : vector<1x1x128xf32> to vector<1x128xf32>
    %867 = vector.broadcast %866 : vector<1x128xf32> to vector<16x128xf32>
    %868 = arith.addf %864, %867 : vector<16x128xf32>
    %869 = vector.extract_strided_slice %868 {offsets = [0, 0], sizes = [16, 64], strides = [1, 1]} : vector<16x128xf32> to vector<16x64xf32>
    %870 = vector.extract_strided_slice %868 {offsets = [0, 64], sizes = [16, 64], strides = [1, 1]} : vector<16x128xf32> to vector<16x64xf32>
    %c0_269 = arith.constant 0 : index
    %c0_270 = arith.constant 0 : index
    %c0_271 = arith.constant 0 : index
    %871 = vector.load %arg26[%c0_269, %c0_270, %c0_271] : memref<2x64x64xbf16, #tpu.memory_space<vmem>>, vector<1x64x64xbf16>
    %872 = vector.shape_cast %871 : vector<1x64x64xbf16> to vector<64x64xbf16>
    %c0_272 = arith.constant 0 : index
    %c0_273 = arith.constant 0 : index
    %c0_274 = arith.constant 0 : index
    %873 = vector.load %arg27[%c0_272, %c0_273, %c0_274] : memref<2x1x64xf32, #tpu.memory_space<vmem>>, vector<1x1x64xf32>
    %874 = vector.shape_cast %873 : vector<1x1x64xf32> to vector<1x64xf32>
    %875 = vector.extract_strided_slice %861 {offsets = [0, 0], sizes = [8, 64], strides = [1, 1]} : vector<16x64xf32> to vector<8x64xf32>
    %876 = vector.extract_strided_slice %869 {offsets = [0, 0], sizes = [8, 64], strides = [1, 1]} : vector<16x64xf32> to vector<8x64xf32>
    %877 = vector.extract_strided_slice %870 {offsets = [0, 0], sizes = [8, 64], strides = [1, 1]} : vector<16x64xf32> to vector<8x64xf32>
    %878 = vector.extract_strided_slice %875 {offsets = [0, 0], sizes = [8, 16], strides = [1, 1]} : vector<8x64xf32> to vector<8x16xf32>
    %879 = arith.truncf %878 : vector<8x16xf32> to vector<8x16xbf16>
    %880 = vector.extract_strided_slice %876 {offsets = [0, 0], sizes = [8, 16], strides = [1, 1]} : vector<8x64xf32> to vector<8x16xf32>
    %881 = arith.truncf %880 : vector<8x16xf32> to vector<8x16xbf16>
    %882 = vector.extract_strided_slice %877 {offsets = [0, 0], sizes = [8, 16], strides = [1, 1]} : vector<8x64xf32> to vector<8x16xf32>
    %883 = arith.truncf %882 : vector<8x16xf32> to vector<8x16xbf16>
    %cst_275 = arith.constant dense<0.000000e+00> : vector<8x8xf32>
    %884 = tpu.matmul %879, %881, %cst_275 {dimension_numbers = #tpu.dot_dimension_numbers<[1], [1], [0], [0], [0, 0, 1, 0], [], []>} : vector<8x16xbf16>, vector<8x16xbf16>, vector<8x8xf32> -> vector<8x8xf32>
    %885 = arith.addf %884, %16 : vector<8x8xf32>
    %cst_276 = arith.constant dense<0xFF800000> : vector<8xf32>
    %886 = vector.multi_reduction <maximumf>, %885, %cst_276 [1] : vector<8x8xf32> to vector<8xf32>
    %887 = vector.shape_cast %886 : vector<8xf32> to vector<8x1xf32>
    %888 = vector.broadcast %887 : vector<8x1xf32> to vector<8x8xf32>
    %889 = arith.subf %885, %888 : vector<8x8xf32>
    %890 = math.exp %889 : vector<8x8xf32>
    %cst_277 = arith.constant dense<0.000000e+00> : vector<8xf32>
    %891 = vector.multi_reduction <add>, %890, %cst_277 [1] : vector<8x8xf32> to vector<8xf32>
    %892 = vector.shape_cast %891 : vector<8xf32> to vector<8x1xf32>
    %893 = tpu.reciprocal %892 {approx = true} : vector<8x1xf32> -> vector<8x1xf32>
    %894 = vector.broadcast %893 : vector<8x1xf32> to vector<8x8xf32>
    %895 = arith.mulf %890, %894 : vector<8x8xf32>
    %896 = arith.truncf %895 : vector<8x8xf32> to vector<8x8xbf16>
    %cst_278 = arith.constant dense<0.000000e+00> : vector<8x16xf32>
    %897 = tpu.matmul %896, %883, %cst_278 {dimension_numbers = #tpu.dot_dimension_numbers<[1], [0], [0], [1], [0, 0, 1, 1], [], []>} : vector<8x8xbf16>, vector<8x16xbf16>, vector<8x16xf32> -> vector<8x16xf32>
    %898 = arith.truncf %897 : vector<8x16xf32> to vector<8x16xbf16>
    %899 = vector.extract_strided_slice %872 {offsets = [0, 0], sizes = [16, 64], strides = [1, 1]} : vector<64x64xbf16> to vector<16x64xbf16>
    %cst_279 = arith.constant dense<0.000000e+00> : vector<8x64xf32>
    %900 = tpu.matmul %898, %899, %cst_279 {dimension_numbers = #tpu.dot_dimension_numbers<[1], [0], [0], [1], [0, 0, 1, 1], [], []>} : vector<8x16xbf16>, vector<16x64xbf16>, vector<8x64xf32> -> vector<8x64xf32>
    %901 = vector.extract_strided_slice %875 {offsets = [0, 16], sizes = [8, 16], strides = [1, 1]} : vector<8x64xf32> to vector<8x16xf32>
    %902 = arith.truncf %901 : vector<8x16xf32> to vector<8x16xbf16>
    %903 = vector.extract_strided_slice %876 {offsets = [0, 16], sizes = [8, 16], strides = [1, 1]} : vector<8x64xf32> to vector<8x16xf32>
    %904 = arith.truncf %903 : vector<8x16xf32> to vector<8x16xbf16>
    %905 = vector.extract_strided_slice %877 {offsets = [0, 16], sizes = [8, 16], strides = [1, 1]} : vector<8x64xf32> to vector<8x16xf32>
    %906 = arith.truncf %905 : vector<8x16xf32> to vector<8x16xbf16>
    %cst_280 = arith.constant dense<0.000000e+00> : vector<8x8xf32>
    %907 = tpu.matmul %902, %904, %cst_280 {dimension_numbers = #tpu.dot_dimension_numbers<[1], [1], [0], [0], [0, 0, 1, 0], [], []>} : vector<8x16xbf16>, vector<8x16xbf16>, vector<8x8xf32> -> vector<8x8xf32>
    %908 = arith.addf %907, %16 : vector<8x8xf32>
    %cst_281 = arith.constant dense<0xFF800000> : vector<8xf32>
    %909 = vector.multi_reduction <maximumf>, %908, %cst_281 [1] : vector<8x8xf32> to vector<8xf32>
    %910 = vector.shape_cast %909 : vector<8xf32> to vector<8x1xf32>
    %911 = vector.broadcast %910 : vector<8x1xf32> to vector<8x8xf32>
    %912 = arith.subf %908, %911 : vector<8x8xf32>
    %913 = math.exp %912 : vector<8x8xf32>
    %cst_282 = arith.constant dense<0.000000e+00> : vector<8xf32>
    %914 = vector.multi_reduction <add>, %913, %cst_282 [1] : vector<8x8xf32> to vector<8xf32>
    %915 = vector.shape_cast %914 : vector<8xf32> to vector<8x1xf32>
    %916 = tpu.reciprocal %915 {approx = true} : vector<8x1xf32> -> vector<8x1xf32>
    %917 = vector.broadcast %916 : vector<8x1xf32> to vector<8x8xf32>
    %918 = arith.mulf %913, %917 : vector<8x8xf32>
    %919 = arith.truncf %918 : vector<8x8xf32> to vector<8x8xbf16>
    %cst_283 = arith.constant dense<0.000000e+00> : vector<8x16xf32>
    %920 = tpu.matmul %919, %906, %cst_283 {dimension_numbers = #tpu.dot_dimension_numbers<[1], [0], [0], [1], [0, 0, 1, 1], [], []>} : vector<8x8xbf16>, vector<8x16xbf16>, vector<8x16xf32> -> vector<8x16xf32>
    %921 = arith.truncf %920 : vector<8x16xf32> to vector<8x16xbf16>
    %922 = vector.extract_strided_slice %872 {offsets = [16, 0], sizes = [16, 64], strides = [1, 1]} : vector<64x64xbf16> to vector<16x64xbf16>
    %cst_284 = arith.constant dense<0.000000e+00> : vector<8x64xf32>
    %923 = tpu.matmul %921, %922, %cst_284 {dimension_numbers = #tpu.dot_dimension_numbers<[1], [0], [0], [1], [0, 0, 1, 1], [], []>} : vector<8x16xbf16>, vector<16x64xbf16>, vector<8x64xf32> -> vector<8x64xf32>
    %924 = arith.addf %900, %923 : vector<8x64xf32>
    %925 = vector.extract_strided_slice %875 {offsets = [0, 32], sizes = [8, 16], strides = [1, 1]} : vector<8x64xf32> to vector<8x16xf32>
    %926 = arith.truncf %925 : vector<8x16xf32> to vector<8x16xbf16>
    %927 = vector.extract_strided_slice %876 {offsets = [0, 32], sizes = [8, 16], strides = [1, 1]} : vector<8x64xf32> to vector<8x16xf32>
    %928 = arith.truncf %927 : vector<8x16xf32> to vector<8x16xbf16>
    %929 = vector.extract_strided_slice %877 {offsets = [0, 32], sizes = [8, 16], strides = [1, 1]} : vector<8x64xf32> to vector<8x16xf32>
    %930 = arith.truncf %929 : vector<8x16xf32> to vector<8x16xbf16>
    %cst_285 = arith.constant dense<0.000000e+00> : vector<8x8xf32>
    %931 = tpu.matmul %926, %928, %cst_285 {dimension_numbers = #tpu.dot_dimension_numbers<[1], [1], [0], [0], [0, 0, 1, 0], [], []>} : vector<8x16xbf16>, vector<8x16xbf16>, vector<8x8xf32> -> vector<8x8xf32>
    %932 = arith.addf %931, %16 : vector<8x8xf32>
    %cst_286 = arith.constant dense<0xFF800000> : vector<8xf32>
    %933 = vector.multi_reduction <maximumf>, %932, %cst_286 [1] : vector<8x8xf32> to vector<8xf32>
    %934 = vector.shape_cast %933 : vector<8xf32> to vector<8x1xf32>
    %935 = vector.broadcast %934 : vector<8x1xf32> to vector<8x8xf32>
    %936 = arith.subf %932, %935 : vector<8x8xf32>
    %937 = math.exp %936 : vector<8x8xf32>
    %cst_287 = arith.constant dense<0.000000e+00> : vector<8xf32>
    %938 = vector.multi_reduction <add>, %937, %cst_287 [1] : vector<8x8xf32> to vector<8xf32>
    %939 = vector.shape_cast %938 : vector<8xf32> to vector<8x1xf32>
    %940 = tpu.reciprocal %939 {approx = true} : vector<8x1xf32> -> vector<8x1xf32>
    %941 = vector.broadcast %940 : vector<8x1xf32> to vector<8x8xf32>
    %942 = arith.mulf %937, %941 : vector<8x8xf32>
    %943 = arith.truncf %942 : vector<8x8xf32> to vector<8x8xbf16>
    %cst_288 = arith.constant dense<0.000000e+00> : vector<8x16xf32>
    %944 = tpu.matmul %943, %930, %cst_288 {dimension_numbers = #tpu.dot_dimension_numbers<[1], [0], [0], [1], [0, 0, 1, 1], [], []>} : vector<8x8xbf16>, vector<8x16xbf16>, vector<8x16xf32> -> vector<8x16xf32>
    %945 = arith.truncf %944 : vector<8x16xf32> to vector<8x16xbf16>
    %946 = vector.extract_strided_slice %872 {offsets = [32, 0], sizes = [16, 64], strides = [1, 1]} : vector<64x64xbf16> to vector<16x64xbf16>
    %cst_289 = arith.constant dense<0.000000e+00> : vector<8x64xf32>
    %947 = tpu.matmul %945, %946, %cst_289 {dimension_numbers = #tpu.dot_dimension_numbers<[1], [0], [0], [1], [0, 0, 1, 1], [], []>} : vector<8x16xbf16>, vector<16x64xbf16>, vector<8x64xf32> -> vector<8x64xf32>
    %948 = arith.addf %924, %947 : vector<8x64xf32>
    %949 = vector.extract_strided_slice %875 {offsets = [0, 48], sizes = [8, 16], strides = [1, 1]} : vector<8x64xf32> to vector<8x16xf32>
    %950 = arith.truncf %949 : vector<8x16xf32> to vector<8x16xbf16>
    %951 = vector.extract_strided_slice %876 {offsets = [0, 48], sizes = [8, 16], strides = [1, 1]} : vector<8x64xf32> to vector<8x16xf32>
    %952 = arith.truncf %951 : vector<8x16xf32> to vector<8x16xbf16>
    %953 = vector.extract_strided_slice %877 {offsets = [0, 48], sizes = [8, 16], strides = [1, 1]} : vector<8x64xf32> to vector<8x16xf32>
    %954 = arith.truncf %953 : vector<8x16xf32> to vector<8x16xbf16>
    %cst_290 = arith.constant dense<0.000000e+00> : vector<8x8xf32>
    %955 = tpu.matmul %950, %952, %cst_290 {dimension_numbers = #tpu.dot_dimension_numbers<[1], [1], [0], [0], [0, 0, 1, 0], [], []>} : vector<8x16xbf16>, vector<8x16xbf16>, vector<8x8xf32> -> vector<8x8xf32>
    %956 = arith.addf %955, %16 : vector<8x8xf32>
    %cst_291 = arith.constant dense<0xFF800000> : vector<8xf32>
    %957 = vector.multi_reduction <maximumf>, %956, %cst_291 [1] : vector<8x8xf32> to vector<8xf32>
    %958 = vector.shape_cast %957 : vector<8xf32> to vector<8x1xf32>
    %959 = vector.broadcast %958 : vector<8x1xf32> to vector<8x8xf32>
    %960 = arith.subf %956, %959 : vector<8x8xf32>
    %961 = math.exp %960 : vector<8x8xf32>
    %cst_292 = arith.constant dense<0.000000e+00> : vector<8xf32>
    %962 = vector.multi_reduction <add>, %961, %cst_292 [1] : vector<8x8xf32> to vector<8xf32>
    %963 = vector.shape_cast %962 : vector<8xf32> to vector<8x1xf32>
    %964 = tpu.reciprocal %963 {approx = true} : vector<8x1xf32> -> vector<8x1xf32>
    %965 = vector.broadcast %964 : vector<8x1xf32> to vector<8x8xf32>
    %966 = arith.mulf %961, %965 : vector<8x8xf32>
    %967 = arith.truncf %966 : vector<8x8xf32> to vector<8x8xbf16>
    %cst_293 = arith.constant dense<0.000000e+00> : vector<8x16xf32>
    %968 = tpu.matmul %967, %954, %cst_293 {dimension_numbers = #tpu.dot_dimension_numbers<[1], [0], [0], [1], [0, 0, 1, 1], [], []>} : vector<8x8xbf16>, vector<8x16xbf16>, vector<8x16xf32> -> vector<8x16xf32>
    %969 = arith.truncf %968 : vector<8x16xf32> to vector<8x16xbf16>
    %970 = vector.extract_strided_slice %872 {offsets = [48, 0], sizes = [16, 64], strides = [1, 1]} : vector<64x64xbf16> to vector<16x64xbf16>
    %cst_294 = arith.constant dense<0.000000e+00> : vector<8x64xf32>
    %971 = tpu.matmul %969, %970, %cst_294 {dimension_numbers = #tpu.dot_dimension_numbers<[1], [0], [0], [1], [0, 0, 1, 1], [], []>} : vector<8x16xbf16>, vector<16x64xbf16>, vector<8x64xf32> -> vector<8x64xf32>
    %972 = arith.addf %948, %971 : vector<8x64xf32>
    %973 = vector.broadcast %874 : vector<1x64xf32> to vector<8x64xf32>
    %974 = arith.addf %972, %973 : vector<8x64xf32>
    %975 = vector.extract_strided_slice %861 {offsets = [8, 0], sizes = [8, 64], strides = [1, 1]} : vector<16x64xf32> to vector<8x64xf32>
    %976 = vector.extract_strided_slice %869 {offsets = [8, 0], sizes = [8, 64], strides = [1, 1]} : vector<16x64xf32> to vector<8x64xf32>
    %977 = vector.extract_strided_slice %870 {offsets = [8, 0], sizes = [8, 64], strides = [1, 1]} : vector<16x64xf32> to vector<8x64xf32>
    %978 = vector.extract_strided_slice %975 {offsets = [0, 0], sizes = [8, 16], strides = [1, 1]} : vector<8x64xf32> to vector<8x16xf32>
    %979 = arith.truncf %978 : vector<8x16xf32> to vector<8x16xbf16>
    %980 = vector.extract_strided_slice %976 {offsets = [0, 0], sizes = [8, 16], strides = [1, 1]} : vector<8x64xf32> to vector<8x16xf32>
    %981 = arith.truncf %980 : vector<8x16xf32> to vector<8x16xbf16>
    %982 = vector.extract_strided_slice %977 {offsets = [0, 0], sizes = [8, 16], strides = [1, 1]} : vector<8x64xf32> to vector<8x16xf32>
    %983 = arith.truncf %982 : vector<8x16xf32> to vector<8x16xbf16>
    %cst_295 = arith.constant dense<0.000000e+00> : vector<8x8xf32>
    %984 = tpu.matmul %979, %981, %cst_295 {dimension_numbers = #tpu.dot_dimension_numbers<[1], [1], [0], [0], [0, 0, 1, 0], [], []>} : vector<8x16xbf16>, vector<8x16xbf16>, vector<8x8xf32> -> vector<8x8xf32>
    %985 = arith.addf %984, %19 : vector<8x8xf32>
    %cst_296 = arith.constant dense<0xFF800000> : vector<8xf32>
    %986 = vector.multi_reduction <maximumf>, %985, %cst_296 [1] : vector<8x8xf32> to vector<8xf32>
    %987 = vector.shape_cast %986 : vector<8xf32> to vector<8x1xf32>
    %988 = vector.broadcast %987 : vector<8x1xf32> to vector<8x8xf32>
    %989 = arith.subf %985, %988 : vector<8x8xf32>
    %990 = math.exp %989 : vector<8x8xf32>
    %cst_297 = arith.constant dense<0.000000e+00> : vector<8xf32>
    %991 = vector.multi_reduction <add>, %990, %cst_297 [1] : vector<8x8xf32> to vector<8xf32>
    %992 = vector.shape_cast %991 : vector<8xf32> to vector<8x1xf32>
    %993 = tpu.reciprocal %992 {approx = true} : vector<8x1xf32> -> vector<8x1xf32>
    %994 = vector.broadcast %993 : vector<8x1xf32> to vector<8x8xf32>
    %995 = arith.mulf %990, %994 : vector<8x8xf32>
    %996 = arith.truncf %995 : vector<8x8xf32> to vector<8x8xbf16>
    %cst_298 = arith.constant dense<0.000000e+00> : vector<8x16xf32>
    %997 = tpu.matmul %996, %983, %cst_298 {dimension_numbers = #tpu.dot_dimension_numbers<[1], [0], [0], [1], [0, 0, 1, 1], [], []>} : vector<8x8xbf16>, vector<8x16xbf16>, vector<8x16xf32> -> vector<8x16xf32>
    %998 = arith.truncf %997 : vector<8x16xf32> to vector<8x16xbf16>
    %999 = vector.extract_strided_slice %872 {offsets = [0, 0], sizes = [16, 64], strides = [1, 1]} : vector<64x64xbf16> to vector<16x64xbf16>
    %cst_299 = arith.constant dense<0.000000e+00> : vector<8x64xf32>
    %1000 = tpu.matmul %998, %999, %cst_299 {dimension_numbers = #tpu.dot_dimension_numbers<[1], [0], [0], [1], [0, 0, 1, 1], [], []>} : vector<8x16xbf16>, vector<16x64xbf16>, vector<8x64xf32> -> vector<8x64xf32>
    %1001 = vector.extract_strided_slice %975 {offsets = [0, 16], sizes = [8, 16], strides = [1, 1]} : vector<8x64xf32> to vector<8x16xf32>
    %1002 = arith.truncf %1001 : vector<8x16xf32> to vector<8x16xbf16>
    %1003 = vector.extract_strided_slice %976 {offsets = [0, 16], sizes = [8, 16], strides = [1, 1]} : vector<8x64xf32> to vector<8x16xf32>
    %1004 = arith.truncf %1003 : vector<8x16xf32> to vector<8x16xbf16>
    %1005 = vector.extract_strided_slice %977 {offsets = [0, 16], sizes = [8, 16], strides = [1, 1]} : vector<8x64xf32> to vector<8x16xf32>
    %1006 = arith.truncf %1005 : vector<8x16xf32> to vector<8x16xbf16>
    %cst_300 = arith.constant dense<0.000000e+00> : vector<8x8xf32>
    %1007 = tpu.matmul %1002, %1004, %cst_300 {dimension_numbers = #tpu.dot_dimension_numbers<[1], [1], [0], [0], [0, 0, 1, 0], [], []>} : vector<8x16xbf16>, vector<8x16xbf16>, vector<8x8xf32> -> vector<8x8xf32>
    %1008 = arith.addf %1007, %19 : vector<8x8xf32>
    %cst_301 = arith.constant dense<0xFF800000> : vector<8xf32>
    %1009 = vector.multi_reduction <maximumf>, %1008, %cst_301 [1] : vector<8x8xf32> to vector<8xf32>
    %1010 = vector.shape_cast %1009 : vector<8xf32> to vector<8x1xf32>
    %1011 = vector.broadcast %1010 : vector<8x1xf32> to vector<8x8xf32>
    %1012 = arith.subf %1008, %1011 : vector<8x8xf32>
    %1013 = math.exp %1012 : vector<8x8xf32>
    %cst_302 = arith.constant dense<0.000000e+00> : vector<8xf32>
    %1014 = vector.multi_reduction <add>, %1013, %cst_302 [1] : vector<8x8xf32> to vector<8xf32>
    %1015 = vector.shape_cast %1014 : vector<8xf32> to vector<8x1xf32>
    %1016 = tpu.reciprocal %1015 {approx = true} : vector<8x1xf32> -> vector<8x1xf32>
    %1017 = vector.broadcast %1016 : vector<8x1xf32> to vector<8x8xf32>
    %1018 = arith.mulf %1013, %1017 : vector<8x8xf32>
    %1019 = arith.truncf %1018 : vector<8x8xf32> to vector<8x8xbf16>
    %cst_303 = arith.constant dense<0.000000e+00> : vector<8x16xf32>
    %1020 = tpu.matmul %1019, %1006, %cst_303 {dimension_numbers = #tpu.dot_dimension_numbers<[1], [0], [0], [1], [0, 0, 1, 1], [], []>} : vector<8x8xbf16>, vector<8x16xbf16>, vector<8x16xf32> -> vector<8x16xf32>
    %1021 = arith.truncf %1020 : vector<8x16xf32> to vector<8x16xbf16>
    %1022 = vector.extract_strided_slice %872 {offsets = [16, 0], sizes = [16, 64], strides = [1, 1]} : vector<64x64xbf16> to vector<16x64xbf16>
    %cst_304 = arith.constant dense<0.000000e+00> : vector<8x64xf32>
    %1023 = tpu.matmul %1021, %1022, %cst_304 {dimension_numbers = #tpu.dot_dimension_numbers<[1], [0], [0], [1], [0, 0, 1, 1], [], []>} : vector<8x16xbf16>, vector<16x64xbf16>, vector<8x64xf32> -> vector<8x64xf32>
    %1024 = arith.addf %1000, %1023 : vector<8x64xf32>
    %1025 = vector.extract_strided_slice %975 {offsets = [0, 32], sizes = [8, 16], strides = [1, 1]} : vector<8x64xf32> to vector<8x16xf32>
    %1026 = arith.truncf %1025 : vector<8x16xf32> to vector<8x16xbf16>
    %1027 = vector.extract_strided_slice %976 {offsets = [0, 32], sizes = [8, 16], strides = [1, 1]} : vector<8x64xf32> to vector<8x16xf32>
    %1028 = arith.truncf %1027 : vector<8x16xf32> to vector<8x16xbf16>
    %1029 = vector.extract_strided_slice %977 {offsets = [0, 32], sizes = [8, 16], strides = [1, 1]} : vector<8x64xf32> to vector<8x16xf32>
    %1030 = arith.truncf %1029 : vector<8x16xf32> to vector<8x16xbf16>
    %cst_305 = arith.constant dense<0.000000e+00> : vector<8x8xf32>
    %1031 = tpu.matmul %1026, %1028, %cst_305 {dimension_numbers = #tpu.dot_dimension_numbers<[1], [1], [0], [0], [0, 0, 1, 0], [], []>} : vector<8x16xbf16>, vector<8x16xbf16>, vector<8x8xf32> -> vector<8x8xf32>
    %1032 = arith.addf %1031, %19 : vector<8x8xf32>
    %cst_306 = arith.constant dense<0xFF800000> : vector<8xf32>
    %1033 = vector.multi_reduction <maximumf>, %1032, %cst_306 [1] : vector<8x8xf32> to vector<8xf32>
    %1034 = vector.shape_cast %1033 : vector<8xf32> to vector<8x1xf32>
    %1035 = vector.broadcast %1034 : vector<8x1xf32> to vector<8x8xf32>
    %1036 = arith.subf %1032, %1035 : vector<8x8xf32>
    %1037 = math.exp %1036 : vector<8x8xf32>
    %cst_307 = arith.constant dense<0.000000e+00> : vector<8xf32>
    %1038 = vector.multi_reduction <add>, %1037, %cst_307 [1] : vector<8x8xf32> to vector<8xf32>
    %1039 = vector.shape_cast %1038 : vector<8xf32> to vector<8x1xf32>
    %1040 = tpu.reciprocal %1039 {approx = true} : vector<8x1xf32> -> vector<8x1xf32>
    %1041 = vector.broadcast %1040 : vector<8x1xf32> to vector<8x8xf32>
    %1042 = arith.mulf %1037, %1041 : vector<8x8xf32>
    %1043 = arith.truncf %1042 : vector<8x8xf32> to vector<8x8xbf16>
    %cst_308 = arith.constant dense<0.000000e+00> : vector<8x16xf32>
    %1044 = tpu.matmul %1043, %1030, %cst_308 {dimension_numbers = #tpu.dot_dimension_numbers<[1], [0], [0], [1], [0, 0, 1, 1], [], []>} : vector<8x8xbf16>, vector<8x16xbf16>, vector<8x16xf32> -> vector<8x16xf32>
    %1045 = arith.truncf %1044 : vector<8x16xf32> to vector<8x16xbf16>
    %1046 = vector.extract_strided_slice %872 {offsets = [32, 0], sizes = [16, 64], strides = [1, 1]} : vector<64x64xbf16> to vector<16x64xbf16>
    %cst_309 = arith.constant dense<0.000000e+00> : vector<8x64xf32>
    %1047 = tpu.matmul %1045, %1046, %cst_309 {dimension_numbers = #tpu.dot_dimension_numbers<[1], [0], [0], [1], [0, 0, 1, 1], [], []>} : vector<8x16xbf16>, vector<16x64xbf16>, vector<8x64xf32> -> vector<8x64xf32>
    %1048 = arith.addf %1024, %1047 : vector<8x64xf32>
    %1049 = vector.extract_strided_slice %975 {offsets = [0, 48], sizes = [8, 16], strides = [1, 1]} : vector<8x64xf32> to vector<8x16xf32>
    %1050 = arith.truncf %1049 : vector<8x16xf32> to vector<8x16xbf16>
    %1051 = vector.extract_strided_slice %976 {offsets = [0, 48], sizes = [8, 16], strides = [1, 1]} : vector<8x64xf32> to vector<8x16xf32>
    %1052 = arith.truncf %1051 : vector<8x16xf32> to vector<8x16xbf16>
    %1053 = vector.extract_strided_slice %977 {offsets = [0, 48], sizes = [8, 16], strides = [1, 1]} : vector<8x64xf32> to vector<8x16xf32>
    %1054 = arith.truncf %1053 : vector<8x16xf32> to vector<8x16xbf16>
    %cst_310 = arith.constant dense<0.000000e+00> : vector<8x8xf32>
    %1055 = tpu.matmul %1050, %1052, %cst_310 {dimension_numbers = #tpu.dot_dimension_numbers<[1], [1], [0], [0], [0, 0, 1, 0], [], []>} : vector<8x16xbf16>, vector<8x16xbf16>, vector<8x8xf32> -> vector<8x8xf32>
    %1056 = arith.addf %1055, %19 : vector<8x8xf32>
    %cst_311 = arith.constant dense<0xFF800000> : vector<8xf32>
    %1057 = vector.multi_reduction <maximumf>, %1056, %cst_311 [1] : vector<8x8xf32> to vector<8xf32>
    %1058 = vector.shape_cast %1057 : vector<8xf32> to vector<8x1xf32>
    %1059 = vector.broadcast %1058 : vector<8x1xf32> to vector<8x8xf32>
    %1060 = arith.subf %1056, %1059 : vector<8x8xf32>
    %1061 = math.exp %1060 : vector<8x8xf32>
    %cst_312 = arith.constant dense<0.000000e+00> : vector<8xf32>
    %1062 = vector.multi_reduction <add>, %1061, %cst_312 [1] : vector<8x8xf32> to vector<8xf32>
    %1063 = vector.shape_cast %1062 : vector<8xf32> to vector<8x1xf32>
    %1064 = tpu.reciprocal %1063 {approx = true} : vector<8x1xf32> -> vector<8x1xf32>
    %1065 = vector.broadcast %1064 : vector<8x1xf32> to vector<8x8xf32>
    %1066 = arith.mulf %1061, %1065 : vector<8x8xf32>
    %1067 = arith.truncf %1066 : vector<8x8xf32> to vector<8x8xbf16>
    %cst_313 = arith.constant dense<0.000000e+00> : vector<8x16xf32>
    %1068 = tpu.matmul %1067, %1054, %cst_313 {dimension_numbers = #tpu.dot_dimension_numbers<[1], [0], [0], [1], [0, 0, 1, 1], [], []>} : vector<8x8xbf16>, vector<8x16xbf16>, vector<8x16xf32> -> vector<8x16xf32>
    %1069 = arith.truncf %1068 : vector<8x16xf32> to vector<8x16xbf16>
    %1070 = vector.extract_strided_slice %872 {offsets = [48, 0], sizes = [16, 64], strides = [1, 1]} : vector<64x64xbf16> to vector<16x64xbf16>
    %cst_314 = arith.constant dense<0.000000e+00> : vector<8x64xf32>
    %1071 = tpu.matmul %1069, %1070, %cst_314 {dimension_numbers = #tpu.dot_dimension_numbers<[1], [0], [0], [1], [0, 0, 1, 1], [], []>} : vector<8x16xbf16>, vector<16x64xbf16>, vector<8x64xf32> -> vector<8x64xf32>
    %1072 = arith.addf %1048, %1071 : vector<8x64xf32>
    %1073 = vector.broadcast %874 : vector<1x64xf32> to vector<8x64xf32>
    %1074 = arith.addf %1072, %1073 : vector<8x64xf32>
    %1075 = tpu.concatenate %974, %1074 in 0 : vector<8x64xf32>, vector<8x64xf32> -> vector<16x64xf32>
    %c0_315 = arith.constant 0 : index
    %c0_316 = arith.constant 0 : index
    %c0_317 = arith.constant 0 : index
    %1076 = vector.load %arg28[%c0_315, %c0_316, %c0_317] : memref<2x1x64xf32, #tpu.memory_space<vmem>>, vector<1x1x64xf32>
    %1077 = vector.shape_cast %1076 : vector<1x1x64xf32> to vector<1x64xf32>
    %c0_318 = arith.constant 0 : index
    %c0_319 = arith.constant 0 : index
    %c0_320 = arith.constant 0 : index
    %1078 = vector.load %arg29[%c0_318, %c0_319, %c0_320] : memref<2x1x64xf32, #tpu.memory_space<vmem>>, vector<1x1x64xf32>
    %1079 = vector.shape_cast %1078 : vector<1x1x64xf32> to vector<1x64xf32>
    %c0_321 = arith.constant 0 : index
    %c0_322 = arith.constant 0 : index
    %c0_323 = arith.constant 0 : index
    %1080 = vector.load %arg30[%c0_321, %c0_322, %c0_323] : memref<2x64x256xbf16, #tpu.memory_space<vmem>>, vector<1x64x256xbf16>
    %1081 = vector.shape_cast %1080 : vector<1x64x256xbf16> to vector<64x256xbf16>
    %c0_324 = arith.constant 0 : index
    %c0_325 = arith.constant 0 : index
    %c0_326 = arith.constant 0 : index
    %1082 = vector.load %arg31[%c0_324, %c0_325, %c0_326] : memref<2x1x256xf32, #tpu.memory_space<vmem>>, vector<1x1x256xf32>
    %1083 = vector.shape_cast %1082 : vector<1x1x256xf32> to vector<1x256xf32>
    %c0_327 = arith.constant 0 : index
    %c0_328 = arith.constant 0 : index
    %c0_329 = arith.constant 0 : index
    %1084 = vector.load %arg32[%c0_327, %c0_328, %c0_329] : memref<2x256x64xbf16, #tpu.memory_space<vmem>>, vector<1x256x64xbf16>
    %1085 = vector.shape_cast %1084 : vector<1x256x64xbf16> to vector<256x64xbf16>
    %c0_330 = arith.constant 0 : index
    %c0_331 = arith.constant 0 : index
    %c0_332 = arith.constant 0 : index
    %1086 = vector.load %arg33[%c0_330, %c0_331, %c0_332] : memref<2x1x64xf32, #tpu.memory_space<vmem>>, vector<1x1x64xf32>
    %1087 = vector.shape_cast %1086 : vector<1x1x64xf32> to vector<1x64xf32>
    %c0_333 = arith.constant 0 : index
    %c0_334 = arith.constant 0 : index
    %c0_335 = arith.constant 0 : index
    %1088 = vector.load %arg34[%c0_333, %c0_334, %c0_335] : memref<2x1x64xf32, #tpu.memory_space<vmem>>, vector<1x1x64xf32>
    %1089 = vector.shape_cast %1088 : vector<1x1x64xf32> to vector<1x64xf32>
    %c0_336 = arith.constant 0 : index
    %c0_337 = arith.constant 0 : index
    %c0_338 = arith.constant 0 : index
    %1090 = vector.load %arg35[%c0_336, %c0_337, %c0_338] : memref<2x1x64xf32, #tpu.memory_space<vmem>>, vector<1x1x64xf32>
    %1091 = vector.shape_cast %1090 : vector<1x1x64xf32> to vector<1x64xf32>
    %1092 = arith.addf %1075, %851 : vector<16x64xf32>
    %cst_339 = arith.constant dense<0.000000e+00> : vector<16xf32>
    %1093 = vector.multi_reduction <add>, %1092, %cst_339 [1] : vector<16x64xf32> to vector<16xf32>
    %1094 = vector.shape_cast %1093 : vector<16xf32> to vector<16x1xf32>
    %cst_340 = arith.constant 6.400000e+01 : f32
    %1095 = vector.broadcast %cst_340 : f32 to vector<16x1xf32>
    %1096 = arith.divf %1094, %1095 : vector<16x1xf32>
    %1097 = vector.broadcast %1096 : vector<16x1xf32> to vector<16x64xf32>
    %1098 = arith.subf %1092, %1097 : vector<16x64xf32>
    %1099 = arith.mulf %1098, %1098 : vector<16x64xf32>
    %cst_341 = arith.constant dense<0.000000e+00> : vector<16xf32>
    %1100 = vector.multi_reduction <add>, %1099, %cst_341 [1] : vector<16x64xf32> to vector<16xf32>
    %1101 = vector.shape_cast %1100 : vector<16xf32> to vector<16x1xf32>
    %cst_342 = arith.constant 6.400000e+01 : f32
    %1102 = vector.broadcast %cst_342 : f32 to vector<16x1xf32>
    %1103 = arith.divf %1101, %1102 : vector<16x1xf32>
    %1104 = vector.broadcast %1096 : vector<16x1xf32> to vector<16x64xf32>
    %1105 = arith.subf %1092, %1104 : vector<16x64xf32>
    %cst_343 = arith.constant 9.99999974E-6 : f32
    %1106 = vector.broadcast %cst_343 : f32 to vector<16x1xf32>
    %1107 = arith.addf %1103, %1106 : vector<16x1xf32>
    %1108 = math.rsqrt %1107 : vector<16x1xf32>
    %1109 = vector.broadcast %1108 : vector<16x1xf32> to vector<16x64xf32>
    %1110 = arith.mulf %1105, %1109 : vector<16x64xf32>
    %1111 = vector.broadcast %1077 : vector<1x64xf32> to vector<16x64xf32>
    %1112 = arith.mulf %1110, %1111 : vector<16x64xf32>
    %1113 = vector.broadcast %1079 : vector<1x64xf32> to vector<16x64xf32>
    %1114 = arith.addf %1112, %1113 : vector<16x64xf32>
    %1115 = arith.truncf %1114 : vector<16x64xf32> to vector<16x64xbf16>
    %cst_344 = arith.constant dense<0.000000e+00> : vector<16x256xf32>
    %1116 = tpu.matmul %1115, %1081, %cst_344 {dimension_numbers = #tpu.dot_dimension_numbers<[1], [0], [0], [1], [0, 0, 1, 1], [], []>} : vector<16x64xbf16>, vector<64x256xbf16>, vector<16x256xf32> -> vector<16x256xf32>
    %1117 = vector.broadcast %1083 : vector<1x256xf32> to vector<16x256xf32>
    %1118 = arith.addf %1116, %1117 : vector<16x256xf32>
    %cst_345 = arith.constant 0.000000e+00 : f32
    %1119 = vector.broadcast %cst_345 : f32 to vector<16x256xf32>
    %1120 = arith.maximumf %1118, %1119 : vector<16x256xf32>
    %1121 = arith.truncf %1120 : vector<16x256xf32> to vector<16x256xbf16>
    %cst_346 = arith.constant dense<0.000000e+00> : vector<16x64xf32>
    %1122 = tpu.matmul %1121, %1085, %cst_346 {dimension_numbers = #tpu.dot_dimension_numbers<[1], [0], [0], [1], [0, 0, 1, 1], [], []>} : vector<16x256xbf16>, vector<256x64xbf16>, vector<16x64xf32> -> vector<16x64xf32>
    %1123 = vector.broadcast %1087 : vector<1x64xf32> to vector<16x64xf32>
    %1124 = arith.addf %1122, %1123 : vector<16x64xf32>
    %1125 = arith.addf %1124, %1114 : vector<16x64xf32>
    %cst_347 = arith.constant dense<0.000000e+00> : vector<16xf32>
    %1126 = vector.multi_reduction <add>, %1125, %cst_347 [1] : vector<16x64xf32> to vector<16xf32>
    %1127 = vector.shape_cast %1126 : vector<16xf32> to vector<16x1xf32>
    %cst_348 = arith.constant 6.400000e+01 : f32
    %1128 = vector.broadcast %cst_348 : f32 to vector<16x1xf32>
    %1129 = arith.divf %1127, %1128 : vector<16x1xf32>
    %1130 = vector.broadcast %1129 : vector<16x1xf32> to vector<16x64xf32>
    %1131 = arith.subf %1125, %1130 : vector<16x64xf32>
    %1132 = arith.mulf %1131, %1131 : vector<16x64xf32>
    %cst_349 = arith.constant dense<0.000000e+00> : vector<16xf32>
    %1133 = vector.multi_reduction <add>, %1132, %cst_349 [1] : vector<16x64xf32> to vector<16xf32>
    %1134 = vector.shape_cast %1133 : vector<16xf32> to vector<16x1xf32>
    %cst_350 = arith.constant 6.400000e+01 : f32
    %1135 = vector.broadcast %cst_350 : f32 to vector<16x1xf32>
    %1136 = arith.divf %1134, %1135 : vector<16x1xf32>
    %1137 = vector.broadcast %1129 : vector<16x1xf32> to vector<16x64xf32>
    %1138 = arith.subf %1125, %1137 : vector<16x64xf32>
    %cst_351 = arith.constant 9.99999974E-6 : f32
    %1139 = vector.broadcast %cst_351 : f32 to vector<16x1xf32>
    %1140 = arith.addf %1136, %1139 : vector<16x1xf32>
    %1141 = math.rsqrt %1140 : vector<16x1xf32>
    %1142 = vector.broadcast %1141 : vector<16x1xf32> to vector<16x64xf32>
    %1143 = arith.mulf %1138, %1142 : vector<16x64xf32>
    %1144 = vector.broadcast %1089 : vector<1x64xf32> to vector<16x64xf32>
    %1145 = arith.mulf %1143, %1144 : vector<16x64xf32>
    %1146 = vector.broadcast %1091 : vector<1x64xf32> to vector<16x64xf32>
    %1147 = arith.addf %1145, %1146 : vector<16x64xf32>
    %c1_352 = arith.constant 1 : index
    %c0_353 = arith.constant 0 : index
    %c0_354 = arith.constant 0 : index
    %1148 = vector.load %arg16[%c1_352, %c0_353, %c0_354] : memref<2x64x192xbf16, #tpu.memory_space<vmem>>, vector<1x64x192xbf16>
    %1149 = vector.shape_cast %1148 : vector<1x64x192xbf16> to vector<64x192xbf16>
    %1150 = arith.truncf %1147 : vector<16x64xf32> to vector<16x64xbf16>
    %cst_355 = arith.constant dense<0.000000e+00> : vector<16x192xf32>
    %1151 = tpu.matmul %1150, %1149, %cst_355 {dimension_numbers = #tpu.dot_dimension_numbers<[1], [0], [0], [1], [0, 0, 1, 1], [], []>} : vector<16x64xbf16>, vector<64x192xbf16>, vector<16x192xf32> -> vector<16x192xf32>
    %c1_356 = arith.constant 1 : index
    %c0_357 = arith.constant 0 : index
    %c0_358 = arith.constant 0 : index
    %1152 = vector.load %arg17[%c1_356, %c0_357, %c0_358] : memref<2x1x192xf32, #tpu.memory_space<vmem>>, vector<1x1x192xf32>
    %1153 = vector.shape_cast %1152 : vector<1x1x192xf32> to vector<1x192xf32>
    %1154 = vector.broadcast %1153 : vector<1x192xf32> to vector<16x192xf32>
    %1155 = arith.addf %1151, %1154 : vector<16x192xf32>
    %1156 = vector.extract_strided_slice %1155 {offsets = [0, 0], sizes = [16, 64], strides = [1, 1]} : vector<16x192xf32> to vector<16x64xf32>
    %cst_359 = arith.constant 1.250000e-01 : f32
    %1157 = vector.broadcast %cst_359 : f32 to vector<16x64xf32>
    %1158 = arith.mulf %1156, %1157 : vector<16x64xf32>
    %1159 = vector.extract_strided_slice %1155 {offsets = [0, 64], sizes = [16, 64], strides = [1, 1]} : vector<16x192xf32> to vector<16x64xf32>
    %1160 = vector.extract_strided_slice %1155 {offsets = [0, 128], sizes = [16, 64], strides = [1, 1]} : vector<16x192xf32> to vector<16x64xf32>
    %c1_360 = arith.constant 1 : index
    %c0_361 = arith.constant 0 : index
    %c0_362 = arith.constant 0 : index
    %1161 = vector.load %arg18[%c1_360, %c0_361, %c0_362] : memref<2x64x64xbf16, #tpu.memory_space<vmem>>, vector<1x64x64xbf16>
    %1162 = vector.shape_cast %1161 : vector<1x64x64xbf16> to vector<64x64xbf16>
    %c1_363 = arith.constant 1 : index
    %c0_364 = arith.constant 0 : index
    %c0_365 = arith.constant 0 : index
    %1163 = vector.load %arg19[%c1_363, %c0_364, %c0_365] : memref<2x1x64xf32, #tpu.memory_space<vmem>>, vector<1x1x64xf32>
    %1164 = vector.shape_cast %1163 : vector<1x1x64xf32> to vector<1x64xf32>
    %1165 = vector.extract_strided_slice %1158 {offsets = [0, 0], sizes = [8, 64], strides = [1, 1]} : vector<16x64xf32> to vector<8x64xf32>
    %1166 = vector.extract_strided_slice %1159 {offsets = [0, 0], sizes = [8, 64], strides = [1, 1]} : vector<16x64xf32> to vector<8x64xf32>
    %1167 = vector.extract_strided_slice %1160 {offsets = [0, 0], sizes = [8, 64], strides = [1, 1]} : vector<16x64xf32> to vector<8x64xf32>
    %1168 = vector.extract_strided_slice %1165 {offsets = [0, 0], sizes = [8, 16], strides = [1, 1]} : vector<8x64xf32> to vector<8x16xf32>
    %1169 = arith.truncf %1168 : vector<8x16xf32> to vector<8x16xbf16>
    %1170 = vector.extract_strided_slice %1166 {offsets = [0, 0], sizes = [8, 16], strides = [1, 1]} : vector<8x64xf32> to vector<8x16xf32>
    %1171 = arith.truncf %1170 : vector<8x16xf32> to vector<8x16xbf16>
    %1172 = vector.extract_strided_slice %1167 {offsets = [0, 0], sizes = [8, 16], strides = [1, 1]} : vector<8x64xf32> to vector<8x16xf32>
    %1173 = arith.truncf %1172 : vector<8x16xf32> to vector<8x16xbf16>
    %cst_366 = arith.constant dense<0.000000e+00> : vector<8x8xf32>
    %1174 = tpu.matmul %1169, %1171, %cst_366 {dimension_numbers = #tpu.dot_dimension_numbers<[1], [1], [0], [0], [0, 0, 1, 0], [], []>} : vector<8x16xbf16>, vector<8x16xbf16>, vector<8x8xf32> -> vector<8x8xf32>
    %1175 = arith.addf %1174, %25 : vector<8x8xf32>
    %cst_367 = arith.constant dense<0xFF800000> : vector<8xf32>
    %1176 = vector.multi_reduction <maximumf>, %1175, %cst_367 [1] : vector<8x8xf32> to vector<8xf32>
    %1177 = vector.shape_cast %1176 : vector<8xf32> to vector<8x1xf32>
    %1178 = vector.broadcast %1177 : vector<8x1xf32> to vector<8x8xf32>
    %1179 = arith.subf %1175, %1178 : vector<8x8xf32>
    %1180 = math.exp %1179 : vector<8x8xf32>
    %cst_368 = arith.constant dense<0.000000e+00> : vector<8xf32>
    %1181 = vector.multi_reduction <add>, %1180, %cst_368 [1] : vector<8x8xf32> to vector<8xf32>
    %1182 = vector.shape_cast %1181 : vector<8xf32> to vector<8x1xf32>
    %1183 = tpu.reciprocal %1182 {approx = true} : vector<8x1xf32> -> vector<8x1xf32>
    %1184 = vector.broadcast %1183 : vector<8x1xf32> to vector<8x8xf32>
    %1185 = arith.mulf %1180, %1184 : vector<8x8xf32>
    %1186 = arith.truncf %1185 : vector<8x8xf32> to vector<8x8xbf16>
    %cst_369 = arith.constant dense<0.000000e+00> : vector<8x16xf32>
    %1187 = tpu.matmul %1186, %1173, %cst_369 {dimension_numbers = #tpu.dot_dimension_numbers<[1], [0], [0], [1], [0, 0, 1, 1], [], []>} : vector<8x8xbf16>, vector<8x16xbf16>, vector<8x16xf32> -> vector<8x16xf32>
    %1188 = arith.truncf %1187 : vector<8x16xf32> to vector<8x16xbf16>
    %1189 = vector.extract_strided_slice %1162 {offsets = [0, 0], sizes = [16, 64], strides = [1, 1]} : vector<64x64xbf16> to vector<16x64xbf16>
    %cst_370 = arith.constant dense<0.000000e+00> : vector<8x64xf32>
    %1190 = tpu.matmul %1188, %1189, %cst_370 {dimension_numbers = #tpu.dot_dimension_numbers<[1], [0], [0], [1], [0, 0, 1, 1], [], []>} : vector<8x16xbf16>, vector<16x64xbf16>, vector<8x64xf32> -> vector<8x64xf32>
    %1191 = vector.extract_strided_slice %1165 {offsets = [0, 16], sizes = [8, 16], strides = [1, 1]} : vector<8x64xf32> to vector<8x16xf32>
    %1192 = arith.truncf %1191 : vector<8x16xf32> to vector<8x16xbf16>
    %1193 = vector.extract_strided_slice %1166 {offsets = [0, 16], sizes = [8, 16], strides = [1, 1]} : vector<8x64xf32> to vector<8x16xf32>
    %1194 = arith.truncf %1193 : vector<8x16xf32> to vector<8x16xbf16>
    %1195 = vector.extract_strided_slice %1167 {offsets = [0, 16], sizes = [8, 16], strides = [1, 1]} : vector<8x64xf32> to vector<8x16xf32>
    %1196 = arith.truncf %1195 : vector<8x16xf32> to vector<8x16xbf16>
    %cst_371 = arith.constant dense<0.000000e+00> : vector<8x8xf32>
    %1197 = tpu.matmul %1192, %1194, %cst_371 {dimension_numbers = #tpu.dot_dimension_numbers<[1], [1], [0], [0], [0, 0, 1, 0], [], []>} : vector<8x16xbf16>, vector<8x16xbf16>, vector<8x8xf32> -> vector<8x8xf32>
    %1198 = arith.addf %1197, %25 : vector<8x8xf32>
    %cst_372 = arith.constant dense<0xFF800000> : vector<8xf32>
    %1199 = vector.multi_reduction <maximumf>, %1198, %cst_372 [1] : vector<8x8xf32> to vector<8xf32>
    %1200 = vector.shape_cast %1199 : vector<8xf32> to vector<8x1xf32>
    %1201 = vector.broadcast %1200 : vector<8x1xf32> to vector<8x8xf32>
    %1202 = arith.subf %1198, %1201 : vector<8x8xf32>
    %1203 = math.exp %1202 : vector<8x8xf32>
    %cst_373 = arith.constant dense<0.000000e+00> : vector<8xf32>
    %1204 = vector.multi_reduction <add>, %1203, %cst_373 [1] : vector<8x8xf32> to vector<8xf32>
    %1205 = vector.shape_cast %1204 : vector<8xf32> to vector<8x1xf32>
    %1206 = tpu.reciprocal %1205 {approx = true} : vector<8x1xf32> -> vector<8x1xf32>
    %1207 = vector.broadcast %1206 : vector<8x1xf32> to vector<8x8xf32>
    %1208 = arith.mulf %1203, %1207 : vector<8x8xf32>
    %1209 = arith.truncf %1208 : vector<8x8xf32> to vector<8x8xbf16>
    %cst_374 = arith.constant dense<0.000000e+00> : vector<8x16xf32>
    %1210 = tpu.matmul %1209, %1196, %cst_374 {dimension_numbers = #tpu.dot_dimension_numbers<[1], [0], [0], [1], [0, 0, 1, 1], [], []>} : vector<8x8xbf16>, vector<8x16xbf16>, vector<8x16xf32> -> vector<8x16xf32>
    %1211 = arith.truncf %1210 : vector<8x16xf32> to vector<8x16xbf16>
    %1212 = vector.extract_strided_slice %1162 {offsets = [16, 0], sizes = [16, 64], strides = [1, 1]} : vector<64x64xbf16> to vector<16x64xbf16>
    %cst_375 = arith.constant dense<0.000000e+00> : vector<8x64xf32>
    %1213 = tpu.matmul %1211, %1212, %cst_375 {dimension_numbers = #tpu.dot_dimension_numbers<[1], [0], [0], [1], [0, 0, 1, 1], [], []>} : vector<8x16xbf16>, vector<16x64xbf16>, vector<8x64xf32> -> vector<8x64xf32>
    %1214 = arith.addf %1190, %1213 : vector<8x64xf32>
    %1215 = vector.extract_strided_slice %1165 {offsets = [0, 32], sizes = [8, 16], strides = [1, 1]} : vector<8x64xf32> to vector<8x16xf32>
    %1216 = arith.truncf %1215 : vector<8x16xf32> to vector<8x16xbf16>
    %1217 = vector.extract_strided_slice %1166 {offsets = [0, 32], sizes = [8, 16], strides = [1, 1]} : vector<8x64xf32> to vector<8x16xf32>
    %1218 = arith.truncf %1217 : vector<8x16xf32> to vector<8x16xbf16>
    %1219 = vector.extract_strided_slice %1167 {offsets = [0, 32], sizes = [8, 16], strides = [1, 1]} : vector<8x64xf32> to vector<8x16xf32>
    %1220 = arith.truncf %1219 : vector<8x16xf32> to vector<8x16xbf16>
    %cst_376 = arith.constant dense<0.000000e+00> : vector<8x8xf32>
    %1221 = tpu.matmul %1216, %1218, %cst_376 {dimension_numbers = #tpu.dot_dimension_numbers<[1], [1], [0], [0], [0, 0, 1, 0], [], []>} : vector<8x16xbf16>, vector<8x16xbf16>, vector<8x8xf32> -> vector<8x8xf32>
    %1222 = arith.addf %1221, %25 : vector<8x8xf32>
    %cst_377 = arith.constant dense<0xFF800000> : vector<8xf32>
    %1223 = vector.multi_reduction <maximumf>, %1222, %cst_377 [1] : vector<8x8xf32> to vector<8xf32>
    %1224 = vector.shape_cast %1223 : vector<8xf32> to vector<8x1xf32>
    %1225 = vector.broadcast %1224 : vector<8x1xf32> to vector<8x8xf32>
    %1226 = arith.subf %1222, %1225 : vector<8x8xf32>
    %1227 = math.exp %1226 : vector<8x8xf32>
    %cst_378 = arith.constant dense<0.000000e+00> : vector<8xf32>
    %1228 = vector.multi_reduction <add>, %1227, %cst_378 [1] : vector<8x8xf32> to vector<8xf32>
    %1229 = vector.shape_cast %1228 : vector<8xf32> to vector<8x1xf32>
    %1230 = tpu.reciprocal %1229 {approx = true} : vector<8x1xf32> -> vector<8x1xf32>
    %1231 = vector.broadcast %1230 : vector<8x1xf32> to vector<8x8xf32>
    %1232 = arith.mulf %1227, %1231 : vector<8x8xf32>
    %1233 = arith.truncf %1232 : vector<8x8xf32> to vector<8x8xbf16>
    %cst_379 = arith.constant dense<0.000000e+00> : vector<8x16xf32>
    %1234 = tpu.matmul %1233, %1220, %cst_379 {dimension_numbers = #tpu.dot_dimension_numbers<[1], [0], [0], [1], [0, 0, 1, 1], [], []>} : vector<8x8xbf16>, vector<8x16xbf16>, vector<8x16xf32> -> vector<8x16xf32>
    %1235 = arith.truncf %1234 : vector<8x16xf32> to vector<8x16xbf16>
    %1236 = vector.extract_strided_slice %1162 {offsets = [32, 0], sizes = [16, 64], strides = [1, 1]} : vector<64x64xbf16> to vector<16x64xbf16>
    %cst_380 = arith.constant dense<0.000000e+00> : vector<8x64xf32>
    %1237 = tpu.matmul %1235, %1236, %cst_380 {dimension_numbers = #tpu.dot_dimension_numbers<[1], [0], [0], [1], [0, 0, 1, 1], [], []>} : vector<8x16xbf16>, vector<16x64xbf16>, vector<8x64xf32> -> vector<8x64xf32>
    %1238 = arith.addf %1214, %1237 : vector<8x64xf32>
    %1239 = vector.extract_strided_slice %1165 {offsets = [0, 48], sizes = [8, 16], strides = [1, 1]} : vector<8x64xf32> to vector<8x16xf32>
    %1240 = arith.truncf %1239 : vector<8x16xf32> to vector<8x16xbf16>
    %1241 = vector.extract_strided_slice %1166 {offsets = [0, 48], sizes = [8, 16], strides = [1, 1]} : vector<8x64xf32> to vector<8x16xf32>
    %1242 = arith.truncf %1241 : vector<8x16xf32> to vector<8x16xbf16>
    %1243 = vector.extract_strided_slice %1167 {offsets = [0, 48], sizes = [8, 16], strides = [1, 1]} : vector<8x64xf32> to vector<8x16xf32>
    %1244 = arith.truncf %1243 : vector<8x16xf32> to vector<8x16xbf16>
    %cst_381 = arith.constant dense<0.000000e+00> : vector<8x8xf32>
    %1245 = tpu.matmul %1240, %1242, %cst_381 {dimension_numbers = #tpu.dot_dimension_numbers<[1], [1], [0], [0], [0, 0, 1, 0], [], []>} : vector<8x16xbf16>, vector<8x16xbf16>, vector<8x8xf32> -> vector<8x8xf32>
    %1246 = arith.addf %1245, %25 : vector<8x8xf32>
    %cst_382 = arith.constant dense<0xFF800000> : vector<8xf32>
    %1247 = vector.multi_reduction <maximumf>, %1246, %cst_382 [1] : vector<8x8xf32> to vector<8xf32>
    %1248 = vector.shape_cast %1247 : vector<8xf32> to vector<8x1xf32>
    %1249 = vector.broadcast %1248 : vector<8x1xf32> to vector<8x8xf32>
    %1250 = arith.subf %1246, %1249 : vector<8x8xf32>
    %1251 = math.exp %1250 : vector<8x8xf32>
    %cst_383 = arith.constant dense<0.000000e+00> : vector<8xf32>
    %1252 = vector.multi_reduction <add>, %1251, %cst_383 [1] : vector<8x8xf32> to vector<8xf32>
    %1253 = vector.shape_cast %1252 : vector<8xf32> to vector<8x1xf32>
    %1254 = tpu.reciprocal %1253 {approx = true} : vector<8x1xf32> -> vector<8x1xf32>
    %1255 = vector.broadcast %1254 : vector<8x1xf32> to vector<8x8xf32>
    %1256 = arith.mulf %1251, %1255 : vector<8x8xf32>
    %1257 = arith.truncf %1256 : vector<8x8xf32> to vector<8x8xbf16>
    %cst_384 = arith.constant dense<0.000000e+00> : vector<8x16xf32>
    %1258 = tpu.matmul %1257, %1244, %cst_384 {dimension_numbers = #tpu.dot_dimension_numbers<[1], [0], [0], [1], [0, 0, 1, 1], [], []>} : vector<8x8xbf16>, vector<8x16xbf16>, vector<8x16xf32> -> vector<8x16xf32>
    %1259 = arith.truncf %1258 : vector<8x16xf32> to vector<8x16xbf16>
    %1260 = vector.extract_strided_slice %1162 {offsets = [48, 0], sizes = [16, 64], strides = [1, 1]} : vector<64x64xbf16> to vector<16x64xbf16>
    %cst_385 = arith.constant dense<0.000000e+00> : vector<8x64xf32>
    %1261 = tpu.matmul %1259, %1260, %cst_385 {dimension_numbers = #tpu.dot_dimension_numbers<[1], [0], [0], [1], [0, 0, 1, 1], [], []>} : vector<8x16xbf16>, vector<16x64xbf16>, vector<8x64xf32> -> vector<8x64xf32>
    %1262 = arith.addf %1238, %1261 : vector<8x64xf32>
    %1263 = vector.broadcast %1164 : vector<1x64xf32> to vector<8x64xf32>
    %1264 = arith.addf %1262, %1263 : vector<8x64xf32>
    %1265 = vector.extract_strided_slice %1158 {offsets = [8, 0], sizes = [8, 64], strides = [1, 1]} : vector<16x64xf32> to vector<8x64xf32>
    %1266 = vector.extract_strided_slice %1159 {offsets = [8, 0], sizes = [8, 64], strides = [1, 1]} : vector<16x64xf32> to vector<8x64xf32>
    %1267 = vector.extract_strided_slice %1160 {offsets = [8, 0], sizes = [8, 64], strides = [1, 1]} : vector<16x64xf32> to vector<8x64xf32>
    %1268 = vector.extract_strided_slice %1265 {offsets = [0, 0], sizes = [8, 16], strides = [1, 1]} : vector<8x64xf32> to vector<8x16xf32>
    %1269 = arith.truncf %1268 : vector<8x16xf32> to vector<8x16xbf16>
    %1270 = vector.extract_strided_slice %1266 {offsets = [0, 0], sizes = [8, 16], strides = [1, 1]} : vector<8x64xf32> to vector<8x16xf32>
    %1271 = arith.truncf %1270 : vector<8x16xf32> to vector<8x16xbf16>
    %1272 = vector.extract_strided_slice %1267 {offsets = [0, 0], sizes = [8, 16], strides = [1, 1]} : vector<8x64xf32> to vector<8x16xf32>
    %1273 = arith.truncf %1272 : vector<8x16xf32> to vector<8x16xbf16>
    %cst_386 = arith.constant dense<0.000000e+00> : vector<8x8xf32>
    %1274 = tpu.matmul %1269, %1271, %cst_386 {dimension_numbers = #tpu.dot_dimension_numbers<[1], [1], [0], [0], [0, 0, 1, 0], [], []>} : vector<8x16xbf16>, vector<8x16xbf16>, vector<8x8xf32> -> vector<8x8xf32>
    %1275 = arith.addf %1274, %25 : vector<8x8xf32>
    %cst_387 = arith.constant dense<0xFF800000> : vector<8xf32>
    %1276 = vector.multi_reduction <maximumf>, %1275, %cst_387 [1] : vector<8x8xf32> to vector<8xf32>
    %1277 = vector.shape_cast %1276 : vector<8xf32> to vector<8x1xf32>
    %1278 = vector.broadcast %1277 : vector<8x1xf32> to vector<8x8xf32>
    %1279 = arith.subf %1275, %1278 : vector<8x8xf32>
    %1280 = math.exp %1279 : vector<8x8xf32>
    %cst_388 = arith.constant dense<0.000000e+00> : vector<8xf32>
    %1281 = vector.multi_reduction <add>, %1280, %cst_388 [1] : vector<8x8xf32> to vector<8xf32>
    %1282 = vector.shape_cast %1281 : vector<8xf32> to vector<8x1xf32>
    %1283 = tpu.reciprocal %1282 {approx = true} : vector<8x1xf32> -> vector<8x1xf32>
    %1284 = vector.broadcast %1283 : vector<8x1xf32> to vector<8x8xf32>
    %1285 = arith.mulf %1280, %1284 : vector<8x8xf32>
    %1286 = arith.truncf %1285 : vector<8x8xf32> to vector<8x8xbf16>
    %cst_389 = arith.constant dense<0.000000e+00> : vector<8x16xf32>
    %1287 = tpu.matmul %1286, %1273, %cst_389 {dimension_numbers = #tpu.dot_dimension_numbers<[1], [0], [0], [1], [0, 0, 1, 1], [], []>} : vector<8x8xbf16>, vector<8x16xbf16>, vector<8x16xf32> -> vector<8x16xf32>
    %1288 = arith.truncf %1287 : vector<8x16xf32> to vector<8x16xbf16>
    %1289 = vector.extract_strided_slice %1162 {offsets = [0, 0], sizes = [16, 64], strides = [1, 1]} : vector<64x64xbf16> to vector<16x64xbf16>
    %cst_390 = arith.constant dense<0.000000e+00> : vector<8x64xf32>
    %1290 = tpu.matmul %1288, %1289, %cst_390 {dimension_numbers = #tpu.dot_dimension_numbers<[1], [0], [0], [1], [0, 0, 1, 1], [], []>} : vector<8x16xbf16>, vector<16x64xbf16>, vector<8x64xf32> -> vector<8x64xf32>
    %1291 = vector.extract_strided_slice %1265 {offsets = [0, 16], sizes = [8, 16], strides = [1, 1]} : vector<8x64xf32> to vector<8x16xf32>
    %1292 = arith.truncf %1291 : vector<8x16xf32> to vector<8x16xbf16>
    %1293 = vector.extract_strided_slice %1266 {offsets = [0, 16], sizes = [8, 16], strides = [1, 1]} : vector<8x64xf32> to vector<8x16xf32>
    %1294 = arith.truncf %1293 : vector<8x16xf32> to vector<8x16xbf16>
    %1295 = vector.extract_strided_slice %1267 {offsets = [0, 16], sizes = [8, 16], strides = [1, 1]} : vector<8x64xf32> to vector<8x16xf32>
    %1296 = arith.truncf %1295 : vector<8x16xf32> to vector<8x16xbf16>
    %cst_391 = arith.constant dense<0.000000e+00> : vector<8x8xf32>
    %1297 = tpu.matmul %1292, %1294, %cst_391 {dimension_numbers = #tpu.dot_dimension_numbers<[1], [1], [0], [0], [0, 0, 1, 0], [], []>} : vector<8x16xbf16>, vector<8x16xbf16>, vector<8x8xf32> -> vector<8x8xf32>
    %1298 = arith.addf %1297, %25 : vector<8x8xf32>
    %cst_392 = arith.constant dense<0xFF800000> : vector<8xf32>
    %1299 = vector.multi_reduction <maximumf>, %1298, %cst_392 [1] : vector<8x8xf32> to vector<8xf32>
    %1300 = vector.shape_cast %1299 : vector<8xf32> to vector<8x1xf32>
    %1301 = vector.broadcast %1300 : vector<8x1xf32> to vector<8x8xf32>
    %1302 = arith.subf %1298, %1301 : vector<8x8xf32>
    %1303 = math.exp %1302 : vector<8x8xf32>
    %cst_393 = arith.constant dense<0.000000e+00> : vector<8xf32>
    %1304 = vector.multi_reduction <add>, %1303, %cst_393 [1] : vector<8x8xf32> to vector<8xf32>
    %1305 = vector.shape_cast %1304 : vector<8xf32> to vector<8x1xf32>
    %1306 = tpu.reciprocal %1305 {approx = true} : vector<8x1xf32> -> vector<8x1xf32>
    %1307 = vector.broadcast %1306 : vector<8x1xf32> to vector<8x8xf32>
    %1308 = arith.mulf %1303, %1307 : vector<8x8xf32>
    %1309 = arith.truncf %1308 : vector<8x8xf32> to vector<8x8xbf16>
    %cst_394 = arith.constant dense<0.000000e+00> : vector<8x16xf32>
    %1310 = tpu.matmul %1309, %1296, %cst_394 {dimension_numbers = #tpu.dot_dimension_numbers<[1], [0], [0], [1], [0, 0, 1, 1], [], []>} : vector<8x8xbf16>, vector<8x16xbf16>, vector<8x16xf32> -> vector<8x16xf32>
    %1311 = arith.truncf %1310 : vector<8x16xf32> to vector<8x16xbf16>
    %1312 = vector.extract_strided_slice %1162 {offsets = [16, 0], sizes = [16, 64], strides = [1, 1]} : vector<64x64xbf16> to vector<16x64xbf16>
    %cst_395 = arith.constant dense<0.000000e+00> : vector<8x64xf32>
    %1313 = tpu.matmul %1311, %1312, %cst_395 {dimension_numbers = #tpu.dot_dimension_numbers<[1], [0], [0], [1], [0, 0, 1, 1], [], []>} : vector<8x16xbf16>, vector<16x64xbf16>, vector<8x64xf32> -> vector<8x64xf32>
    %1314 = arith.addf %1290, %1313 : vector<8x64xf32>
    %1315 = vector.extract_strided_slice %1265 {offsets = [0, 32], sizes = [8, 16], strides = [1, 1]} : vector<8x64xf32> to vector<8x16xf32>
    %1316 = arith.truncf %1315 : vector<8x16xf32> to vector<8x16xbf16>
    %1317 = vector.extract_strided_slice %1266 {offsets = [0, 32], sizes = [8, 16], strides = [1, 1]} : vector<8x64xf32> to vector<8x16xf32>
    %1318 = arith.truncf %1317 : vector<8x16xf32> to vector<8x16xbf16>
    %1319 = vector.extract_strided_slice %1267 {offsets = [0, 32], sizes = [8, 16], strides = [1, 1]} : vector<8x64xf32> to vector<8x16xf32>
    %1320 = arith.truncf %1319 : vector<8x16xf32> to vector<8x16xbf16>
    %cst_396 = arith.constant dense<0.000000e+00> : vector<8x8xf32>
    %1321 = tpu.matmul %1316, %1318, %cst_396 {dimension_numbers = #tpu.dot_dimension_numbers<[1], [1], [0], [0], [0, 0, 1, 0], [], []>} : vector<8x16xbf16>, vector<8x16xbf16>, vector<8x8xf32> -> vector<8x8xf32>
    %1322 = arith.addf %1321, %25 : vector<8x8xf32>
    %cst_397 = arith.constant dense<0xFF800000> : vector<8xf32>
    %1323 = vector.multi_reduction <maximumf>, %1322, %cst_397 [1] : vector<8x8xf32> to vector<8xf32>
    %1324 = vector.shape_cast %1323 : vector<8xf32> to vector<8x1xf32>
    %1325 = vector.broadcast %1324 : vector<8x1xf32> to vector<8x8xf32>
    %1326 = arith.subf %1322, %1325 : vector<8x8xf32>
    %1327 = math.exp %1326 : vector<8x8xf32>
    %cst_398 = arith.constant dense<0.000000e+00> : vector<8xf32>
    %1328 = vector.multi_reduction <add>, %1327, %cst_398 [1] : vector<8x8xf32> to vector<8xf32>
    %1329 = vector.shape_cast %1328 : vector<8xf32> to vector<8x1xf32>
    %1330 = tpu.reciprocal %1329 {approx = true} : vector<8x1xf32> -> vector<8x1xf32>
    %1331 = vector.broadcast %1330 : vector<8x1xf32> to vector<8x8xf32>
    %1332 = arith.mulf %1327, %1331 : vector<8x8xf32>
    %1333 = arith.truncf %1332 : vector<8x8xf32> to vector<8x8xbf16>
    %cst_399 = arith.constant dense<0.000000e+00> : vector<8x16xf32>
    %1334 = tpu.matmul %1333, %1320, %cst_399 {dimension_numbers = #tpu.dot_dimension_numbers<[1], [0], [0], [1], [0, 0, 1, 1], [], []>} : vector<8x8xbf16>, vector<8x16xbf16>, vector<8x16xf32> -> vector<8x16xf32>
    %1335 = arith.truncf %1334 : vector<8x16xf32> to vector<8x16xbf16>
    %1336 = vector.extract_strided_slice %1162 {offsets = [32, 0], sizes = [16, 64], strides = [1, 1]} : vector<64x64xbf16> to vector<16x64xbf16>
    %cst_400 = arith.constant dense<0.000000e+00> : vector<8x64xf32>
    %1337 = tpu.matmul %1335, %1336, %cst_400 {dimension_numbers = #tpu.dot_dimension_numbers<[1], [0], [0], [1], [0, 0, 1, 1], [], []>} : vector<8x16xbf16>, vector<16x64xbf16>, vector<8x64xf32> -> vector<8x64xf32>
    %1338 = arith.addf %1314, %1337 : vector<8x64xf32>
    %1339 = vector.extract_strided_slice %1265 {offsets = [0, 48], sizes = [8, 16], strides = [1, 1]} : vector<8x64xf32> to vector<8x16xf32>
    %1340 = arith.truncf %1339 : vector<8x16xf32> to vector<8x16xbf16>
    %1341 = vector.extract_strided_slice %1266 {offsets = [0, 48], sizes = [8, 16], strides = [1, 1]} : vector<8x64xf32> to vector<8x16xf32>
    %1342 = arith.truncf %1341 : vector<8x16xf32> to vector<8x16xbf16>
    %1343 = vector.extract_strided_slice %1267 {offsets = [0, 48], sizes = [8, 16], strides = [1, 1]} : vector<8x64xf32> to vector<8x16xf32>
    %1344 = arith.truncf %1343 : vector<8x16xf32> to vector<8x16xbf16>
    %cst_401 = arith.constant dense<0.000000e+00> : vector<8x8xf32>
    %1345 = tpu.matmul %1340, %1342, %cst_401 {dimension_numbers = #tpu.dot_dimension_numbers<[1], [1], [0], [0], [0, 0, 1, 0], [], []>} : vector<8x16xbf16>, vector<8x16xbf16>, vector<8x8xf32> -> vector<8x8xf32>
    %1346 = arith.addf %1345, %25 : vector<8x8xf32>
    %cst_402 = arith.constant dense<0xFF800000> : vector<8xf32>
    %1347 = vector.multi_reduction <maximumf>, %1346, %cst_402 [1] : vector<8x8xf32> to vector<8xf32>
    %1348 = vector.shape_cast %1347 : vector<8xf32> to vector<8x1xf32>
    %1349 = vector.broadcast %1348 : vector<8x1xf32> to vector<8x8xf32>
    %1350 = arith.subf %1346, %1349 : vector<8x8xf32>
    %1351 = math.exp %1350 : vector<8x8xf32>
    %cst_403 = arith.constant dense<0.000000e+00> : vector<8xf32>
    %1352 = vector.multi_reduction <add>, %1351, %cst_403 [1] : vector<8x8xf32> to vector<8xf32>
    %1353 = vector.shape_cast %1352 : vector<8xf32> to vector<8x1xf32>
    %1354 = tpu.reciprocal %1353 {approx = true} : vector<8x1xf32> -> vector<8x1xf32>
    %1355 = vector.broadcast %1354 : vector<8x1xf32> to vector<8x8xf32>
    %1356 = arith.mulf %1351, %1355 : vector<8x8xf32>
    %1357 = arith.truncf %1356 : vector<8x8xf32> to vector<8x8xbf16>
    %cst_404 = arith.constant dense<0.000000e+00> : vector<8x16xf32>
    %1358 = tpu.matmul %1357, %1344, %cst_404 {dimension_numbers = #tpu.dot_dimension_numbers<[1], [0], [0], [1], [0, 0, 1, 1], [], []>} : vector<8x8xbf16>, vector<8x16xbf16>, vector<8x16xf32> -> vector<8x16xf32>
    %1359 = arith.truncf %1358 : vector<8x16xf32> to vector<8x16xbf16>
    %1360 = vector.extract_strided_slice %1162 {offsets = [48, 0], sizes = [16, 64], strides = [1, 1]} : vector<64x64xbf16> to vector<16x64xbf16>
    %cst_405 = arith.constant dense<0.000000e+00> : vector<8x64xf32>
    %1361 = tpu.matmul %1359, %1360, %cst_405 {dimension_numbers = #tpu.dot_dimension_numbers<[1], [0], [0], [1], [0, 0, 1, 1], [], []>} : vector<8x16xbf16>, vector<16x64xbf16>, vector<8x64xf32> -> vector<8x64xf32>
    %1362 = arith.addf %1338, %1361 : vector<8x64xf32>
    %1363 = vector.broadcast %1164 : vector<1x64xf32> to vector<8x64xf32>
    %1364 = arith.addf %1362, %1363 : vector<8x64xf32>
    %1365 = tpu.concatenate %1264, %1364 in 0 : vector<8x64xf32>, vector<8x64xf32> -> vector<16x64xf32>
    %1366 = arith.addf %1365, %1147 : vector<16x64xf32>
    %c1_406 = arith.constant 1 : index
    %c0_407 = arith.constant 0 : index
    %c0_408 = arith.constant 0 : index
    %1367 = vector.load %arg20[%c1_406, %c0_407, %c0_408] : memref<2x1x64xf32, #tpu.memory_space<vmem>>, vector<1x1x64xf32>
    %1368 = vector.shape_cast %1367 : vector<1x1x64xf32> to vector<1x64xf32>
    %c1_409 = arith.constant 1 : index
    %c0_410 = arith.constant 0 : index
    %c0_411 = arith.constant 0 : index
    %1369 = vector.load %arg21[%c1_409, %c0_410, %c0_411] : memref<2x1x64xf32, #tpu.memory_space<vmem>>, vector<1x1x64xf32>
    %1370 = vector.shape_cast %1369 : vector<1x1x64xf32> to vector<1x64xf32>
    %cst_412 = arith.constant dense<0.000000e+00> : vector<16xf32>
    %1371 = vector.multi_reduction <add>, %1366, %cst_412 [1] : vector<16x64xf32> to vector<16xf32>
    %1372 = vector.shape_cast %1371 : vector<16xf32> to vector<16x1xf32>
    %cst_413 = arith.constant 6.400000e+01 : f32
    %1373 = vector.broadcast %cst_413 : f32 to vector<16x1xf32>
    %1374 = arith.divf %1372, %1373 : vector<16x1xf32>
    %1375 = vector.broadcast %1374 : vector<16x1xf32> to vector<16x64xf32>
    %1376 = arith.subf %1366, %1375 : vector<16x64xf32>
    %1377 = arith.mulf %1376, %1376 : vector<16x64xf32>
    %cst_414 = arith.constant dense<0.000000e+00> : vector<16xf32>
    %1378 = vector.multi_reduction <add>, %1377, %cst_414 [1] : vector<16x64xf32> to vector<16xf32>
    %1379 = vector.shape_cast %1378 : vector<16xf32> to vector<16x1xf32>
    %cst_415 = arith.constant 6.400000e+01 : f32
    %1380 = vector.broadcast %cst_415 : f32 to vector<16x1xf32>
    %1381 = arith.divf %1379, %1380 : vector<16x1xf32>
    %1382 = vector.broadcast %1374 : vector<16x1xf32> to vector<16x64xf32>
    %1383 = arith.subf %1366, %1382 : vector<16x64xf32>
    %cst_416 = arith.constant 9.99999974E-6 : f32
    %1384 = vector.broadcast %cst_416 : f32 to vector<16x1xf32>
    %1385 = arith.addf %1381, %1384 : vector<16x1xf32>
    %1386 = math.rsqrt %1385 : vector<16x1xf32>
    %1387 = vector.broadcast %1386 : vector<16x1xf32> to vector<16x64xf32>
    %1388 = arith.mulf %1383, %1387 : vector<16x64xf32>
    %1389 = vector.broadcast %1368 : vector<1x64xf32> to vector<16x64xf32>
    %1390 = arith.mulf %1388, %1389 : vector<16x64xf32>
    %1391 = vector.broadcast %1370 : vector<1x64xf32> to vector<16x64xf32>
    %1392 = arith.addf %1390, %1391 : vector<16x64xf32>
    %c1_417 = arith.constant 1 : index
    %c0_418 = arith.constant 0 : index
    %c0_419 = arith.constant 0 : index
    %1393 = vector.load %arg22[%c1_417, %c0_418, %c0_419] : memref<2x64x64xbf16, #tpu.memory_space<vmem>>, vector<1x64x64xbf16>
    %1394 = vector.shape_cast %1393 : vector<1x64x64xbf16> to vector<64x64xbf16>
    %1395 = arith.truncf %1392 : vector<16x64xf32> to vector<16x64xbf16>
    %cst_420 = arith.constant dense<0.000000e+00> : vector<16x64xf32>
    %1396 = tpu.matmul %1395, %1394, %cst_420 {dimension_numbers = #tpu.dot_dimension_numbers<[1], [0], [0], [1], [0, 0, 1, 1], [], []>} : vector<16x64xbf16>, vector<64x64xbf16>, vector<16x64xf32> -> vector<16x64xf32>
    %c1_421 = arith.constant 1 : index
    %c0_422 = arith.constant 0 : index
    %c0_423 = arith.constant 0 : index
    %1397 = vector.load %arg23[%c1_421, %c0_422, %c0_423] : memref<2x1x64xf32, #tpu.memory_space<vmem>>, vector<1x1x64xf32>
    %1398 = vector.shape_cast %1397 : vector<1x1x64xf32> to vector<1x64xf32>
    %1399 = vector.broadcast %1398 : vector<1x64xf32> to vector<16x64xf32>
    %1400 = arith.addf %1396, %1399 : vector<16x64xf32>
    %cst_424 = arith.constant 1.250000e-01 : f32
    %1401 = vector.broadcast %cst_424 : f32 to vector<16x64xf32>
    %1402 = arith.mulf %1400, %1401 : vector<16x64xf32>
    %c1_425 = arith.constant 1 : index
    %c0_426 = arith.constant 0 : index
    %c0_427 = arith.constant 0 : index
    %1403 = vector.load %arg24[%c1_425, %c0_426, %c0_427] : memref<2x64x128xbf16, #tpu.memory_space<vmem>>, vector<1x64x128xbf16>
    %1404 = vector.shape_cast %1403 : vector<1x64x128xbf16> to vector<64x128xbf16>
    %cst_428 = arith.constant dense<0.000000e+00> : vector<16x128xf32>
    %1405 = tpu.matmul %606, %1404, %cst_428 {dimension_numbers = #tpu.dot_dimension_numbers<[1], [0], [0], [1], [0, 0, 1, 1], [], []>} : vector<16x64xbf16>, vector<64x128xbf16>, vector<16x128xf32> -> vector<16x128xf32>
    %c1_429 = arith.constant 1 : index
    %c0_430 = arith.constant 0 : index
    %c0_431 = arith.constant 0 : index
    %1406 = vector.load %arg25[%c1_429, %c0_430, %c0_431] : memref<2x1x128xf32, #tpu.memory_space<vmem>>, vector<1x1x128xf32>
    %1407 = vector.shape_cast %1406 : vector<1x1x128xf32> to vector<1x128xf32>
    %1408 = vector.broadcast %1407 : vector<1x128xf32> to vector<16x128xf32>
    %1409 = arith.addf %1405, %1408 : vector<16x128xf32>
    %1410 = vector.extract_strided_slice %1409 {offsets = [0, 0], sizes = [16, 64], strides = [1, 1]} : vector<16x128xf32> to vector<16x64xf32>
    %1411 = vector.extract_strided_slice %1409 {offsets = [0, 64], sizes = [16, 64], strides = [1, 1]} : vector<16x128xf32> to vector<16x64xf32>
    %c1_432 = arith.constant 1 : index
    %c0_433 = arith.constant 0 : index
    %c0_434 = arith.constant 0 : index
    %1412 = vector.load %arg26[%c1_432, %c0_433, %c0_434] : memref<2x64x64xbf16, #tpu.memory_space<vmem>>, vector<1x64x64xbf16>
    %1413 = vector.shape_cast %1412 : vector<1x64x64xbf16> to vector<64x64xbf16>
    %c1_435 = arith.constant 1 : index
    %c0_436 = arith.constant 0 : index
    %c0_437 = arith.constant 0 : index
    %1414 = vector.load %arg27[%c1_435, %c0_436, %c0_437] : memref<2x1x64xf32, #tpu.memory_space<vmem>>, vector<1x1x64xf32>
    %1415 = vector.shape_cast %1414 : vector<1x1x64xf32> to vector<1x64xf32>
    %1416 = vector.extract_strided_slice %1402 {offsets = [0, 0], sizes = [8, 64], strides = [1, 1]} : vector<16x64xf32> to vector<8x64xf32>
    %1417 = vector.extract_strided_slice %1410 {offsets = [0, 0], sizes = [8, 64], strides = [1, 1]} : vector<16x64xf32> to vector<8x64xf32>
    %1418 = vector.extract_strided_slice %1411 {offsets = [0, 0], sizes = [8, 64], strides = [1, 1]} : vector<16x64xf32> to vector<8x64xf32>
    %1419 = vector.extract_strided_slice %1416 {offsets = [0, 0], sizes = [8, 16], strides = [1, 1]} : vector<8x64xf32> to vector<8x16xf32>
    %1420 = arith.truncf %1419 : vector<8x16xf32> to vector<8x16xbf16>
    %1421 = vector.extract_strided_slice %1417 {offsets = [0, 0], sizes = [8, 16], strides = [1, 1]} : vector<8x64xf32> to vector<8x16xf32>
    %1422 = arith.truncf %1421 : vector<8x16xf32> to vector<8x16xbf16>
    %1423 = vector.extract_strided_slice %1418 {offsets = [0, 0], sizes = [8, 16], strides = [1, 1]} : vector<8x64xf32> to vector<8x16xf32>
    %1424 = arith.truncf %1423 : vector<8x16xf32> to vector<8x16xbf16>
    %cst_438 = arith.constant dense<0.000000e+00> : vector<8x8xf32>
    %1425 = tpu.matmul %1420, %1422, %cst_438 {dimension_numbers = #tpu.dot_dimension_numbers<[1], [1], [0], [0], [0, 0, 1, 0], [], []>} : vector<8x16xbf16>, vector<8x16xbf16>, vector<8x8xf32> -> vector<8x8xf32>
    %1426 = arith.addf %1425, %16 : vector<8x8xf32>
    %cst_439 = arith.constant dense<0xFF800000> : vector<8xf32>
    %1427 = vector.multi_reduction <maximumf>, %1426, %cst_439 [1] : vector<8x8xf32> to vector<8xf32>
    %1428 = vector.shape_cast %1427 : vector<8xf32> to vector<8x1xf32>
    %1429 = vector.broadcast %1428 : vector<8x1xf32> to vector<8x8xf32>
    %1430 = arith.subf %1426, %1429 : vector<8x8xf32>
    %1431 = math.exp %1430 : vector<8x8xf32>
    %cst_440 = arith.constant dense<0.000000e+00> : vector<8xf32>
    %1432 = vector.multi_reduction <add>, %1431, %cst_440 [1] : vector<8x8xf32> to vector<8xf32>
    %1433 = vector.shape_cast %1432 : vector<8xf32> to vector<8x1xf32>
    %1434 = tpu.reciprocal %1433 {approx = true} : vector<8x1xf32> -> vector<8x1xf32>
    %1435 = vector.broadcast %1434 : vector<8x1xf32> to vector<8x8xf32>
    %1436 = arith.mulf %1431, %1435 : vector<8x8xf32>
    %1437 = arith.truncf %1436 : vector<8x8xf32> to vector<8x8xbf16>
    %cst_441 = arith.constant dense<0.000000e+00> : vector<8x16xf32>
    %1438 = tpu.matmul %1437, %1424, %cst_441 {dimension_numbers = #tpu.dot_dimension_numbers<[1], [0], [0], [1], [0, 0, 1, 1], [], []>} : vector<8x8xbf16>, vector<8x16xbf16>, vector<8x16xf32> -> vector<8x16xf32>
    %1439 = arith.truncf %1438 : vector<8x16xf32> to vector<8x16xbf16>
    %1440 = vector.extract_strided_slice %1413 {offsets = [0, 0], sizes = [16, 64], strides = [1, 1]} : vector<64x64xbf16> to vector<16x64xbf16>
    %cst_442 = arith.constant dense<0.000000e+00> : vector<8x64xf32>
    %1441 = tpu.matmul %1439, %1440, %cst_442 {dimension_numbers = #tpu.dot_dimension_numbers<[1], [0], [0], [1], [0, 0, 1, 1], [], []>} : vector<8x16xbf16>, vector<16x64xbf16>, vector<8x64xf32> -> vector<8x64xf32>
    %1442 = vector.extract_strided_slice %1416 {offsets = [0, 16], sizes = [8, 16], strides = [1, 1]} : vector<8x64xf32> to vector<8x16xf32>
    %1443 = arith.truncf %1442 : vector<8x16xf32> to vector<8x16xbf16>
    %1444 = vector.extract_strided_slice %1417 {offsets = [0, 16], sizes = [8, 16], strides = [1, 1]} : vector<8x64xf32> to vector<8x16xf32>
    %1445 = arith.truncf %1444 : vector<8x16xf32> to vector<8x16xbf16>
    %1446 = vector.extract_strided_slice %1418 {offsets = [0, 16], sizes = [8, 16], strides = [1, 1]} : vector<8x64xf32> to vector<8x16xf32>
    %1447 = arith.truncf %1446 : vector<8x16xf32> to vector<8x16xbf16>
    %cst_443 = arith.constant dense<0.000000e+00> : vector<8x8xf32>
    %1448 = tpu.matmul %1443, %1445, %cst_443 {dimension_numbers = #tpu.dot_dimension_numbers<[1], [1], [0], [0], [0, 0, 1, 0], [], []>} : vector<8x16xbf16>, vector<8x16xbf16>, vector<8x8xf32> -> vector<8x8xf32>
    %1449 = arith.addf %1448, %16 : vector<8x8xf32>
    %cst_444 = arith.constant dense<0xFF800000> : vector<8xf32>
    %1450 = vector.multi_reduction <maximumf>, %1449, %cst_444 [1] : vector<8x8xf32> to vector<8xf32>
    %1451 = vector.shape_cast %1450 : vector<8xf32> to vector<8x1xf32>
    %1452 = vector.broadcast %1451 : vector<8x1xf32> to vector<8x8xf32>
    %1453 = arith.subf %1449, %1452 : vector<8x8xf32>
    %1454 = math.exp %1453 : vector<8x8xf32>
    %cst_445 = arith.constant dense<0.000000e+00> : vector<8xf32>
    %1455 = vector.multi_reduction <add>, %1454, %cst_445 [1] : vector<8x8xf32> to vector<8xf32>
    %1456 = vector.shape_cast %1455 : vector<8xf32> to vector<8x1xf32>
    %1457 = tpu.reciprocal %1456 {approx = true} : vector<8x1xf32> -> vector<8x1xf32>
    %1458 = vector.broadcast %1457 : vector<8x1xf32> to vector<8x8xf32>
    %1459 = arith.mulf %1454, %1458 : vector<8x8xf32>
    %1460 = arith.truncf %1459 : vector<8x8xf32> to vector<8x8xbf16>
    %cst_446 = arith.constant dense<0.000000e+00> : vector<8x16xf32>
    %1461 = tpu.matmul %1460, %1447, %cst_446 {dimension_numbers = #tpu.dot_dimension_numbers<[1], [0], [0], [1], [0, 0, 1, 1], [], []>} : vector<8x8xbf16>, vector<8x16xbf16>, vector<8x16xf32> -> vector<8x16xf32>
    %1462 = arith.truncf %1461 : vector<8x16xf32> to vector<8x16xbf16>
    %1463 = vector.extract_strided_slice %1413 {offsets = [16, 0], sizes = [16, 64], strides = [1, 1]} : vector<64x64xbf16> to vector<16x64xbf16>
    %cst_447 = arith.constant dense<0.000000e+00> : vector<8x64xf32>
    %1464 = tpu.matmul %1462, %1463, %cst_447 {dimension_numbers = #tpu.dot_dimension_numbers<[1], [0], [0], [1], [0, 0, 1, 1], [], []>} : vector<8x16xbf16>, vector<16x64xbf16>, vector<8x64xf32> -> vector<8x64xf32>
    %1465 = arith.addf %1441, %1464 : vector<8x64xf32>
    %1466 = vector.extract_strided_slice %1416 {offsets = [0, 32], sizes = [8, 16], strides = [1, 1]} : vector<8x64xf32> to vector<8x16xf32>
    %1467 = arith.truncf %1466 : vector<8x16xf32> to vector<8x16xbf16>
    %1468 = vector.extract_strided_slice %1417 {offsets = [0, 32], sizes = [8, 16], strides = [1, 1]} : vector<8x64xf32> to vector<8x16xf32>
    %1469 = arith.truncf %1468 : vector<8x16xf32> to vector<8x16xbf16>
    %1470 = vector.extract_strided_slice %1418 {offsets = [0, 32], sizes = [8, 16], strides = [1, 1]} : vector<8x64xf32> to vector<8x16xf32>
    %1471 = arith.truncf %1470 : vector<8x16xf32> to vector<8x16xbf16>
    %cst_448 = arith.constant dense<0.000000e+00> : vector<8x8xf32>
    %1472 = tpu.matmul %1467, %1469, %cst_448 {dimension_numbers = #tpu.dot_dimension_numbers<[1], [1], [0], [0], [0, 0, 1, 0], [], []>} : vector<8x16xbf16>, vector<8x16xbf16>, vector<8x8xf32> -> vector<8x8xf32>
    %1473 = arith.addf %1472, %16 : vector<8x8xf32>
    %cst_449 = arith.constant dense<0xFF800000> : vector<8xf32>
    %1474 = vector.multi_reduction <maximumf>, %1473, %cst_449 [1] : vector<8x8xf32> to vector<8xf32>
    %1475 = vector.shape_cast %1474 : vector<8xf32> to vector<8x1xf32>
    %1476 = vector.broadcast %1475 : vector<8x1xf32> to vector<8x8xf32>
    %1477 = arith.subf %1473, %1476 : vector<8x8xf32>
    %1478 = math.exp %1477 : vector<8x8xf32>
    %cst_450 = arith.constant dense<0.000000e+00> : vector<8xf32>
    %1479 = vector.multi_reduction <add>, %1478, %cst_450 [1] : vector<8x8xf32> to vector<8xf32>
    %1480 = vector.shape_cast %1479 : vector<8xf32> to vector<8x1xf32>
    %1481 = tpu.reciprocal %1480 {approx = true} : vector<8x1xf32> -> vector<8x1xf32>
    %1482 = vector.broadcast %1481 : vector<8x1xf32> to vector<8x8xf32>
    %1483 = arith.mulf %1478, %1482 : vector<8x8xf32>
    %1484 = arith.truncf %1483 : vector<8x8xf32> to vector<8x8xbf16>
    %cst_451 = arith.constant dense<0.000000e+00> : vector<8x16xf32>
    %1485 = tpu.matmul %1484, %1471, %cst_451 {dimension_numbers = #tpu.dot_dimension_numbers<[1], [0], [0], [1], [0, 0, 1, 1], [], []>} : vector<8x8xbf16>, vector<8x16xbf16>, vector<8x16xf32> -> vector<8x16xf32>
    %1486 = arith.truncf %1485 : vector<8x16xf32> to vector<8x16xbf16>
    %1487 = vector.extract_strided_slice %1413 {offsets = [32, 0], sizes = [16, 64], strides = [1, 1]} : vector<64x64xbf16> to vector<16x64xbf16>
    %cst_452 = arith.constant dense<0.000000e+00> : vector<8x64xf32>
    %1488 = tpu.matmul %1486, %1487, %cst_452 {dimension_numbers = #tpu.dot_dimension_numbers<[1], [0], [0], [1], [0, 0, 1, 1], [], []>} : vector<8x16xbf16>, vector<16x64xbf16>, vector<8x64xf32> -> vector<8x64xf32>
    %1489 = arith.addf %1465, %1488 : vector<8x64xf32>
    %1490 = vector.extract_strided_slice %1416 {offsets = [0, 48], sizes = [8, 16], strides = [1, 1]} : vector<8x64xf32> to vector<8x16xf32>
    %1491 = arith.truncf %1490 : vector<8x16xf32> to vector<8x16xbf16>
    %1492 = vector.extract_strided_slice %1417 {offsets = [0, 48], sizes = [8, 16], strides = [1, 1]} : vector<8x64xf32> to vector<8x16xf32>
    %1493 = arith.truncf %1492 : vector<8x16xf32> to vector<8x16xbf16>
    %1494 = vector.extract_strided_slice %1418 {offsets = [0, 48], sizes = [8, 16], strides = [1, 1]} : vector<8x64xf32> to vector<8x16xf32>
    %1495 = arith.truncf %1494 : vector<8x16xf32> to vector<8x16xbf16>
    %cst_453 = arith.constant dense<0.000000e+00> : vector<8x8xf32>
    %1496 = tpu.matmul %1491, %1493, %cst_453 {dimension_numbers = #tpu.dot_dimension_numbers<[1], [1], [0], [0], [0, 0, 1, 0], [], []>} : vector<8x16xbf16>, vector<8x16xbf16>, vector<8x8xf32> -> vector<8x8xf32>
    %1497 = arith.addf %1496, %16 : vector<8x8xf32>
    %cst_454 = arith.constant dense<0xFF800000> : vector<8xf32>
    %1498 = vector.multi_reduction <maximumf>, %1497, %cst_454 [1] : vector<8x8xf32> to vector<8xf32>
    %1499 = vector.shape_cast %1498 : vector<8xf32> to vector<8x1xf32>
    %1500 = vector.broadcast %1499 : vector<8x1xf32> to vector<8x8xf32>
    %1501 = arith.subf %1497, %1500 : vector<8x8xf32>
    %1502 = math.exp %1501 : vector<8x8xf32>
    %cst_455 = arith.constant dense<0.000000e+00> : vector<8xf32>
    %1503 = vector.multi_reduction <add>, %1502, %cst_455 [1] : vector<8x8xf32> to vector<8xf32>
    %1504 = vector.shape_cast %1503 : vector<8xf32> to vector<8x1xf32>
    %1505 = tpu.reciprocal %1504 {approx = true} : vector<8x1xf32> -> vector<8x1xf32>
    %1506 = vector.broadcast %1505 : vector<8x1xf32> to vector<8x8xf32>
    %1507 = arith.mulf %1502, %1506 : vector<8x8xf32>
    %1508 = arith.truncf %1507 : vector<8x8xf32> to vector<8x8xbf16>
    %cst_456 = arith.constant dense<0.000000e+00> : vector<8x16xf32>
    %1509 = tpu.matmul %1508, %1495, %cst_456 {dimension_numbers = #tpu.dot_dimension_numbers<[1], [0], [0], [1], [0, 0, 1, 1], [], []>} : vector<8x8xbf16>, vector<8x16xbf16>, vector<8x16xf32> -> vector<8x16xf32>
    %1510 = arith.truncf %1509 : vector<8x16xf32> to vector<8x16xbf16>
    %1511 = vector.extract_strided_slice %1413 {offsets = [48, 0], sizes = [16, 64], strides = [1, 1]} : vector<64x64xbf16> to vector<16x64xbf16>
    %cst_457 = arith.constant dense<0.000000e+00> : vector<8x64xf32>
    %1512 = tpu.matmul %1510, %1511, %cst_457 {dimension_numbers = #tpu.dot_dimension_numbers<[1], [0], [0], [1], [0, 0, 1, 1], [], []>} : vector<8x16xbf16>, vector<16x64xbf16>, vector<8x64xf32> -> vector<8x64xf32>
    %1513 = arith.addf %1489, %1512 : vector<8x64xf32>
    %1514 = vector.broadcast %1415 : vector<1x64xf32> to vector<8x64xf32>
    %1515 = arith.addf %1513, %1514 : vector<8x64xf32>
    %1516 = vector.extract_strided_slice %1402 {offsets = [8, 0], sizes = [8, 64], strides = [1, 1]} : vector<16x64xf32> to vector<8x64xf32>
    %1517 = vector.extract_strided_slice %1410 {offsets = [8, 0], sizes = [8, 64], strides = [1, 1]} : vector<16x64xf32> to vector<8x64xf32>
    %1518 = vector.extract_strided_slice %1411 {offsets = [8, 0], sizes = [8, 64], strides = [1, 1]} : vector<16x64xf32> to vector<8x64xf32>
    %1519 = vector.extract_strided_slice %1516 {offsets = [0, 0], sizes = [8, 16], strides = [1, 1]} : vector<8x64xf32> to vector<8x16xf32>
    %1520 = arith.truncf %1519 : vector<8x16xf32> to vector<8x16xbf16>
    %1521 = vector.extract_strided_slice %1517 {offsets = [0, 0], sizes = [8, 16], strides = [1, 1]} : vector<8x64xf32> to vector<8x16xf32>
    %1522 = arith.truncf %1521 : vector<8x16xf32> to vector<8x16xbf16>
    %1523 = vector.extract_strided_slice %1518 {offsets = [0, 0], sizes = [8, 16], strides = [1, 1]} : vector<8x64xf32> to vector<8x16xf32>
    %1524 = arith.truncf %1523 : vector<8x16xf32> to vector<8x16xbf16>
    %cst_458 = arith.constant dense<0.000000e+00> : vector<8x8xf32>
    %1525 = tpu.matmul %1520, %1522, %cst_458 {dimension_numbers = #tpu.dot_dimension_numbers<[1], [1], [0], [0], [0, 0, 1, 0], [], []>} : vector<8x16xbf16>, vector<8x16xbf16>, vector<8x8xf32> -> vector<8x8xf32>
    %1526 = arith.addf %1525, %19 : vector<8x8xf32>
    %cst_459 = arith.constant dense<0xFF800000> : vector<8xf32>
    %1527 = vector.multi_reduction <maximumf>, %1526, %cst_459 [1] : vector<8x8xf32> to vector<8xf32>
    %1528 = vector.shape_cast %1527 : vector<8xf32> to vector<8x1xf32>
    %1529 = vector.broadcast %1528 : vector<8x1xf32> to vector<8x8xf32>
    %1530 = arith.subf %1526, %1529 : vector<8x8xf32>
    %1531 = math.exp %1530 : vector<8x8xf32>
    %cst_460 = arith.constant dense<0.000000e+00> : vector<8xf32>
    %1532 = vector.multi_reduction <add>, %1531, %cst_460 [1] : vector<8x8xf32> to vector<8xf32>
    %1533 = vector.shape_cast %1532 : vector<8xf32> to vector<8x1xf32>
    %1534 = tpu.reciprocal %1533 {approx = true} : vector<8x1xf32> -> vector<8x1xf32>
    %1535 = vector.broadcast %1534 : vector<8x1xf32> to vector<8x8xf32>
    %1536 = arith.mulf %1531, %1535 : vector<8x8xf32>
    %1537 = arith.truncf %1536 : vector<8x8xf32> to vector<8x8xbf16>
    %cst_461 = arith.constant dense<0.000000e+00> : vector<8x16xf32>
    %1538 = tpu.matmul %1537, %1524, %cst_461 {dimension_numbers = #tpu.dot_dimension_numbers<[1], [0], [0], [1], [0, 0, 1, 1], [], []>} : vector<8x8xbf16>, vector<8x16xbf16>, vector<8x16xf32> -> vector<8x16xf32>
    %1539 = arith.truncf %1538 : vector<8x16xf32> to vector<8x16xbf16>
    %1540 = vector.extract_strided_slice %1413 {offsets = [0, 0], sizes = [16, 64], strides = [1, 1]} : vector<64x64xbf16> to vector<16x64xbf16>
    %cst_462 = arith.constant dense<0.000000e+00> : vector<8x64xf32>
    %1541 = tpu.matmul %1539, %1540, %cst_462 {dimension_numbers = #tpu.dot_dimension_numbers<[1], [0], [0], [1], [0, 0, 1, 1], [], []>} : vector<8x16xbf16>, vector<16x64xbf16>, vector<8x64xf32> -> vector<8x64xf32>
    %1542 = vector.extract_strided_slice %1516 {offsets = [0, 16], sizes = [8, 16], strides = [1, 1]} : vector<8x64xf32> to vector<8x16xf32>
    %1543 = arith.truncf %1542 : vector<8x16xf32> to vector<8x16xbf16>
    %1544 = vector.extract_strided_slice %1517 {offsets = [0, 16], sizes = [8, 16], strides = [1, 1]} : vector<8x64xf32> to vector<8x16xf32>
    %1545 = arith.truncf %1544 : vector<8x16xf32> to vector<8x16xbf16>
    %1546 = vector.extract_strided_slice %1518 {offsets = [0, 16], sizes = [8, 16], strides = [1, 1]} : vector<8x64xf32> to vector<8x16xf32>
    %1547 = arith.truncf %1546 : vector<8x16xf32> to vector<8x16xbf16>
    %cst_463 = arith.constant dense<0.000000e+00> : vector<8x8xf32>
    %1548 = tpu.matmul %1543, %1545, %cst_463 {dimension_numbers = #tpu.dot_dimension_numbers<[1], [1], [0], [0], [0, 0, 1, 0], [], []>} : vector<8x16xbf16>, vector<8x16xbf16>, vector<8x8xf32> -> vector<8x8xf32>
    %1549 = arith.addf %1548, %19 : vector<8x8xf32>
    %cst_464 = arith.constant dense<0xFF800000> : vector<8xf32>
    %1550 = vector.multi_reduction <maximumf>, %1549, %cst_464 [1] : vector<8x8xf32> to vector<8xf32>
    %1551 = vector.shape_cast %1550 : vector<8xf32> to vector<8x1xf32>
    %1552 = vector.broadcast %1551 : vector<8x1xf32> to vector<8x8xf32>
    %1553 = arith.subf %1549, %1552 : vector<8x8xf32>
    %1554 = math.exp %1553 : vector<8x8xf32>
    %cst_465 = arith.constant dense<0.000000e+00> : vector<8xf32>
    %1555 = vector.multi_reduction <add>, %1554, %cst_465 [1] : vector<8x8xf32> to vector<8xf32>
    %1556 = vector.shape_cast %1555 : vector<8xf32> to vector<8x1xf32>
    %1557 = tpu.reciprocal %1556 {approx = true} : vector<8x1xf32> -> vector<8x1xf32>
    %1558 = vector.broadcast %1557 : vector<8x1xf32> to vector<8x8xf32>
    %1559 = arith.mulf %1554, %1558 : vector<8x8xf32>
    %1560 = arith.truncf %1559 : vector<8x8xf32> to vector<8x8xbf16>
    %cst_466 = arith.constant dense<0.000000e+00> : vector<8x16xf32>
    %1561 = tpu.matmul %1560, %1547, %cst_466 {dimension_numbers = #tpu.dot_dimension_numbers<[1], [0], [0], [1], [0, 0, 1, 1], [], []>} : vector<8x8xbf16>, vector<8x16xbf16>, vector<8x16xf32> -> vector<8x16xf32>
    %1562 = arith.truncf %1561 : vector<8x16xf32> to vector<8x16xbf16>
    %1563 = vector.extract_strided_slice %1413 {offsets = [16, 0], sizes = [16, 64], strides = [1, 1]} : vector<64x64xbf16> to vector<16x64xbf16>
    %cst_467 = arith.constant dense<0.000000e+00> : vector<8x64xf32>
    %1564 = tpu.matmul %1562, %1563, %cst_467 {dimension_numbers = #tpu.dot_dimension_numbers<[1], [0], [0], [1], [0, 0, 1, 1], [], []>} : vector<8x16xbf16>, vector<16x64xbf16>, vector<8x64xf32> -> vector<8x64xf32>
    %1565 = arith.addf %1541, %1564 : vector<8x64xf32>
    %1566 = vector.extract_strided_slice %1516 {offsets = [0, 32], sizes = [8, 16], strides = [1, 1]} : vector<8x64xf32> to vector<8x16xf32>
    %1567 = arith.truncf %1566 : vector<8x16xf32> to vector<8x16xbf16>
    %1568 = vector.extract_strided_slice %1517 {offsets = [0, 32], sizes = [8, 16], strides = [1, 1]} : vector<8x64xf32> to vector<8x16xf32>
    %1569 = arith.truncf %1568 : vector<8x16xf32> to vector<8x16xbf16>
    %1570 = vector.extract_strided_slice %1518 {offsets = [0, 32], sizes = [8, 16], strides = [1, 1]} : vector<8x64xf32> to vector<8x16xf32>
    %1571 = arith.truncf %1570 : vector<8x16xf32> to vector<8x16xbf16>
    %cst_468 = arith.constant dense<0.000000e+00> : vector<8x8xf32>
    %1572 = tpu.matmul %1567, %1569, %cst_468 {dimension_numbers = #tpu.dot_dimension_numbers<[1], [1], [0], [0], [0, 0, 1, 0], [], []>} : vector<8x16xbf16>, vector<8x16xbf16>, vector<8x8xf32> -> vector<8x8xf32>
    %1573 = arith.addf %1572, %19 : vector<8x8xf32>
    %cst_469 = arith.constant dense<0xFF800000> : vector<8xf32>
    %1574 = vector.multi_reduction <maximumf>, %1573, %cst_469 [1] : vector<8x8xf32> to vector<8xf32>
    %1575 = vector.shape_cast %1574 : vector<8xf32> to vector<8x1xf32>
    %1576 = vector.broadcast %1575 : vector<8x1xf32> to vector<8x8xf32>
    %1577 = arith.subf %1573, %1576 : vector<8x8xf32>
    %1578 = math.exp %1577 : vector<8x8xf32>
    %cst_470 = arith.constant dense<0.000000e+00> : vector<8xf32>
    %1579 = vector.multi_reduction <add>, %1578, %cst_470 [1] : vector<8x8xf32> to vector<8xf32>
    %1580 = vector.shape_cast %1579 : vector<8xf32> to vector<8x1xf32>
    %1581 = tpu.reciprocal %1580 {approx = true} : vector<8x1xf32> -> vector<8x1xf32>
    %1582 = vector.broadcast %1581 : vector<8x1xf32> to vector<8x8xf32>
    %1583 = arith.mulf %1578, %1582 : vector<8x8xf32>
    %1584 = arith.truncf %1583 : vector<8x8xf32> to vector<8x8xbf16>
    %cst_471 = arith.constant dense<0.000000e+00> : vector<8x16xf32>
    %1585 = tpu.matmul %1584, %1571, %cst_471 {dimension_numbers = #tpu.dot_dimension_numbers<[1], [0], [0], [1], [0, 0, 1, 1], [], []>} : vector<8x8xbf16>, vector<8x16xbf16>, vector<8x16xf32> -> vector<8x16xf32>
    %1586 = arith.truncf %1585 : vector<8x16xf32> to vector<8x16xbf16>
    %1587 = vector.extract_strided_slice %1413 {offsets = [32, 0], sizes = [16, 64], strides = [1, 1]} : vector<64x64xbf16> to vector<16x64xbf16>
    %cst_472 = arith.constant dense<0.000000e+00> : vector<8x64xf32>
    %1588 = tpu.matmul %1586, %1587, %cst_472 {dimension_numbers = #tpu.dot_dimension_numbers<[1], [0], [0], [1], [0, 0, 1, 1], [], []>} : vector<8x16xbf16>, vector<16x64xbf16>, vector<8x64xf32> -> vector<8x64xf32>
    %1589 = arith.addf %1565, %1588 : vector<8x64xf32>
    %1590 = vector.extract_strided_slice %1516 {offsets = [0, 48], sizes = [8, 16], strides = [1, 1]} : vector<8x64xf32> to vector<8x16xf32>
    %1591 = arith.truncf %1590 : vector<8x16xf32> to vector<8x16xbf16>
    %1592 = vector.extract_strided_slice %1517 {offsets = [0, 48], sizes = [8, 16], strides = [1, 1]} : vector<8x64xf32> to vector<8x16xf32>
    %1593 = arith.truncf %1592 : vector<8x16xf32> to vector<8x16xbf16>
    %1594 = vector.extract_strided_slice %1518 {offsets = [0, 48], sizes = [8, 16], strides = [1, 1]} : vector<8x64xf32> to vector<8x16xf32>
    %1595 = arith.truncf %1594 : vector<8x16xf32> to vector<8x16xbf16>
    %cst_473 = arith.constant dense<0.000000e+00> : vector<8x8xf32>
    %1596 = tpu.matmul %1591, %1593, %cst_473 {dimension_numbers = #tpu.dot_dimension_numbers<[1], [1], [0], [0], [0, 0, 1, 0], [], []>} : vector<8x16xbf16>, vector<8x16xbf16>, vector<8x8xf32> -> vector<8x8xf32>
    %1597 = arith.addf %1596, %19 : vector<8x8xf32>
    %cst_474 = arith.constant dense<0xFF800000> : vector<8xf32>
    %1598 = vector.multi_reduction <maximumf>, %1597, %cst_474 [1] : vector<8x8xf32> to vector<8xf32>
    %1599 = vector.shape_cast %1598 : vector<8xf32> to vector<8x1xf32>
    %1600 = vector.broadcast %1599 : vector<8x1xf32> to vector<8x8xf32>
    %1601 = arith.subf %1597, %1600 : vector<8x8xf32>
    %1602 = math.exp %1601 : vector<8x8xf32>
    %cst_475 = arith.constant dense<0.000000e+00> : vector<8xf32>
    %1603 = vector.multi_reduction <add>, %1602, %cst_475 [1] : vector<8x8xf32> to vector<8xf32>
    %1604 = vector.shape_cast %1603 : vector<8xf32> to vector<8x1xf32>
    %1605 = tpu.reciprocal %1604 {approx = true} : vector<8x1xf32> -> vector<8x1xf32>
    %1606 = vector.broadcast %1605 : vector<8x1xf32> to vector<8x8xf32>
    %1607 = arith.mulf %1602, %1606 : vector<8x8xf32>
    %1608 = arith.truncf %1607 : vector<8x8xf32> to vector<8x8xbf16>
    %cst_476 = arith.constant dense<0.000000e+00> : vector<8x16xf32>
    %1609 = tpu.matmul %1608, %1595, %cst_476 {dimension_numbers = #tpu.dot_dimension_numbers<[1], [0], [0], [1], [0, 0, 1, 1], [], []>} : vector<8x8xbf16>, vector<8x16xbf16>, vector<8x16xf32> -> vector<8x16xf32>
    %1610 = arith.truncf %1609 : vector<8x16xf32> to vector<8x16xbf16>
    %1611 = vector.extract_strided_slice %1413 {offsets = [48, 0], sizes = [16, 64], strides = [1, 1]} : vector<64x64xbf16> to vector<16x64xbf16>
    %cst_477 = arith.constant dense<0.000000e+00> : vector<8x64xf32>
    %1612 = tpu.matmul %1610, %1611, %cst_477 {dimension_numbers = #tpu.dot_dimension_numbers<[1], [0], [0], [1], [0, 0, 1, 1], [], []>} : vector<8x16xbf16>, vector<16x64xbf16>, vector<8x64xf32> -> vector<8x64xf32>
    %1613 = arith.addf %1589, %1612 : vector<8x64xf32>
    %1614 = vector.broadcast %1415 : vector<1x64xf32> to vector<8x64xf32>
    %1615 = arith.addf %1613, %1614 : vector<8x64xf32>
    %1616 = tpu.concatenate %1515, %1615 in 0 : vector<8x64xf32>, vector<8x64xf32> -> vector<16x64xf32>
    %c1_478 = arith.constant 1 : index
    %c0_479 = arith.constant 0 : index
    %c0_480 = arith.constant 0 : index
    %1617 = vector.load %arg28[%c1_478, %c0_479, %c0_480] : memref<2x1x64xf32, #tpu.memory_space<vmem>>, vector<1x1x64xf32>
    %1618 = vector.shape_cast %1617 : vector<1x1x64xf32> to vector<1x64xf32>
    %c1_481 = arith.constant 1 : index
    %c0_482 = arith.constant 0 : index
    %c0_483 = arith.constant 0 : index
    %1619 = vector.load %arg29[%c1_481, %c0_482, %c0_483] : memref<2x1x64xf32, #tpu.memory_space<vmem>>, vector<1x1x64xf32>
    %1620 = vector.shape_cast %1619 : vector<1x1x64xf32> to vector<1x64xf32>
    %c1_484 = arith.constant 1 : index
    %c0_485 = arith.constant 0 : index
    %c0_486 = arith.constant 0 : index
    %1621 = vector.load %arg30[%c1_484, %c0_485, %c0_486] : memref<2x64x256xbf16, #tpu.memory_space<vmem>>, vector<1x64x256xbf16>
    %1622 = vector.shape_cast %1621 : vector<1x64x256xbf16> to vector<64x256xbf16>
    %c1_487 = arith.constant 1 : index
    %c0_488 = arith.constant 0 : index
    %c0_489 = arith.constant 0 : index
    %1623 = vector.load %arg31[%c1_487, %c0_488, %c0_489] : memref<2x1x256xf32, #tpu.memory_space<vmem>>, vector<1x1x256xf32>
    %1624 = vector.shape_cast %1623 : vector<1x1x256xf32> to vector<1x256xf32>
    %c1_490 = arith.constant 1 : index
    %c0_491 = arith.constant 0 : index
    %c0_492 = arith.constant 0 : index
    %1625 = vector.load %arg32[%c1_490, %c0_491, %c0_492] : memref<2x256x64xbf16, #tpu.memory_space<vmem>>, vector<1x256x64xbf16>
    %1626 = vector.shape_cast %1625 : vector<1x256x64xbf16> to vector<256x64xbf16>
    %c1_493 = arith.constant 1 : index
    %c0_494 = arith.constant 0 : index
    %c0_495 = arith.constant 0 : index
    %1627 = vector.load %arg33[%c1_493, %c0_494, %c0_495] : memref<2x1x64xf32, #tpu.memory_space<vmem>>, vector<1x1x64xf32>
    %1628 = vector.shape_cast %1627 : vector<1x1x64xf32> to vector<1x64xf32>
    %c1_496 = arith.constant 1 : index
    %c0_497 = arith.constant 0 : index
    %c0_498 = arith.constant 0 : index
    %1629 = vector.load %arg34[%c1_496, %c0_497, %c0_498] : memref<2x1x64xf32, #tpu.memory_space<vmem>>, vector<1x1x64xf32>
    %1630 = vector.shape_cast %1629 : vector<1x1x64xf32> to vector<1x64xf32>
    %c1_499 = arith.constant 1 : index
    %c0_500 = arith.constant 0 : index
    %c0_501 = arith.constant 0 : index
    %1631 = vector.load %arg35[%c1_499, %c0_500, %c0_501] : memref<2x1x64xf32, #tpu.memory_space<vmem>>, vector<1x1x64xf32>
    %1632 = vector.shape_cast %1631 : vector<1x1x64xf32> to vector<1x64xf32>
    %1633 = arith.addf %1616, %1392 : vector<16x64xf32>
    %cst_502 = arith.constant dense<0.000000e+00> : vector<16xf32>
    %1634 = vector.multi_reduction <add>, %1633, %cst_502 [1] : vector<16x64xf32> to vector<16xf32>
    %1635 = vector.shape_cast %1634 : vector<16xf32> to vector<16x1xf32>
    %cst_503 = arith.constant 6.400000e+01 : f32
    %1636 = vector.broadcast %cst_503 : f32 to vector<16x1xf32>
    %1637 = arith.divf %1635, %1636 : vector<16x1xf32>
    %1638 = vector.broadcast %1637 : vector<16x1xf32> to vector<16x64xf32>
    %1639 = arith.subf %1633, %1638 : vector<16x64xf32>
    %1640 = arith.mulf %1639, %1639 : vector<16x64xf32>
    %cst_504 = arith.constant dense<0.000000e+00> : vector<16xf32>
    %1641 = vector.multi_reduction <add>, %1640, %cst_504 [1] : vector<16x64xf32> to vector<16xf32>
    %1642 = vector.shape_cast %1641 : vector<16xf32> to vector<16x1xf32>
    %cst_505 = arith.constant 6.400000e+01 : f32
    %1643 = vector.broadcast %cst_505 : f32 to vector<16x1xf32>
    %1644 = arith.divf %1642, %1643 : vector<16x1xf32>
    %1645 = vector.broadcast %1637 : vector<16x1xf32> to vector<16x64xf32>
    %1646 = arith.subf %1633, %1645 : vector<16x64xf32>
    %cst_506 = arith.constant 9.99999974E-6 : f32
    %1647 = vector.broadcast %cst_506 : f32 to vector<16x1xf32>
    %1648 = arith.addf %1644, %1647 : vector<16x1xf32>
    %1649 = math.rsqrt %1648 : vector<16x1xf32>
    %1650 = vector.broadcast %1649 : vector<16x1xf32> to vector<16x64xf32>
    %1651 = arith.mulf %1646, %1650 : vector<16x64xf32>
    %1652 = vector.broadcast %1618 : vector<1x64xf32> to vector<16x64xf32>
    %1653 = arith.mulf %1651, %1652 : vector<16x64xf32>
    %1654 = vector.broadcast %1620 : vector<1x64xf32> to vector<16x64xf32>
    %1655 = arith.addf %1653, %1654 : vector<16x64xf32>
    %1656 = arith.truncf %1655 : vector<16x64xf32> to vector<16x64xbf16>
    %cst_507 = arith.constant dense<0.000000e+00> : vector<16x256xf32>
    %1657 = tpu.matmul %1656, %1622, %cst_507 {dimension_numbers = #tpu.dot_dimension_numbers<[1], [0], [0], [1], [0, 0, 1, 1], [], []>} : vector<16x64xbf16>, vector<64x256xbf16>, vector<16x256xf32> -> vector<16x256xf32>
    %1658 = vector.broadcast %1624 : vector<1x256xf32> to vector<16x256xf32>
    %1659 = arith.addf %1657, %1658 : vector<16x256xf32>
    %cst_508 = arith.constant 0.000000e+00 : f32
    %1660 = vector.broadcast %cst_508 : f32 to vector<16x256xf32>
    %1661 = arith.maximumf %1659, %1660 : vector<16x256xf32>
    %1662 = arith.truncf %1661 : vector<16x256xf32> to vector<16x256xbf16>
    %cst_509 = arith.constant dense<0.000000e+00> : vector<16x64xf32>
    %1663 = tpu.matmul %1662, %1626, %cst_509 {dimension_numbers = #tpu.dot_dimension_numbers<[1], [0], [0], [1], [0, 0, 1, 1], [], []>} : vector<16x256xbf16>, vector<256x64xbf16>, vector<16x64xf32> -> vector<16x64xf32>
    %1664 = vector.broadcast %1628 : vector<1x64xf32> to vector<16x64xf32>
    %1665 = arith.addf %1663, %1664 : vector<16x64xf32>
    %1666 = arith.addf %1665, %1655 : vector<16x64xf32>
    %cst_510 = arith.constant dense<0.000000e+00> : vector<16xf32>
    %1667 = vector.multi_reduction <add>, %1666, %cst_510 [1] : vector<16x64xf32> to vector<16xf32>
    %1668 = vector.shape_cast %1667 : vector<16xf32> to vector<16x1xf32>
    %cst_511 = arith.constant 6.400000e+01 : f32
    %1669 = vector.broadcast %cst_511 : f32 to vector<16x1xf32>
    %1670 = arith.divf %1668, %1669 : vector<16x1xf32>
    %1671 = vector.broadcast %1670 : vector<16x1xf32> to vector<16x64xf32>
    %1672 = arith.subf %1666, %1671 : vector<16x64xf32>
    %1673 = arith.mulf %1672, %1672 : vector<16x64xf32>
    %cst_512 = arith.constant dense<0.000000e+00> : vector<16xf32>
    %1674 = vector.multi_reduction <add>, %1673, %cst_512 [1] : vector<16x64xf32> to vector<16xf32>
    %1675 = vector.shape_cast %1674 : vector<16xf32> to vector<16x1xf32>
    %cst_513 = arith.constant 6.400000e+01 : f32
    %1676 = vector.broadcast %cst_513 : f32 to vector<16x1xf32>
    %1677 = arith.divf %1675, %1676 : vector<16x1xf32>
    %1678 = vector.broadcast %1670 : vector<16x1xf32> to vector<16x64xf32>
    %1679 = arith.subf %1666, %1678 : vector<16x64xf32>
    %cst_514 = arith.constant 9.99999974E-6 : f32
    %1680 = vector.broadcast %cst_514 : f32 to vector<16x1xf32>
    %1681 = arith.addf %1677, %1680 : vector<16x1xf32>
    %1682 = math.rsqrt %1681 : vector<16x1xf32>
    %1683 = vector.broadcast %1682 : vector<16x1xf32> to vector<16x64xf32>
    %1684 = arith.mulf %1679, %1683 : vector<16x64xf32>
    %1685 = vector.broadcast %1630 : vector<1x64xf32> to vector<16x64xf32>
    %1686 = arith.mulf %1684, %1685 : vector<16x64xf32>
    %1687 = vector.broadcast %1632 : vector<1x64xf32> to vector<16x64xf32>
    %1688 = arith.addf %1686, %1687 : vector<16x64xf32>
    %c0_515 = arith.constant 0 : index
    %c0_516 = arith.constant 0 : index
    %1689 = vector.load %arg36[%c0_515, %c0_516] : memref<64x128xbf16, #tpu.memory_space<vmem>>, vector<64x128xbf16>
    %1690 = arith.truncf %1688 : vector<16x64xf32> to vector<16x64xbf16>
    %cst_517 = arith.constant dense<0.000000e+00> : vector<16x128xf32>
    %1691 = tpu.matmul %1690, %1689, %cst_517 {dimension_numbers = #tpu.dot_dimension_numbers<[1], [0], [0], [1], [0, 0, 1, 1], [], []>} : vector<16x64xbf16>, vector<64x128xbf16>, vector<16x128xf32> -> vector<16x128xf32>
    %c0_518 = arith.constant 0 : index
    %c0_519 = arith.constant 0 : index
    %1692 = vector.load %arg37[%c0_518, %c0_519] : memref<1x128xf32, #tpu.memory_space<vmem>>, vector<1x128xf32>
    %1693 = vector.broadcast %1692 : vector<1x128xf32> to vector<16x128xf32>
    %1694 = arith.addf %1691, %1693 : vector<16x128xf32>
    %c0_520 = arith.constant 0 : index
    %c0_521 = arith.constant 0 : index
    %1695 = vector.load %arg38[%c0_520, %c0_521] : memref<16x128xf32, #tpu.memory_space<vmem>>, vector<16x128xf32>
    tpu.vector_store %arg38[%c0_520, %c0_521], %1694 {strides = array<i32>} : memref<16x128xf32, #tpu.memory_space<vmem>>, vector<16x128xf32>,
    return
  }
  func.func @transform_0(%arg0: i32) -> (i32, i32) {
    %c0_i32 = arith.constant 0 : i32
    %c0_i32_0 = arith.constant 0 : i32
    return %arg0, %c0_i32 : i32, i32
  }
  func.func @transform_1(%arg0: i32) -> (i32, i32) {
    %c0_i32 = arith.constant 0 : i32
    %c0_i32_0 = arith.constant 0 : i32
    return %arg0, %c0_i32 : i32, i32
  }
  func.func @transform_2(%arg0: i32) -> (i32, i32) {
    %c0_i32 = arith.constant 0 : i32
    %c0_i32_0 = arith.constant 0 : i32
    return %arg0, %c0_i32 : i32, i32
  }
  func.func @transform_3(%arg0: i32) -> (i32, i32, i32) {
    %c0_i32 = arith.constant 0 : i32
    %c0_i32_0 = arith.constant 0 : i32
    %c0_i32_1 = arith.constant 0 : i32
    %c0_i32_2 = arith.constant 0 : i32
    return %c0_i32, %c0_i32_0, %c0_i32_1 : i32, i32, i32
  }
  func.func @transform_4(%arg0: i32) -> (i32, i32, i32) {
    %c0_i32 = arith.constant 0 : i32
    %c0_i32_0 = arith.constant 0 : i32
    %c0_i32_1 = arith.constant 0 : i32
    %c0_i32_2 = arith.constant 0 : i32
    return %c0_i32, %c0_i32_0, %c0_i32_1 : i32, i32, i32
  }
  func.func @transform_5(%arg0: i32) -> (i32, i32, i32) {
    %c0_i32 = arith.constant 0 : i32
    %c0_i32_0 = arith.constant 0 : i32
    %c0_i32_1 = arith.constant 0 : i32
    %c0_i32_2 = arith.constant 0 : i32
    return %c0_i32, %c0_i32_0, %c0_i32_1 : i32, i32, i32
  }
  func.func @transform_6(%arg0: i32) -> (i32, i32, i32) {
    %c0_i32 = arith.constant 0 : i32
    %c0_i32_0 = arith.constant 0 : i32
    %c0_i32_1 = arith.constant 0 : i32
    %c0_i32_2 = arith.constant 0 : i32
    return %c0_i32, %c0_i32_0, %c0_i32_1 : i32, i32, i32
  }
  func.func @transform_7(%arg0: i32) -> (i32, i32, i32) {
    %c0_i32 = arith.constant 0 : i32
    %c0_i32_0 = arith.constant 0 : i32
    %c0_i32_1 = arith.constant 0 : i32
    %c0_i32_2 = arith.constant 0 : i32
    return %c0_i32, %c0_i32_0, %c0_i32_1 : i32, i32, i32
  }
  func.func @transform_8(%arg0: i32) -> (i32, i32, i32) {
    %c0_i32 = arith.constant 0 : i32
    %c0_i32_0 = arith.constant 0 : i32
    %c0_i32_1 = arith.constant 0 : i32
    %c0_i32_2 = arith.constant 0 : i32
    return %c0_i32, %c0_i32_0, %c0_i32_1 : i32, i32, i32
  }
  func.func @transform_9(%arg0: i32) -> (i32, i32, i32) {
    %c0_i32 = arith.constant 0 : i32
    %c0_i32_0 = arith.constant 0 : i32
    %c0_i32_1 = arith.constant 0 : i32
    %c0_i32_2 = arith.constant 0 : i32
    return %c0_i32, %c0_i32_0, %c0_i32_1 : i32, i32, i32
  }
  func.func @transform_10(%arg0: i32) -> (i32, i32, i32) {
    %c0_i32 = arith.constant 0 : i32
    %c0_i32_0 = arith.constant 0 : i32
    %c0_i32_1 = arith.constant 0 : i32
    %c0_i32_2 = arith.constant 0 : i32
    return %c0_i32, %c0_i32_0, %c0_i32_1 : i32, i32, i32
  }
  func.func @transform_11(%arg0: i32) -> (i32, i32, i32) {
    %c0_i32 = arith.constant 0 : i32
    %c0_i32_0 = arith.constant 0 : i32
    %c0_i32_1 = arith.constant 0 : i32
    %c0_i32_2 = arith.constant 0 : i32
    return %c0_i32, %c0_i32_0, %c0_i32_1 : i32, i32, i32
  }
  func.func @transform_12(%arg0: i32) -> (i32, i32, i32) {
    %c0_i32 = arith.constant 0 : i32
    %c0_i32_0 = arith.constant 0 : i32
    %c0_i32_1 = arith.constant 0 : i32
    %c0_i32_2 = arith.constant 0 : i32
    return %c0_i32, %c0_i32_0, %c0_i32_1 : i32, i32, i32
  }
  func.func @transform_13(%arg0: i32) -> (i32, i32, i32) {
    %c0_i32 = arith.constant 0 : i32
    %c0_i32_0 = arith.constant 0 : i32
    %c0_i32_1 = arith.constant 0 : i32
    %c0_i32_2 = arith.constant 0 : i32
    return %c0_i32, %c0_i32_0, %c0_i32_1 : i32, i32, i32
  }
  func.func @transform_14(%arg0: i32) -> (i32, i32, i32) {
    %c0_i32 = arith.constant 0 : i32
    %c0_i32_0 = arith.constant 0 : i32
    %c0_i32_1 = arith.constant 0 : i32
    %c0_i32_2 = arith.constant 0 : i32
    return %c0_i32, %c0_i32_0, %c0_i32_1 : i32, i32, i32
  }
  func.func @transform_15(%arg0: i32) -> (i32, i32, i32) {
    %c0_i32 = arith.constant 0 : i32
    %c0_i32_0 = arith.constant 0 : i32
    %c0_i32_1 = arith.constant 0 : i32
    %c0_i32_2 = arith.constant 0 : i32
    return %c0_i32, %c0_i32_0, %c0_i32_1 : i32, i32, i32
  }
  func.func @transform_16(%arg0: i32) -> (i32, i32, i32) {
    %c0_i32 = arith.constant 0 : i32
    %c0_i32_0 = arith.constant 0 : i32
    %c0_i32_1 = arith.constant 0 : i32
    %c0_i32_2 = arith.constant 0 : i32
    return %c0_i32, %c0_i32_0, %c0_i32_1 : i32, i32, i32
  }
  func.func @transform_17(%arg0: i32) -> (i32, i32, i32) {
    %c0_i32 = arith.constant 0 : i32
    %c0_i32_0 = arith.constant 0 : i32
    %c0_i32_1 = arith.constant 0 : i32
    %c0_i32_2 = arith.constant 0 : i32
    return %c0_i32, %c0_i32_0, %c0_i32_1 : i32, i32, i32
  }
  func.func @transform_18(%arg0: i32) -> (i32, i32, i32) {
    %c0_i32 = arith.constant 0 : i32
    %c0_i32_0 = arith.constant 0 : i32
    %c0_i32_1 = arith.constant 0 : i32
    %c0_i32_2 = arith.constant 0 : i32
    return %c0_i32, %c0_i32_0, %c0_i32_1 : i32, i32, i32
  }
  func.func @transform_19(%arg0: i32) -> (i32, i32, i32) {
    %c0_i32 = arith.constant 0 : i32
    %c0_i32_0 = arith.constant 0 : i32
    %c0_i32_1 = arith.constant 0 : i32
    %c0_i32_2 = arith.constant 0 : i32
    return %c0_i32, %c0_i32_0, %c0_i32_1 : i32, i32, i32
  }
  func.func @transform_20(%arg0: i32) -> (i32, i32, i32) {
    %c0_i32 = arith.constant 0 : i32
    %c0_i32_0 = arith.constant 0 : i32
    %c0_i32_1 = arith.constant 0 : i32
    %c0_i32_2 = arith.constant 0 : i32
    return %c0_i32, %c0_i32_0, %c0_i32_1 : i32, i32, i32
  }
  func.func @transform_21(%arg0: i32) -> (i32, i32, i32) {
    %c0_i32 = arith.constant 0 : i32
    %c0_i32_0 = arith.constant 0 : i32
    %c0_i32_1 = arith.constant 0 : i32
    %c0_i32_2 = arith.constant 0 : i32
    return %c0_i32, %c0_i32_0, %c0_i32_1 : i32, i32, i32
  }
  func.func @transform_22(%arg0: i32) -> (i32, i32, i32) {
    %c0_i32 = arith.constant 0 : i32
    %c0_i32_0 = arith.constant 0 : i32
    %c0_i32_1 = arith.constant 0 : i32
    %c0_i32_2 = arith.constant 0 : i32
    return %c0_i32, %c0_i32_0, %c0_i32_1 : i32, i32, i32
  }
  func.func @transform_23(%arg0: i32) -> (i32, i32, i32) {
    %c0_i32 = arith.constant 0 : i32
    %c0_i32_0 = arith.constant 0 : i32
    %c0_i32_1 = arith.constant 0 : i32
    %c0_i32_2 = arith.constant 0 : i32
    return %c0_i32, %c0_i32_0, %c0_i32_1 : i32, i32, i32
  }
  func.func @transform_24(%arg0: i32) -> (i32, i32, i32) {
    %c0_i32 = arith.constant 0 : i32
    %c0_i32_0 = arith.constant 0 : i32
    %c0_i32_1 = arith.constant 0 : i32
    %c0_i32_2 = arith.constant 0 : i32
    return %c0_i32, %c0_i32_0, %c0_i32_1 : i32, i32, i32
  }
  func.func @transform_25(%arg0: i32) -> (i32, i32, i32) {
    %c0_i32 = arith.constant 0 : i32
    %c0_i32_0 = arith.constant 0 : i32
    %c0_i32_1 = arith.constant 0 : i32
    %c0_i32_2 = arith.constant 0 : i32
    return %c0_i32, %c0_i32_0, %c0_i32_1 : i32, i32, i32
  }
  func.func @transform_26(%arg0: i32) -> (i32, i32, i32) {
    %c0_i32 = arith.constant 0 : i32
    %c0_i32_0 = arith.constant 0 : i32
    %c0_i32_1 = arith.constant 0 : i32
    %c0_i32_2 = arith.constant 0 : i32
    return %c0_i32, %c0_i32_0, %c0_i32_1 : i32, i32, i32
  }
  func.func @transform_27(%arg0: i32) -> (i32, i32, i32) {
    %c0_i32 = arith.constant 0 : i32
    %c0_i32_0 = arith.constant 0 : i32
    %c0_i32_1 = arith.constant 0 : i32
    %c0_i32_2 = arith.constant 0 : i32
    return %c0_i32, %c0_i32_0, %c0_i32_1 : i32, i32, i32
  }
  func.func @transform_28(%arg0: i32) -> (i32, i32, i32) {
    %c0_i32 = arith.constant 0 : i32
    %c0_i32_0 = arith.constant 0 : i32
    %c0_i32_1 = arith.constant 0 : i32
    %c0_i32_2 = arith.constant 0 : i32
    return %c0_i32, %c0_i32_0, %c0_i32_1 : i32, i32, i32
  }
  func.func @transform_29(%arg0: i32) -> (i32, i32, i32) {
    %c0_i32 = arith.constant 0 : i32
    %c0_i32_0 = arith.constant 0 : i32
    %c0_i32_1 = arith.constant 0 : i32
    %c0_i32_2 = arith.constant 0 : i32
    return %c0_i32, %c0_i32_0, %c0_i32_1 : i32, i32, i32
  }
  func.func @transform_30(%arg0: i32) -> (i32, i32, i32) {
    %c0_i32 = arith.constant 0 : i32
    %c0_i32_0 = arith.constant 0 : i32
    %c0_i32_1 = arith.constant 0 : i32
    %c0_i32_2 = arith.constant 0 : i32
    return %c0_i32, %c0_i32_0, %c0_i32_1 : i32, i32, i32
  }
  func.func @transform_31(%arg0: i32) -> (i32, i32, i32) {
    %c0_i32 = arith.constant 0 : i32
    %c0_i32_0 = arith.constant 0 : i32
    %c0_i32_1 = arith.constant 0 : i32
    %c0_i32_2 = arith.constant 0 : i32
    return %c0_i32, %c0_i32_0, %c0_i32_1 : i32, i32, i32
  }
  func.func @transform_32(%arg0: i32) -> (i32, i32, i32) {
    %c0_i32 = arith.constant 0 : i32
    %c0_i32_0 = arith.constant 0 : i32
    %c0_i32_1 = arith.constant 0 : i32
    %c0_i32_2 = arith.constant 0 : i32
    return %c0_i32, %c0_i32_0, %c0_i32_1 : i32, i32, i32
  }
  func.func @transform_33(%arg0: i32) -> (i32, i32, i32) {
    %c0_i32 = arith.constant 0 : i32
    %c0_i32_0 = arith.constant 0 : i32
    %c0_i32_1 = arith.constant 0 : i32
    %c0_i32_2 = arith.constant 0 : i32
    return %c0_i32, %c0_i32_0, %c0_i32_1 : i32, i32, i32
  }
  func.func @transform_34(%arg0: i32) -> (i32, i32, i32) {
    %c0_i32 = arith.constant 0 : i32
    %c0_i32_0 = arith.constant 0 : i32
    %c0_i32_1 = arith.constant 0 : i32
    %c0_i32_2 = arith.constant 0 : i32
    return %c0_i32, %c0_i32_0, %c0_i32_1 : i32, i32, i32
  }
  func.func @transform_35(%arg0: i32) -> (i32, i32) {
    %c0_i32 = arith.constant 0 : i32
    %c0_i32_0 = arith.constant 0 : i32
    %c0_i32_1 = arith.constant 0 : i32
    return %c0_i32, %c0_i32_0 : i32, i32
  }
  func.func @transform_36(%arg0: i32) -> (i32, i32) {
    %c0_i32 = arith.constant 0 : i32
    %c0_i32_0 = arith.constant 0 : i32
    %c0_i32_1 = arith.constant 0 : i32
    return %c0_i32, %c0_i32_0 : i32, i32
  }
  func.func @transform_37(%arg0: i32) -> (i32, i32) {
    %c0_i32 = arith.constant 0 : i32
    %c0_i32_0 = arith.constant 0 : i32
    return %arg0, %c0_i32 : i32, i32
  }
}

</mosaic_0001>

<bundles_post_ra>
// kernel: transformer_forward.1
= control target key start
LH: loop header
LB: loop body
LE: loop exit
PB: predicated region body
PF: predicated region fallthrough
CT: control target
= control target key end

     0   :  { %s12778_s6 = smov 1   ;;  %s12779_s10 = smov 2   ;;  %s14825_s0 = inlined_call_operand.smem [shape: u32[38], index: -1, kind: input, shape index: {}] }
   0x1   :  { %s12837_s5 = sld [smem:[%s14825_s0]]   ;;  %s12780_s14 = smov 3  }
   0x2   :  { %s12842_s9 = sld [smem:[%s14825_s0 + %s12778_s6]]   ;;  %s12781_s18 = smov 4  }
   0x3   :  { %s12847_s13 = sld [smem:[%s14825_s0 + %s12779_s10]]   ;;  %s12782_s22 = smov 5  }
   0x4   :  { %s12852_s17 = sld [smem:[%s14825_s0 + %s12780_s14]]   ;;  %s12783_s26 = smov 6  }
   0x5   :  { %s12857_s21 = sld [smem:[%s14825_s0 + %s12781_s18]]   ;;  %s12784_s30 = smov 7  }
   0x6   :  { %s12862_s25 = sld [smem:[%s14825_s0 + %s12782_s22]]   ;;  %s12785_s4 = smov 8  }
   0x7   :  { %s12867_s29 = sld [smem:[%s14825_s0 + %s12783_s26]]   ;;  %s12786_s10 = smov 9  }
   0x8   :  { %14846 = sst [smem:[#allocation5_spill]] %s12842_s9  ;;  %s12787_s15 = smov 10  }
   0x9   :  { %s12872_s3 = sld [smem:[%s14825_s0 + %s12784_s30]]   ;;  %s12788_s20 = smov 11  }
   0xa   :  { %s12877_s8 = sld [smem:[%s14825_s0 + %s12785_s4]]   ;;  %s12789_s26 = smov 12  }
   0xb   :  { %s12882_s14 = sld [smem:[%s14825_s0 + %s12786_s10]]   ;;  %s12790_s1 = smov 13  }
   0xc   :  { %s12887_s19 = sld [smem:[%s14825_s0 + %s12787_s15]]   ;;  %s12791_s7 = smov 14  }
   0xd   :  { %s12892_s24 = sld [smem:[%s14825_s0 + %s12788_s20]]   ;;  %s12792_s15 = smov 15  }
   0xe   :  { %s12897_s30 = sld [smem:[%s14825_s0 + %s12789_s26]]   ;;  %s12793_s22 = smov 16  }
   0xf   :  { %s12902_s6 = sld [smem:[%s14825_s0 + %s12790_s1]]   ;;  %s12794_s28 = smov 17  }
  0x10   :  { %s12907_s12 = sld [smem:[%s14825_s0 + %s12791_s7]]   ;;  %s12795_s7 = smov 18  }
  0x11   :  { %s12912_s20 = sld [smem:[%s14825_s0 + %s12792_s15]]   ;;  %s12796_s15 = smov 19  }
  0x12   :  { %s12917_s27 = sld [smem:[%s14825_s0 + %s12793_s22]]   ;;  %s12797_s22 = smov 20  }
  0x13   :  { %s12922_s4 = sld [smem:[%s14825_s0 + %s12794_s28]]   ;;  %s12798_s28 = smov 21  }
  0x14   :  { %s12927_s9 = sld [smem:[%s14825_s0 + %s12795_s7]]   ;;  %s12799_s7 = smov 22  }
  0x17   :  { %14847 = sst [smem:[#allocation6_spill]] %s12912_s20 }
  0x18   :  { %14848 = sst [smem:[#allocation7_spill]] %s12917_s27 }
  0x19   :  { %14849 = sst [smem:[#allocation8_spill]] %s12922_s4 }
  0x1a   :  { %14850 = sst [smem:[#allocation9_spill]] %s12927_s9 }
  0x1b   :  { %s12932_s20 = sld [smem:[%s14825_s0 + %s12796_s15]]   ;;  %s12800_s15 = smov 23  }
  0x1c   :  { %s12937_s27 = sld [smem:[%s14825_s0 + %s12797_s22]]   ;;  %s12801_s22 = smov 24  }
  0x1d   :  { %s12942_s4 = sld [smem:[%s14825_s0 + %s12798_s28]]   ;;  %s12802_s28 = smov 25  }
  0x1e   :  { %s12947_s9 = sld [smem:[%s14825_s0 + %s12799_s7]]   ;;  %s12803_s7 = smov 26  }
  0x21   :  { %14851 = sst [smem:[#allocation10_spill]] %s12932_s20 }
  0x22   :  { %14852 = sst [smem:[#allocation11_spill]] %s12937_s27 }
  0x23   :  { %14853 = sst [smem:[#allocation12_spill]] %s12942_s4 }
  0x24   :  { %14854 = sst [smem:[#allocation13_spill]] %s12947_s9 }
  0x25   :  { %s12952_s20 = sld [smem:[%s14825_s0 + %s12800_s15]]   ;;  %s12804_s15 = smov 27  }
  0x26   :  { %s12957_s27 = sld [smem:[%s14825_s0 + %s12801_s22]]   ;;  %s12805_s22 = smov 28  }
  0x27   :  { %s12962_s4 = sld [smem:[%s14825_s0 + %s12802_s28]]   ;;  %s12806_s28 = smov 29  }
  0x28   :  { %s12967_s9 = sld [smem:[%s14825_s0 + %s12803_s7]]   ;;  %s12807_s7 = smov 30  }
  0x2b   :  { %14855 = sst [smem:[#allocation14_spill]] %s12952_s20 }
  0x2c   :  { %14856 = sst [smem:[#allocation15_spill]] %s12957_s27 }
  0x2d   :  { %14857 = sst [smem:[#allocation16_spill]] %s12962_s4 }
  0x2e   :  { %14858 = sst [smem:[#allocation17_spill]] %s12967_s9 }
  0x2f   :  { %s12972_s20 = sld [smem:[%s14825_s0 + %s12804_s15]]   ;;  %s12808_s15 = smov 31  }
  0x30   :  { %s12977_s27 = sld [smem:[%s14825_s0 + %s12805_s22]]   ;;  %s12809_s22 = smov 32  }
  0x31   :  { %s12982_s4 = sld [smem:[%s14825_s0 + %s12806_s28]]   ;;  %s12810_s28 = smov 33  }
  0x32   :  { %s12987_s9 = sld [smem:[%s14825_s0 + %s12807_s7]]   ;;  %s12811_s7 = smov 34  }
  0x35   :  { %14859 = sst [smem:[#allocation18_spill]] %s12972_s20 }
  0x36   :  { %14860 = sst [smem:[#allocation19_spill]] %s12977_s27 }
  0x37   :  { %14861 = sst [smem:[#allocation20_spill]] %s12982_s4 }
  0x38   :  { %14862 = sst [smem:[#allocation21_spill]] %s12987_s9 }
  0x39   :  { %s12992_s20 = sld [smem:[%s14825_s0 + %s12808_s15]]   ;;  %s12812_s15 = smov 35  }
  0x3a   :  { %s12997_s27 = sld [smem:[%s14825_s0 + %s12809_s22]]   ;;  %s12813_s22 = smov 36  }
  0x3b   :  { %s13002_s4 = sld [smem:[%s14825_s0 + %s12810_s28]]   ;;  %s12814_s28 = smov 37  }
  0x3c   :  { %s13007_s9 = sld [smem:[%s14825_s0 + %s12811_s7]]  }
  0x3f   :  { %14863 = sst [smem:[#allocation22_spill]] %s12992_s20 }
  0x40   :  { %14864 = sst [smem:[#allocation23_spill]] %s12997_s27 }
  0x41   :  { %14865 = sst [smem:[#allocation24_spill]] %s13002_s4 }
  0x42   :  { %s13012_s20 = sld [smem:[%s14825_s0 + %s12812_s15]]  }
  0x43   :  { %s13017_s27 = sld [smem:[%s14825_s0 + %s12813_s22]]  }
  0x44   :  { %s13022_s4 = sld [smem:[%s14825_s0 + %s12814_s28]]  }
  0x45   :  { %v12316_v0 = vld [vmem:[%s12852_s17 + $0x4] ss:$8 sps:$4 sm:$0xff]   ;;  %v12318_v1 = vld [vmem:[%s12852_s17] ss:$8 sps:$4 sm:$0xff]   ;;  %v12815_v2 = vmov 0   ;;  %v12816_v4 = vmov 0.0  }
  0x46   :  { %274 = vmatprep.mubr.bf16.mxu0 %v12815_v2  ;;  %242 = vmatprep.subr.bf16.mxu0 %v12316_v0  ;;  %v12319_v3 = vld [vmem:[%s12852_s17 + $0x14] ss:$8 sps:$4 sm:$0xff]   ;;  %v12321_v5 = vld [vmem:[%s12852_s17 + $0x10] ss:$8 sps:$4 sm:$0xff]   ;;  %v12322_v6 = vld [vmem:[%s12852_s17 + $0x24] ss:$8 sps:$4 sm:$0xff]  }
  0x47   :  { %11341 = vmatprep.subr.bf16.mxu1 %v12816_v4  ;;  %243 = vmatpush1.bf16.msra.mxu0 %v12318_v1  ;;  %v12324_v7 = vld [vmem:[%s12852_s17 + $0x20] ss:$8 sps:$4 sm:$0xff]   ;;  %v12325_v8 = vld [vmem:[%s12852_s17 + $0x34] ss:$8 sps:$4 sm:$0xff]   ;;  %v12327_v9 = vld [vmem:[%s12852_s17 + $0x30] ss:$8 sps:$4 sm:$0xff]  }
  0x48   :  { %244 = vmatprep.subr.bf16.mxu0 %v12319_v3  ;;  %v156_v10 = vld [vmem:[%s12837_s5] sm:$0xff]  ;;  %v157_v11 = vld [vmem:[%s12837_s5 + $0x8] sm:$0xff]  ;;  %vm238_vm0 = vcmask 523264  }
  0x49   :  { %v185_v12 = vpack.c.bf16 %v157_v11, %v156_v10 }
  0x4b   :  { %245 = vmatpush1.bf16.msra.mxu0 %v12321_v5 }
  0x4c   :  { %246 = vmatprep.subr.bf16.mxu0 %v12322_v6 }
  0x4f   :  { %247 = vmatpush1.bf16.msra.mxu0 %v12324_v7 }
  0x50   :  { %248 = vmatprep.subr.bf16.mxu0 %v12325_v8 }
  0x53   :  { %249 = vmatpush1.bf16.msra.mxu0 %v12327_v9 }
  0x54   :  { %11353 = vmatprep.subr.bf16.mxu0 %v12816_v4 }
  0x56   :  { %10427 = vmatmul.mubr.msk.bf16.vlgmr.msra.gmra.mrb[0].mxu0 %vm238_vm0, %v185_v12 }
  0x57   :  { %80 = vsyncpa [#allocation3], 0  ;;  %v163_v13 = vlaneseq  ;;  %v186_v16 = vld [vmem:[%s12857_s21] sm:$0x3]  ;;  %vm12817_vm1 = vmmov 0   ;;  %s12818_s0 = smov 64  }
  0x58   :  { %11343 = vmatprep.mubr.msk.bf16.mxu1 %vm12817_vm1, %v12816_v4  ;;  %11355 = vmatprep.mubr.msk.bf16.mxu0 %vm12817_vm1, %v12816_v4  ;;  %s12819_s7 = smov 112   ;;  %s12820_s10 = smov 48   ;;  %vm302_vm2 = vcmask 130048   ;;  %vm365_vm3 = vcmask 1043456   ;;  %v160_v38 = vld [vmem:[%s12847_s13] sm:$0x3] }
  0x59   :  { %v13039_v14 = vshrl.u32 %v163_v13, 7  ;;  %vm161_vm4 = vcmp.eq.s32.totalorder %v160_v38, 0  ;;  %vm349_vm5 = vcmask 64512   ;;  %s12821_s13 = smov 32   ;;  %s12822_s11 = smov 96   ;;  %v13113_v11 = vld [vmem:[%s12862_s25] sm:$0xff]  }
  0x5a   :  { %v13086_v39 = vsel %vm161_vm4, -1e+20, %v12816_v4  ;;  %v13117_v12 = vld [vmem:[%s12862_s25 + $0x8] sm:$0xff]   ;;  %s12823_s15 = smov 80   ;;  %s12824_s16 = smov 16  }
  0x5b   :  { %v13042_v15 = vsub.s32 0, %v13039_v14  ;;  %v13047_v18 = vsub.s32 1, %v13039_v14  ;;  %s14879_s18 = sld [smem:[#allocation20_spill]]  ;;  %s14880_s22 = sld [smem:[#allocation22_spill]] }
  0x5c   :  { %s14881_s23 = sld [smem:[#allocation18_spill]]  ;;  %s14882_s26 = sld [smem:[#allocation19_spill]] }
  0x5d   :  { %v191_v17 = vrot.slane %v186_v16, %v13042_v15  ;;  %v195_v22 = vrot.slane %v186_v16, %v13047_v18  ;;  %v13090_v40 = vrot.slane %v13086_v39, %v13042_v15  ;;  %s14883_s28 = sld [smem:[#allocation21_spill]]  ;;  %s14884_s1 = sld [smem:[#allocation23_spill]] }
  0x5e   :  { %s14885_s2 = sld [smem:[#allocation24_spill]] }
 0x129   :  { %v276_v19 = vpop.f32.mrb[0].mxu0 }
 0x12a   :  { %v277_v20 = vadd.f32 %v276_v19, %v191_v17  ;;  %v278_v21 = vpop.f32.mrb[1].mxu0 }
 0x12b   :  { %v280_v23 = vpop.f32.mrb[2].mxu0  ;;  %v279_v31 = vadd.f32 %v278_v21, %v195_v22 }
 0x12c   :  { %v285_v24 = vmul.f32 0.125, %v277_v20  ;;  %v13054_v25 = vpack.c.bf16 %v277_v20, %v277_v20  ;;  %v13056_v26 = vadd.f32 %v280_v23, %v191_v17  ;;  %v282_v27 = vpop.f32.mrb[3].mxu0 }
 0x12d   :  { %v13058_v28 = vadd.f32 %v282_v27, %v195_v22  ;;  %v13070_v34 = vpack.c.bf16 %v279_v31, %v279_v31 }
 0x12e   :  { %v13060_v29 = vpack.c.bf16 %v285_v24, %v285_v24  ;;  %300 = vrot.lane.b32.xlu0 %v13054_v25, %s12818_s0 }
 0x12f   :  { %v367_v36 = vsel %vm365_vm3, %v13070_v34, 0 }
 0x130   :  { %411 = vrot.lane.b32.xlu1 %v13060_v29, %s12819_s7 }
 0x132   :  { %413 = vrot.lane.b32.xlu0 %v13054_v25, %s12820_s10 }
 0x1a0   :  { %v301_v30 = vpop.permute.xlu0 %300 }
 0x1a1   :  { %v307_v32 = vsel %vm302_vm2, %v301_v30, 0 }
 0x1a2   :  { %11342 = vmatpush3.bf16.xpose.msra.mxu1 %v307_v32  ;;  %v412_v37 = vpop.permute.xlu1 %411 }
 0x1a3   :  { %11347 = vmatprep.subr.bf16.mxu1 %v12816_v4 }
 0x1a4   :  { %v414_v33 = vpop.permute.xlu0 %413 }
 0x1a5   :  { %v419_v35 = vsel %vm302_vm2, %v414_v33, 0 }
 0x1a6   :  { %11354 = vmatpush3.bf16.xpose.msra.mxu0 %v419_v35 }
 0x1a7   :  { %11365 = vmatprep.subr.bf16.mxu0 %v12816_v4 }
 0x1a9   :  { %11344 = vmatmul.mubr.msk.bf16.vlgmr.msra.gmra.mrb[0].mxu1 %vm302_vm2, %v13060_v29 }
 0x1aa   :  { %11348 = vmatpush3.bf16.msra.mxu1 %v367_v36  ;;  %11349 = vmatprep.mubr.msk.bf16.mxu1 %vm12817_vm1, %v12816_v4 }
 0x1ab   :  { %11359 = vmatprep.subr.bf16.mxu1 %v12816_v4 }
 0x1ad   :  { %11356 = vmatmul.mubr.msk.bf16.vlgmr.msra.gmra.mrb[4].mxu0 %vm302_vm2, %v412_v37 }
 0x1ae   :  { %11367 = vmatprep.mubr.msk.bf16.mxu0 %vm12817_vm1, %v12816_v4  ;;  %11366 = vmatpush3.bf16.msra.mxu0 %v13117_v12 }
 0x1af   :  { %11377 = vmatprep.subr.bf16.mxu0 %v12816_v4 }
 0x27c   :  { %v343_v41 = vpop.f32.mrb[0].mxu1 }
 0x27d   :  { %v11345_v42 = vpop.f32.mrb[1].mxu1  ;;  %v344_v43 = vadd.f32 %v343_v41, %v13090_v40 }
 0x27e   :  { %v346_v44 = vpop.f32.mrb[2].mxu1 }
 0x27f   :  { %v11346_v45 = vpop.f32.mrb[3].mxu1  ;;  %v350_v46 = vsel %vm349_vm5, %v344_v43, -inf }
 0x280   :  { %v455_v47 = vpop.f32.mrb[4].mxu0  ;;  %351 = vmax.xlane.f32.xlu1 %v350_v46 }
 0x281   :  { %v11357_v48 = vpop.f32.mrb[5].mxu0  ;;  %v456_v49 = vadd.f32 %v455_v47, %v13090_v40 }
 0x282   :  { %v458_v50 = vpop.f32.mrb[6].mxu0 }
 0x283   :  { %v11358_v51 = vpop.f32.mrb[7].mxu0  ;;  %v461_v52 = vsel %vm349_vm5, %v456_v49, -inf }
 0x284   :  { %462 = vmax.xlane.f32.xlu0 %v461_v52 }
 0x30d   :  { %v352_v53 = vpop.xlane.xlu1 %351 }
 0x30e   :  { %v353_v54 = vsub.f32 %v344_v43, %v352_v53 }
 0x310   :  { %v354_v55 = vmul.f32 1.442695, %v353_v54 }
 0x311   :  { %v463_v56 = vpop.xlane.xlu0 %462 }
 0x312   :  { %12520 = vpow2.f32 %v354_v55  ;;  %v464_v57 = vsub.f32 %v456_v49, %v463_v56 }
 0x314   :  { %v465_v58 = vmul.f32 1.442695, %v464_v57 }
 0x316   :  { %12522 = vpow2.f32 %v465_v58 }
 0x31c   :  { %v12521_v59 = vpop.eup %12520 }
 0x31d   :  { %v356_v60 = vsel %vm349_vm5, %v12521_v59, 0.0 }
 0x31e   :  { %357 = vadd.xlane.f32.xlu0 %v356_v60 }
 0x320   :  { %v12523_v61 = vpop.eup %12522 }
 0x321   :  { %v467_v62 = vsel %vm349_vm5, %v12523_v61, 0.0 }
 0x322   :  { %468 = vadd.xlane.f32.xlu1 %v467_v62 }
 0x333   :  { %623 = vrot.lane.b32.xlu1 %v13054_v25, %s12821_s13 }
 0x334   :  { %474 = vrot.lane.b32.xlu0 %v13070_v34, %s12819_s7 }
 0x337   :  { %621 = vrot.lane.b32.xlu1 %v13060_v29, %s12822_s11 }
 0x3ab   :  { %v358_v63 = vpop.xlane.xlu0 %357 }
 0x3ac   :  { %12524 = vrcp.f32 %v358_v63 }
 0x3af   :  { %v469_v0 = vpop.xlane.xlu1 %468  ;;  %v475_v5 = vpop.permute.xlu0 %474 }
 0x3b0   :  { %12526 = vrcp.f32 %v469_v0  ;;  %v480_v8 = vsel %vm365_vm3, %v475_v5, 0 }
 0x3b3   :  { %v624_v22 = vpop.permute.xlu1 %623 }
 0x3b4   :  { %v629_v31 = vsel %vm302_vm2, %v624_v22, 0 }
 0x3b6   :  { %v12525_v1 = vpop.eup %12524 }
 0x3b7   :  { %v360_v3 = vmul.f32 %v12525_v1, %v12521_v59  ;;  %v622_v33 = vpop.permute.xlu1 %621 }
 0x3b9   :  { %v361_v6 = vpack.c.bf16 %v360_v3, %v360_v3 }
 0x3ba   :  { %v12527_v7 = vpop.eup %12526 }
 0x3bb   :  { %11350 = vmatmul.mubr.msk.bf16.vlgmr.msra.gmra.mrb[4].mxu1 %vm349_vm5, %v361_v6  ;;  %v471_v9 = vmul.f32 %v12527_v7, %v12523_v61 }
 0x3bc   :  { %11360 = vmatpush3.bf16.msra.mxu1 %v480_v8  ;;  %11361 = vmatprep.mubr.msk.bf16.mxu1 %vm12817_vm1, %v12816_v4 }
 0x3bd   :  { %11371 = vmatprep.subr.bf16.mxu1 %v12816_v4  ;;  %v472_v10 = vpack.c.bf16 %v471_v9, %v471_v9 }
 0x3c3   :  { %11362 = vmatmul.mubr.msk.bf16.vlgmr.msra.gmra.mrb[8].mxu1 %vm349_vm5, %v472_v10 }
 0x3c4   :  { %11373 = vmatprep.mubr.msk.bf16.mxu1 %vm12817_vm1, %v12816_v4  ;;  %11372 = vmatpush3.bf16.msra.mxu1 %v13113_v11 }
 0x3c5   :  { %11383 = vmatprep.subr.bf16.mxu1 %v12816_v4 }
 0x48e   :  { %v403_v16 = vpop.f32.mrb[4].mxu1 }
 0x48f   :  { %v409_v17 = vpack.c.bf16 %v403_v16, %v403_v16  ;;  %v11351_v19 = vpop.f32.mrb[5].mxu1 }
 0x490   :  { %v406_v20 = vpop.f32.mrb[6].mxu1 }
 0x491   :  { %v11352_v21 = vpop.f32.mrb[7].mxu1  ;;  %11374 = vmatmul.mubr.msk.bf16.vlgmr.msra.gmra.mrb[12].mxu1 %vm302_vm2, %v409_v17  ;;  %v13166_v20 = vpack.c.bf16 %v13056_v26, %v13056_v26 }
 0x492   :  { %11385 = vmatprep.mubr.msk.bf16.mxu1 %vm12817_vm1, %v12816_v4 }
 0x496   :  { %v516_v23 = vpop.f32.mrb[8].mxu1 }
 0x497   :  { %v522_v24 = vpack.c.bf16 %v516_v23, %v516_v23  ;;  %v11363_v27 = vpop.f32.mrb[9].mxu1 }
 0x498   :  { %v519_v30 = vpop.f32.mrb[10].mxu1 }
 0x499   :  { %v11364_v32 = vpop.f32.mrb[11].mxu1  ;;  %11368 = vmatmul.mubr.msk.bf16.vlgmr.msra.gmra.mrb[8].mxu0 %vm302_vm2, %v522_v24  ;;  %v286_v30 = vmul.f32 0.125, %v13056_v26 }
 0x49a   :  { %11378 = vmatpush3.bf16.xpose.msra.mxu0 %v629_v31  ;;  %11379 = vmatprep.mubr.msk.bf16.mxu0 %vm12817_vm1, %v12816_v4 }
 0x49b   :  { %11389 = vmatprep.subr.bf16.mxu0 %v12816_v4  ;;  %v13176_v31 = vpack.c.bf16 %v286_v30, %v286_v30 }
 0x4a1   :  { %11380 = vmatmul.mubr.msk.bf16.vlgmr.msra.gmra.mrb[12].mxu0 %vm302_vm2, %v622_v33 }
 0x4a2   :  { %11391 = vmatprep.mubr.msk.bf16.mxu0 %vm12817_vm1, %v12816_v4 }
 0x564   :  { %v615_v35 = vpop.f32.mrb[12].mxu1 }
 0x565   :  { %v11375_v36 = vpop.f32.mrb[13].mxu1 }
 0x566   :  { %v618_v37 = vpop.f32.mrb[14].mxu1  ;;  %v13184_v36 = vld [vmem:[%s12862_s25 + $0x18] sm:$0xff]  }
 0x567   :  { %v11376_v38 = vpop.f32.mrb[15].mxu1 }
 0x56c   :  { %v566_v41 = vpop.f32.mrb[8].mxu0 }
 0x56d   :  { %v13133_v42 = vadd.f32 %v615_v35, %v566_v41  ;;  %v11369_v43 = vpop.f32.mrb[9].mxu0 }
 0x56e   :  { %v569_v44 = vpop.f32.mrb[10].mxu0 }
 0x56f   :  { %v11370_v45 = vpop.f32.mrb[11].mxu0 }
 0x574   :  { %v665_v46 = vpop.f32.mrb[12].mxu0 }
 0x575   :  { %v11381_v47 = vpop.f32.mrb[13].mxu0  ;;  %v666_v48 = vadd.f32 %v665_v46, %v13090_v40 }
 0x576   :  { %v668_v49 = vpop.f32.mrb[14].mxu0 }
 0x577   :  { %v11382_v50 = vpop.f32.mrb[15].mxu0  ;;  %v671_v51 = vsel %vm349_vm5, %v666_v48, -inf }
 0x578   :  { %672 = vmax.xlane.f32.xlu0 %v671_v51  ;;  %v13208_v50 = vpack.c.bf16 %v13058_v28, %v13058_v28 }
 0x58e   :  { %683 = vrot.lane.b32.xlu0 %v13070_v34, %s12822_s11 }
 0x592   :  { %782 = vrot.lane.b32.xlu0 %v13060_v29, %s12823_s15 }
 0x605   :  { %v673_v52 = vpop.xlane.xlu0 %672 }
 0x606   :  { %v674_v53 = vsub.f32 %v666_v48, %v673_v52 }
 0x608   :  { %v675_v54 = vmul.f32 1.442695, %v674_v53 }
 0x609   :  { %v684_v55 = vpop.permute.xlu0 %683 }
 0x60a   :  { %12528 = vpow2.f32 %v675_v54  ;;  %v689_v56 = vsel %vm365_vm3, %v684_v55, 0 }
 0x60b   :  { %11384 = vmatpush3.bf16.msra.mxu1 %v689_v56  ;;  %v1018_v56 = vsel %vm365_vm3, %v13208_v50, 0 }
 0x60c   :  { %11395 = vmatprep.subr.bf16.mxu1 %v12816_v4 }
 0x60d   :  { %v783_v0 = vpop.permute.xlu0 %782 }
 0x614   :  { %v12529_v57 = vpop.eup %12528 }
 0x615   :  { %v677_v58 = vsel %vm349_vm5, %v12529_v57, 0.0 }
 0x616   :  { %678 = vadd.xlane.f32.xlu1 %v677_v58 }
 0x627   :  { %784 = vrot.lane.b32.xlu1 %v13054_v25, %s12824_s16  ;;  %v13155_v25 = vld [vmem:[%s12862_s25 + $0x10] sm:$0xff]  }
 0x628   :  { %11390 = vmatpush3.bf16.msra.mxu0 %v13155_v25 }
 0x629   :  { %11401 = vmatprep.subr.bf16.mxu0 %v12816_v4 }
 0x6a3   :  { %v679_v29 = vpop.xlane.xlu1 %678 }
 0x6a4   :  { %12530 = vrcp.f32 %v679_v29 }
 0x6a7   :  { %v785_v61 = vpop.permute.xlu1 %784 }
 0x6a8   :  { %v790_v63 = vsel %vm302_vm2, %v785_v61, 0 }
 0x6ae   :  { %v12531_v59 = vpop.eup %12530 }
 0x6af   :  { %v681_v60 = vmul.f32 %v12531_v59, %v12529_v57 }
 0x6b1   :  { %v682_v62 = vpack.c.bf16 %v681_v60, %v681_v60 }
 0x6b3   :  { %11386 = vmatmul.mubr.msk.bf16.vlgmr.msra.gmra.mrb[16].mxu1 %vm349_vm5, %v682_v62 }
 0x6b4   :  { %11396 = vmatpush3.bf16.xpose.msra.mxu1 %v790_v63  ;;  %11397 = vmatprep.mubr.msk.bf16.mxu1 %vm12817_vm1, %v12816_v4 }
 0x6b5   :  { %11407 = vmatprep.subr.bf16.mxu1 %v12816_v4 }
 0x6bb   :  { %11398 = vmatmul.mubr.msk.bf16.vlgmr.msra.gmra.mrb[20].mxu1 %vm302_vm2, %v783_v0 }
 0x6bc   :  { %11409 = vmatprep.mubr.msk.bf16.mxu1 %vm12817_vm1, %v12816_v4  ;;  %11408 = vmatpush3.bf16.msra.mxu1 %v13184_v36 }
 0x6bd   :  { %11419 = vmatprep.subr.bf16.mxu1 %v12816_v4 }
 0x786   :  { %v725_v1 = vpop.f32.mrb[16].mxu1 }
 0x787   :  { %v731_v3 = vpack.c.bf16 %v725_v1, %v725_v1  ;;  %v11387_v5 = vpop.f32.mrb[17].mxu1 }
 0x788   :  { %v728_v6 = vpop.f32.mrb[18].mxu1 }
 0x789   :  { %v11388_v7 = vpop.f32.mrb[19].mxu1  ;;  %11392 = vmatmul.mubr.msk.bf16.vlgmr.msra.gmra.mrb[16].mxu0 %vm302_vm2, %v731_v3 }
 0x78a   :  { %11403 = vmatprep.mubr.msk.bf16.mxu0 %vm12817_vm1, %v12816_v4 }
 0x78e   :  { %v826_v8 = vpop.f32.mrb[20].mxu1 }
 0x78f   :  { %v11399_v9 = vpop.f32.mrb[21].mxu1  ;;  %v827_v10 = vadd.f32 %v826_v8, %v13090_v40 }
 0x790   :  { %v829_v16 = vpop.f32.mrb[22].mxu1 }
 0x791   :  { %v11400_v17 = vpop.f32.mrb[23].mxu1  ;;  %v832_v19 = vsel %vm349_vm5, %v827_v10, -inf }
 0x792   :  { %833 = vmax.xlane.f32.xlu1 %v832_v19 }
 0x7a3   :  { %954 = vrot.lane.b32.xlu1 %v13166_v20, %s12818_s0 }
 0x7a7   :  { %1064 = vrot.lane.b32.xlu1 %v13166_v20, %s12820_s10 }
 0x81f   :  { %v834_v21 = vpop.xlane.xlu1 %833 }
 0x820   :  { %v835_v22 = vsub.f32 %v827_v10, %v834_v21 }
 0x822   :  { %v836_v23 = vmul.f32 1.442695, %v835_v22 }
 0x823   :  { %v955_v44 = vpop.permute.xlu1 %954 }
 0x824   :  { %12532 = vpow2.f32 %v836_v23  ;;  %v960_v46 = vsel %vm302_vm2, %v955_v44, 0 }
 0x827   :  { %v1065_v47 = vpop.permute.xlu1 %1064 }
 0x828   :  { %v1070_v48 = vsel %vm302_vm2, %v1065_v47, 0 }
 0x82e   :  { %v12533_v24 = vpop.eup %12532 }
 0x82f   :  { %v838_v27 = vsel %vm349_vm5, %v12533_v24, 0.0 }
 0x830   :  { %839 = vadd.xlane.f32.xlu0 %v838_v27 }
 0x846   :  { %844 = vrot.lane.b32.xlu0 %v13070_v34, %s12823_s15 }
 0x84a   :  { %1062 = vrot.lane.b32.xlu0 %v13176_v31, %s12819_s7 }
 0x85c   :  { %v775_v32 = vpop.f32.mrb[16].mxu0 }
 0x85d   :  { %v13181_v33 = vadd.f32 %v775_v32, %v13133_v42  ;;  %v11393_v35 = vpop.f32.mrb[17].mxu0 }
 0x85e   :  { %v778_v37 = vpop.f32.mrb[18].mxu0 }
 0x85f   :  { %v11394_v38 = vpop.f32.mrb[19].mxu0 }
 0x8bd   :  { %v840_v26 = vpop.xlane.xlu0 %839 }
 0x8be   :  { %12534 = vrcp.f32 %v840_v26 }
 0x8c1   :  { %v845_v34 = vpop.permute.xlu0 %844 }
 0x8c2   :  { %v850_v41 = vsel %vm365_vm3, %v845_v34, 0 }
 0x8c3   :  { %11402 = vmatpush3.bf16.msra.mxu0 %v850_v41 }
 0x8c4   :  { %11413 = vmatprep.subr.bf16.mxu0 %v12816_v4 }
 0x8c5   :  { %v1063_v49 = vpop.permute.xlu0 %1062 }
 0x8c8   :  { %v12535_v43 = vpop.eup %12534 }
 0x8c9   :  { %v842_v42 = vmul.f32 %v12535_v43, %v12533_v24 }
 0x8cb   :  { %v843_v45 = vpack.c.bf16 %v842_v42, %v842_v42 }
 0x8cd   :  { %11404 = vmatmul.mubr.msk.bf16.vlgmr.msra.gmra.mrb[20].mxu0 %vm349_vm5, %v843_v45 }
 0x8ce   :  { %11414 = vmatpush3.bf16.xpose.msra.mxu0 %v960_v46  ;;  %11415 = vmatprep.mubr.msk.bf16.mxu0 %vm12817_vm1, %v12816_v4 }
 0x8cf   :  { %11425 = vmatprep.subr.bf16.mxu0 %v12816_v4 }
 0x8d5   :  { %11416 = vmatmul.mubr.msk.bf16.vlgmr.msra.gmra.mrb[24].mxu0 %vm302_vm2, %v13176_v31 }
 0x8d6   :  { %11426 = vmatpush3.bf16.xpose.msra.mxu0 %v1070_v48  ;;  %11427 = vmatprep.mubr.msk.bf16.mxu0 %vm12817_vm1, %v12816_v4 }
 0x8d7   :  { %11437 = vmatprep.subr.bf16.mxu0 %v12816_v4 }
 0x8dd   :  { %11428 = vmatmul.mubr.msk.bf16.vlgmr.msra.gmra.mrb[28].mxu0 %vm302_vm2, %v1063_v49 }
 0x8de   :  { %11438 = vmatpush3.bf16.msra.mxu0 %v13117_v12  ;;  %11439 = vmatprep.mubr.msk.bf16.mxu0 %vm12817_vm1, %v12816_v4  ;;  %v13217_v12 = vrot.slane %v13086_v39, %v13047_v18 }
 0x8df   :  { %11449 = vmatprep.subr.bf16.mxu0 %v12816_v4 }
 0x9a0   :  { %v886_v51 = vpop.f32.mrb[20].mxu0 }
 0x9a1   :  { %v892_v52 = vpack.c.bf16 %v886_v51, %v886_v51  ;;  %v11405_v53 = vpop.f32.mrb[21].mxu0 }
 0x9a2   :  { %v889_v54 = vpop.f32.mrb[22].mxu0 }
 0x9a3   :  { %v11406_v55 = vpop.f32.mrb[23].mxu0  ;;  %11410 = vmatmul.mubr.msk.bf16.vlgmr.msra.gmra.mrb[24].mxu1 %vm302_vm2, %v892_v52 }
 0x9a4   :  { %11420 = vmatpush3.bf16.msra.mxu1 %v1018_v56  ;;  %11421 = vmatprep.mubr.msk.bf16.mxu1 %vm12817_vm1, %v12816_v4 }
 0x9a5   :  { %11431 = vmatprep.subr.bf16.mxu1 %v12816_v4 }
 0x9a8   :  { %v996_v28 = vpop.f32.mrb[24].mxu0 }
 0x9a9   :  { %v11417_v57 = vpop.f32.mrb[25].mxu0  ;;  %v997_v58 = vadd.f32 %v996_v28, %v13217_v12 }
 0x9aa   :  { %v999_v29 = vpop.f32.mrb[26].mxu0 }
 0x9ab   :  { %v11418_v59 = vpop.f32.mrb[27].mxu0  ;;  %v1002_v60 = vsel %vm349_vm5, %v997_v58, -inf }
 0x9ac   :  { %1003 = vmax.xlane.f32.xlu1 %v1002_v60 }
 0x9b0   :  { %v1106_v61 = vpop.f32.mrb[28].mxu0 }
 0x9b1   :  { %v11429_v62 = vpop.f32.mrb[29].mxu0  ;;  %v1107_v63 = vadd.f32 %v1106_v61, %v13217_v12 }
 0x9b2   :  { %v1109_v0 = vpop.f32.mrb[30].mxu0 }
 0x9b3   :  { %v11430_v1 = vpop.f32.mrb[31].mxu0  ;;  %v1112_v39 = vsel %vm349_vm5, %v1107_v63, -inf }
 0x9b4   :  { %1113 = vmax.xlane.f32.xlu0 %v1112_v39 }
 0xa39   :  { %v1004_v3 = vpop.xlane.xlu1 %1003 }
 0xa3a   :  { %v1005_v5 = vsub.f32 %v997_v58, %v1004_v3 }
 0xa3c   :  { %v1006_v6 = vmul.f32 1.442695, %v1005_v5 }
 0xa3e   :  { %12536 = vpow2.f32 %v1006_v6 }
 0xa41   :  { %v1114_v7 = vpop.xlane.xlu0 %1113 }
 0xa42   :  { %v1115_v8 = vsub.f32 %v1107_v63, %v1114_v7 }
 0xa44   :  { %v1116_v9 = vmul.f32 1.442695, %v1115_v8 }
 0xa46   :  { %12538 = vpow2.f32 %v1116_v9 }
 0xa48   :  { %v12537_v10 = vpop.eup %12536 }
 0xa49   :  { %v1008_v16 = vsel %vm349_vm5, %v12537_v10, 0.0 }
 0xa4a   :  { %1009 = vadd.xlane.f32.xlu0 %v1008_v16 }
 0xa50   :  { %v12539_v17 = vpop.eup %12538 }
 0xa51   :  { %v1118_v19 = vsel %vm349_vm5, %v12539_v17, 0.0 }
 0xa52   :  { %1119 = vadd.xlane.f32.xlu1 %v1118_v19 }
 0xa60   :  { %1125 = vrot.lane.b32.xlu0 %v13208_v50, %s12819_s7 }
 0xa63   :  { %1262 = vrot.lane.b32.xlu1 %v13166_v20, %s12821_s13 }
 0xa67   :  { %1260 = vrot.lane.b32.xlu1 %v13176_v31, %s12822_s11 }
 0xa76   :  { %v936_v21 = vpop.f32.mrb[24].mxu1 }
 0xa77   :  { %v13233_v22 = vadd.f32 %v936_v21, %v13181_v33  ;;  %v11411_v23 = vpop.f32.mrb[25].mxu1 }
 0xa78   :  { %v939_v24 = vpop.f32.mrb[26].mxu1 }
 0xa79   :  { %v11412_v27 = vpop.f32.mrb[27].mxu1 }
 0xad7   :  { %v1010_v30 = vpop.xlane.xlu0 %1009 }
 0xad8   :  { %12540 = vrcp.f32 %v1010_v30 }
 0xadb   :  { %v1126_v38 = vpop.permute.xlu0 %1125 }
 0xadc   :  { %v1131_v34 = vsel %vm365_vm3, %v1126_v38, 0  ;;  %v10444_v38 = vld [vmem:[%s12867_s29] ss:$0 sm:$0xff] }
 0xadf   :  { %v1120_v32 = vpop.xlane.xlu1 %1119 }
 0xae0   :  { %12542 = vrcp.f32 %v1120_v32 }
 0xae2   :  { %v12541_v35 = vpop.eup %12540 }
 0xae3   :  { %v1012_v37 = vmul.f32 %v12541_v35, %v12537_v10  ;;  %v1263_v48 = vpop.permute.xlu1 %1262 }
 0xae4   :  { %v1268_v53 = vsel %vm302_vm2, %v1263_v48, 0 }
 0xae5   :  { %v1013_v26 = vpack.c.bf16 %v1012_v37, %v1012_v37 }
 0xae7   :  { %11422 = vmatmul.mubr.msk.bf16.vlgmr.msra.gmra.mrb[28].mxu1 %vm349_vm5, %v1013_v26  ;;  %v1261_v55 = vpop.permute.xlu1 %1260  ;;  %v949_v26 = vadd.f32 %v10444_v38, %v13233_v22 }
 0xae8   :  { %11432 = vmatpush3.bf16.msra.mxu1 %v1131_v34  ;;  %11433 = vmatprep.mubr.msk.bf16.mxu1 %vm12817_vm1, %v12816_v4 }
 0xae9   :  { %11443 = vmatprep.subr.bf16.mxu1 %v12816_v4 }
 0xaea   :  { %v12543_v33 = vpop.eup %12542 }
 0xaeb   :  { %v1122_v41 = vmul.f32 %v12543_v33, %v12539_v17 }
 0xaed   :  { %v1123_v43 = vpack.c.bf16 %v1122_v41, %v1122_v41 }
 0xaef   :  { %11434 = vmatmul.mubr.msk.bf16.vlgmr.msra.gmra.mrb[32].mxu1 %vm349_vm5, %v1123_v43 }
 0xaf0   :  { %11444 = vmatpush3.bf16.msra.mxu1 %v13113_v11  ;;  %11445 = vmatprep.mubr.msk.bf16.mxu1 %vm12817_vm1, %v12816_v4 }
 0xaf1   :  { %11455 = vmatprep.subr.bf16.mxu1 %v12816_v4 }
 0xbba   :  { %v1054_v42 = vpop.f32.mrb[28].mxu1 }
 0xbbb   :  { %v1060_v44 = vpack.c.bf16 %v1054_v42, %v1054_v42  ;;  %v11423_v45 = vpop.f32.mrb[29].mxu1 }
 0xbbc   :  { %v1057_v46 = vpop.f32.mrb[30].mxu1 }
 0xbbd   :  { %v11424_v47 = vpop.f32.mrb[31].mxu1  ;;  %11446 = vmatmul.mubr.msk.bf16.vlgmr.msra.gmra.mrb[36].mxu1 %vm302_vm2, %v1060_v44  ;;  %v12752_v44 = vld [vmem:[%s12837_s5] sm:$0xff] }
 0xbbe   :  { %11457 = vmatprep.mubr.msk.bf16.mxu1 %vm12817_vm1, %v12816_v4  ;;  %v1617_v45 = vadd.f32 %v12752_v44, %v949_v26  ;;  %v12341_v26 = vld [vmem:[%s12882_s14 + $0x30] ss:$8 sps:$4 sm:$0xff]  }
 0xbbf   :  { %v12349_v44 = vld [vmem:[%s12892_s24 + $0x10] sm:$0xff]  }
 0xbc0   :  { %v1619_v46 = vsel %vm238_vm0, %v1617_v45, 0.0 }
 0xbc2   :  { %v1167_v49 = vpop.f32.mrb[32].mxu1 }
 0xbc3   :  { %v1173_v51 = vpack.c.bf16 %v1167_v49, %v1167_v49  ;;  %v11435_v52 = vpop.f32.mrb[33].mxu1 }
 0xbc4   :  { %v1170_v11 = vpop.f32.mrb[34].mxu1 }
 0xbc5   :  { %v11436_v54 = vpop.f32.mrb[35].mxu1  ;;  %11440 = vmatmul.mubr.msk.bf16.vlgmr.msra.gmra.mrb[32].mxu0 %vm302_vm2, %v1173_v51 }
 0xbc6   :  { %11450 = vmatpush3.bf16.xpose.msra.mxu0 %v1268_v53  ;;  %11451 = vmatprep.mubr.msk.bf16.mxu0 %vm12817_vm1, %v12816_v4 }
 0xbc7   :  { %11461 = vmatprep.subr.bf16.mxu0 %v12816_v4 }
 0xbcd   :  { %11452 = vmatmul.mubr.msk.bf16.vlgmr.msra.gmra.mrb[36].mxu0 %vm302_vm2, %v1261_v55 }
 0xbce   :  { %11462 = vmatpush3.bf16.msra.mxu0 %v13155_v25  ;;  %11463 = vmatprep.mubr.msk.bf16.mxu0 %vm12817_vm1, %v12816_v4 }
 0xbcf   :  { %11473 = vmatprep.subr.bf16.mxu0 %v12816_v4 }
 0xc90   :  { %v1254_v56 = vpop.f32.mrb[36].mxu1 }
 0xc91   :  { %v11447_v28 = vpop.f32.mrb[37].mxu1 }
 0xc92   :  { %v1257_v57 = vpop.f32.mrb[38].mxu1 }
 0xc93   :  { %v11448_v58 = vpop.f32.mrb[39].mxu1 }
 0xc98   :  { %v1211_v29 = vpop.f32.mrb[32].mxu0 }
 0xc99   :  { %v13258_v59 = vadd.f32 %v1254_v56, %v1211_v29  ;;  %v11441_v60 = vpop.f32.mrb[33].mxu0 }
 0xc9a   :  { %v1214_v61 = vpop.f32.mrb[34].mxu0 }
 0xc9b   :  { %v11442_v62 = vpop.f32.mrb[35].mxu0 }
 0xca0   :  { %v1304_v63 = vpop.f32.mrb[36].mxu0 }
 0xca1   :  { %v11453_v0 = vpop.f32.mrb[37].mxu0  ;;  %v1305_v1 = vadd.f32 %v1304_v63, %v13217_v12 }
 0xca2   :  { %v1307_v25 = vpop.f32.mrb[38].mxu0 }
 0xca3   :  { %v11454_v39 = vpop.f32.mrb[39].mxu0  ;;  %v1310_v3 = vsel %vm349_vm5, %v1305_v1, -inf }
 0xca4   :  { %1311 = vmax.xlane.f32.xlu0 %v1310_v3 }
 0xcba   :  { %1322 = vrot.lane.b32.xlu0 %v13208_v50, %s12822_s11 }
 0xcbe   :  { %1415 = vrot.lane.b32.xlu0 %v13176_v31, %s12823_s15 }
 0xd31   :  { %v1312_v5 = vpop.xlane.xlu0 %1311 }
 0xd32   :  { %v1313_v6 = vsub.f32 %v1305_v1, %v1312_v5 }
 0xd34   :  { %v1314_v7 = vmul.f32 1.442695, %v1313_v6 }
 0xd35   :  { %v1323_v8 = vpop.permute.xlu0 %1322 }
 0xd36   :  { %12544 = vpow2.f32 %v1314_v7  ;;  %v1328_v9 = vsel %vm365_vm3, %v1323_v8, 0 }
 0xd37   :  { %11456 = vmatpush3.bf16.msra.mxu1 %v1328_v9  ;;  %v12753_v9 = vld [vmem:[%s12837_s5 + $0x8] sm:$0xff]  ;;  %s14866_s5 = sld [smem:[#allocation6_spill]] }
 0xd38   :  { %11467 = vmatprep.subr.bf16.mxu1 %v12816_v4 }
 0xd39   :  { %v1416_v27 = vpop.permute.xlu0 %1415 }
 0xd40   :  { %v12545_v10 = vpop.eup %12544 }
 0xd41   :  { %v1316_v16 = vsel %vm349_vm5, %v12545_v10, 0.0 }
 0xd42   :  { %1317 = vadd.xlane.f32.xlu1 %v1316_v16 }
 0xd53   :  { %1417 = vrot.lane.b32.xlu1 %v13166_v20, %s12824_s16 }
 0xdcf   :  { %v1318_v17 = vpop.xlane.xlu1 %1317 }
 0xdd0   :  { %12546 = vrcp.f32 %v1318_v17 }
 0xdd3   :  { %v1418_v21 = vpop.permute.xlu1 %1417 }
 0xdd4   :  { %v1423_v24 = vsel %vm302_vm2, %v1418_v21, 0 }
 0xdda   :  { %v12547_v31 = vpop.eup %12546 }
 0xddb   :  { %v1320_v19 = vmul.f32 %v12547_v31, %v12545_v10 }
 0xddd   :  { %v1321_v23 = vpack.c.bf16 %v1320_v19, %v1320_v19 }
 0xddf   :  { %11458 = vmatmul.mubr.msk.bf16.vlgmr.msra.gmra.mrb[40].mxu1 %vm349_vm5, %v1321_v23 }
 0xde0   :  { %11468 = vmatpush3.bf16.xpose.msra.mxu1 %v1423_v24  ;;  %11469 = vmatprep.mubr.msk.bf16.mxu1 %vm12817_vm1, %v12816_v4 }
 0xde1   :  { %11479 = vmatprep.subr.bf16.mxu1 %v12816_v4 }
 0xde7   :  { %11470 = vmatmul.mubr.msk.bf16.vlgmr.msra.gmra.mrb[44].mxu1 %vm302_vm2, %v1416_v27 }
 0xde8   :  { %11480 = vmatpush3.bf16.msra.mxu1 %v13184_v36  ;;  %11481 = vmatprep.mubr.msk.bf16.mxu1 %vm12817_vm1, %v12816_v4 }
 0xeb2   :  { %v1364_v20 = vpop.f32.mrb[40].mxu1 }
 0xeb3   :  { %v1370_v30 = vpack.c.bf16 %v1364_v20, %v1364_v20  ;;  %v11459_v32 = vpop.f32.mrb[41].mxu1  ;;  %v12334_v20 = vld [vmem:[%s12882_s14 + $0x4] ss:$8 sps:$4 sm:$0xff]  }
 0xeb4   :  { %v1367_v35 = vpop.f32.mrb[42].mxu1  ;;  %v12337_v32 = vld [vmem:[%s12882_s14 + $0x14] ss:$8 sps:$4 sm:$0xff]  }
 0xeb5   :  { %v11460_v37 = vpop.f32.mrb[43].mxu1  ;;  %11464 = vmatmul.mubr.msk.bf16.vlgmr.msra.gmra.mrb[40].mxu0 %vm302_vm2, %v1370_v30  ;;  %v12332_v30 = vld [vmem:[%s12882_s14] ss:$8 sps:$4 sm:$0xff]   ;;  %v12335_v35 = vld [vmem:[%s12882_s14 + $0x10] ss:$8 sps:$4 sm:$0xff]  }
 0xeb6   :  { %11475 = vmatprep.mubr.msk.bf16.mxu0 %vm12817_vm1, %v12816_v4  ;;  %v12340_v37 = vld [vmem:[%s12882_s14 + $0x24] ss:$8 sps:$4 sm:$0xff]  }
 0xeba   :  { %v1459_v34 = vpop.f32.mrb[44].mxu1 }
 0xebb   :  { %v11471_v33 = vpop.f32.mrb[45].mxu1  ;;  %v1460_v36 = vadd.f32 %v1459_v34, %v13217_v12  ;;  %v12343_v34 = vld [vmem:[%s12882_s14 + $0x34] ss:$8 sps:$4 sm:$0xff]  }
 0xebc   :  { %v1462_v41 = vpop.f32.mrb[46].mxu1  ;;  %v12344_v33 = vld [vmem:[%s12892_s24 + $0x40] sm:$0xff]  }
 0xebd   :  { %v11472_v43 = vpop.f32.mrb[47].mxu1  ;;  %v1465_v42 = vsel %vm349_vm5, %v1460_v36, -inf  ;;  %v12346_v41 = vld [vmem:[%s12892_s24 + $0x48] sm:$0xff]   ;;  %10988 = vmatprep.subr.bf16.mxu1 %v12344_v33 }
 0xebe   :  { %1466 = vmax.xlane.f32.xlu1 %v1465_v42  ;;  %v12347_v43 = vld [vmem:[%s12892_s24 + $0x8] sm:$0xff]   ;;  %v12348_v42 = vld [vmem:[%s12892_s24 + $0x50] sm:$0xff]  }
 0xec2   :  { %1620 = vadd.xlane.f32.xlu1 %v1619_v46  ;;  %v12351_v46 = vld [vmem:[%s12892_s24 + $0x18] sm:$0xff]  }
 0xf4b   :  { %v1467_v47 = vpop.xlane.xlu1 %1466 }
 0xf4c   :  { %v1468_v48 = vsub.f32 %v1460_v36, %v1467_v47  ;;  %v12345_v36 = vld [vmem:[%s12892_s24] sm:$0xff]  }
 0xf4d   :  { %v12352_v47 = vld [vmem:[%s12892_s24 + $0x60] sm:$0xff]  }
 0xf4e   :  { %v1469_v49 = vmul.f32 1.442695, %v1468_v48  ;;  %v12353_v48 = vld [vmem:[%s12892_s24 + $0x20] sm:$0xff]  }
 0xf4f   :  { %v1621_v0 = vpop.xlane.xlu1 %1620 }
 0xf50   :  { %12548 = vpow2.f32 %v1469_v49  ;;  %v1626_v1 = vmul.f32 0.015625, %v1621_v0  ;;  %v12354_v49 = vld [vmem:[%s12892_s24 + $0x68] sm:$0xff]   ;;  %v12356_v0 = vld [vmem:[%s12892_s24 + $0x70] sm:$0xff]  }
 0xf52   :  { %v13297_v6 = vsub.f32 %v1617_v45, %v1626_v1  ;;  %v12350_v45 = vld [vmem:[%s12892_s24 + $0x58] sm:$0xff]   ;;  %v12357_v1 = vld [vmem:[%s12892_s24 + $0x30] sm:$0xff]  }
 0xf54   :  { %v1630_v17 = vmul.f32 %v13297_v6, %v13297_v6 }
 0xf56   :  { %v1632_v31 = vsel %vm238_vm0, %v1630_v17, 0.0 }
 0xf5a   :  { %v12549_v51 = vpop.eup %12548 }
 0xf5b   :  { %v1471_v22 = vsel %vm349_vm5, %v12549_v51, 0.0 }
 0xf5c   :  { %1472 = vadd.xlane.f32.xlu0 %v1471_v22 }
 0xf72   :  { %1477 = vrot.lane.b32.xlu0 %v13208_v50, %s12823_s15 }
 0xf88   :  { %v1408_v52 = vpop.f32.mrb[40].mxu0 }
 0xf89   :  { %v1414_v11 = vadd.f32 %v1408_v52, %v13258_v59  ;;  %v11465_v53 = vpop.f32.mrb[41].mxu0 }
 0xf8a   :  { %v1411_v54 = vpop.f32.mrb[42].mxu0 }
 0xf8b   :  { %v11466_v55 = vpop.f32.mrb[43].mxu0 }
 0xfe9   :  { %v1473_v56 = vpop.xlane.xlu0 %1472 }
 0xfea   :  { %12550 = vrcp.f32 %v1473_v56 }
 0xfed   :  { %v1478_v28 = vpop.permute.xlu0 %1477 }
 0xfee   :  { %v1483_v57 = vsel %vm365_vm3, %v1478_v28, 0  ;;  %v10457_v28 = vld [vmem:[%s12872_s3] ss:$0 sm:$0xff] }
 0xfef   :  { %11474 = vmatpush3.bf16.msra.mxu0 %v1483_v57 }
 0xff0   :  { %1717 = vmatprep.subr.bf16.mxu0 %v12334_v20 }
 0xff4   :  { %v12551_v58 = vpop.eup %12550 }
 0xff5   :  { %v1475_v29 = vmul.f32 %v12551_v58, %v12549_v51 }
 0xff7   :  { %v1476_v60 = vpack.c.bf16 %v1475_v29, %v1475_v29 }
 0xff9   :  { %11476 = vmatmul.mubr.msk.bf16.vlgmr.msra.gmra.mrb[44].mxu0 %vm349_vm5, %v1476_v60  ;;  %v10458_v60 = vld [vmem:[%s12877_s8] ss:$0 sm:$0xff] }
 0xffa   :  { %1749 = vmatprep.mubr.bf16.mxu0 %v12815_v2  ;;  %1718 = vmatpush1.bf16.msra.mxu0 %v12332_v30 }
 0xffb   :  { %1719 = vmatprep.subr.bf16.mxu0 %v12337_v32 }
 0xffe   :  { %1720 = vmatpush1.bf16.msra.mxu0 %v12335_v35 }
 0xfff   :  { %1721 = vmatprep.subr.bf16.mxu0 %v12340_v37  ;;  %v10468_v37 = vld [vmem:[%s12897_s30] ss:$0 sm:$0xff] }
0x10cc   :  { %v1519_v50 = vpop.f32.mrb[44].mxu0 }
0x10cd   :  { %v1525_v61 = vpack.c.bf16 %v1519_v50, %v1519_v50  ;;  %v11477_v59 = vpop.f32.mrb[45].mxu0 }
0x10ce   :  { %v1522_v62 = vpop.f32.mrb[46].mxu0 }
0x10cf   :  { %v11478_v63 = vpop.f32.mrb[47].mxu0  ;;  %11482 = vmatmul.mubr.msk.bf16.vlgmr.msra.gmra.mrb[48].mxu1 %vm302_vm2, %v1525_v61 }
0x10d0   :  { %10989 = vmatpush3.bf16.msra.mxu1 %v12345_v36  ;;  %v12355_v63 = vld [vmem:[%s12892_s24 + $0x28] sm:$0xff]  }
0x10d1   :  { %10990 = vmatprep.subr.bf16.mxu1 %v12346_v41 }
0x10d4   :  { %10991 = vmatpush3.bf16.msra.mxu1 %v12347_v43 }
0x10d5   :  { %10992 = vmatprep.subr.bf16.mxu1 %v12348_v42 }
0x10d8   :  { %10993 = vmatpush3.bf16.msra.mxu1 %v12349_v44 }
0x10d9   :  { %10994 = vmatprep.subr.bf16.mxu1 %v12350_v45 }
0x10dc   :  { %10995 = vmatpush3.bf16.msra.mxu1 %v12351_v46 }
0x10dd   :  { %10996 = vmatprep.subr.bf16.mxu1 %v12352_v47 }
0x10e0   :  { %10997 = vmatpush3.bf16.msra.mxu1 %v12353_v48 }
0x10e1   :  { %10998 = vmatprep.subr.bf16.mxu1 %v12354_v49 }
0x10e4   :  { %10999 = vmatpush3.bf16.msra.mxu1 %v12355_v63 }
0x10e5   :  { %11000 = vmatprep.subr.bf16.mxu1 %v12356_v0 }
0x10e8   :  { %11001 = vmatpush3.bf16.msra.mxu1 %v12357_v1 }
0x11a2   :  { %v1563_v25 = vpop.f32.mrb[48].mxu1 }
0x11a3   :  { %v1569_v39 = vadd.f32 %v1563_v25, %v1414_v11  ;;  %v11483_v3 = vpop.f32.mrb[49].mxu1  ;;  %v12358_v25 = vld [vmem:[%s12892_s24 + $0x78] sm:$0xff]  }
0x11a4   :  { %v1566_v5 = vpop.f32.mrb[50].mxu1  ;;  %11002 = vmatprep.subr.bf16.mxu1 %v12358_v25  ;;  %v1581_v3 = vld [vmem:[%s12887_s19] sm:$0x3] }
0x11a5   :  { %v11484_v7 = vpop.f32.mrb[51].mxu1  ;;  %v1570_v8 = vadd.f32 %v10444_v38, %v1569_v39  ;;  %v12338_v38 = vld [vmem:[%s12882_s14 + $0x20] ss:$8 sps:$4 sm:$0xff]   ;;  %v12359_v39 = vld [vmem:[%s12892_s24 + $0x38] sm:$0xff]   ;;  %v1667_v5 = vrot.slane %v1581_v3, %v13042_v15 }
0x11a6   :  { %1722 = vmatpush1.bf16.msra.mxu0 %v12338_v38  ;;  %11003 = vmatpush3.bf16.msra.mxu1 %v12359_v39 }
0x11a7   :  { %v1618_v10 = vadd.f32 %v12753_v9, %v1570_v8  ;;  %1723 = vmatprep.subr.bf16.mxu0 %v12343_v34  ;;  %11491 = vmatprep.subr.bf16.mxu1 %v12816_v4 }
0x11a9   :  { %v1622_v16 = vsel %vm238_vm0, %v1618_v10, 0.0 }
0x11aa   :  { %1623 = vadd.xlane.f32.xlu1 %v1622_v16  ;;  %1724 = vmatpush1.bf16.msra.mxu0 %v12341_v26 }
0x11ae   :  { %1633 = vadd.xlane.f32.xlu1 %v1632_v31 }
0x1237   :  { %v1624_v19 = vpop.xlane.xlu1 %1623 }
0x1238   :  { %v1627_v21 = vmul.f32 0.015625, %v1624_v19 }
0x123a   :  { %v1629_v23 = vsub.f32 %v1618_v10, %v1627_v21 }
0x123b   :  { %v1634_v51 = vpop.xlane.xlu1 %1633 }
0x123c   :  { %v1631_v24 = vmul.f32 %v1629_v23, %v1629_v23  ;;  %v1638_v22 = vmul.f32 0.015625, %v1634_v51 }
0x123e   :  { %v1635_v27 = vsel %vm238_vm0, %v1631_v24, 0.0  ;;  %v1640_v52 = vadd.f32 1e-05, %v1638_v22 }
0x123f   :  { %1636 = vadd.xlane.f32.xlu1 %v1635_v27 }
0x1240   :  { %12552 = vrsqrt.f32 %v1640_v52 }
0x124a   :  { %v12553_v55 = vpop.eup %12552 }
0x124b   :  { %v1644_v56 = vmul.f32 %v12553_v55, %v13297_v6  ;;  %v1671_v6 = vrot.slane %v1581_v3, %v13047_v18  ;;  %v12362_v55 = vld [vmem:[%s12852_s17 + $0x44] ss:$8 sps:$4 sm:$0xff]   ;;  %v10485_v3 = vld [vmem:[%s12902_s6] ss:$0 sm:$0xff] }
0x124c   :  { %2019 = vmatprep.subr.bf16.mxu0 %v12362_v55 }
0x124d   :  { %v1652_v58 = vmul.f32 %v10457_v28, %v1644_v56  ;;  %v12360_v56 = vld [vmem:[%s12852_s17 + $0x40] ss:$8 sps:$4 sm:$0xff]  }
0x124f   :  { %v1660_v61 = vadd.f32 %v10458_v60, %v1652_v58  ;;  %v12368_v58 = vld [vmem:[%s12852_s17 + $0x64] ss:$8 sps:$4 sm:$0xff]  }
0x12cc   :  { %v1637_v11 = vpop.xlane.xlu1 %1636 }
0x12cd   :  { %v1639_v53 = vmul.f32 0.015625, %v1637_v11 }
0x12cf   :  { %v1641_v54 = vadd.f32 1e-05, %v1639_v53 }
0x12d1   :  { %12554 = vrsqrt.f32 %v1641_v54 }
0x12db   :  { %v12555_v57 = vpop.eup %12554 }
0x12dc   :  { %v1645_v29 = vmul.f32 %v12555_v57, %v1629_v23  ;;  %v12363_v57 = vld [vmem:[%s12852_s17 + $0x50] ss:$8 sps:$4 sm:$0xff]  }
0x12de   :  { %v1653_v50 = vmul.f32 %v10457_v28, %v1645_v29  ;;  %v12365_v28 = vld [vmem:[%s12852_s17 + $0x54] ss:$8 sps:$4 sm:$0xff]   ;;  %v12366_v29 = vld [vmem:[%s12852_s17 + $0x60] ss:$8 sps:$4 sm:$0xff]  }
0x12e0   :  { %v1661_v59 = vadd.f32 %v10458_v60, %v1653_v50  ;;  %v12369_v60 = vld [vmem:[%s12852_s17 + $0x70] ss:$8 sps:$4 sm:$0xff]   ;;  %v12371_v50 = vld [vmem:[%s12852_s17 + $0x74] ss:$8 sps:$4 sm:$0xff]   ;;  %s14867_s17 = sld [smem:[#allocation5_spill]] }
0x12e2   :  { %v1662_v62 = vpack.c.bf16 %v1661_v59, %v1660_v61 }
0x12e4   :  { %10467 = vmatmul.mubr.msk.bf16.vlgmr.msra.gmra.mrb[48].mxu0 %vm238_vm0, %v1662_v62 }
0x12e5   :  { %2051 = vmatprep.mubr.bf16.mxu0 %v12815_v2  ;;  %2020 = vmatpush1.bf16.msra.mxu0 %v12360_v56 }
0x12e6   :  { %2021 = vmatprep.subr.bf16.mxu0 %v12365_v28 }
0x12e9   :  { %2022 = vmatpush1.bf16.msra.mxu0 %v12363_v57 }
0x12ea   :  { %2023 = vmatprep.subr.bf16.mxu0 %v12368_v58 }
0x12ed   :  { %2024 = vmatpush1.bf16.msra.mxu0 %v12366_v29 }
0x12ee   :  { %2025 = vmatprep.subr.bf16.mxu0 %v12371_v50 }
0x12f1   :  { %2026 = vmatpush1.bf16.msra.mxu0 %v12369_v60 }
0x12f2   :  { %11485 = vmatprep.subr.bf16.mxu0 %v12816_v4 }
0x13b7   :  { %v1751_v7 = vpop.f32.mrb[48].mxu0 }
0x13b8   :  { %v1752_v8 = vadd.f32 %v1751_v7, %v1667_v5  ;;  %v1753_v9 = vpop.f32.mrb[49].mxu0 }
0x13b9   :  { %v1754_v10 = vadd.f32 %v1753_v9, %v1671_v6  ;;  %v1755_v16 = vpop.f32.mrb[50].mxu0 }
0x13ba   :  { %v1756_v17 = vadd.f32 %v1755_v16, %v1667_v5  ;;  %v1757_v31 = vpop.f32.mrb[51].mxu0  ;;  %v1760_v21 = vmax.f32 %v1752_v8, 0.0  ;;  %v10486_v8 = vld [vmem:[%s12907_s12] ss:$0 sm:$0xff] }
0x13bb   :  { %v1758_v19 = vadd.f32 %v1757_v31, %v1671_v6  ;;  %v1761_v24 = vmax.f32 %v1754_v10, 0.0  ;;  %v10495_v31 = vld [vmem:[%s12857_s21 + $0x2] sm:$0x3]  ;;  %s14868_s21 = sld [smem:[#allocation7_spill]] }
0x13bc   :  { %v1762_v23 = vmax.f32 %v1756_v17, 0.0 }
0x13bd   :  { %v1763_v27 = vmax.f32 %v1758_v19, 0.0  ;;  %v1969_v19 = vrot.slane %v10495_v31, %v13042_v15 }
0x13be   :  { %v1764_v20 = vpack.c.bf16 %v1762_v23, %v1760_v21  ;;  %v1973_v21 = vrot.slane %v10495_v31, %v13047_v18  ;;  %v13423_v31 = vld [vmem:[%s12862_s25 + $0x28] sm:$0xff]  }
0x13bf   :  { %v1765_v30 = vpack.c.bf16 %v1763_v27, %v1761_v24 }
0x13c1   :  { %1900 = vmatprep.mubr.bf16.mxu1 %v1765_v30 }
0x13c2   :  { %1901 = vmatmul.mubr.bf16.vlgmr.msra.gmra.mrb[52].mxu1 %v1764_v20 }
0x13c3   :  { %11493 = vmatprep.mubr.msk.bf16.mxu1 %vm12817_vm1, %v12816_v4 }
0x1495   :  { %v11004_v32 = vpop.f32.mrb[52].mxu1 }
0x1496   :  { %v11005_v35 = vpop.f32.mrb[53].mxu1 }
0x1497   :  { %v11006_v38 = vadd.f32 %v11005_v35, %v11004_v32  ;;  %v11007_v26 = vpop.f32.mrb[54].mxu1 }
0x1498   :  { %v11008_v34 = vpop.f32.mrb[55].mxu1 }
0x1499   :  { %v11009_v33 = vadd.f32 %v11008_v34, %v11007_v26  ;;  %v1903_v36 = vadd.f32 %v11006_v38, %v10468_v37 }
0x149b   :  { %v1909_v41 = vadd.f32 %v1903_v36, %v1660_v61  ;;  %v1906_v43 = vadd.f32 %v11009_v33, %v10468_v37 }
0x149d   :  { %v1911_v42 = vsel %vm238_vm0, %v1909_v41, 0.0  ;;  %v1910_v44 = vadd.f32 %v1906_v43, %v1661_v59 }
0x149e   :  { %1912 = vadd.xlane.f32.xlu1 %v1911_v42 }
0x149f   :  { %v1914_v45 = vsel %vm238_vm0, %v1910_v44, 0.0 }
0x14a2   :  { %1915 = vadd.xlane.f32.xlu1 %v1914_v45 }
0x152b   :  { %v1913_v46 = vpop.xlane.xlu1 %1912 }
0x152c   :  { %v1917_v47 = vmul.f32 0.015625, %v1913_v46 }
0x152e   :  { %v1919_v48 = vsub.f32 %v1909_v41, %v1917_v47 }
0x152f   :  { %v1916_v49 = vpop.xlane.xlu1 %1915 }
0x1530   :  { %v1918_v51 = vmul.f32 0.015625, %v1916_v49  ;;  %v1921_v22 = vmul.f32 %v1919_v48, %v1919_v48 }
0x1532   :  { %v1920_v52 = vsub.f32 %v1910_v44, %v1918_v51  ;;  %v1923_v11 = vsel %vm238_vm0, %v1921_v22, 0.0 }
0x1533   :  { %1924 = vadd.xlane.f32.xlu0 %v1923_v11 }
0x1534   :  { %v1922_v53 = vmul.f32 %v1920_v52, %v1920_v52 }
0x1536   :  { %v1926_v54 = vsel %vm238_vm0, %v1922_v53, 0.0 }
0x1537   :  { %1927 = vadd.xlane.f32.xlu1 %v1926_v54 }
0x15c0   :  { %v1925_v61 = vpop.xlane.xlu0 %1924 }
0x15c1   :  { %v1929_v59 = vmul.f32 0.015625, %v1925_v61 }
0x15c3   :  { %v1931_v62 = vadd.f32 1e-05, %v1929_v59 }
0x15c4   :  { %v1928_v63 = vpop.xlane.xlu1 %1927 }
0x15c5   :  { %12556 = vrsqrt.f32 %v1931_v62  ;;  %v1930_v0 = vmul.f32 0.015625, %v1928_v63 }
0x15c7   :  { %v1932_v1 = vadd.f32 1e-05, %v1930_v0 }
0x15c9   :  { %12558 = vrsqrt.f32 %v1932_v1 }
0x15cf   :  { %v12557_v25 = vpop.eup %12556 }
0x15d0   :  { %v1935_v39 = vmul.f32 %v12557_v25, %v1919_v48 }
0x15d2   :  { %v1943_v6 = vmul.f32 %v10485_v3, %v1935_v39 }
0x15d3   :  { %v12559_v5 = vpop.eup %12558 }
0x15d4   :  { %v1936_v7 = vmul.f32 %v12559_v5, %v1920_v52  ;;  %v13356_v10 = vadd.f32 %v10486_v8, %v1943_v6 }
0x15d6   :  { %v1944_v9 = vmul.f32 %v10485_v3, %v1936_v7 }
0x15d8   :  { %v13358_v16 = vadd.f32 %v10486_v8, %v1944_v9 }
0x15da   :  { %v1962_v17 = vpack.c.bf16 %v13358_v16, %v13356_v10 }
0x15dc   :  { %10504 = vmatmul.mubr.msk.bf16.vlgmr.msra.gmra.mrb[52].mxu0 %vm238_vm0, %v1962_v17  ;;  %v13419_v17 = vld [vmem:[%s12862_s25 + $0x20] sm:$0xff]  }
0x15dd   :  { %11487 = vmatprep.mubr.msk.bf16.mxu0 %vm12817_vm1, %v12816_v4 }
0x16af   :  { %v2053_v23 = vpop.f32.mrb[52].mxu0 }
0x16b0   :  { %v2054_v24 = vadd.f32 %v2053_v23, %v1969_v19  ;;  %v2055_v27 = vpop.f32.mrb[53].mxu0 }
0x16b1   :  { %v2056_v20 = vadd.f32 %v2055_v27, %v1973_v21  ;;  %v2057_v30 = vpop.f32.mrb[54].mxu0 }
0x16b2   :  { %v13368_v32 = vpack.c.bf16 %v2054_v24, %v2054_v24  ;;  %v13370_v35 = vadd.f32 %v2057_v30, %v1969_v19  ;;  %v2059_v37 = vpop.f32.mrb[55].mxu0  ;;  %v2062_v33 = vmul.f32 0.125, %v2054_v24 }
0x16b3   :  { %v13372_v38 = vpack.c.bf16 %v2056_v20, %v2056_v20  ;;  %v13374_v26 = vadd.f32 %v2059_v37, %v1973_v21 }
0x16b4   :  { %2079 = vrot.lane.b32.xlu1 %v13368_v32, %s12818_s0  ;;  %v13383_v36 = vpack.c.bf16 %v2062_v33, %v2062_v33 }
0x16b5   :  { %v2143_v34 = vsel %vm365_vm3, %v13372_v38, 0 }
0x16b6   :  { %11492 = vmatpush3.bf16.msra.mxu1 %v2143_v34 }
0x16b7   :  { %11503 = vmatprep.subr.bf16.mxu1 %v12816_v4 }
0x16b8   :  { %2189 = vrot.lane.b32.xlu1 %v13368_v32, %s12820_s10 }
0x16bc   :  { %2187 = vrot.lane.b32.xlu1 %v13383_v36, %s12819_s7 }
0x1726   :  { %v2080_v41 = vpop.permute.xlu1 %2079 }
0x1727   :  { %v2085_v43 = vsel %vm302_vm2, %v2080_v41, 0 }
0x1728   :  { %11486 = vmatpush3.bf16.xpose.msra.mxu0 %v2085_v43 }
0x1729   :  { %11497 = vmatprep.subr.bf16.mxu0 %v12816_v4 }
0x172a   :  { %v2190_v42 = vpop.permute.xlu1 %2189 }
0x172b   :  { %v2195_v44 = vsel %vm302_vm2, %v2190_v42, 0 }
0x172e   :  { %v2188_v45 = vpop.permute.xlu1 %2187 }
0x172f   :  { %11488 = vmatmul.mubr.msk.bf16.vlgmr.msra.gmra.mrb[56].mxu0 %vm302_vm2, %v13383_v36 }
0x1730   :  { %11498 = vmatpush3.bf16.xpose.msra.mxu0 %v2195_v44  ;;  %11499 = vmatprep.mubr.msk.bf16.mxu0 %vm12817_vm1, %v12816_v4 }
0x1731   :  { %11509 = vmatprep.subr.bf16.mxu0 %v12816_v4 }
0x1737   :  { %11500 = vmatmul.mubr.msk.bf16.vlgmr.msra.gmra.mrb[60].mxu0 %vm302_vm2, %v2188_v45 }
0x1738   :  { %11511 = vmatprep.mubr.msk.bf16.mxu0 %vm12817_vm1, %v12816_v4  ;;  %11510 = vmatpush3.bf16.msra.mxu0 %v13423_v31 }
0x1739   :  { %11521 = vmatprep.subr.bf16.mxu0 %v12816_v4 }
0x1802   :  { %v2121_v46 = vpop.f32.mrb[56].mxu0 }
0x1803   :  { %v11489_v47 = vpop.f32.mrb[57].mxu0  ;;  %v2122_v48 = vadd.f32 %v2121_v46, %v13090_v40 }
0x1804   :  { %v2124_v49 = vpop.f32.mrb[58].mxu0 }
0x1805   :  { %v11490_v51 = vpop.f32.mrb[59].mxu0  ;;  %v2127_v22 = vsel %vm349_vm5, %v2122_v48, -inf }
0x1806   :  { %2128 = vmax.xlane.f32.xlu0 %v2127_v22 }
0x180a   :  { %v2231_v52 = vpop.f32.mrb[60].mxu0 }
0x180b   :  { %v11501_v11 = vpop.f32.mrb[61].mxu0  ;;  %v2232_v53 = vadd.f32 %v2231_v52, %v13090_v40 }
0x180c   :  { %v2234_v54 = vpop.f32.mrb[62].mxu0 }
0x180d   :  { %v11502_v55 = vpop.f32.mrb[63].mxu0  ;;  %v2237_v56 = vsel %vm349_vm5, %v2232_v53, -inf }
0x180e   :  { %2238 = vmax.xlane.f32.xlu1 %v2237_v56 }
0x181f   :  { %2397 = vrot.lane.b32.xlu1 %v13383_v36, %s12822_s11 }
0x1893   :  { %v2129_v28 = vpop.xlane.xlu0 %2128 }
0x1894   :  { %v2130_v57 = vsub.f32 %v2122_v48, %v2129_v28 }
0x1896   :  { %v2131_v58 = vmul.f32 1.442695, %v2130_v57 }
0x1898   :  { %12560 = vpow2.f32 %v2131_v58 }
0x189b   :  { %v2239_v29 = vpop.xlane.xlu1 %2238 }
0x189c   :  { %v2240_v60 = vsub.f32 %v2232_v53, %v2239_v29 }
0x189e   :  { %v2241_v50 = vmul.f32 1.442695, %v2240_v60 }
0x189f   :  { %v2398_v42 = vpop.permute.xlu1 %2397 }
0x18a0   :  { %12562 = vpow2.f32 %v2241_v50 }
0x18a2   :  { %v12561_v61 = vpop.eup %12560 }
0x18a3   :  { %v2133_v59 = vsel %vm349_vm5, %v12561_v61, 0.0 }
0x18a4   :  { %2134 = vadd.xlane.f32.xlu0 %v2133_v59 }
0x18aa   :  { %v12563_v62 = vpop.eup %12562 }
0x18ab   :  { %v2243_v63 = vsel %vm349_vm5, %v12563_v62, 0.0 }
0x18ac   :  { %2244 = vadd.xlane.f32.xlu0 %v2243_v63 }
0x18c2   :  { %2250 = vrot.lane.b32.xlu0 %v13372_v38, %s12819_s7 }
0x18c6   :  { %2399 = vrot.lane.b32.xlu0 %v13368_v32, %s12821_s13 }
0x1931   :  { %v2135_v0 = vpop.xlane.xlu0 %2134 }
0x1932   :  { %12564 = vrcp.f32 %v2135_v0 }
0x1939   :  { %v2245_v1 = vpop.xlane.xlu0 %2244 }
0x193a   :  { %12566 = vrcp.f32 %v2245_v1 }
0x193c   :  { %v12565_v25 = vpop.eup %12564 }
0x193d   :  { %v2137_v39 = vmul.f32 %v12565_v25, %v12561_v61  ;;  %v2251_v3 = vpop.permute.xlu0 %2250 }
0x193e   :  { %v2256_v6 = vsel %vm365_vm3, %v2251_v3, 0 }
0x193f   :  { %v2138_v5 = vpack.c.bf16 %v2137_v39, %v2137_v39 }
0x1941   :  { %11494 = vmatmul.mubr.msk.bf16.vlgmr.msra.gmra.mrb[56].mxu1 %vm349_vm5, %v2138_v5  ;;  %v2400_v20 = vpop.permute.xlu0 %2399 }
0x1942   :  { %11504 = vmatpush3.bf16.msra.mxu1 %v2256_v6  ;;  %11505 = vmatprep.mubr.msk.bf16.mxu1 %vm12817_vm1, %v12816_v4  ;;  %v2405_v41 = vsel %vm302_vm2, %v2400_v20, 0  ;;  %v2063_v20 = vmul.f32 0.125, %v13370_v35 }
0x1943   :  { %11515 = vmatprep.subr.bf16.mxu1 %v12816_v4 }
0x1944   :  { %v12567_v7 = vpop.eup %12566 }
0x1945   :  { %v2247_v8 = vmul.f32 %v12567_v7, %v12563_v62 }
0x1947   :  { %v2248_v9 = vpack.c.bf16 %v2247_v8, %v2247_v8 }
0x1949   :  { %11506 = vmatmul.mubr.msk.bf16.vlgmr.msra.gmra.mrb[60].mxu1 %vm349_vm5, %v2248_v9 }
0x194a   :  { %11517 = vmatprep.mubr.msk.bf16.mxu1 %vm12817_vm1, %v12816_v4  ;;  %11516 = vmatpush3.bf16.msra.mxu1 %v13419_v17 }
0x194b   :  { %11527 = vmatprep.subr.bf16.mxu1 %v12816_v4 }
0x1a14   :  { %v2179_v19 = vpop.f32.mrb[56].mxu1 }
0x1a15   :  { %v2185_v21 = vpack.c.bf16 %v2179_v19, %v2179_v19  ;;  %v11495_v23 = vpop.f32.mrb[57].mxu1 }
0x1a16   :  { %v2182_v24 = vpop.f32.mrb[58].mxu1 }
0x1a17   :  { %v11496_v27 = vpop.f32.mrb[59].mxu1  ;;  %11518 = vmatmul.mubr.msk.bf16.vlgmr.msra.gmra.mrb[64].mxu1 %vm302_vm2, %v2185_v21 }
0x1a18   :  { %11529 = vmatprep.mubr.msk.bf16.mxu1 %vm12817_vm1, %v12816_v4 }
0x1a1c   :  { %v2292_v30 = vpop.f32.mrb[60].mxu1 }
0x1a1d   :  { %v2298_v37 = vpack.c.bf16 %v2292_v30, %v2292_v30  ;;  %v11507_v34 = vpop.f32.mrb[61].mxu1  ;;  %v13475_v30 = vpack.c.bf16 %v13370_v35, %v13370_v35 }
0x1a1e   :  { %v2295_v33 = vpop.f32.mrb[62].mxu1 }
0x1a1f   :  { %v11508_v43 = vpop.f32.mrb[63].mxu1  ;;  %11512 = vmatmul.mubr.msk.bf16.vlgmr.msra.gmra.mrb[64].mxu0 %vm302_vm2, %v2298_v37  ;;  %v13479_v37 = vpack.c.bf16 %v2063_v20, %v2063_v20 }
0x1a20   :  { %11522 = vmatpush3.bf16.xpose.msra.mxu0 %v2405_v41  ;;  %11523 = vmatprep.mubr.msk.bf16.mxu0 %vm12817_vm1, %v12816_v4 }
0x1a21   :  { %11533 = vmatprep.subr.bf16.mxu0 %v12816_v4 }
0x1a27   :  { %11524 = vmatmul.mubr.msk.bf16.vlgmr.msra.gmra.mrb[68].mxu0 %vm302_vm2, %v2398_v42 }
0x1a28   :  { %11535 = vmatprep.mubr.msk.bf16.mxu0 %vm12817_vm1, %v12816_v4 }
0x1aea   :  { %v2391_v44 = vpop.f32.mrb[64].mxu1 }
0x1aeb   :  { %v11519_v45 = vpop.f32.mrb[65].mxu1 }
0x1aec   :  { %v2394_v46 = vpop.f32.mrb[66].mxu1 }
0x1aed   :  { %v11520_v47 = vpop.f32.mrb[67].mxu1 }
0x1aee   :  { %v13492_v47 = vld [vmem:[%s12862_s25 + $0x38] sm:$0xff]  }
0x1af2   :  { %v2342_v48 = vpop.f32.mrb[64].mxu0 }
0x1af3   :  { %v11513_v49 = vpop.f32.mrb[65].mxu0  ;;  %v13439_v51 = vadd.f32 %v2391_v44, %v2342_v48 }
0x1af4   :  { %v2345_v22 = vpop.f32.mrb[66].mxu0 }
0x1af5   :  { %v11514_v52 = vpop.f32.mrb[67].mxu0 }
0x1afa   :  { %v2441_v11 = vpop.f32.mrb[68].mxu0 }
0x1afb   :  { %v11525_v53 = vpop.f32.mrb[69].mxu0  ;;  %v2442_v54 = vadd.f32 %v2441_v11, %v13090_v40 }
0x1afc   :  { %v2444_v55 = vpop.f32.mrb[70].mxu0 }
0x1afd   :  { %v11526_v56 = vpop.f32.mrb[71].mxu0  ;;  %v2447_v28 = vsel %vm349_vm5, %v2442_v54, -inf }
0x1afe   :  { %2448 = vmax.xlane.f32.xlu0 %v2447_v28 }
0x1b14   :  { %2459 = vrot.lane.b32.xlu0 %v13372_v38, %s12822_s11 }
0x1b18   :  { %2558 = vrot.lane.b32.xlu0 %v13383_v36, %s12823_s15 }
0x1b8b   :  { %v2449_v57 = vpop.xlane.xlu0 %2448 }
0x1b8c   :  { %v2450_v58 = vsub.f32 %v2442_v54, %v2449_v57  ;;  %v13514_v57 = vpack.c.bf16 %v13374_v26, %v13374_v26 }
0x1b8e   :  { %v2451_v29 = vmul.f32 1.442695, %v2450_v58 }
0x1b8f   :  { %v2460_v60 = vpop.permute.xlu0 %2459 }
0x1b90   :  { %12568 = vpow2.f32 %v2451_v29  ;;  %v2465_v50 = vsel %vm365_vm3, %v2460_v60, 0 }
0x1b91   :  { %11528 = vmatpush3.bf16.msra.mxu1 %v2465_v50 }
0x1b92   :  { %11539 = vmatprep.subr.bf16.mxu1 %v12816_v4 }
0x1b93   :  { %v2559_v39 = vpop.permute.xlu0 %2558 }
0x1b9a   :  { %v12569_v61 = vpop.eup %12568 }
0x1b9b   :  { %v2453_v59 = vsel %vm349_vm5, %v12569_v61, 0.0 }
0x1b9c   :  { %2454 = vadd.xlane.f32.xlu1 %v2453_v59  ;;  %v2794_v59 = vsel %vm365_vm3, %v13514_v57, 0 }
0x1bad   :  { %2560 = vrot.lane.b32.xlu1 %v13368_v32, %s12824_s16  ;;  %v13461_v32 = vld [vmem:[%s12862_s25 + $0x30] sm:$0xff]   ;;  %s14869_s25 = sld [smem:[#allocation8_spill]] }
0x1bae   :  { %11534 = vmatpush3.bf16.msra.mxu0 %v13461_v32 }
0x1baf   :  { %11545 = vmatprep.subr.bf16.mxu0 %v12816_v4 }
0x1c29   :  { %v2455_v62 = vpop.xlane.xlu1 %2454 }
0x1c2a   :  { %12570 = vrcp.f32 %v2455_v62 }
0x1c2d   :  { %v2561_v0 = vpop.permute.xlu1 %2560 }
0x1c2e   :  { %v2566_v25 = vsel %vm302_vm2, %v2561_v0, 0 }
0x1c34   :  { %v12571_v36 = vpop.eup %12570 }
0x1c35   :  { %v2457_v63 = vmul.f32 %v12571_v36, %v12569_v61 }
0x1c37   :  { %v2458_v1 = vpack.c.bf16 %v2457_v63, %v2457_v63 }
0x1c39   :  { %11530 = vmatmul.mubr.msk.bf16.vlgmr.msra.gmra.mrb[68].mxu1 %vm349_vm5, %v2458_v1 }
0x1c3a   :  { %11540 = vmatpush3.bf16.xpose.msra.mxu1 %v2566_v25  ;;  %11541 = vmatprep.mubr.msk.bf16.mxu1 %vm12817_vm1, %v12816_v4 }
0x1c3b   :  { %11551 = vmatprep.subr.bf16.mxu1 %v12816_v4 }
0x1c41   :  { %11542 = vmatmul.mubr.msk.bf16.vlgmr.msra.gmra.mrb[72].mxu1 %vm302_vm2, %v2559_v39 }
0x1c42   :  { %11553 = vmatprep.mubr.msk.bf16.mxu1 %vm12817_vm1, %v12816_v4  ;;  %11552 = vmatpush3.bf16.msra.mxu1 %v13492_v47 }
0x1c43   :  { %11563 = vmatprep.subr.bf16.mxu1 %v12816_v4 }
0x1d0c   :  { %v2501_v3 = vpop.f32.mrb[68].mxu1 }
0x1d0d   :  { %v2507_v5 = vpack.c.bf16 %v2501_v3, %v2501_v3  ;;  %v11531_v6 = vpop.f32.mrb[69].mxu1 }
0x1d0e   :  { %v2504_v7 = vpop.f32.mrb[70].mxu1 }
0x1d0f   :  { %v11532_v8 = vpop.f32.mrb[71].mxu1  ;;  %11536 = vmatmul.mubr.msk.bf16.vlgmr.msra.gmra.mrb[72].mxu0 %vm302_vm2, %v2507_v5 }
0x1d10   :  { %11547 = vmatprep.mubr.msk.bf16.mxu0 %vm12817_vm1, %v12816_v4 }
0x1d14   :  { %v2602_v9 = vpop.f32.mrb[72].mxu1 }
0x1d15   :  { %v2603_v19 = vadd.f32 %v2602_v9, %v13090_v40  ;;  %v11543_v21 = vpop.f32.mrb[73].mxu1 }
0x1d16   :  { %v2605_v23 = vpop.f32.mrb[74].mxu1 }
0x1d17   :  { %v11544_v24 = vpop.f32.mrb[75].mxu1  ;;  %v2608_v27 = vsel %vm349_vm5, %v2603_v19, -inf }
0x1d18   :  { %2609 = vmax.xlane.f32.xlu0 %v2608_v27 }
0x1d2e   :  { %2620 = vrot.lane.b32.xlu0 %v13372_v38, %s12823_s15 }
0x1d32   :  { %2840 = vrot.lane.b32.xlu0 %v13475_v30, %s12820_s10 }
0x1d36   :  { %2838 = vrot.lane.b32.xlu0 %v13479_v37, %s12819_s7 }
0x1da5   :  { %v2610_v34 = vpop.xlane.xlu0 %2609 }
0x1da6   :  { %v2611_v33 = vsub.f32 %v2603_v19, %v2610_v34 }
0x1da8   :  { %v2612_v41 = vmul.f32 1.442695, %v2611_v33 }
0x1da9   :  { %v2621_v43 = vpop.permute.xlu0 %2620 }
0x1daa   :  { %12572 = vpow2.f32 %v2612_v41  ;;  %v2626_v38 = vsel %vm365_vm3, %v2621_v43, 0 }
0x1dab   :  { %11546 = vmatpush3.bf16.msra.mxu0 %v2626_v38 }
0x1dac   :  { %11557 = vmatprep.subr.bf16.mxu0 %v12816_v4 }
0x1db4   :  { %v12573_v35 = vpop.eup %12572 }
0x1db5   :  { %v2614_v42 = vsel %vm349_vm5, %v12573_v35, 0.0 }
0x1db6   :  { %2615 = vadd.xlane.f32.xlu1 %v2614_v42 }
0x1dc7   :  { %2730 = vrot.lane.b32.xlu1 %v13475_v30, %s12818_s0 }
0x1de2   :  { %v2551_v44 = vpop.f32.mrb[72].mxu0 }
0x1de3   :  { %v13489_v45 = vadd.f32 %v2551_v44, %v13439_v51  ;;  %v11537_v46 = vpop.f32.mrb[73].mxu0  ;;  %v2841_v51 = vpop.permute.xlu0 %2840 }
0x1de4   :  { %v2554_v48 = vpop.f32.mrb[74].mxu0  ;;  %v2846_v56 = vsel %vm302_vm2, %v2841_v51, 0 }
0x1de5   :  { %v11538_v49 = vpop.f32.mrb[75].mxu0 }
0x1de7   :  { %v2839_v28 = vpop.permute.xlu0 %2838 }
0x1e43   :  { %v2616_v22 = vpop.xlane.xlu1 %2615 }
0x1e44   :  { %12574 = vrcp.f32 %v2616_v22 }
0x1e47   :  { %v2731_v53 = vpop.permute.xlu1 %2730 }
0x1e48   :  { %v2736_v55 = vsel %vm302_vm2, %v2731_v53, 0 }
0x1e4e   :  { %v12575_v52 = vpop.eup %12574 }
0x1e4f   :  { %v2618_v11 = vmul.f32 %v12575_v52, %v12573_v35 }
0x1e51   :  { %v2619_v54 = vpack.c.bf16 %v2618_v11, %v2618_v11 }
0x1e53   :  { %11548 = vmatmul.mubr.msk.bf16.vlgmr.msra.gmra.mrb[76].mxu0 %vm349_vm5, %v2619_v54 }
0x1e54   :  { %11558 = vmatpush3.bf16.xpose.msra.mxu0 %v2736_v55  ;;  %11559 = vmatprep.mubr.msk.bf16.mxu0 %vm12817_vm1, %v12816_v4 }
0x1e55   :  { %11569 = vmatprep.subr.bf16.mxu0 %v12816_v4 }
0x1e5b   :  { %11560 = vmatmul.mubr.msk.bf16.vlgmr.msra.gmra.mrb[80].mxu0 %vm302_vm2, %v13479_v37 }
0x1e5c   :  { %11570 = vmatpush3.bf16.xpose.msra.mxu0 %v2846_v56  ;;  %11571 = vmatprep.mubr.msk.bf16.mxu0 %vm12817_vm1, %v12816_v4 }
0x1e5d   :  { %11581 = vmatprep.subr.bf16.mxu0 %v12816_v4 }
0x1e63   :  { %11572 = vmatmul.mubr.msk.bf16.vlgmr.msra.gmra.mrb[84].mxu0 %vm302_vm2, %v2839_v28 }
0x1e64   :  { %11582 = vmatpush3.bf16.msra.mxu0 %v13423_v31  ;;  %11583 = vmatprep.mubr.msk.bf16.mxu0 %vm12817_vm1, %v12816_v4 }
0x1e65   :  { %11593 = vmatprep.subr.bf16.mxu0 %v12816_v4 }
0x1f26   :  { %v2662_v58 = vpop.f32.mrb[76].mxu0 }
0x1f27   :  { %v2668_v29 = vpack.c.bf16 %v2662_v58, %v2662_v58  ;;  %v11549_v60 = vpop.f32.mrb[77].mxu0 }
0x1f28   :  { %v2665_v50 = vpop.f32.mrb[78].mxu0 }
0x1f29   :  { %v11550_v61 = vpop.f32.mrb[79].mxu0  ;;  %11554 = vmatmul.mubr.msk.bf16.vlgmr.msra.gmra.mrb[76].mxu1 %vm302_vm2, %v2668_v29 }
0x1f2a   :  { %11564 = vmatpush3.bf16.msra.mxu1 %v2794_v59  ;;  %11565 = vmatprep.mubr.msk.bf16.mxu1 %vm12817_vm1, %v12816_v4 }
0x1f2b   :  { %11575 = vmatprep.subr.bf16.mxu1 %v12816_v4 }
0x1f2e   :  { %v2772_v31 = vpop.f32.mrb[80].mxu0 }
0x1f2f   :  { %v2773_v26 = vadd.f32 %v2772_v31, %v13217_v12  ;;  %v11561_v62 = vpop.f32.mrb[81].mxu0 }
0x1f30   :  { %v2775_v36 = vpop.f32.mrb[82].mxu0 }
0x1f31   :  { %v11562_v63 = vpop.f32.mrb[83].mxu0  ;;  %v2778_v0 = vsel %vm349_vm5, %v2773_v26, -inf }
0x1f32   :  { %2779 = vmax.xlane.f32.xlu0 %v2778_v0 }
0x1f36   :  { %v2882_v1 = vpop.f32.mrb[84].mxu0 }
0x1f37   :  { %v2883_v25 = vadd.f32 %v2882_v1, %v13217_v12  ;;  %v11573_v39 = vpop.f32.mrb[85].mxu0 }
0x1f38   :  { %v2885_v3 = vpop.f32.mrb[86].mxu0 }
0x1f39   :  { %v11574_v5 = vpop.f32.mrb[87].mxu0  ;;  %v2888_v6 = vsel %vm349_vm5, %v2883_v25, -inf }
0x1f3a   :  { %2889 = vmax.xlane.f32.xlu1 %v2888_v6 }
0x1f4b   :  { %3038 = vrot.lane.b32.xlu1 %v13475_v30, %s12821_s13 }
0x1f4f   :  { %3036 = vrot.lane.b32.xlu1 %v13479_v37, %s12822_s11 }
0x1fbf   :  { %v2780_v7 = vpop.xlane.xlu0 %2779 }
0x1fc0   :  { %v2781_v8 = vsub.f32 %v2773_v26, %v2780_v7 }
0x1fc2   :  { %v2782_v9 = vmul.f32 1.442695, %v2781_v8 }
0x1fc4   :  { %12576 = vpow2.f32 %v2782_v9 }
0x1fc7   :  { %v2890_v19 = vpop.xlane.xlu1 %2889 }
0x1fc8   :  { %v2891_v21 = vsub.f32 %v2883_v25, %v2890_v19 }
0x1fca   :  { %v2892_v23 = vmul.f32 1.442695, %v2891_v21 }
0x1fcb   :  { %v3039_v58 = vpop.permute.xlu1 %3038 }
0x1fcc   :  { %12578 = vpow2.f32 %v2892_v23  ;;  %v3044_v61 = vsel %vm302_vm2, %v3039_v58, 0 }
0x1fce   :  { %v12577_v24 = vpop.eup %12576 }
0x1fcf   :  { %v2784_v27 = vsel %vm349_vm5, %v12577_v24, 0.0  ;;  %v3037_v31 = vpop.permute.xlu1 %3036 }
0x1fd0   :  { %2785 = vadd.xlane.f32.xlu0 %v2784_v27 }
0x1fd6   :  { %v12579_v20 = vpop.eup %12578 }
0x1fd7   :  { %v2894_v34 = vsel %vm349_vm5, %v12579_v20, 0.0 }
0x1fd8   :  { %2895 = vadd.xlane.f32.xlu0 %v2894_v34 }
0x1fee   :  { %2901 = vrot.lane.b32.xlu0 %v13514_v57, %s12819_s7 }
0x1ffc   :  { %v2712_v33 = vpop.f32.mrb[76].mxu1 }
0x1ffd   :  { %v13535_v41 = vadd.f32 %v2712_v33, %v13489_v45  ;;  %v11555_v43 = vpop.f32.mrb[77].mxu1 }
0x1ffe   :  { %v2715_v38 = vpop.f32.mrb[78].mxu1 }
0x1fff   :  { %v11556_v35 = vpop.f32.mrb[79].mxu1 }
0x205d   :  { %v2786_v42 = vpop.xlane.xlu0 %2785 }
0x205e   :  { %12580 = vrcp.f32 %v2786_v42 }
0x2065   :  { %v2896_v44 = vpop.xlane.xlu0 %2895 }
0x2066   :  { %12582 = vrcp.f32 %v2896_v44 }
0x2068   :  { %v12581_v46 = vpop.eup %12580 }
0x2069   :  { %v2788_v48 = vmul.f32 %v12581_v46, %v12577_v24  ;;  %v2902_v49 = vpop.permute.xlu0 %2901 }
0x206a   :  { %v2907_v52 = vsel %vm365_vm3, %v2902_v49, 0 }
0x206b   :  { %v2789_v22 = vpack.c.bf16 %v2788_v48, %v2788_v48 }
0x206d   :  { %11566 = vmatmul.mubr.msk.bf16.vlgmr.msra.gmra.mrb[80].mxu1 %vm349_vm5, %v2789_v22 }
0x206e   :  { %11576 = vmatpush3.bf16.msra.mxu1 %v2907_v52  ;;  %11577 = vmatprep.mubr.msk.bf16.mxu1 %vm12817_vm1, %v12816_v4  ;;  %v10530_v52 = vld [vmem:[%s12867_s29 + $0x1] ss:$0 sm:$0xff]  ;;  %s14870_s29 = sld [smem:[#allocation9_spill]] }
0x206f   :  { %11587 = vmatprep.subr.bf16.mxu1 %v12816_v4 }
0x2070   :  { %v12583_v45 = vpop.eup %12582 }
0x2071   :  { %v2898_v11 = vmul.f32 %v12583_v45, %v12579_v20  ;;  %v2725_v45 = vadd.f32 %v10530_v52, %v13535_v41 }
0x2073   :  { %v2899_v53 = vpack.c.bf16 %v2898_v11, %v2898_v11 }
0x2075   :  { %11578 = vmatmul.mubr.msk.bf16.vlgmr.msra.gmra.mrb[84].mxu1 %vm349_vm5, %v2899_v53 }
0x2076   :  { %11588 = vmatpush3.bf16.msra.mxu1 %v13419_v17  ;;  %11589 = vmatprep.mubr.msk.bf16.mxu1 %vm12817_vm1, %v12816_v4 }
0x2077   :  { %11599 = vmatprep.subr.bf16.mxu1 %v12816_v4 }
0x2140   :  { %v2830_v54 = vpop.f32.mrb[80].mxu1 }
0x2141   :  { %v2836_v55 = vpack.c.bf16 %v2830_v54, %v2830_v54  ;;  %v11567_v51 = vpop.f32.mrb[81].mxu1 }
0x2142   :  { %v2833_v56 = vpop.f32.mrb[82].mxu1 }
0x2143   :  { %v11568_v28 = vpop.f32.mrb[83].mxu1  ;;  %11590 = vmatmul.mubr.msk.bf16.vlgmr.msra.gmra.mrb[88].mxu1 %vm302_vm2, %v2836_v55  ;;  %v3401_v56 = vadd.f32 %v2725_v45, %v13356_v10  ;;  %v12390_v45 = vld [vmem:[%s14866_s5 + $0x4] ss:$8 sps:$4 sm:$0xff]  }
0x2144   :  { %11601 = vmatprep.mubr.msk.bf16.mxu1 %vm12817_vm1, %v12816_v4 }
0x2145   :  { %v3403_v28 = vsel %vm238_vm0, %v3401_v56, 0.0 }
0x2148   :  { %v2943_v29 = vpop.f32.mrb[84].mxu1 }
0x2149   :  { %v2949_v60 = vpack.c.bf16 %v2943_v29, %v2943_v29  ;;  %v11579_v50 = vpop.f32.mrb[85].mxu1 }
0x214a   :  { %v2946_v17 = vpop.f32.mrb[86].mxu1 }
0x214b   :  { %v11580_v59 = vpop.f32.mrb[87].mxu1  ;;  %11584 = vmatmul.mubr.msk.bf16.vlgmr.msra.gmra.mrb[88].mxu0 %vm302_vm2, %v2949_v60 }
0x214c   :  { %11594 = vmatpush3.bf16.xpose.msra.mxu0 %v3044_v61  ;;  %11595 = vmatprep.mubr.msk.bf16.mxu0 %vm12817_vm1, %v12816_v4 }
0x214d   :  { %11605 = vmatprep.subr.bf16.mxu0 %v12816_v4 }
0x2153   :  { %11596 = vmatmul.mubr.msk.bf16.vlgmr.msra.gmra.mrb[92].mxu0 %vm302_vm2, %v3037_v31 }
0x2154   :  { %11606 = vmatpush3.bf16.msra.mxu0 %v13461_v32  ;;  %11607 = vmatprep.mubr.msk.bf16.mxu0 %vm12817_vm1, %v12816_v4 }
0x2155   :  { %11617 = vmatprep.subr.bf16.mxu0 %v12816_v4 }
0x2216   :  { %v3030_v26 = vpop.f32.mrb[88].mxu1 }
0x2217   :  { %v11591_v62 = vpop.f32.mrb[89].mxu1 }
0x2218   :  { %v3033_v36 = vpop.f32.mrb[90].mxu1 }
0x2219   :  { %v11592_v63 = vpop.f32.mrb[91].mxu1 }
0x221e   :  { %v2987_v0 = vpop.f32.mrb[88].mxu0 }
0x221f   :  { %v13560_v1 = vadd.f32 %v3030_v26, %v2987_v0  ;;  %v11585_v25 = vpop.f32.mrb[89].mxu0 }
0x2220   :  { %v2990_v39 = vpop.f32.mrb[90].mxu0 }
0x2221   :  { %v11586_v3 = vpop.f32.mrb[91].mxu0 }
0x2226   :  { %v3080_v5 = vpop.f32.mrb[92].mxu0 }
0x2227   :  { %v3081_v6 = vadd.f32 %v3080_v5, %v13217_v12  ;;  %v11597_v7 = vpop.f32.mrb[93].mxu0 }
0x2228   :  { %v3083_v32 = vpop.f32.mrb[94].mxu0 }
0x2229   :  { %v11598_v8 = vpop.f32.mrb[95].mxu0  ;;  %v3086_v9 = vsel %vm349_vm5, %v3081_v6, -inf }
0x222a   :  { %3087 = vmax.xlane.f32.xlu0 %v3086_v9 }
0x2240   :  { %3098 = vrot.lane.b32.xlu0 %v13514_v57, %s12822_s11 }
0x2244   :  { %3191 = vrot.lane.b32.xlu0 %v13479_v37, %s12823_s15 }
0x22b7   :  { %v3088_v19 = vpop.xlane.xlu0 %3087 }
0x22b8   :  { %v3089_v21 = vsub.f32 %v3081_v6, %v3088_v19 }
0x22ba   :  { %v3090_v23 = vmul.f32 1.442695, %v3089_v21 }
0x22bb   :  { %v3099_v24 = vpop.permute.xlu0 %3098 }
0x22bc   :  { %12584 = vpow2.f32 %v3090_v23  ;;  %v3104_v27 = vsel %vm365_vm3, %v3099_v24, 0 }
0x22bd   :  { %11600 = vmatpush3.bf16.msra.mxu1 %v3104_v27 }
0x22be   :  { %11611 = vmatprep.subr.bf16.mxu1 %v12816_v4 }
0x22bf   :  { %v3192_v44 = vpop.permute.xlu0 %3191 }
0x22c6   :  { %v12585_v20 = vpop.eup %12584 }
0x22c7   :  { %v3092_v34 = vsel %vm349_vm5, %v12585_v20, 0.0 }
0x22c8   :  { %3093 = vadd.xlane.f32.xlu1 %v3092_v34 }
0x22d9   :  { %3193 = vrot.lane.b32.xlu1 %v13475_v30, %s12824_s16 }
0x2355   :  { %v3094_v33 = vpop.xlane.xlu1 %3093 }
0x2356   :  { %12586 = vrcp.f32 %v3094_v33 }
0x2359   :  { %v3194_v38 = vpop.permute.xlu1 %3193 }
0x235a   :  { %v3199_v42 = vsel %vm302_vm2, %v3194_v38, 0 }
0x2360   :  { %v12587_v37 = vpop.eup %12586 }
0x2361   :  { %v3096_v43 = vmul.f32 %v12587_v37, %v12585_v20 }
0x2363   :  { %v3097_v35 = vpack.c.bf16 %v3096_v43, %v3096_v43 }
0x2365   :  { %11602 = vmatmul.mubr.msk.bf16.vlgmr.msra.gmra.mrb[92].mxu1 %vm349_vm5, %v3097_v35 }
0x2366   :  { %11612 = vmatpush3.bf16.xpose.msra.mxu1 %v3199_v42  ;;  %11613 = vmatprep.mubr.msk.bf16.mxu1 %vm12817_vm1, %v12816_v4  ;;  %v12378_v42 = vld [vmem:[%s12882_s14 + $0x44] ss:$8 sps:$4 sm:$0xff]  }
0x2367   :  { %11623 = vmatprep.subr.bf16.mxu1 %v12816_v4 }
0x236d   :  { %11614 = vmatmul.mubr.msk.bf16.vlgmr.msra.gmra.mrb[96].mxu1 %vm302_vm2, %v3192_v44  ;;  %v12376_v44 = vld [vmem:[%s12882_s14 + $0x40] ss:$8 sps:$4 sm:$0xff]  }
0x236e   :  { %11624 = vmatpush3.bf16.msra.mxu1 %v13492_v47  ;;  %11625 = vmatprep.mubr.msk.bf16.mxu1 %vm12817_vm1, %v12816_v4 }
0x2438   :  { %v3140_v30 = vpop.f32.mrb[92].mxu1 }
0x2439   :  { %v3146_v46 = vpack.c.bf16 %v3140_v30, %v3140_v30  ;;  %v11603_v48 = vpop.f32.mrb[93].mxu1  ;;  %v12381_v30 = vld [vmem:[%s12882_s14 + $0x54] ss:$8 sps:$4 sm:$0xff]  }
0x243a   :  { %v3143_v49 = vpop.f32.mrb[94].mxu1  ;;  %v12384_v48 = vld [vmem:[%s12882_s14 + $0x64] ss:$8 sps:$4 sm:$0xff]  }
0x243b   :  { %v11604_v22 = vpop.f32.mrb[95].mxu1  ;;  %11608 = vmatmul.mubr.msk.bf16.vlgmr.msra.gmra.mrb[96].mxu0 %vm302_vm2, %v3146_v46  ;;  %v12379_v46 = vld [vmem:[%s12882_s14 + $0x50] ss:$8 sps:$4 sm:$0xff]   ;;  %v12382_v49 = vld [vmem:[%s12882_s14 + $0x60] ss:$8 sps:$4 sm:$0xff]  }
0x243c   :  { %11619 = vmatprep.mubr.msk.bf16.mxu0 %vm12817_vm1, %v12816_v4  ;;  %v12385_v22 = vld [vmem:[%s12882_s14 + $0x70] ss:$8 sps:$4 sm:$0xff]  }
0x2440   :  { %v3235_v11 = vpop.f32.mrb[96].mxu1 }
0x2441   :  { %v3236_v53 = vadd.f32 %v3235_v11, %v13217_v12  ;;  %v11615_v47 = vpop.f32.mrb[97].mxu1  ;;  %v12400_v11 = vld [vmem:[%s12892_s24 + $0xc0] sm:$0xff]  }
0x2442   :  { %v3238_v54 = vpop.f32.mrb[98].mxu1  ;;  %v12402_v47 = vld [vmem:[%s12892_s24 + $0xc8] sm:$0xff]   ;;  %11058 = vmatprep.subr.bf16.mxu1 %v12400_v11 }
0x2443   :  { %v11616_v55 = vpop.f32.mrb[99].mxu1  ;;  %v3241_v51 = vsel %vm349_vm5, %v3236_v53, -inf  ;;  %v12403_v54 = vld [vmem:[%s12892_s24 + $0x88] sm:$0xff]  }
0x2444   :  { %3242 = vmax.xlane.f32.xlu1 %v3241_v51  ;;  %v12404_v55 = vld [vmem:[%s12892_s24 + $0xd0] sm:$0xff]  }
0x2445   :  { %v12405_v51 = vld [vmem:[%s12892_s24 + $0x90] sm:$0xff]  }
0x2448   :  { %3404 = vadd.xlane.f32.xlu1 %v3403_v28  ;;  %v12407_v28 = vld [vmem:[%s12892_s24 + $0x98] sm:$0xff]  }
0x24d1   :  { %v3243_v58 = vpop.xlane.xlu1 %3242 }
0x24d2   :  { %v3244_v29 = vsub.f32 %v3236_v53, %v3243_v58  ;;  %v12401_v53 = vld [vmem:[%s12892_s24 + $0x80] sm:$0xff]  }
0x24d3   :  { %v12408_v58 = vld [vmem:[%s12892_s24 + $0xe0] sm:$0xff]  }
0x24d4   :  { %v3245_v60 = vmul.f32 1.442695, %v3244_v29  ;;  %v12409_v29 = vld [vmem:[%s12892_s24 + $0xa0] sm:$0xff]  }
0x24d5   :  { %v3405_v6 = vpop.xlane.xlu1 %3404 }
0x24d6   :  { %12588 = vpow2.f32 %v3245_v60  ;;  %v3409_v7 = vmul.f32 0.015625, %v3405_v6  ;;  %v12410_v60 = vld [vmem:[%s12892_s24 + $0xe8] sm:$0xff]   ;;  %v12393_v6 = vld [vmem:[%s14866_s5 + $0x14] ss:$8 sps:$4 sm:$0xff]  }
0x24d8   :  { %v13599_v21 = vsub.f32 %v3401_v56, %v3409_v7  ;;  %v12406_v56 = vld [vmem:[%s12892_s24 + $0xd8] sm:$0xff]  }
0x24d9   :  { %v12391_v7 = vld [vmem:[%s14866_s5 + $0x10] ss:$8 sps:$4 sm:$0xff]  }
0x24da   :  { %v3413_v34 = vmul.f32 %v13599_v21, %v13599_v21 }
0x24dc   :  { %v3415_v33 = vsel %vm238_vm0, %v3413_v34, 0.0  ;;  %v12413_v34 = vld [vmem:[%s12892_s24 + $0xb0] sm:$0xff]  }
0x24e0   :  { %v12589_v50 = vpop.eup %12588 }
0x24e1   :  { %v3247_v41 = vsel %vm349_vm5, %v12589_v50, 0.0 }
0x24e2   :  { %3248 = vadd.xlane.f32.xlu0 %v3247_v41 }
0x24f8   :  { %3253 = vrot.lane.b32.xlu0 %v13514_v57, %s12823_s15 }
0x250e   :  { %v3184_v17 = vpop.f32.mrb[96].mxu0 }
0x250f   :  { %v3190_v61 = vadd.f32 %v3184_v17, %v13560_v1  ;;  %v11609_v59 = vpop.f32.mrb[97].mxu0 }
0x2510   :  { %v3187_v10 = vpop.f32.mrb[98].mxu0 }
0x2511   :  { %v11610_v31 = vpop.f32.mrb[99].mxu0 }
0x256f   :  { %v3249_v26 = vpop.xlane.xlu0 %3248 }
0x2570   :  { %12590 = vrcp.f32 %v3249_v26 }
0x2573   :  { %v3254_v62 = vpop.permute.xlu0 %3253 }
0x2574   :  { %v3259_v36 = vsel %vm365_vm3, %v3254_v62, 0  ;;  %v10589_v62 = vld [vmem:[%s12872_s3 + $0x1] ss:$0 sm:$0xff]  ;;  %s14871_s3 = sld [smem:[#allocation14_spill]] }
0x2575   :  { %11618 = vmatpush3.bf16.msra.mxu0 %v3259_v36 }
0x2576   :  { %3500 = vmatprep.subr.bf16.mxu0 %v12378_v42 }
0x257a   :  { %v12591_v63 = vpop.eup %12590 }
0x257b   :  { %v3251_v0 = vmul.f32 %v12591_v63, %v12589_v50 }
0x257d   :  { %v3252_v25 = vpack.c.bf16 %v3251_v0, %v3251_v0 }
0x257f   :  { %11620 = vmatmul.mubr.msk.bf16.vlgmr.msra.gmra.mrb[100].mxu0 %vm349_vm5, %v3252_v25  ;;  %v10590_v25 = vld [vmem:[%s12877_s8 + $0x1] ss:$0 sm:$0xff]  ;;  %s14872_s8 = sld [smem:[#allocation12_spill]] }
0x2580   :  { %3532 = vmatprep.mubr.bf16.mxu0 %v12815_v2  ;;  %3501 = vmatpush1.bf16.msra.mxu0 %v12376_v44 }
0x2581   :  { %3502 = vmatprep.subr.bf16.mxu0 %v12381_v30 }
0x2584   :  { %3503 = vmatpush1.bf16.msra.mxu0 %v12379_v46 }
0x2585   :  { %3504 = vmatprep.subr.bf16.mxu0 %v12384_v48 }
0x2588   :  { %3505 = vmatpush1.bf16.msra.mxu0 %v12382_v49 }
0x2652   :  { %v3295_v57 = vpop.f32.mrb[100].mxu0 }
0x2653   :  { %v3301_v39 = vpack.c.bf16 %v3295_v57, %v3295_v57  ;;  %v11621_v3 = vpop.f32.mrb[101].mxu0 }
0x2654   :  { %v3298_v1 = vpop.f32.mrb[102].mxu0 }
0x2655   :  { %v11622_v5 = vpop.f32.mrb[103].mxu0  ;;  %11626 = vmatmul.mubr.msk.bf16.vlgmr.msra.gmra.mrb[100].mxu1 %vm302_vm2, %v3301_v39  ;;  %v12388_v1 = vld [vmem:[%s14866_s5] ss:$8 sps:$4 sm:$0xff]  }
0x2656   :  { %11059 = vmatpush3.bf16.msra.mxu1 %v12401_v53 }
0x2657   :  { %11060 = vmatprep.subr.bf16.mxu1 %v12402_v47 }
0x265a   :  { %11061 = vmatpush3.bf16.msra.mxu1 %v12403_v54 }
0x265b   :  { %11062 = vmatprep.subr.bf16.mxu1 %v12404_v55  ;;  %v3746_v55 = vld [vmem:[%s14868_s21] sm:$0x3] }
0x265e   :  { %11063 = vmatpush3.bf16.msra.mxu1 %v12405_v51  ;;  %v3751_v51 = vrot.slane %v3746_v55, %v13042_v15 }
0x265f   :  { %11064 = vmatprep.subr.bf16.mxu1 %v12406_v56  ;;  %v3755_v56 = vrot.slane %v3746_v55, %v13047_v18 }
0x2662   :  { %11065 = vmatpush3.bf16.msra.mxu1 %v12407_v28 }
0x2663   :  { %11066 = vmatprep.subr.bf16.mxu1 %v12408_v58 }
0x2666   :  { %11067 = vmatpush3.bf16.msra.mxu1 %v12409_v29 }
0x2667   :  { %11068 = vmatprep.subr.bf16.mxu1 %v12410_v60 }
0x2728   :  { %v3339_v32 = vpop.f32.mrb[100].mxu1 }
0x2729   :  { %v3345_v8 = vadd.f32 %v3339_v32, %v3190_v61  ;;  %v11627_v9 = vpop.f32.mrb[101].mxu1  ;;  %v12396_v32 = vld [vmem:[%s14866_s5 + $0x24] ss:$8 sps:$4 sm:$0xff]  }
0x272a   :  { %v3342_v19 = vpop.f32.mrb[102].mxu1  ;;  %v12399_v9 = vld [vmem:[%s14866_s5 + $0x34] ss:$8 sps:$4 sm:$0xff]  }
0x272b   :  { %v3346_v23 = vadd.f32 %v10530_v52, %v3345_v8  ;;  %v11628_v24 = vpop.f32.mrb[103].mxu1  ;;  %v12387_v52 = vld [vmem:[%s12882_s14 + $0x74] ss:$8 sps:$4 sm:$0xff]   ;;  %v12394_v8 = vld [vmem:[%s14866_s5 + $0x20] ss:$8 sps:$4 sm:$0xff]   ;;  %s14873_s14 = sld [smem:[#allocation10_spill]] }
0x272c   :  { %3506 = vmatprep.subr.bf16.mxu0 %v12387_v52  ;;  %v12397_v19 = vld [vmem:[%s14866_s5 + $0x30] ss:$8 sps:$4 sm:$0xff]  }
0x272d   :  { %v3402_v27 = vadd.f32 %v3346_v23, %v13358_v16  ;;  %3507 = vmatpush1.bf16.msra.mxu0 %v12385_v22  ;;  %v13649_v23 = vld [vmem:[%s14867_s17 + $0x8] sm:$0xff] }
0x272e   :  { %3801 = vmatprep.subr.bf16.mxu0 %v12390_v45 }
0x272f   :  { %v3406_v20 = vsel %vm238_vm0, %v3402_v27, 0.0 }
0x2730   :  { %3407 = vadd.xlane.f32.xlu1 %v3406_v20  ;;  %v12412_v20 = vld [vmem:[%s12892_s24 + $0xf0] sm:$0xff]  }
0x2734   :  { %3416 = vadd.xlane.f32.xlu1 %v3415_v33  ;;  %v12414_v33 = vld [vmem:[%s12892_s24 + $0xf8] sm:$0xff]  }
0x27bd   :  { %v3408_v37 = vpop.xlane.xlu1 %3407 }
0x27be   :  { %v3410_v43 = vmul.f32 0.015625, %v3408_v37  ;;  %v12415_v37 = vld [vmem:[%s12892_s24 + $0xb8] sm:$0xff]  }
0x27c0   :  { %v3412_v38 = vsub.f32 %v3402_v27, %v3410_v43  ;;  %v12411_v27 = vld [vmem:[%s12892_s24 + $0xa8] sm:$0xff]   ;;  %v10553_v43 = vld [vmem:[%s12887_s19 + $0x2] sm:$0x3]  ;;  %s14874_s19 = sld [smem:[#allocation11_spill]]  ;;  %s14875_s24 = sld [smem:[#allocation15_spill]] }
0x27c1   :  { %v3417_v50 = vpop.xlane.xlu1 %3416  ;;  %11069 = vmatpush3.bf16.msra.mxu1 %v12411_v27 }
0x27c2   :  { %v3414_v35 = vmul.f32 %v3412_v38, %v3412_v38  ;;  %v3421_v41 = vmul.f32 0.015625, %v3417_v50  ;;  %11070 = vmatprep.subr.bf16.mxu1 %v12412_v20 }
0x27c4   :  { %v3418_v16 = vsel %vm238_vm0, %v3414_v35, 0.0  ;;  %v3423_v17 = vadd.f32 1e-05, %v3421_v41  ;;  %v3454_v35 = vrot.slane %v10553_v43, %v13047_v18 }
0x27c5   :  { %3419 = vadd.xlane.f32.xlu1 %v3418_v16  ;;  %11071 = vmatpush3.bf16.msra.mxu1 %v12413_v34 }
0x27c6   :  { %12592 = vrsqrt.f32 %v3423_v17  ;;  %11072 = vmatprep.subr.bf16.mxu1 %v12414_v33 }
0x27c9   :  { %11073 = vmatpush3.bf16.msra.mxu1 %v12415_v37 }
0x27ca   :  { %11635 = vmatprep.subr.bf16.mxu1 %v12816_v4 }
0x27d0   :  { %v12593_v31 = vpop.eup %12592 }
0x27d1   :  { %v3427_v26 = vmul.f32 %v12593_v31, %v13599_v21  ;;  %v13646_v21 = vld [vmem:[%s14867_s17] sm:$0xff] }
0x27d2   :  { %v3745_v24 = vpack.c.bf16 %v13649_v23, %v13646_v21 }
0x27d3   :  { %v3435_v63 = vmul.f32 %v10589_v62, %v3427_v26 }
0x27d5   :  { %v13630_v39 = vadd.f32 %v10590_v25, %v3435_v63 }
0x2852   :  { %v3420_v61 = vpop.xlane.xlu1 %3419 }
0x2853   :  { %v3422_v59 = vmul.f32 0.015625, %v3420_v61 }
0x2855   :  { %v3424_v10 = vadd.f32 1e-05, %v3422_v59 }
0x2857   :  { %12594 = vrsqrt.f32 %v3424_v10 }
0x2861   :  { %v12595_v36 = vpop.eup %12594 }
0x2862   :  { %v3428_v0 = vmul.f32 %v12595_v36, %v3412_v38  ;;  %v3450_v38 = vrot.slane %v10553_v43, %v13042_v15 }
0x2864   :  { %v3436_v57 = vmul.f32 %v10589_v62, %v3428_v0 }
0x2866   :  { %v13632_v3 = vadd.f32 %v10590_v25, %v3436_v57 }
0x2868   :  { %v3445_v5 = vpack.c.bf16 %v13632_v3, %v13630_v39 }
0x286a   :  { %10599 = vmatmul.mubr.msk.bf16.vlgmr.msra.gmra.mrb[104].mxu0 %vm238_vm0, %v3445_v5 }
0x286b   :  { %3802 = vmatpush1.bf16.msra.mxu0 %v12388_v1  ;;  %3833 = vmatprep.mubr.bf16.mxu0 %v12815_v2 }
0x286c   :  { %3803 = vmatprep.subr.bf16.mxu0 %v12393_v6 }
0x286f   :  { %3804 = vmatpush1.bf16.msra.mxu0 %v12391_v7 }
0x2870   :  { %3805 = vmatprep.subr.bf16.mxu0 %v12396_v32 }
0x2873   :  { %3806 = vmatpush1.bf16.msra.mxu0 %v12394_v8 }
0x2874   :  { %3807 = vmatprep.subr.bf16.mxu0 %v12399_v9  ;;  %v174_v9 = vand.u32 127, %v163_v13 }
0x2876   :  { %vm175_vm6 = vcmp.le.s32.totalorder %v174_v9, %v13039_v14 }
0x2877   :  { %3808 = vmatpush1.bf16.msra.mxu0 %v12397_v19  ;;  %v12825_v19 = vmov -1e+20  }
0x2878   :  { %11629 = vmatprep.subr.bf16.mxu0 %v12816_v4 }
0x287a   :  { %10627 = vmatmul.mubr.msk.bf16.vlgmr.msra.gmra.mrb[108].mxu0 %vm238_vm0, %v3745_v24  ;;  %v13707_v24 = vsel %vm175_vm6, 0.0, %v12825_v19 }
0x287b   :  { %11631 = vmatprep.mubr.msk.bf16.mxu0 %vm12817_vm1, %v12816_v4 }
0x293d   :  { %v3534_v16 = vpop.f32.mrb[104].mxu0 }
0x293e   :  { %v3535_v42 = vadd.f32 %v3534_v16, %v3450_v38  ;;  %v3536_v44 = vpop.f32.mrb[105].mxu0 }
0x293f   :  { %v3537_v30 = vadd.f32 %v3536_v44, %v3454_v35  ;;  %v3538_v46 = vpop.f32.mrb[106].mxu0 }
0x2940   :  { %v3539_v48 = vadd.f32 %v3538_v46, %v3450_v38  ;;  %v3540_v49 = vpop.f32.mrb[107].mxu0  ;;  %v3543_v52 = vmax.f32 %v3535_v42, 0.0 }
0x2941   :  { %v3541_v22 = vadd.f32 %v3540_v49, %v3454_v35  ;;  %v3544_v11 = vmax.f32 %v3537_v30, 0.0 }
0x2942   :  { %v3545_v45 = vmax.f32 %v3539_v48, 0.0 }
0x2943   :  { %v3546_v53 = vmax.f32 %v3541_v22, 0.0 }
0x2944   :  { %v3547_v47 = vpack.c.bf16 %v3545_v45, %v3543_v52 }
0x2945   :  { %v3548_v54 = vpack.c.bf16 %v3546_v53, %v3544_v11 }
0x2947   :  { %3683 = vmatprep.mubr.bf16.mxu1 %v3548_v54 }
0x2948   :  { %3684 = vmatmul.mubr.bf16.vlgmr.msra.gmra.mrb[104].mxu1 %v3547_v47 }
0x2949   :  { %11637 = vmatprep.mubr.msk.bf16.mxu1 %vm12817_vm1, %v12816_v4 }
0x294d   :  { %v3835_v28 = vpop.f32.mrb[108].mxu0 }
0x294e   :  { %v3836_v58 = vadd.f32 %v3835_v28, %v3751_v51  ;;  %v3837_v29 = vpop.f32.mrb[109].mxu0 }
0x294f   :  { %v3838_v60 = vadd.f32 %v3837_v29, %v3755_v56  ;;  %v3839_v50 = vpop.f32.mrb[110].mxu0 }
0x2950   :  { %v3844_v41 = vmul.f32 0.125, %v3836_v58  ;;  %v13671_v17 = vpack.c.bf16 %v3836_v58, %v3836_v58  ;;  %v13673_v61 = vadd.f32 %v3839_v50, %v3751_v51  ;;  %v3841_v59 = vpop.f32.mrb[111].mxu0 }
0x2951   :  { %v13675_v10 = vpack.c.bf16 %v3838_v60, %v3838_v60  ;;  %v13677_v31 = vadd.f32 %v3841_v59, %v3755_v56  ;;  %v13734_v59 = vld [vmem:[%s14869_s25 + $0x8] sm:$0xff]  }
0x2952   :  { %3969 = vrot.lane.b32.xlu0 %v13671_v17, %s12820_s10  ;;  %3859 = vrot.lane.b32.xlu1 %v13671_v17, %s12818_s0  ;;  %v13685_v62 = vpack.c.bf16 %v3844_v41, %v3844_v41  ;;  %v13730_v41 = vld [vmem:[%s14869_s25] sm:$0xff]  }
0x2953   :  { %v3923_v26 = vsel %vm365_vm3, %v13675_v10, 0 }
0x2954   :  { %11636 = vmatpush3.bf16.msra.mxu1 %v3923_v26 }
0x2955   :  { %11647 = vmatprep.subr.bf16.mxu1 %v12816_v4 }
0x2956   :  { %3967 = vrot.lane.b32.xlu0 %v13685_v62, %s12819_s7 }
0x29c4   :  { %v3860_v36 = vpop.permute.xlu1 %3859  ;;  %v3970_v0 = vpop.permute.xlu0 %3969 }
0x29c5   :  { %v3865_v63 = vsel %vm302_vm2, %v3860_v36, 0  ;;  %v3975_v25 = vsel %vm302_vm2, %v3970_v0, 0 }
0x29c6   :  { %11630 = vmatpush3.bf16.xpose.msra.mxu0 %v3865_v63 }
0x29c7   :  { %11641 = vmatprep.subr.bf16.mxu0 %v12816_v4 }
0x29c8   :  { %v3968_v57 = vpop.permute.xlu0 %3967 }
0x29cd   :  { %11632 = vmatmul.mubr.msk.bf16.vlgmr.msra.gmra.mrb[112].mxu0 %vm302_vm2, %v13685_v62 }
0x29ce   :  { %11642 = vmatpush3.bf16.xpose.msra.mxu0 %v3975_v25  ;;  %11643 = vmatprep.mubr.msk.bf16.mxu0 %vm12817_vm1, %v12816_v4 }
0x29cf   :  { %11653 = vmatprep.subr.bf16.mxu0 %v12816_v4 }
0x29d5   :  { %11644 = vmatmul.mubr.msk.bf16.vlgmr.msra.gmra.mrb[116].mxu0 %vm302_vm2, %v3968_v57 }
0x29d6   :  { %11655 = vmatprep.mubr.msk.bf16.mxu0 %vm12817_vm1, %v12816_v4  ;;  %11654 = vmatpush3.bf16.msra.mxu0 %v13734_v59 }
0x29d7   :  { %11665 = vmatprep.subr.bf16.mxu0 %v12816_v4 }
0x2a1b   :  { %v11074_v1 = vpop.f32.mrb[104].mxu1 }
0x2a1c   :  { %v11075_v5 = vpop.f32.mrb[105].mxu1 }
0x2a1d   :  { %v13701_v6 = vadd.f32 %v11075_v5, %v11074_v1  ;;  %v11077_v7 = vpop.f32.mrb[106].mxu1 }
0x2a1e   :  { %v11078_v32 = vpop.f32.mrb[107].mxu1 }
0x2a1f   :  { %v13703_v8 = vadd.f32 %v11078_v32, %v11077_v7 }
0x2aa0   :  { %v3901_v27 = vpop.f32.mrb[112].mxu0 }
0x2aa1   :  { %v3902_v20 = vadd.f32 %v3901_v27, %v13707_v24  ;;  %v11633_v34 = vpop.f32.mrb[113].mxu0 }
0x2aa2   :  { %v3904_v33 = vpop.f32.mrb[114].mxu0 }
0x2aa3   :  { %v11634_v37 = vpop.f32.mrb[115].mxu0  ;;  %v3907_v43 = vsel %vm349_vm5, %v3902_v20, -inf }
0x2aa4   :  { %3908 = vmax.xlane.f32.xlu0 %v3907_v43 }
0x2aa8   :  { %v4011_v38 = vpop.f32.mrb[116].mxu0 }
0x2aa9   :  { %v4012_v35 = vadd.f32 %v4011_v38, %v13707_v24  ;;  %v11645_v16 = vpop.f32.mrb[117].mxu0 }
0x2aaa   :  { %v4014_v42 = vpop.f32.mrb[118].mxu0 }
0x2aab   :  { %v11646_v13 = vpop.f32.mrb[119].mxu0  ;;  %v4017_v14 = vsel %vm349_vm5, %v4012_v35, -inf }
0x2aac   :  { %4018 = vmax.xlane.f32.xlu1 %v4017_v14 }
0x2abd   :  { %4179 = vrot.lane.b32.xlu1 %v13671_v17, %s12821_s13 }
0x2ac1   :  { %4177 = vrot.lane.b32.xlu1 %v13685_v62, %s12822_s11 }
0x2b31   :  { %v3909_v44 = vpop.xlane.xlu0 %3908 }
0x2b32   :  { %v3910_v30 = vsub.f32 %v3902_v20, %v3909_v44 }
0x2b34   :  { %v3911_v46 = vmul.f32 1.442695, %v3910_v30 }
0x2b36   :  { %12596 = vpow2.f32 %v3911_v46 }
0x2b39   :  { %v4019_v48 = vpop.xlane.xlu1 %4018 }
0x2b3a   :  { %v4020_v49 = vsub.f32 %v4012_v35, %v4019_v48 }
0x2b3c   :  { %v4021_v22 = vmul.f32 1.442695, %v4020_v49 }
0x2b3d   :  { %v4180_v57 = vpop.permute.xlu1 %4179 }
0x2b3e   :  { %12598 = vpow2.f32 %v4021_v22  ;;  %v4185_v9 = vsel %vm302_vm2, %v4180_v57, 0 }
0x2b40   :  { %v12597_v52 = vpop.eup %12596 }
0x2b41   :  { %v3913_v45 = vsel %vm349_vm5, %v12597_v52, 0.0  ;;  %v4178_v27 = vpop.permute.xlu1 %4177 }
0x2b42   :  { %3914 = vadd.xlane.f32.xlu0 %v3913_v45 }
0x2b48   :  { %v12599_v11 = vpop.eup %12598 }
0x2b49   :  { %v4023_v53 = vsel %vm349_vm5, %v12599_v11, 0.0 }
0x2b4a   :  { %4024 = vadd.xlane.f32.xlu0 %v4023_v53 }
0x2b60   :  { %4030 = vrot.lane.b32.xlu0 %v13675_v10, %s12819_s7 }
0x2bcf   :  { %v3915_v47 = vpop.xlane.xlu0 %3914 }
0x2bd0   :  { %12600 = vrcp.f32 %v3915_v47 }
0x2bd7   :  { %v4025_v54 = vpop.xlane.xlu0 %4024 }
0x2bd8   :  { %12602 = vrcp.f32 %v4025_v54 }
0x2bda   :  { %v12601_v55 = vpop.eup %12600 }
0x2bdb   :  { %v3917_v51 = vmul.f32 %v12601_v55, %v12597_v52  ;;  %v4031_v56 = vpop.permute.xlu0 %4030 }
0x2bdc   :  { %v4036_v58 = vsel %vm365_vm3, %v4031_v56, 0 }
0x2bdd   :  { %v3918_v28 = vpack.c.bf16 %v3917_v51, %v3917_v51 }
0x2bdf   :  { %11638 = vmatmul.mubr.msk.bf16.vlgmr.msra.gmra.mrb[108].mxu1 %vm349_vm5, %v3918_v28 }
0x2be0   :  { %11648 = vmatpush3.bf16.msra.mxu1 %v4036_v58  ;;  %11649 = vmatprep.mubr.msk.bf16.mxu1 %vm12817_vm1, %v12816_v4 }
0x2be1   :  { %11659 = vmatprep.subr.bf16.mxu1 %v12816_v4 }
0x2be2   :  { %v12603_v29 = vpop.eup %12602 }
0x2be3   :  { %v4027_v60 = vmul.f32 %v12603_v29, %v12599_v11 }
0x2be5   :  { %v4028_v50 = vpack.c.bf16 %v4027_v60, %v4027_v60 }
0x2be7   :  { %11650 = vmatmul.mubr.msk.bf16.vlgmr.msra.gmra.mrb[112].mxu1 %vm349_vm5, %v4028_v50 }
0x2be8   :  { %11661 = vmatprep.mubr.msk.bf16.mxu1 %vm12817_vm1, %v12816_v4  ;;  %11660 = vmatpush3.bf16.msra.mxu1 %v13730_v41 }
0x2be9   :  { %11671 = vmatprep.subr.bf16.mxu1 %v12816_v4 }
0x2cb2   :  { %v3959_v26 = vpop.f32.mrb[108].mxu1 }
0x2cb3   :  { %v3965_v36 = vpack.c.bf16 %v3959_v26, %v3959_v26  ;;  %v11639_v63 = vpop.f32.mrb[109].mxu1 }
0x2cb4   :  { %v3962_v0 = vpop.f32.mrb[110].mxu1 }
0x2cb5   :  { %v11640_v25 = vpop.f32.mrb[111].mxu1  ;;  %11662 = vmatmul.mubr.msk.bf16.vlgmr.msra.gmra.mrb[116].mxu1 %vm302_vm2, %v3965_v36 }
0x2cb6   :  { %11673 = vmatprep.mubr.msk.bf16.mxu1 %vm12817_vm1, %v12816_v4 }
0x2cba   :  { %v4072_v1 = vpop.f32.mrb[112].mxu1 }
0x2cbb   :  { %v4078_v5 = vpack.c.bf16 %v4072_v1, %v4072_v1  ;;  %v11651_v7 = vpop.f32.mrb[113].mxu1 }
0x2cbc   :  { %v4075_v32 = vpop.f32.mrb[114].mxu1  ;;  %v13783_v7 = vpack.c.bf16 %v13673_v61, %v13673_v61 }
0x2cbd   :  { %v11652_v19 = vpop.f32.mrb[115].mxu1  ;;  %11656 = vmatmul.mubr.msk.bf16.vlgmr.msra.gmra.mrb[120].mxu0 %vm302_vm2, %v4078_v5 }
0x2cbe   :  { %11666 = vmatpush3.bf16.xpose.msra.mxu0 %v4185_v9  ;;  %11667 = vmatprep.mubr.msk.bf16.mxu0 %vm12817_vm1, %v12816_v4 }
0x2cbf   :  { %11677 = vmatprep.subr.bf16.mxu0 %v12816_v4 }
0x2cc5   :  { %11668 = vmatmul.mubr.msk.bf16.vlgmr.msra.gmra.mrb[124].mxu0 %vm302_vm2, %v4178_v27 }
0x2cc6   :  { %11679 = vmatprep.mubr.msk.bf16.mxu0 %vm12817_vm1, %v12816_v4 }
0x2d88   :  { %v4171_v20 = vpop.f32.mrb[116].mxu1 }
0x2d89   :  { %v11663_v34 = vpop.f32.mrb[117].mxu1 }
0x2d8a   :  { %v4174_v33 = vpop.f32.mrb[118].mxu1  ;;  %v3845_v34 = vmul.f32 0.125, %v13673_v61 }
0x2d8b   :  { %v11664_v37 = vpop.f32.mrb[119].mxu1 }
0x2d8c   :  { %v13793_v33 = vpack.c.bf16 %v3845_v34, %v3845_v34 }
0x2d90   :  { %v4122_v43 = vpop.f32.mrb[120].mxu0 }
0x2d91   :  { %v13750_v38 = vadd.f32 %v4171_v20, %v4122_v43  ;;  %v11657_v35 = vpop.f32.mrb[121].mxu0 }
0x2d92   :  { %v4125_v16 = vpop.f32.mrb[122].mxu0 }
0x2d93   :  { %v11658_v42 = vpop.f32.mrb[123].mxu0  ;;  %v13801_v16 = vld [vmem:[%s14869_s25 + $0x18] sm:$0xff]  }
0x2d98   :  { %v4221_v13 = vpop.f32.mrb[124].mxu0 }
0x2d99   :  { %v4222_v14 = vadd.f32 %v4221_v13, %v13707_v24  ;;  %v11669_v44 = vpop.f32.mrb[125].mxu0 }
0x2d9a   :  { %v4224_v30 = vpop.f32.mrb[126].mxu0 }
0x2d9b   :  { %v11670_v46 = vpop.f32.mrb[127].mxu0  ;;  %v4227_v48 = vsel %vm349_vm5, %v4222_v14, -inf }
0x2d9c   :  { %4228 = vmax.xlane.f32.xlu0 %v4227_v48 }
0x2db2   :  { %4239 = vrot.lane.b32.xlu0 %v13675_v10, %s12822_s11 }
0x2db6   :  { %4338 = vrot.lane.b32.xlu0 %v13685_v62, %s12823_s15 }
0x2e29   :  { %v4229_v49 = vpop.xlane.xlu0 %4228 }
0x2e2a   :  { %v4230_v22 = vsub.f32 %v4222_v14, %v4229_v49 }
0x2e2c   :  { %v4231_v52 = vmul.f32 1.442695, %v4230_v22 }
0x2e2d   :  { %v4240_v45 = vpop.permute.xlu0 %4239 }
0x2e2e   :  { %12604 = vpow2.f32 %v4231_v52  ;;  %v4245_v11 = vsel %vm365_vm3, %v4240_v45, 0  ;;  %v13825_v45 = vpack.c.bf16 %v13677_v31, %v13677_v31 }
0x2e2f   :  { %11672 = vmatpush3.bf16.msra.mxu1 %v4245_v11 }
0x2e30   :  { %11683 = vmatprep.subr.bf16.mxu1 %v12816_v4 }
0x2e31   :  { %v4339_v58 = vpop.permute.xlu0 %4338 }
0x2e38   :  { %v12605_v53 = vpop.eup %12604 }
0x2e39   :  { %v4233_v47 = vsel %vm349_vm5, %v12605_v53, 0.0 }
0x2e3a   :  { %4234 = vadd.xlane.f32.xlu1 %v4233_v47 }
0x2e4b   :  { %4340 = vrot.lane.b32.xlu1 %v13671_v17, %s12824_s16  ;;  %v13772_v17 = vld [vmem:[%s14869_s25 + $0x10] sm:$0xff]  }
0x2e4c   :  { %11678 = vmatpush3.bf16.msra.mxu0 %v13772_v17 }
0x2e4d   :  { %11689 = vmatprep.subr.bf16.mxu0 %v12816_v4 }
0x2ec7   :  { %v4235_v54 = vpop.xlane.xlu1 %4234 }
0x2ec8   :  { %12606 = vrcp.f32 %v4235_v54 }
0x2ecb   :  { %v4341_v51 = vpop.permute.xlu1 %4340 }
0x2ecc   :  { %v4346_v28 = vsel %vm302_vm2, %v4341_v51, 0 }
0x2ed2   :  { %v12607_v62 = vpop.eup %12606 }
0x2ed3   :  { %v4237_v55 = vmul.f32 %v12607_v62, %v12605_v53 }
0x2ed5   :  { %v4238_v56 = vpack.c.bf16 %v4237_v55, %v4237_v55  ;;  %v4574_v55 = vsel %vm365_vm3, %v13825_v45, 0 }
0x2ed7   :  { %11674 = vmatmul.mubr.msk.bf16.vlgmr.msra.gmra.mrb[120].mxu1 %vm349_vm5, %v4238_v56 }
0x2ed8   :  { %11684 = vmatpush3.bf16.xpose.msra.mxu1 %v4346_v28  ;;  %11685 = vmatprep.mubr.msk.bf16.mxu1 %vm12817_vm1, %v12816_v4 }
0x2ed9   :  { %11695 = vmatprep.subr.bf16.mxu1 %v12816_v4 }
0x2edf   :  { %11686 = vmatmul.mubr.msk.bf16.vlgmr.msra.gmra.mrb[124].mxu1 %vm302_vm2, %v4339_v58 }
0x2ee0   :  { %11697 = vmatprep.mubr.msk.bf16.mxu1 %vm12817_vm1, %v12816_v4  ;;  %11696 = vmatpush3.bf16.msra.mxu1 %v13801_v16 }
0x2ee1   :  { %11707 = vmatprep.subr.bf16.mxu1 %v12816_v4 }
0x2faa   :  { %v4281_v29 = vpop.f32.mrb[120].mxu1 }
0x2fab   :  { %v4287_v60 = vpack.c.bf16 %v4281_v29, %v4281_v29  ;;  %v11675_v50 = vpop.f32.mrb[121].mxu1 }
0x2fac   :  { %v4284_v26 = vpop.f32.mrb[122].mxu1 }
0x2fad   :  { %v11676_v36 = vpop.f32.mrb[123].mxu1  ;;  %11680 = vmatmul.mubr.msk.bf16.vlgmr.msra.gmra.mrb[128].mxu0 %vm302_vm2, %v4287_v60 }
0x2fae   :  { %11691 = vmatprep.mubr.msk.bf16.mxu0 %vm12817_vm1, %v12816_v4 }
0x2fb2   :  { %v4382_v63 = vpop.f32.mrb[124].mxu1 }
0x2fb3   :  { %v4383_v0 = vadd.f32 %v4382_v63, %v13707_v24  ;;  %v11687_v25 = vpop.f32.mrb[125].mxu1 }
0x2fb4   :  { %v4385_v57 = vpop.f32.mrb[126].mxu1 }
0x2fb5   :  { %v11688_v1 = vpop.f32.mrb[127].mxu1  ;;  %v4388_v5 = vsel %vm349_vm5, %v4383_v0, -inf }
0x2fb6   :  { %4389 = vmax.xlane.f32.xlu1 %v4388_v5 }
0x2fc7   :  { %4510 = vrot.lane.b32.xlu1 %v13783_v7, %s12818_s0 }
0x2fcb   :  { %4620 = vrot.lane.b32.xlu1 %v13783_v7, %s12820_s10 }
0x3043   :  { %v4390_v32 = vpop.xlane.xlu1 %4389 }
0x3044   :  { %v4391_v9 = vsub.f32 %v4383_v0, %v4390_v32 }
0x3046   :  { %v4392_v19 = vmul.f32 1.442695, %v4391_v9 }
0x3047   :  { %v4511_v30 = vpop.permute.xlu1 %4510 }
0x3048   :  { %12608 = vpow2.f32 %v4392_v19  ;;  %v4516_v48 = vsel %vm302_vm2, %v4511_v30, 0 }
0x304b   :  { %v4621_v49 = vpop.permute.xlu1 %4620 }
0x304c   :  { %v4626_v22 = vsel %vm302_vm2, %v4621_v49, 0 }
0x3052   :  { %v12609_v27 = vpop.eup %12608 }
0x3053   :  { %v4394_v20 = vsel %vm349_vm5, %v12609_v27, 0.0 }
0x3054   :  { %4395 = vadd.xlane.f32.xlu0 %v4394_v20 }
0x306a   :  { %4400 = vrot.lane.b32.xlu0 %v13675_v10, %s12823_s15 }
0x306e   :  { %4618 = vrot.lane.b32.xlu0 %v13793_v33, %s12819_s7 }
0x3080   :  { %v4331_v37 = vpop.f32.mrb[128].mxu0 }
0x3081   :  { %v13798_v43 = vadd.f32 %v4331_v37, %v13750_v38  ;;  %v11681_v35 = vpop.f32.mrb[129].mxu0 }
0x3082   :  { %v4334_v42 = vpop.f32.mrb[130].mxu0 }
0x3083   :  { %v11682_v13 = vpop.f32.mrb[131].mxu0 }
0x30e1   :  { %v4396_v61 = vpop.xlane.xlu0 %4395 }
0x30e2   :  { %12610 = vrcp.f32 %v4396_v61 }
0x30e5   :  { %v4401_v10 = vpop.permute.xlu0 %4400 }
0x30e6   :  { %v4406_v14 = vsel %vm365_vm3, %v4401_v10, 0 }
0x30e7   :  { %11690 = vmatpush3.bf16.msra.mxu0 %v4406_v14 }
0x30e8   :  { %11701 = vmatprep.subr.bf16.mxu0 %v12816_v4 }
0x30e9   :  { %v4619_v52 = vpop.permute.xlu0 %4618 }
0x30ec   :  { %v12611_v44 = vpop.eup %12610 }
0x30ed   :  { %v4398_v38 = vmul.f32 %v12611_v44, %v12609_v27 }
0x30ef   :  { %v4399_v46 = vpack.c.bf16 %v4398_v38, %v4398_v38 }
0x30f1   :  { %11692 = vmatmul.mubr.msk.bf16.vlgmr.msra.gmra.mrb[132].mxu0 %vm349_vm5, %v4399_v46 }
0x30f2   :  { %11702 = vmatpush3.bf16.xpose.msra.mxu0 %v4516_v48  ;;  %11703 = vmatprep.mubr.msk.bf16.mxu0 %vm12817_vm1, %v12816_v4 }
0x30f3   :  { %11713 = vmatprep.subr.bf16.mxu0 %v12816_v4 }
0x30f9   :  { %11704 = vmatmul.mubr.msk.bf16.vlgmr.msra.gmra.mrb[136].mxu0 %vm302_vm2, %v13793_v33 }
0x30fa   :  { %11714 = vmatpush3.bf16.xpose.msra.mxu0 %v4626_v22  ;;  %11715 = vmatprep.mubr.msk.bf16.mxu0 %vm12817_vm1, %v12816_v4 }
0x30fb   :  { %11725 = vmatprep.subr.bf16.mxu0 %v12816_v4 }
0x3101   :  { %11716 = vmatmul.mubr.msk.bf16.vlgmr.msra.gmra.mrb[140].mxu0 %vm302_vm2, %v4619_v52 }
0x3102   :  { %11726 = vmatpush3.bf16.msra.mxu0 %v13734_v59  ;;  %11727 = vmatprep.mubr.msk.bf16.mxu0 %vm12817_vm1, %v12816_v4 }
0x3103   :  { %11737 = vmatprep.subr.bf16.mxu0 %v12816_v4 }
0x31c4   :  { %v4442_v11 = vpop.f32.mrb[132].mxu0 }
0x31c5   :  { %v4448_v53 = vpack.c.bf16 %v4442_v11, %v4442_v11  ;;  %v11693_v47 = vpop.f32.mrb[133].mxu0 }
0x31c6   :  { %v4445_v54 = vpop.f32.mrb[134].mxu0 }
0x31c7   :  { %v11694_v62 = vpop.f32.mrb[135].mxu0  ;;  %11698 = vmatmul.mubr.msk.bf16.vlgmr.msra.gmra.mrb[128].mxu1 %vm302_vm2, %v4448_v53 }
0x31c8   :  { %11708 = vmatpush3.bf16.msra.mxu1 %v4574_v55  ;;  %11709 = vmatprep.mubr.msk.bf16.mxu1 %vm12817_vm1, %v12816_v4 }
0x31c9   :  { %11719 = vmatprep.subr.bf16.mxu1 %v12816_v4 }
0x31cc   :  { %v4552_v59 = vpop.f32.mrb[136].mxu0 }
0x31cd   :  { %v4553_v31 = vadd.f32 %v4552_v59, %v13707_v24  ;;  %v11705_v51 = vpop.f32.mrb[137].mxu0 }
0x31ce   :  { %v4555_v56 = vpop.f32.mrb[138].mxu0 }
0x31cf   :  { %v11706_v28 = vpop.f32.mrb[139].mxu0  ;;  %v4558_v58 = vsel %vm349_vm5, %v4553_v31, -inf }
0x31d0   :  { %4559 = vmax.xlane.f32.xlu1 %v4558_v58 }
0x31d4   :  { %v4662_v29 = vpop.f32.mrb[140].mxu0 }
0x31d5   :  { %v4663_v60 = vadd.f32 %v4662_v29, %v13707_v24  ;;  %v11717_v50 = vpop.f32.mrb[141].mxu0 }
0x31d6   :  { %v4665_v26 = vpop.f32.mrb[142].mxu0 }
0x31d7   :  { %v11718_v36 = vpop.f32.mrb[143].mxu0  ;;  %v4668_v63 = vsel %vm349_vm5, %v4663_v60, -inf }
0x31d8   :  { %4669 = vmax.xlane.f32.xlu0 %v4668_v63 }
0x325d   :  { %v4560_v0 = vpop.xlane.xlu1 %4559 }
0x325e   :  { %v4561_v25 = vsub.f32 %v4553_v31, %v4560_v0 }
0x3260   :  { %v4562_v57 = vmul.f32 1.442695, %v4561_v25 }
0x3262   :  { %12612 = vpow2.f32 %v4562_v57 }
0x3265   :  { %v4670_v1 = vpop.xlane.xlu0 %4669 }
0x3266   :  { %v4671_v5 = vsub.f32 %v4663_v60, %v4670_v1 }
0x3268   :  { %v4672_v32 = vmul.f32 1.442695, %v4671_v5 }
0x326a   :  { %12614 = vpow2.f32 %v4672_v32 }
0x326c   :  { %v12613_v9 = vpop.eup %12612 }
0x326d   :  { %v4564_v19 = vsel %vm349_vm5, %v12613_v9, 0.0 }
0x326e   :  { %4565 = vadd.xlane.f32.xlu0 %v4564_v19 }
0x3274   :  { %v12615_v27 = vpop.eup %12614 }
0x3275   :  { %v4674_v20 = vsel %vm349_vm5, %v12615_v27, 0.0 }
0x3276   :  { %4675 = vadd.xlane.f32.xlu1 %v4674_v20 }
0x3284   :  { %4681 = vrot.lane.b32.xlu0 %v13825_v45, %s12819_s7 }
0x3287   :  { %4818 = vrot.lane.b32.xlu1 %v13783_v7, %s12821_s13 }
0x328b   :  { %4816 = vrot.lane.b32.xlu1 %v13793_v33, %s12822_s11 }
0x329a   :  { %v4492_v34 = vpop.f32.mrb[128].mxu1 }
0x329b   :  { %v13846_v37 = vadd.f32 %v4492_v34, %v13798_v43  ;;  %v11699_v35 = vpop.f32.mrb[129].mxu1 }
0x329c   :  { %v4495_v42 = vpop.f32.mrb[130].mxu1 }
0x329d   :  { %v11700_v13 = vpop.f32.mrb[131].mxu1 }
0x32fb   :  { %v4566_v61 = vpop.xlane.xlu0 %4565 }
0x32fc   :  { %12616 = vrcp.f32 %v4566_v61 }
0x32ff   :  { %v4682_v38 = vpop.permute.xlu0 %4681 }
0x3300   :  { %v4687_v46 = vsel %vm365_vm3, %v4682_v38, 0 }
0x3303   :  { %v4676_v10 = vpop.xlane.xlu1 %4675 }
0x3304   :  { %12618 = vrcp.f32 %v4676_v10 }
0x3306   :  { %v12617_v14 = vpop.eup %12616 }
0x3307   :  { %v4568_v44 = vmul.f32 %v12617_v14, %v12613_v9  ;;  %v4819_v54 = vpop.permute.xlu1 %4818 }
0x3308   :  { %v4824_v31 = vsel %vm302_vm2, %v4819_v54, 0 }
0x3309   :  { %v4569_v30 = vpack.c.bf16 %v4568_v44, %v4568_v44 }
0x330b   :  { %11710 = vmatmul.mubr.msk.bf16.vlgmr.msra.gmra.mrb[132].mxu1 %vm349_vm5, %v4569_v30  ;;  %v4817_v56 = vpop.permute.xlu1 %4816 }
0x330c   :  { %11720 = vmatpush3.bf16.msra.mxu1 %v4687_v46  ;;  %11721 = vmatprep.mubr.msk.bf16.mxu1 %vm12817_vm1, %v12816_v4 }
0x330d   :  { %11731 = vmatprep.subr.bf16.mxu1 %v12816_v4 }
0x330e   :  { %v12619_v43 = vpop.eup %12618 }
0x330f   :  { %v4678_v48 = vmul.f32 %v12619_v43, %v12615_v27 }
0x3311   :  { %v4679_v49 = vpack.c.bf16 %v4678_v48, %v4678_v48 }
0x3313   :  { %11722 = vmatmul.mubr.msk.bf16.vlgmr.msra.gmra.mrb[136].mxu1 %vm349_vm5, %v4679_v49  ;;  %v10600_v49 = vld [vmem:[%s12897_s30 + $0x1] ss:$0 sm:$0xff]  ;;  %s14876_s30 = sld [smem:[#allocation13_spill]] }
0x3314   :  { %11732 = vmatpush3.bf16.msra.mxu1 %v13730_v41  ;;  %11733 = vmatprep.mubr.msk.bf16.mxu1 %vm12817_vm1, %v12816_v4 }
0x3315   :  { %11743 = vmatprep.subr.bf16.mxu1 %v12816_v4 }
0x33de   :  { %v4610_v22 = vpop.f32.mrb[132].mxu1 }
0x33df   :  { %v4616_v52 = vpack.c.bf16 %v4610_v22, %v4610_v22  ;;  %v11711_v11 = vpop.f32.mrb[133].mxu1  ;;  %v3686_v22 = vadd.f32 %v13701_v6, %v10600_v49 }
0x33e0   :  { %v4613_v53 = vpop.f32.mrb[134].mxu1 }
0x33e1   :  { %v11712_v47 = vpop.f32.mrb[135].mxu1  ;;  %11734 = vmatmul.mubr.msk.bf16.vlgmr.msra.gmra.mrb[140].mxu1 %vm302_vm2, %v4616_v52 }
0x33e2   :  { %11745 = vmatprep.mubr.msk.bf16.mxu1 %vm12817_vm1, %v12816_v4  ;;  %v3689_v47 = vadd.f32 %v13703_v8, %v10600_v49 }
0x33e4   :  { %v3693_v6 = vadd.f32 %v3689_v47, %v13632_v3  ;;  %v12421_v47 = vld [vmem:[%s14871_s3 + $0x8] sm:$0xff]  }
0x33e6   :  { %v4723_v62 = vpop.f32.mrb[136].mxu1 }
0x33e7   :  { %v4729_v55 = vpack.c.bf16 %v4723_v62, %v4723_v62  ;;  %v11723_v59 = vpop.f32.mrb[137].mxu1 }
0x33e8   :  { %v4726_v41 = vpop.f32.mrb[138].mxu1  ;;  %v10644_v59 = vld [vmem:[%s14870_s29] ss:$0 sm:$0xff] }
0x33e9   :  { %v11724_v51 = vpop.f32.mrb[139].mxu1  ;;  %11728 = vmatmul.mubr.msk.bf16.vlgmr.msra.gmra.mrb[144].mxu0 %vm302_vm2, %v4729_v55  ;;  %v3692_v55 = vadd.f32 %v3686_v22, %v13630_v39  ;;  %v4505_v41 = vadd.f32 %v10644_v59, %v13846_v37 }
0x33ea   :  { %11738 = vmatpush3.bf16.xpose.msra.mxu0 %v4824_v31  ;;  %11739 = vmatprep.mubr.msk.bf16.mxu0 %vm12817_vm1, %v12816_v4  ;;  %v3697_v51 = vsel %vm238_vm0, %v3693_v6, 0.0 }
0x33eb   :  { %11749 = vmatprep.subr.bf16.mxu0 %v12816_v4  ;;  %v3694_v31 = vsel %vm238_vm0, %v3692_v55, 0.0 }
0x33f1   :  { %11740 = vmatmul.mubr.msk.bf16.vlgmr.msra.gmra.mrb[148].mxu0 %vm302_vm2, %v4817_v56  ;;  %v5127_v56 = vadd.f32 %v4505_v41, %v13646_v21 }
0x33f2   :  { %11750 = vmatpush3.bf16.msra.mxu0 %v13772_v17  ;;  %11751 = vmatprep.mubr.msk.bf16.mxu0 %vm12817_vm1, %v12816_v4 }
0x33f3   :  { %11761 = vmatprep.subr.bf16.mxu0 %v12816_v4  ;;  %v5131_v8 = vsel %vm238_vm0, %v5127_v56, 0.0 }
0x34b4   :  { %v4810_v28 = vpop.f32.mrb[140].mxu1 }
0x34b5   :  { %v11735_v58 = vpop.f32.mrb[141].mxu1 }
0x34b6   :  { %v4813_v29 = vpop.f32.mrb[142].mxu1 }
0x34b7   :  { %v11736_v60 = vpop.f32.mrb[143].mxu1 }
0x34bc   :  { %v4767_v50 = vpop.f32.mrb[144].mxu0 }
0x34bd   :  { %v13871_v26 = vadd.f32 %v4810_v28, %v4767_v50  ;;  %v11729_v36 = vpop.f32.mrb[145].mxu0 }
0x34be   :  { %v4770_v63 = vpop.f32.mrb[146].mxu0 }
0x34bf   :  { %v11730_v0 = vpop.f32.mrb[147].mxu0 }
0x34c4   :  { %v4860_v25 = vpop.f32.mrb[148].mxu0 }
0x34c5   :  { %v4861_v57 = vadd.f32 %v4860_v25, %v13707_v24  ;;  %v11741_v1 = vpop.f32.mrb[149].mxu0 }
0x34c6   :  { %v4863_v17 = vpop.f32.mrb[150].mxu0 }
0x34c7   :  { %v11742_v5 = vpop.f32.mrb[151].mxu0  ;;  %v4866_v32 = vsel %vm349_vm5, %v4861_v57, -inf }
0x34c8   :  { %4867 = vmax.xlane.f32.xlu0 %v4866_v32 }
0x34de   :  { %4878 = vrot.lane.b32.xlu0 %v13825_v45, %s12822_s11 }
0x34e2   :  { %4971 = vrot.lane.b32.xlu0 %v13793_v33, %s12823_s15 }
0x3555   :  { %v4868_v9 = vpop.xlane.xlu0 %4867 }
0x3556   :  { %v4869_v19 = vsub.f32 %v4861_v57, %v4868_v9 }
0x3558   :  { %v4870_v27 = vmul.f32 1.442695, %v4869_v19 }
0x3559   :  { %v4879_v20 = vpop.permute.xlu0 %4878 }
0x355a   :  { %12620 = vpow2.f32 %v4870_v27  ;;  %v4884_v34 = vsel %vm365_vm3, %v4879_v20, 0 }
0x355b   :  { %11744 = vmatpush3.bf16.msra.mxu1 %v4884_v34 }
0x355c   :  { %11755 = vmatprep.subr.bf16.mxu1 %v12816_v4 }
0x355d   :  { %v4972_v38 = vpop.permute.xlu0 %4971 }
0x3564   :  { %v12621_v35 = vpop.eup %12620 }
0x3565   :  { %v4872_v42 = vsel %vm349_vm5, %v12621_v35, 0.0 }
0x3566   :  { %4873 = vadd.xlane.f32.xlu1 %v4872_v42 }
0x3577   :  { %4973 = vrot.lane.b32.xlu1 %v13783_v7, %s12824_s16 }
0x35f3   :  { %v4874_v13 = vpop.xlane.xlu1 %4873 }
0x35f4   :  { %12622 = vrcp.f32 %v4874_v13 }
0x35f7   :  { %v4974_v10 = vpop.permute.xlu1 %4973 }
0x35f8   :  { %v4979_v44 = vsel %vm302_vm2, %v4974_v10, 0 }
0x35fe   :  { %v12623_v33 = vpop.eup %12622 }
0x35ff   :  { %v4876_v61 = vmul.f32 %v12623_v33, %v12621_v35 }
0x3601   :  { %v4877_v14 = vpack.c.bf16 %v4876_v61, %v4876_v61 }
0x3603   :  { %11746 = vmatmul.mubr.msk.bf16.vlgmr.msra.gmra.mrb[144].mxu1 %vm349_vm5, %v4877_v14 }
0x3604   :  { %11756 = vmatpush3.bf16.xpose.msra.mxu1 %v4979_v44  ;;  %11757 = vmatprep.mubr.msk.bf16.mxu1 %vm12817_vm1, %v12816_v4 }
0x3605   :  { %11767 = vmatprep.subr.bf16.mxu1 %v12816_v4 }
0x360b   :  { %11758 = vmatmul.mubr.msk.bf16.vlgmr.msra.gmra.mrb[148].mxu1 %vm302_vm2, %v4972_v38 }
0x360c   :  { %11768 = vmatpush3.bf16.msra.mxu1 %v13801_v16  ;;  %11769 = vmatprep.mubr.msk.bf16.mxu1 %vm12817_vm1, %v12816_v4 }
0x360d   :  { %11785 = vmatprep.subr.bf16.mxu1 %v12816_v4 }
0x36d6   :  { %v4920_v7 = vpop.f32.mrb[144].mxu1 }
0x36d7   :  { %v4926_v30 = vpack.c.bf16 %v4920_v7, %v4920_v7  ;;  %v11747_v46 = vpop.f32.mrb[145].mxu1 }
0x36d8   :  { %v4923_v43 = vpop.f32.mrb[146].mxu1 }
0x36d9   :  { %v11748_v48 = vpop.f32.mrb[147].mxu1  ;;  %11752 = vmatmul.mubr.msk.bf16.vlgmr.msra.gmra.mrb[152].mxu0 %vm302_vm2, %v4926_v30 }
0x36da   :  { %11763 = vmatprep.mubr.msk.bf16.mxu0 %vm12817_vm1, %v12816_v4 }
0x36de   :  { %v5015_v16 = vpop.f32.mrb[148].mxu1 }
0x36df   :  { %v5016_v52 = vadd.f32 %v5015_v16, %v13707_v24  ;;  %v11759_v11 = vpop.f32.mrb[149].mxu1 }
0x36e0   :  { %v5018_v53 = vpop.f32.mrb[150].mxu1 }
0x36e1   :  { %v11760_v54 = vpop.f32.mrb[151].mxu1  ;;  %v5021_v62 = vsel %vm349_vm5, %v5016_v52, -inf  ;;  %v12420_v53 = vld [vmem:[%s14871_s3] sm:$0xff]  }
0x36e2   :  { %5022 = vmax.xlane.f32.xlu1 %v5021_v62  ;;  %v12423_v54 = vld [vmem:[%s14871_s3 + $0x18] sm:$0xff]  }
0x36e6   :  { %3695 = vadd.xlane.f32.xlu1 %v3694_v31 }
0x36ea   :  { %3698 = vadd.xlane.f32.xlu1 %v3697_v51 }
0x36ee   :  { %5132 = vadd.xlane.f32.xlu1 %v5131_v8 }
0x376f   :  { %v5023_v28 = vpop.xlane.xlu1 %5022 }
0x3770   :  { %v5024_v58 = vsub.f32 %v5016_v52, %v5023_v28 }
0x3772   :  { %v5025_v39 = vmul.f32 1.442695, %v5024_v58 }
0x3773   :  { %v3696_v3 = vpop.xlane.xlu1 %3695 }
0x3774   :  { %12624 = vpow2.f32 %v5025_v39  ;;  %v3700_v33 = vmul.f32 0.015625, %v3696_v3 }
0x3776   :  { %v3702_v38 = vsub.f32 %v3692_v55, %v3700_v33 }
0x3777   :  { %v3699_v60 = vpop.xlane.xlu1 %3698 }
0x3778   :  { %v3701_v7 = vmul.f32 0.015625, %v3699_v60  ;;  %v3704_v22 = vmul.f32 %v3702_v38, %v3702_v38 }
0x377a   :  { %v3703_v48 = vsub.f32 %v3693_v6, %v3701_v7  ;;  %v3706_v16 = vsel %vm238_vm0, %v3704_v22, 0.0 }
0x377b   :  { %v5133_v50 = vpop.xlane.xlu1 %5132 }
0x377c   :  { %v5137_v36 = vmul.f32 0.015625, %v5133_v50  ;;  %v3705_v52 = vmul.f32 %v3703_v48, %v3703_v48 }
0x377e   :  { %v12625_v29 = vpop.eup %12624  ;;  %v13913_v21 = vsub.f32 %v5127_v56, %v5137_v36  ;;  %v3709_v11 = vsel %vm238_vm0, %v3705_v52, 0.0  ;;  %v10618_v36 = vld [vmem:[%s12907_s12 + $0x1] ss:$0 sm:$0xff]  ;;  %s14878_s12 = sld [smem:[#allocation17_spill]] }
0x377f   :  { %v5027_v37 = vsel %vm349_vm5, %v12625_v29, 0.0 }
0x3780   :  { %5028 = vadd.xlane.f32.xlu0 %v5027_v37  ;;  %v5141_v17 = vmul.f32 %v13913_v21, %v13913_v21  ;;  %v10617_v37 = vld [vmem:[%s12902_s6 + $0x1] ss:$0 sm:$0xff]  ;;  %s14877_s6 = sld [smem:[#allocation16_spill]] }
0x3782   :  { %v5143_v5 = vsel %vm238_vm0, %v5141_v17, 0.0  ;;  %v12425_v17 = vld [vmem:[%s14872_s8 + $0x8] sm:$0xff]  }
0x3796   :  { %5033 = vrot.lane.b32.xlu0 %v13825_v45, %s12823_s15 }
0x37ac   :  { %v4964_v63 = vpop.f32.mrb[152].mxu0 }
0x37ad   :  { %v4970_v0 = vadd.f32 %v4964_v63, %v13871_v26  ;;  %v11753_v25 = vpop.f32.mrb[153].mxu0 }
0x37ae   :  { %v4967_v57 = vpop.f32.mrb[154].mxu0 }
0x37af   :  { %v11754_v1 = vpop.f32.mrb[155].mxu0  ;;  %v12424_v57 = vld [vmem:[%s14872_s8] sm:$0xff]  }
0x37b5   :  { %5144 = vadd.xlane.f32.xlu0 %v5143_v5  ;;  %v12426_v5 = vld [vmem:[%s14872_s8 + $0x10] sm:$0xff]  }
0x380d   :  { %v5029_v32 = vpop.xlane.xlu0 %5028 }
0x380e   :  { %12626 = vrcp.f32 %v5029_v32  ;;  %v12427_v32 = vld [vmem:[%s14872_s8 + $0x18] sm:$0xff]  }
0x3811   :  { %v5034_v45 = vpop.permute.xlu0 %5033 }
0x3812   :  { %v5039_v9 = vsel %vm365_vm3, %v5034_v45, 0 }
0x3813   :  { %11762 = vmatpush3.bf16.msra.mxu0 %v5039_v9 }
0x3814   :  { %11773 = vmatprep.subr.bf16.mxu0 %v12816_v4 }
0x3818   :  { %v12627_v19 = vpop.eup %12626 }
0x3819   :  { %v5031_v27 = vmul.f32 %v12627_v19, %v12625_v29 }
0x381b   :  { %v5032_v26 = vpack.c.bf16 %v5031_v27, %v5031_v27 }
0x381d   :  { %11764 = vmatmul.mubr.msk.bf16.vlgmr.msra.gmra.mrb[156].mxu0 %vm349_vm5, %v5032_v26 }
0x381e   :  { %11781 = vmatprep.mubr.msk.bf16.mxu0 %vm12817_vm1, %v12816_v4  ;;  %11774 = vmatpush3.bf16.msra.mxu0 %v12424_v57 }
0x381f   :  { %11775 = vmatprep.subr.bf16.mxu0 %v12816_v4 }
0x3822   :  { %11776 = vmatpush3.bf16.msra.mxu0 %v12425_v17 }
0x3823   :  { %11777 = vmatprep.subr.bf16.mxu0 %v12816_v4 }
0x3826   :  { %11778 = vmatpush3.bf16.msra.mxu0 %v12426_v5 }
0x3827   :  { %11779 = vmatprep.subr.bf16.mxu0 %v12816_v4 }
0x382a   :  { %11780 = vmatpush3.bf16.msra.mxu0 %v12427_v32 }
0x382b   :  { %11797 = vmatprep.subr.bf16.mxu0 %v12816_v4 }
0x3842   :  { %v5145_v45 = vpop.xlane.xlu0 %5144 }
0x3843   :  { %v5149_v9 = vmul.f32 0.015625, %v5145_v45 }
0x3845   :  { %v5151_v19 = vadd.f32 1e-05, %v5149_v9 }
0x38f0   :  { %v5075_v20 = vpop.f32.mrb[156].mxu0 }
0x38f1   :  { %v5081_v34 = vpack.c.bf16 %v5075_v20, %v5075_v20  ;;  %v11765_v35 = vpop.f32.mrb[157].mxu0 }
0x38f2   :  { %v5078_v42 = vpop.f32.mrb[158].mxu0 }
0x38f3   :  { %v11766_v13 = vpop.f32.mrb[159].mxu0  ;;  %11770 = vmatmul.mubr.msk.bf16.vlgmr.msra.gmra.mrb[152].mxu1 %vm302_vm2, %v5081_v34  ;;  %v10657_v42 = vld [vmem:[%s14873_s14] ss:$0 sm:$0xff] }
0x38f4   :  { %11793 = vmatprep.mubr.msk.bf16.mxu1 %vm12817_vm1, %v12816_v4  ;;  %11786 = vmatpush3.bf16.msra.mxu1 %v12420_v53 }
0x38f5   :  { %11787 = vmatprep.subr.bf16.mxu1 %v12816_v4 }
0x38f8   :  { %11788 = vmatpush3.bf16.msra.mxu1 %v12421_v47 }
0x38f9   :  { %11789 = vmatprep.subr.bf16.mxu1 %v12816_v4 }
0x39c6   :  { %v5119_v61 = vpop.f32.mrb[152].mxu1 }
0x39c7   :  { %v5125_v10 = vadd.f32 %v5119_v61, %v4970_v0  ;;  %v11771_v14 = vpop.f32.mrb[153].mxu1 }
0x39c8   :  { %v5122_v44 = vpop.f32.mrb[154].mxu1 }
0x39c9   :  { %v5126_v30 = vadd.f32 %v10644_v59, %v5125_v10  ;;  %v11772_v46 = vpop.f32.mrb[155].mxu1  ;;  %v10658_v10 = vld [vmem:[%s14874_s19] ss:$0 sm:$0xff] }
0x39cb   :  { %v5128_v43 = vadd.f32 %v5126_v30, %v13649_v23  ;;  %v12422_v23 = vld [vmem:[%s14871_s3 + $0x10] sm:$0xff]  }
0x39cc   :  { %11790 = vmatpush3.bf16.msra.mxu1 %v12422_v23 }
0x39cd   :  { %v5134_v49 = vsel %vm238_vm0, %v5128_v43, 0.0  ;;  %11791 = vmatprep.subr.bf16.mxu1 %v12816_v4 }
0x39ce   :  { %5135 = vadd.xlane.f32.xlu1 %v5134_v49 }
0x39d0   :  { %11792 = vmatpush3.bf16.msra.mxu1 %v12423_v54 }
0x39d1   :  { %11803 = vmatprep.subr.bf16.mxu1 %v12816_v4 }
0x39d2   :  { %3707 = vadd.xlane.f32.xlu1 %v3706_v16 }
0x39d6   :  { %3710 = vadd.xlane.f32.xlu1 %v3709_v11  ;;  %v10659_v11 = vld [vmem:[%s14876_s30] ss:$0 sm:$0xff] }
0x3a5b   :  { %v5136_v62 = vpop.xlane.xlu1 %5135 }
0x3a5c   :  { %v5138_v55 = vmul.f32 0.015625, %v5136_v62 }
0x3a5e   :  { %v5140_v59 = vsub.f32 %v5128_v43, %v5138_v55 }
0x3a5f   :  { %v3708_v41 = vpop.xlane.xlu1 %3707 }
0x3a60   :  { %v3712_v31 = vmul.f32 0.015625, %v3708_v41  ;;  %v5142_v6 = vmul.f32 %v5140_v59, %v5140_v59 }
0x3a62   :  { %v3714_v51 = vadd.f32 1e-05, %v3712_v31  ;;  %v5146_v56 = vsel %vm238_vm0, %v5142_v6, 0.0 }
0x3a63   :  { %5147 = vadd.xlane.f32.xlu1 %v5146_v56  ;;  %v3711_v8 = vpop.xlane.xlu1 %3710 }
0x3a64   :  { %12628 = vrsqrt.f32 %v3714_v51  ;;  %v3713_v28 = vmul.f32 0.015625, %v3711_v8 }
0x3a66   :  { %v3715_v58 = vadd.f32 1e-05, %v3713_v28 }
0x3a68   :  { %12630 = vrsqrt.f32 %v3715_v58 }
0x3a69   :  { %12632 = vrsqrt.f32 %v5151_v19 }
0x3a6e   :  { %v12629_v39 = vpop.eup %12628 }
0x3a6f   :  { %v3718_v29 = vmul.f32 %v12629_v39, %v3702_v38 }
0x3a71   :  { %v3726_v60 = vmul.f32 %v10617_v37, %v3718_v29 }
0x3a72   :  { %v12631_v3 = vpop.eup %12630 }
0x3a73   :  { %v3719_v50 = vmul.f32 %v12631_v3, %v3703_v48  ;;  %v3734_v0 = vadd.f32 %v10618_v36, %v3726_v60  ;;  %v12633_v34 = vpop.eup %12632 }
0x3a74   :  { %v5155_v35 = vmul.f32 %v12633_v34, %v13913_v21  ;;  %v10665_v21 = vld [vmem:[%s14875_s24] ss:$0 sm:$0xff] }
0x3a75   :  { %v3727_v63 = vmul.f32 %v10617_v37, %v3719_v50 }
0x3a76   :  { %v5163_v33 = vmul.f32 %v10657_v42, %v5155_v35 }
0x3a77   :  { %v3735_v25 = vadd.f32 %v10618_v36, %v3727_v63 }
0x3a78   :  { %v13959_v44 = vadd.f32 %v10658_v10, %v5163_v33 }
0x3a79   :  { %v13943_v1 = vpack.c.bf16 %v3735_v25, %v3734_v0 }
0x3a7b   :  { %11794 = vmatmul.mubr.msk.bf16.vlgmr.msra.gmra.mrb[156].mxu1 %vm238_vm0, %v13943_v1 }
0x3a7c   :  { %11805 = vmatprep.mubr.msk.bf16.mxu1 %vm12817_vm1, %v12816_v4 }
0x3af0   :  { %v5148_v27 = vpop.xlane.xlu1 %5147 }
0x3af1   :  { %v5150_v26 = vmul.f32 0.015625, %v5148_v27 }
0x3af3   :  { %v5152_v20 = vadd.f32 1e-05, %v5150_v26 }
0x3af5   :  { %12634 = vrsqrt.f32 %v5152_v20 }
0x3aff   :  { %v12635_v13 = vpop.eup %12634 }
0x3b00   :  { %v5156_v61 = vmul.f32 %v12635_v13, %v5140_v59 }
0x3b02   :  { %v5164_v14 = vmul.f32 %v10657_v42, %v5156_v61 }
0x3b04   :  { %v13961_v38 = vadd.f32 %v10658_v10, %v5164_v14 }
0x3b06   :  { %v5181_v7 = vpack.c.bf16 %v13961_v38, %v13959_v44 }
0x3b08   :  { %11782 = vmatmul.mubr.msk.bf16.vlgmr.msra.gmra.mrb[160].mxu0 %vm238_vm0, %v5181_v7 }
0x3b09   :  { %11799 = vmatprep.mubr.msk.bf16.mxu0 %vm12817_vm1, %v12816_v4 }
0x3b4e   :  { %v5335_v30 = vpop.f32.mrb[156].mxu1 }
0x3b4f   :  { %v5336_v46 = vadd.f32 %v10665_v21, %v5335_v30  ;;  %v11795_v43 = vpop.f32.mrb[157].mxu1  ;;  %v14019_v30 = vld [vmem:[%s14877_s6] sm:$0xff]  }
0x3b50   :  { %v5338_v48 = vpop.f32.mrb[158].mxu1 }
0x3b51   :  { %v13969_v49 = vpack.c.bf16 %v5336_v46, %v5336_v46  ;;  %v13971_v22 = vadd.f32 %v10665_v21, %v5338_v48  ;;  %v11796_v16 = vpop.f32.mrb[159].mxu1  ;;  %v14023_v46 = vld [vmem:[%s14877_s6 + $0x8] sm:$0xff]  }
0x3b53   :  { %5464 = vrot.lane.b32.xlu1 %v13969_v49, %s12819_s7  ;;  %v5357_v52 = vsel %vm302_vm2, %v13969_v49, 0 }
0x3b54   :  { %11798 = vmatpush3.bf16.xpose.msra.mxu0 %v5357_v52 }
0x3b55   :  { %11809 = vmatprep.subr.bf16.mxu0 %v12816_v4 }
0x3bc5   :  { %v5465_v41 = vpop.permute.xlu1 %5464 }
0x3bc6   :  { %v5470_v6 = vsel %vm302_vm2, %v5465_v41, 0 }
0x3bdb   :  { %v5250_v53 = vpop.f32.mrb[160].mxu0 }
0x3bdc   :  { %v5251_v47 = vadd.f32 %v10659_v11, %v5250_v53  ;;  %v11783_v23 = vpop.f32.mrb[161].mxu0 }
0x3bdd   :  { %v5253_v54 = vpop.f32.mrb[162].mxu0 }
0x3bde   :  { %v5257_v62 = vmul.f32 0.125, %v5251_v47  ;;  %v13979_v55 = vadd.f32 %v10659_v11, %v5253_v54  ;;  %v11784_v59 = vpop.f32.mrb[163].mxu0 }
0x3be0   :  { %v13981_v31 = vpack.c.bf16 %v5257_v62, %v5257_v62 }
0x3be2   :  { %5462 = vrot.lane.b32.xlu1 %v13981_v31, %s12819_s7  ;;  %11800 = vmatmul.mubr.msk.bf16.vlgmr.msra.gmra.mrb[164].mxu0 %vm302_vm2, %v13981_v31 }
0x3be3   :  { %11810 = vmatpush3.bf16.xpose.msra.mxu0 %v5470_v6  ;;  %11811 = vmatprep.mubr.msk.bf16.mxu0 %vm12817_vm1, %v12816_v4 }
0x3be4   :  { %11821 = vmatprep.subr.bf16.mxu0 %v12816_v4 }
0x3c54   :  { %v5463_v51 = vpop.permute.xlu1 %5462 }
0x3c55   :  { %11812 = vmatmul.mubr.msk.bf16.vlgmr.msra.gmra.mrb[168].mxu0 %vm302_vm2, %v5463_v51 }
0x3c56   :  { %11823 = vmatprep.mubr.msk.bf16.mxu0 %vm12817_vm1, %v12816_v4  ;;  %11822 = vmatpush3.bf16.msra.mxu0 %v14023_v46 }
0x3c57   :  { %11833 = vmatprep.subr.bf16.mxu0 %v12816_v4 }
0x3cb5   :  { %v5393_v56 = vpop.f32.mrb[164].mxu0 }
0x3cb6   :  { %v5394_v8 = vadd.f32 %v5393_v56, %v13090_v40  ;;  %v11801_v28 = vpop.f32.mrb[165].mxu0 }
0x3cb7   :  { %v5396_v58 = vpop.f32.mrb[166].mxu0 }
0x3cb8   :  { %v11802_v39 = vpop.f32.mrb[167].mxu0  ;;  %v5399_v29 = vsel %vm349_vm5, %v5394_v8, -inf }
0x3cb9   :  { %5400 = vmax.xlane.f32.xlu1 %v5399_v29 }
0x3cca   :  { %5524 = vrot.lane.b32.xlu1 %v13969_v49, %s12820_s10 }
0x3d28   :  { %v5506_v37 = vpop.f32.mrb[168].mxu0 }
0x3d29   :  { %v5507_v3 = vadd.f32 %v5506_v37, %v13090_v40  ;;  %v11813_v60 = vpop.f32.mrb[169].mxu0 }
0x3d2a   :  { %v5509_v50 = vpop.f32.mrb[170].mxu0 }
0x3d2b   :  { %v11814_v36 = vpop.f32.mrb[171].mxu0  ;;  %v5512_v63 = vsel %vm349_vm5, %v5507_v3, -inf }
0x3d2c   :  { %5513 = vmax.xlane.f32.xlu0 %v5512_v63 }
0x3d46   :  { %v5401_v0 = vpop.xlane.xlu1 %5400 }
0x3d47   :  { %v5402_v25 = vsub.f32 %v5394_v8, %v5401_v0 }
0x3d49   :  { %v5403_v57 = vmul.f32 1.442695, %v5402_v25 }
0x3d4a   :  { %v5525_v33 = vpop.permute.xlu1 %5524 }
0x3d4b   :  { %12636 = vpow2.f32 %v5403_v57  ;;  %v5530_v10 = vsel %vm365_vm3, %v5525_v33, 0 }
0x3d55   :  { %v12637_v17 = vpop.eup %12636 }
0x3d56   :  { %v5405_v5 = vsel %vm349_vm5, %v12637_v17, 0.0 }
0x3d57   :  { %5406 = vadd.xlane.f32.xlu0 %v5405_v5 }
0x3db9   :  { %v5514_v32 = vpop.xlane.xlu0 %5513 }
0x3dba   :  { %v5515_v45 = vsub.f32 %v5507_v3, %v5514_v32 }
0x3dbc   :  { %v5516_v9 = vmul.f32 1.442695, %v5515_v45 }
0x3dbe   :  { %12638 = vpow2.f32 %v5516_v9 }
0x3dc8   :  { %v12639_v19 = vpop.eup %12638 }
0x3dc9   :  { %v5518_v27 = vsel %vm349_vm5, %v12639_v19, 0.0 }
0x3dca   :  { %5519 = vadd.xlane.f32.xlu0 %v5518_v27 }
0x3de0   :  { %5412 = vrot.lane.b32.xlu0 %v13969_v49, %s12818_s0 }
0x3de4   :  { %5673 = vrot.lane.b32.xlu0 %v13969_v49, %s12822_s11  ;;  %v5407_v26 = vpop.xlane.xlu0 %5406 }
0x3de5   :  { %12640 = vrcp.f32 %v5407_v26 }
0x3de8   :  { %5671 = vrot.lane.b32.xlu0 %v13981_v31, %s12822_s11 }
0x3def   :  { %v12641_v20 = vpop.eup %12640 }
0x3df0   :  { %v5409_v35 = vmul.f32 %v12641_v20, %v12637_v17 }
0x3df2   :  { %v5410_v61 = vpack.c.bf16 %v5409_v35, %v5409_v35 }
0x3e57   :  { %v5520_v34 = vpop.xlane.xlu0 %5519 }
0x3e58   :  { %12642 = vrcp.f32 %v5520_v34 }
0x3e5b   :  { %v5413_v42 = vpop.permute.xlu0 %5412 }
0x3e5c   :  { %v5418_v13 = vsel %vm365_vm3, %v5413_v42, 0 }
0x3e5d   :  { %11804 = vmatpush3.bf16.msra.mxu1 %v5418_v13  ;;  %v14061_v13 = vld [vmem:[%s14877_s6 + $0x10] sm:$0xff]  }
0x3e5e   :  { %11815 = vmatprep.subr.bf16.mxu1 %v12816_v4 }
0x3e5f   :  { %v5674_v53 = vpop.permute.xlu0 %5673 }
0x3e60   :  { %11806 = vmatmul.mubr.msk.bf16.vlgmr.msra.gmra.mrb[160].mxu1 %vm349_vm5, %v5410_v61  ;;  %v5679_v59 = vsel %vm302_vm2, %v5674_v53, 0  ;;  %v5258_v53 = vmul.f32 0.125, %v13979_v55 }
0x3e61   :  { %11816 = vmatpush3.bf16.msra.mxu1 %v5530_v10  ;;  %11817 = vmatprep.mubr.msk.bf16.mxu1 %vm12817_vm1, %v12816_v4 }
0x3e62   :  { %v12643_v14 = vpop.eup %12642  ;;  %11827 = vmatprep.subr.bf16.mxu1 %v12816_v4 }
0x3e63   :  { %v5522_v7 = vmul.f32 %v12643_v14, %v12639_v19  ;;  %v5672_v6 = vpop.permute.xlu0 %5671 }
0x3e65   :  { %v5523_v21 = vpack.c.bf16 %v5522_v7, %v5522_v7 }
0x3e68   :  { %11818 = vmatmul.mubr.msk.bf16.vlgmr.msra.gmra.mrb[164].mxu1 %vm349_vm5, %v5523_v21 }
0x3e69   :  { %11829 = vmatprep.mubr.msk.bf16.mxu1 %vm12817_vm1, %v12816_v4  ;;  %11828 = vmatpush3.bf16.msra.mxu1 %v14019_v30 }
0x3e6a   :  { %11839 = vmatprep.subr.bf16.mxu1 %v12816_v4 }
0x3f33   :  { %v5454_v43 = vpop.f32.mrb[160].mxu1 }
0x3f34   :  { %v5460_v48 = vpack.c.bf16 %v5454_v43, %v5454_v43  ;;  %v11807_v16 = vpop.f32.mrb[161].mxu1 }
0x3f35   :  { %v5457_v52 = vpop.f32.mrb[162].mxu1 }
0x3f36   :  { %v11808_v11 = vpop.f32.mrb[163].mxu1  ;;  %11830 = vmatmul.mubr.msk.bf16.vlgmr.msra.gmra.mrb[168].mxu1 %vm302_vm2, %v5460_v48 }
0x3f37   :  { %11841 = vmatprep.mubr.msk.bf16.mxu1 %vm12817_vm1, %v12816_v4 }
0x3f3b   :  { %v5566_v47 = vpop.f32.mrb[164].mxu1 }
0x3f3c   :  { %v5572_v23 = vpack.c.bf16 %v5566_v47, %v5566_v47  ;;  %v11819_v54 = vpop.f32.mrb[165].mxu1  ;;  %v14073_v47 = vpack.c.bf16 %v5258_v53, %v5258_v53 }
0x3f3d   :  { %v5569_v62 = vpop.f32.mrb[166].mxu1 }
0x3f3e   :  { %v11820_v41 = vpop.f32.mrb[167].mxu1  ;;  %11824 = vmatmul.mubr.msk.bf16.vlgmr.msra.gmra.mrb[172].mxu0 %vm302_vm2, %v5572_v23 }
0x3f3f   :  { %11834 = vmatpush3.bf16.xpose.msra.mxu0 %v5679_v59  ;;  %11835 = vmatprep.mubr.msk.bf16.mxu0 %vm12817_vm1, %v12816_v4 }
0x3f40   :  { %11845 = vmatprep.subr.bf16.mxu0 %v12816_v4 }
0x3f46   :  { %11836 = vmatmul.mubr.msk.bf16.vlgmr.msra.gmra.mrb[176].mxu0 %vm302_vm2, %v5672_v6 }
0x3f47   :  { %11847 = vmatprep.mubr.msk.bf16.mxu0 %vm12817_vm1, %v12816_v4  ;;  %11846 = vmatpush3.bf16.msra.mxu0 %v14061_v13 }
0x3f48   :  { %11857 = vmatprep.subr.bf16.mxu0 %v12816_v4 }
0x4009   :  { %v5665_v51 = vpop.f32.mrb[168].mxu1 }
0x400a   :  { %v11831_v56 = vpop.f32.mrb[169].mxu1 }
0x400b   :  { %v5668_v8 = vpop.f32.mrb[170].mxu1 }
0x400c   :  { %v11832_v28 = vpop.f32.mrb[171].mxu1 }
0x4011   :  { %v5616_v58 = vpop.f32.mrb[172].mxu0 }
0x4012   :  { %v14039_v39 = vadd.f32 %v5665_v51, %v5616_v58  ;;  %v11825_v29 = vpop.f32.mrb[173].mxu0 }
0x4013   :  { %v5619_v37 = vpop.f32.mrb[174].mxu0 }
0x4014   :  { %v11826_v3 = vpop.f32.mrb[175].mxu0 }
0x4019   :  { %v5715_v60 = vpop.f32.mrb[176].mxu0 }
0x401a   :  { %v5716_v50 = vadd.f32 %v5715_v60, %v13090_v40  ;;  %v11837_v36 = vpop.f32.mrb[177].mxu0 }
0x401b   :  { %v5718_v63 = vpop.f32.mrb[178].mxu0 }
0x401c   :  { %v11838_v0 = vpop.f32.mrb[179].mxu0  ;;  %v5721_v25 = vsel %vm349_vm5, %v5716_v50, -inf  ;;  %v14107_v63 = vld [vmem:[%s14877_s6 + $0x18] sm:$0xff]  }
0x401d   :  { %5722 = vmax.xlane.f32.xlu0 %v5721_v25 }
0x4033   :  { %5733 = vrot.lane.b32.xlu0 %v13969_v49, %s12821_s13 }
0x4037   :  { %5832 = vrot.lane.b32.xlu0 %v13981_v31, %s12823_s15 }
0x40aa   :  { %v5723_v57 = vpop.xlane.xlu0 %5722 }
0x40ab   :  { %v5724_v17 = vsub.f32 %v5716_v50, %v5723_v57 }
0x40ad   :  { %v5725_v5 = vmul.f32 1.442695, %v5724_v17 }
0x40ae   :  { %v5734_v32 = vpop.permute.xlu0 %5733 }
0x40af   :  { %12644 = vpow2.f32 %v5725_v5  ;;  %v5739_v45 = vsel %vm365_vm3, %v5734_v32, 0 }
0x40b0   :  { %11840 = vmatpush3.bf16.msra.mxu1 %v5739_v45 }
0x40b1   :  { %11851 = vmatprep.subr.bf16.mxu1 %v12816_v4 }
0x40b2   :  { %v5833_v42 = vpop.permute.xlu0 %5832 }
0x40b9   :  { %v12645_v9 = vpop.eup %12644 }
0x40ba   :  { %v5727_v19 = vsel %vm349_vm5, %v12645_v9, 0.0 }
0x40bb   :  { %5728 = vadd.xlane.f32.xlu1 %v5727_v19 }
0x40cc   :  { %5834 = vrot.lane.b32.xlu1 %v13969_v49, %s12823_s15 }
0x4148   :  { %v5729_v27 = vpop.xlane.xlu1 %5728 }
0x4149   :  { %12646 = vrcp.f32 %v5729_v27 }
0x414c   :  { %v5835_v20 = vpop.permute.xlu1 %5834 }
0x414d   :  { %v5840_v35 = vsel %vm302_vm2, %v5835_v20, 0 }
0x4153   :  { %v12647_v31 = vpop.eup %12646 }
0x4154   :  { %v5731_v26 = vmul.f32 %v12647_v31, %v12645_v9 }
0x4156   :  { %v5732_v34 = vpack.c.bf16 %v5731_v26, %v5731_v26 }
0x4158   :  { %11842 = vmatmul.mubr.msk.bf16.vlgmr.msra.gmra.mrb[172].mxu1 %vm349_vm5, %v5732_v34 }
0x4159   :  { %11852 = vmatpush3.bf16.xpose.msra.mxu1 %v5840_v35  ;;  %11853 = vmatprep.mubr.msk.bf16.mxu1 %vm12817_vm1, %v12816_v4 }
0x415a   :  { %11863 = vmatprep.subr.bf16.mxu1 %v12816_v4 }
0x4160   :  { %11854 = vmatmul.mubr.msk.bf16.vlgmr.msra.gmra.mrb[176].mxu1 %vm302_vm2, %v5833_v42 }
0x4161   :  { %11865 = vmatprep.mubr.msk.bf16.mxu1 %vm12817_vm1, %v12816_v4  ;;  %11864 = vmatpush3.bf16.msra.mxu1 %v14107_v63 }
0x4162   :  { %11875 = vmatprep.subr.bf16.mxu1 %v12816_v4 }
0x422b   :  { %v5775_v33 = vpop.f32.mrb[172].mxu1 }
0x422c   :  { %v5781_v61 = vpack.c.bf16 %v5775_v33, %v5775_v33  ;;  %v11843_v10 = vpop.f32.mrb[173].mxu1 }
0x422d   :  { %v5778_v14 = vpop.f32.mrb[174].mxu1 }
0x422e   :  { %v11844_v7 = vpop.f32.mrb[175].mxu1  ;;  %11848 = vmatmul.mubr.msk.bf16.vlgmr.msra.gmra.mrb[180].mxu0 %vm302_vm2, %v5781_v61 }
0x422f   :  { %11859 = vmatprep.mubr.msk.bf16.mxu0 %vm12817_vm1, %v12816_v4 }
0x4233   :  { %v5876_v21 = vpop.f32.mrb[176].mxu1 }
0x4234   :  { %v5877_v43 = vadd.f32 %v5876_v21, %v13090_v40  ;;  %v11855_v48 = vpop.f32.mrb[177].mxu1 }
0x4235   :  { %v5879_v16 = vpop.f32.mrb[178].mxu1 }
0x4236   :  { %v11856_v52 = vpop.f32.mrb[179].mxu1  ;;  %v5882_v11 = vsel %vm349_vm5, %v5877_v43, -inf }
0x4237   :  { %5883 = vmax.xlane.f32.xlu0 %v5882_v11 }
0x424d   :  { %5894 = vrot.lane.b32.xlu0 %v13969_v49, %s12824_s16  ;;  %v14082_v49 = vpack.c.bf16 %v13971_v22, %v13971_v22 }
0x424f   :  { %v6006_v22 = vsel %vm302_vm2, %v14082_v49, 0 }
0x4251   :  { %6111 = vrot.lane.b32.xlu0 %v14073_v47, %s12819_s7 }
0x42c4   :  { %v5884_v23 = vpop.xlane.xlu0 %5883 }
0x42c5   :  { %v5885_v54 = vsub.f32 %v5877_v43, %v5884_v23 }
0x42c7   :  { %v5886_v62 = vmul.f32 1.442695, %v5885_v54 }
0x42c8   :  { %v5895_v59 = vpop.permute.xlu0 %5894 }
0x42c9   :  { %12648 = vpow2.f32 %v5886_v62  ;;  %v5900_v41 = vsel %vm365_vm3, %v5895_v59, 0 }
0x42ca   :  { %11858 = vmatpush3.bf16.msra.mxu0 %v5900_v41 }
0x42cb   :  { %11869 = vmatprep.subr.bf16.mxu0 %v12816_v4 }
0x42cc   :  { %v6112_v36 = vpop.permute.xlu0 %6111 }
0x42d3   :  { %v12649_v6 = vpop.eup %12648 }
0x42d4   :  { %v5888_v55 = vsel %vm349_vm5, %v12649_v6, 0.0 }
0x42d5   :  { %5889 = vadd.xlane.f32.xlu1 %v5888_v55 }
0x42e6   :  { %6113 = vrot.lane.b32.xlu1 %v14082_v49, %s12819_s7 }
0x4301   :  { %v5825_v51 = vpop.f32.mrb[180].mxu0 }
0x4302   :  { %v14087_v56 = vadd.f32 %v5825_v51, %v14039_v39  ;;  %v11849_v8 = vpop.f32.mrb[181].mxu0 }
0x4303   :  { %v5828_v28 = vpop.f32.mrb[182].mxu0 }
0x4304   :  { %v11850_v58 = vpop.f32.mrb[183].mxu0 }
0x4362   :  { %v5890_v29 = vpop.xlane.xlu1 %5889 }
0x4363   :  { %12650 = vrcp.f32 %v5890_v29 }
0x4366   :  { %v6114_v39 = vpop.permute.xlu1 %6113 }
0x4367   :  { %v6119_v50 = vsel %vm302_vm2, %v6114_v39, 0 }
0x436d   :  { %v12651_v37 = vpop.eup %12650 }
0x436e   :  { %v5892_v3 = vmul.f32 %v12651_v37, %v12649_v6 }
0x4370   :  { %v5893_v60 = vpack.c.bf16 %v5892_v3, %v5892_v3 }
0x4372   :  { %11860 = vmatmul.mubr.msk.bf16.vlgmr.msra.gmra.mrb[184].mxu0 %vm349_vm5, %v5893_v60 }
0x4373   :  { %11870 = vmatpush3.bf16.xpose.msra.mxu0 %v6006_v22  ;;  %11871 = vmatprep.mubr.msk.bf16.mxu0 %vm12817_vm1, %v12816_v4 }
0x4374   :  { %11881 = vmatprep.subr.bf16.mxu0 %v12816_v4 }
0x437a   :  { %11872 = vmatmul.mubr.msk.bf16.vlgmr.msra.gmra.mrb[188].mxu0 %vm302_vm2, %v14073_v47 }
0x437b   :  { %11882 = vmatpush3.bf16.xpose.msra.mxu0 %v6119_v50  ;;  %11883 = vmatprep.mubr.msk.bf16.mxu0 %vm12817_vm1, %v12816_v4 }
0x437c   :  { %11893 = vmatprep.subr.bf16.mxu0 %v12816_v4 }
0x4382   :  { %11884 = vmatmul.mubr.msk.bf16.vlgmr.msra.gmra.mrb[192].mxu0 %vm302_vm2, %v6112_v36 }
0x4383   :  { %11894 = vmatpush3.bf16.msra.mxu0 %v14023_v46  ;;  %11895 = vmatprep.mubr.msk.bf16.mxu0 %vm12817_vm1, %v12816_v4 }
0x4384   :  { %11905 = vmatprep.subr.bf16.mxu0 %v12816_v4 }
0x4445   :  { %v5936_v0 = vpop.f32.mrb[184].mxu0 }
0x4446   :  { %v5942_v25 = vpack.c.bf16 %v5936_v0, %v5936_v0  ;;  %v11861_v57 = vpop.f32.mrb[185].mxu0 }
0x4447   :  { %v5939_v17 = vpop.f32.mrb[186].mxu0 }
0x4448   :  { %v11862_v5 = vpop.f32.mrb[187].mxu0  ;;  %11866 = vmatmul.mubr.msk.bf16.vlgmr.msra.gmra.mrb[180].mxu1 %vm302_vm2, %v5942_v25 }
0x4449   :  { %11877 = vmatprep.mubr.msk.bf16.mxu1 %vm12817_vm1, %v12816_v4 }
0x444d   :  { %v6042_v46 = vpop.f32.mrb[188].mxu0 }
0x444e   :  { %v6043_v32 = vadd.f32 %v6042_v46, %v13217_v12  ;;  %v11873_v45 = vpop.f32.mrb[189].mxu0 }
0x444f   :  { %v6045_v9 = vpop.f32.mrb[190].mxu0 }
0x4450   :  { %v11874_v19 = vpop.f32.mrb[191].mxu0  ;;  %v6048_v27 = vsel %vm349_vm5, %v6043_v32, -inf }
0x4451   :  { %6049 = vmax.xlane.f32.xlu0 %v6048_v27 }
0x4455   :  { %v6155_v31 = vpop.f32.mrb[192].mxu0 }
0x4456   :  { %v6156_v26 = vadd.f32 %v6155_v31, %v13217_v12  ;;  %v11885_v20 = vpop.f32.mrb[193].mxu0 }
0x4457   :  { %v6158_v34 = vpop.f32.mrb[194].mxu0 }
0x4458   :  { %v11886_v35 = vpop.f32.mrb[195].mxu0  ;;  %v6161_v42 = vsel %vm349_vm5, %v6156_v26, -inf }
0x4459   :  { %6162 = vmax.xlane.f32.xlu1 %v6161_v42 }
0x446a   :  { %6061 = vrot.lane.b32.xlu1 %v14082_v49, %s12818_s0 }
0x446e   :  { %6310 = vrot.lane.b32.xlu1 %v14082_v49, %s12822_s11 }
0x4472   :  { %6308 = vrot.lane.b32.xlu1 %v14073_v47, %s12822_s11 }
0x44de   :  { %v6050_v33 = vpop.xlane.xlu0 %6049 }
0x44df   :  { %v6051_v61 = vsub.f32 %v6043_v32, %v6050_v33 }
0x44e1   :  { %v6052_v10 = vmul.f32 1.442695, %v6051_v61 }
0x44e3   :  { %12652 = vpow2.f32 %v6052_v10 }
0x44e6   :  { %v6163_v14 = vpop.xlane.xlu1 %6162 }
0x44e7   :  { %v6164_v7 = vsub.f32 %v6156_v26, %v6163_v14 }
0x44e9   :  { %v6165_v21 = vmul.f32 1.442695, %v6164_v7 }
0x44ea   :  { %v6062_v43 = vpop.permute.xlu1 %6061 }
0x44eb   :  { %12654 = vpow2.f32 %v6165_v21  ;;  %v6067_v48 = vsel %vm365_vm3, %v6062_v43, 0 }
0x44ec   :  { %11876 = vmatpush3.bf16.msra.mxu1 %v6067_v48 }
0x44ed   :  { %v12653_v16 = vpop.eup %12652  ;;  %11887 = vmatprep.subr.bf16.mxu1 %v12816_v4 }
0x44ee   :  { %v6054_v52 = vsel %vm349_vm5, %v12653_v16, 0.0  ;;  %v6311_v0 = vpop.permute.xlu1 %6310 }
0x44ef   :  { %6055 = vadd.xlane.f32.xlu0 %v6054_v52  ;;  %v6316_v5 = vsel %vm302_vm2, %v6311_v0, 0 }
0x44f2   :  { %v6309_v32 = vpop.permute.xlu1 %6308 }
0x44f5   :  { %v12655_v11 = vpop.eup %12654 }
0x44f6   :  { %v6167_v53 = vsel %vm349_vm5, %v12655_v11, 0.0 }
0x44f7   :  { %6168 = vadd.xlane.f32.xlu0 %v6167_v53 }
0x450d   :  { %6173 = vrot.lane.b32.xlu0 %v14082_v49, %s12820_s10 }
0x451b   :  { %v5986_v23 = vpop.f32.mrb[180].mxu1 }
0x451c   :  { %v14131_v54 = vadd.f32 %v5986_v23, %v14087_v56  ;;  %v11867_v62 = vpop.f32.mrb[181].mxu1 }
0x451d   :  { %v5989_v59 = vpop.f32.mrb[182].mxu1 }
0x451e   :  { %v11868_v41 = vpop.f32.mrb[183].mxu1 }
0x457c   :  { %v6056_v6 = vpop.xlane.xlu0 %6055 }
0x457d   :  { %12656 = vrcp.f32 %v6056_v6 }
0x4584   :  { %v6169_v55 = vpop.xlane.xlu0 %6168 }
0x4585   :  { %12658 = vrcp.f32 %v6169_v55 }
0x4587   :  { %v12657_v51 = vpop.eup %12656 }
0x4588   :  { %v6058_v8 = vmul.f32 %v12657_v51, %v12653_v16  ;;  %v6174_v28 = vpop.permute.xlu0 %6173 }
0x4589   :  { %v6179_v29 = vsel %vm365_vm3, %v6174_v28, 0 }
0x458a   :  { %v6059_v58 = vpack.c.bf16 %v6058_v8, %v6058_v8 }
0x458c   :  { %11878 = vmatmul.mubr.msk.bf16.vlgmr.msra.gmra.mrb[184].mxu1 %vm349_vm5, %v6059_v58 }
0x458d   :  { %11888 = vmatpush3.bf16.msra.mxu1 %v6179_v29  ;;  %11889 = vmatprep.mubr.msk.bf16.mxu1 %vm12817_vm1, %v12816_v4  ;;  %v10687_v29 = vld [vmem:[%s14878_s12] ss:$0 sm:$0xff] }
0x458e   :  { %11899 = vmatprep.subr.bf16.mxu1 %v12816_v4 }
0x458f   :  { %v12659_v56 = vpop.eup %12658 }
0x4590   :  { %v6171_v37 = vmul.f32 %v12659_v56, %v12655_v11  ;;  %v5999_v56 = vadd.f32 %v10687_v29, %v14131_v54 }
0x4592   :  { %v6172_v3 = vpack.c.bf16 %v6171_v37, %v6171_v37 }
0x4594   :  { %11890 = vmatmul.mubr.msk.bf16.vlgmr.msra.gmra.mrb[188].mxu1 %vm349_vm5, %v6172_v3 }
0x4595   :  { %11900 = vmatpush3.bf16.msra.mxu1 %v14019_v30  ;;  %11901 = vmatprep.mubr.msk.bf16.mxu1 %vm12817_vm1, %v12816_v4 }
0x4596   :  { %11911 = vmatprep.subr.bf16.mxu1 %v12816_v4 }
0x465f   :  { %v6103_v60 = vpop.f32.mrb[184].mxu1 }
0x4660   :  { %v6109_v22 = vpack.c.bf16 %v6103_v60, %v6103_v60  ;;  %v11879_v39 = vpop.f32.mrb[185].mxu1 }
0x4661   :  { %v6106_v50 = vpop.f32.mrb[186].mxu1 }
0x4662   :  { %v11880_v36 = vpop.f32.mrb[187].mxu1  ;;  %11902 = vmatmul.mubr.msk.bf16.vlgmr.msra.gmra.mrb[192].mxu1 %vm302_vm2, %v6109_v22  ;;  %v6665_v50 = vadd.f32 %v5999_v56, %v13959_v44  ;;  %v12444_v56 = vld [vmem:[%s14880_s22 + $0x40] sm:$0xff]  }
0x4663   :  { %11913 = vmatprep.mubr.msk.bf16.mxu1 %vm12817_vm1, %v12816_v4 }
0x4664   :  { %v6667_v36 = vsel %vm238_vm0, %v6665_v50, 0.0 }
0x4667   :  { %v6215_v25 = vpop.f32.mrb[188].mxu1 }
0x4668   :  { %v6221_v57 = vpack.c.bf16 %v6215_v25, %v6215_v25  ;;  %v11891_v17 = vpop.f32.mrb[189].mxu1 }
0x4669   :  { %v6218_v30 = vpop.f32.mrb[190].mxu1 }
0x466a   :  { %v11892_v46 = vpop.f32.mrb[191].mxu1  ;;  %11896 = vmatmul.mubr.msk.bf16.vlgmr.msra.gmra.mrb[196].mxu0 %vm302_vm2, %v6221_v57 }
0x466b   :  { %11906 = vmatpush3.bf16.xpose.msra.mxu0 %v6316_v5  ;;  %11907 = vmatprep.mubr.msk.bf16.mxu0 %vm12817_vm1, %v12816_v4 }
0x466c   :  { %11917 = vmatprep.subr.bf16.mxu0 %v12816_v4 }
0x4672   :  { %11908 = vmatmul.mubr.msk.bf16.vlgmr.msra.gmra.mrb[200].mxu0 %vm302_vm2, %v6309_v32 }
0x4673   :  { %11918 = vmatpush3.bf16.msra.mxu0 %v14061_v13  ;;  %11919 = vmatprep.mubr.msk.bf16.mxu0 %vm12817_vm1, %v12816_v4 }
0x4674   :  { %11929 = vmatprep.subr.bf16.mxu0 %v12816_v4 }
0x4735   :  { %v6302_v45 = vpop.f32.mrb[192].mxu1 }
0x4736   :  { %v11903_v9 = vpop.f32.mrb[193].mxu1 }
0x4737   :  { %v6305_v19 = vpop.f32.mrb[194].mxu1 }
0x4738   :  { %v11904_v27 = vpop.f32.mrb[195].mxu1 }
0x473d   :  { %v6259_v31 = vpop.f32.mrb[196].mxu0 }
0x473e   :  { %v14156_v26 = vadd.f32 %v6302_v45, %v6259_v31  ;;  %v11897_v20 = vpop.f32.mrb[197].mxu0 }
0x473f   :  { %v6262_v34 = vpop.f32.mrb[198].mxu0 }
0x4740   :  { %v11898_v35 = vpop.f32.mrb[199].mxu0 }
0x4745   :  { %v6352_v42 = vpop.f32.mrb[200].mxu0 }
0x4746   :  { %v6353_v33 = vadd.f32 %v6352_v42, %v13217_v12  ;;  %v11909_v61 = vpop.f32.mrb[201].mxu0 }
0x4747   :  { %v6355_v13 = vpop.f32.mrb[202].mxu0 }
0x4748   :  { %v11910_v10 = vpop.f32.mrb[203].mxu0  ;;  %v6358_v14 = vsel %vm349_vm5, %v6353_v33, -inf }
0x4749   :  { %6359 = vmax.xlane.f32.xlu0 %v6358_v14 }
0x475f   :  { %6370 = vrot.lane.b32.xlu0 %v14082_v49, %s12821_s13 }
0x4763   :  { %6463 = vrot.lane.b32.xlu0 %v14073_v47, %s12823_s15 }
0x47d6   :  { %v6360_v7 = vpop.xlane.xlu0 %6359 }
0x47d7   :  { %v6361_v21 = vsub.f32 %v6353_v33, %v6360_v7 }
0x47d9   :  { %v6362_v43 = vmul.f32 1.442695, %v6361_v21 }
0x47da   :  { %v6371_v48 = vpop.permute.xlu0 %6370 }
0x47db   :  { %12660 = vpow2.f32 %v6362_v43  ;;  %v6376_v16 = vsel %vm365_vm3, %v6371_v48, 0 }
0x47dc   :  { %11912 = vmatpush3.bf16.msra.mxu1 %v6376_v16 }
0x47dd   :  { %11923 = vmatprep.subr.bf16.mxu1 %v12816_v4 }
0x47de   :  { %v6464_v6 = vpop.permute.xlu0 %6463 }
0x47e5   :  { %v12661_v52 = vpop.eup %12660 }
0x47e6   :  { %v6364_v11 = vsel %vm349_vm5, %v12661_v52, 0.0 }
0x47e7   :  { %6365 = vadd.xlane.f32.xlu1 %v6364_v11 }
0x47f8   :  { %6465 = vrot.lane.b32.xlu1 %v14082_v49, %s12823_s15 }
0x4874   :  { %v6366_v53 = vpop.xlane.xlu1 %6365 }
0x4875   :  { %12662 = vrcp.f32 %v6366_v53 }
0x4878   :  { %v6466_v62 = vpop.permute.xlu1 %6465 }
0x4879   :  { %v6471_v41 = vsel %vm302_vm2, %v6466_v62, 0 }
0x487f   :  { %v12663_v47 = vpop.eup %12662 }
0x4880   :  { %v6368_v23 = vmul.f32 %v12663_v47, %v12661_v52 }
0x4882   :  { %v6369_v59 = vpack.c.bf16 %v6368_v23, %v6368_v23 }
0x4884   :  { %11914 = vmatmul.mubr.msk.bf16.vlgmr.msra.gmra.mrb[196].mxu1 %vm349_vm5, %v6369_v59 }
0x4885   :  { %11924 = vmatpush3.bf16.xpose.msra.mxu1 %v6471_v41  ;;  %11925 = vmatprep.mubr.msk.bf16.mxu1 %vm12817_vm1, %v12816_v4 }
0x4886   :  { %11935 = vmatprep.subr.bf16.mxu1 %v12816_v4 }
0x488c   :  { %11926 = vmatmul.mubr.msk.bf16.vlgmr.msra.gmra.mrb[200].mxu1 %vm302_vm2, %v6464_v6  ;;  %v12432_v6 = vld [vmem:[%s14879_s18] ss:$8 sps:$4 sm:$0xff]  }
0x488d   :  { %11936 = vmatpush3.bf16.msra.mxu1 %v14107_v63  ;;  %11937 = vmatprep.mubr.msk.bf16.mxu1 %vm12817_vm1, %v12816_v4 }
0x488e   :  { %11186 = vmatprep.subr.bf16.mxu1 %v12444_v56 }
0x4957   :  { %v6412_v55 = vpop.f32.mrb[196].mxu1 }
0x4958   :  { %v6418_v51 = vpack.c.bf16 %v6412_v55, %v6412_v55  ;;  %v11915_v8 = vpop.f32.mrb[197].mxu1  ;;  %v12437_v55 = vld [vmem:[%s14879_s18 + $0x14] ss:$8 sps:$4 sm:$0xff]  }
0x4959   :  { %v6415_v28 = vpop.f32.mrb[198].mxu1  ;;  %v12440_v8 = vld [vmem:[%s14879_s18 + $0x24] ss:$8 sps:$4 sm:$0xff]  }
0x495a   :  { %v11916_v58 = vpop.f32.mrb[199].mxu1  ;;  %11920 = vmatmul.mubr.msk.bf16.vlgmr.msra.gmra.mrb[204].mxu0 %vm302_vm2, %v6418_v51  ;;  %v12435_v51 = vld [vmem:[%s14879_s18 + $0x10] ss:$8 sps:$4 sm:$0xff]   ;;  %v12438_v28 = vld [vmem:[%s14879_s18 + $0x20] ss:$8 sps:$4 sm:$0xff]  }
0x495b   :  { %11931 = vmatprep.mubr.msk.bf16.mxu0 %vm12817_vm1, %v12816_v4  ;;  %v12441_v58 = vld [vmem:[%s14879_s18 + $0x30] ss:$8 sps:$4 sm:$0xff]  }
0x495f   :  { %v6507_v37 = vpop.f32.mrb[200].mxu1 }
0x4960   :  { %v6508_v3 = vadd.f32 %v6507_v37, %v13217_v12  ;;  %v11927_v63 = vpop.f32.mrb[201].mxu1  ;;  %v12445_v37 = vld [vmem:[%s14880_s22] sm:$0xff]  }
0x4961   :  { %v6510_v60 = vpop.f32.mrb[202].mxu1  ;;  %v12447_v63 = vld [vmem:[%s14880_s22 + $0x8] sm:$0xff]  }
0x4962   :  { %v11928_v22 = vpop.f32.mrb[203].mxu1  ;;  %v6513_v39 = vsel %vm349_vm5, %v6508_v3, -inf  ;;  %v12448_v60 = vld [vmem:[%s14880_s22 + $0x50] sm:$0xff]  }
0x4963   :  { %6514 = vmax.xlane.f32.xlu1 %v6513_v39  ;;  %v12449_v22 = vld [vmem:[%s14880_s22 + $0x10] sm:$0xff]   ;;  %v12450_v39 = vld [vmem:[%s14880_s22 + $0x58] sm:$0xff]  }
0x4967   :  { %6668 = vadd.xlane.f32.xlu1 %v6667_v36  ;;  %v12452_v36 = vld [vmem:[%s14880_s22 + $0x60] sm:$0xff]  }
0x49f0   :  { %v6515_v0 = vpop.xlane.xlu1 %6514 }
0x49f1   :  { %v6516_v25 = vsub.f32 %v6508_v3, %v6515_v0  ;;  %v12446_v3 = vld [vmem:[%s14880_s22 + $0x48] sm:$0xff]   ;;  %v12453_v0 = vld [vmem:[%s14880_s22 + $0x20] sm:$0xff]  }
0x49f3   :  { %v6517_v57 = vmul.f32 1.442695, %v6516_v25  ;;  %v12454_v25 = vld [vmem:[%s14880_s22 + $0x68] sm:$0xff]  }
0x49f4   :  { %v6669_v33 = vpop.xlane.xlu1 %6668 }
0x49f5   :  { %12664 = vpow2.f32 %v6517_v57  ;;  %v6673_v61 = vmul.f32 0.015625, %v6669_v33  ;;  %v12457_v33 = vld [vmem:[%s14880_s22 + $0x30] sm:$0xff]  }
0x49f7   :  { %v6675_v21 = vsub.f32 %v6665_v50, %v6673_v61  ;;  %v12451_v50 = vld [vmem:[%s14880_s22 + $0x18] sm:$0xff]  }
0x49f8   :  { %v12458_v61 = vld [vmem:[%s14880_s22 + $0x78] sm:$0xff]  }
0x49f9   :  { %v6677_v11 = vmul.f32 %v6675_v21, %v6675_v21 }
0x49fb   :  { %v6679_v53 = vsel %vm238_vm0, %v6677_v11, 0.0 }
0x49ff   :  { %v12665_v17 = vpop.eup %12664 }
0x4a00   :  { %v6519_v54 = vsel %vm349_vm5, %v12665_v17, 0.0 }
0x4a01   :  { %6520 = vadd.xlane.f32.xlu0 %v6519_v54 }
0x4a17   :  { %6525 = vrot.lane.b32.xlu0 %v14082_v49, %s12824_s16 }
0x4a2d   :  { %v6456_v30 = vpop.f32.mrb[204].mxu0 }
0x4a2e   :  { %v6462_v5 = vadd.f32 %v6456_v30, %v14156_v26  ;;  %v11921_v46 = vpop.f32.mrb[205].mxu0 }
0x4a2f   :  { %v6459_v44 = vpop.f32.mrb[206].mxu0 }
0x4a30   :  { %v11922_v32 = vpop.f32.mrb[207].mxu0 }
0x4a8e   :  { %v6521_v45 = vpop.xlane.xlu0 %6520 }
0x4a8f   :  { %12666 = vrcp.f32 %v6521_v45  ;;  %v10700_v45 = vld [vmem:[%s14881_s23] ss:$0 sm:$0xff] }
0x4a92   :  { %v6526_v9 = vpop.permute.xlu0 %6525 }
0x4a93   :  { %v6531_v19 = vsel %vm365_vm3, %v6526_v9, 0 }
0x4a94   :  { %11930 = vmatpush3.bf16.msra.mxu0 %v6531_v19 }
0x4a99   :  { %v12667_v27 = vpop.eup %12666 }
0x4a9a   :  { %v6523_v31 = vmul.f32 %v12667_v27, %v12665_v17 }
0x4a9c   :  { %v6524_v20 = vpack.c.bf16 %v6523_v31, %v6523_v31  ;;  %v10701_v31 = vld [vmem:[%s14882_s26] ss:$0 sm:$0xff] }
0x4a9e   :  { %11932 = vmatmul.mubr.msk.bf16.vlgmr.msra.gmra.mrb[208].mxu0 %vm349_vm5, %v6524_v20 }
0x4a9f   :  { %6796 = vmatprep.mubr.bf16.mxu0 %v12815_v2 }
0x4b71   :  { %v6567_v49 = vpop.f32.mrb[208].mxu0 }
0x4b72   :  { %v6573_v34 = vpack.c.bf16 %v6567_v49, %v6567_v49  ;;  %v11933_v35 = vpop.f32.mrb[209].mxu0 }
0x4b73   :  { %v6570_v26 = vpop.f32.mrb[210].mxu0 }
0x4b74   :  { %v11934_v42 = vpop.f32.mrb[211].mxu0  ;;  %11938 = vmatmul.mubr.msk.bf16.vlgmr.msra.gmra.mrb[204].mxu1 %vm302_vm2, %v6573_v34  ;;  %v12455_v26 = vld [vmem:[%s14880_s22 + $0x28] sm:$0xff]  }
0x4b75   :  { %11187 = vmatpush3.bf16.msra.mxu1 %v12445_v37  ;;  %v12456_v42 = vld [vmem:[%s14880_s22 + $0x70] sm:$0xff]  }
0x4b76   :  { %11188 = vmatprep.subr.bf16.mxu1 %v12446_v3 }
0x4b79   :  { %11189 = vmatpush3.bf16.msra.mxu1 %v12447_v63 }
0x4b7a   :  { %11190 = vmatprep.subr.bf16.mxu1 %v12448_v60 }
0x4b7d   :  { %11191 = vmatpush3.bf16.msra.mxu1 %v12449_v22 }
0x4b7e   :  { %11192 = vmatprep.subr.bf16.mxu1 %v12450_v39 }
0x4b81   :  { %11193 = vmatpush3.bf16.msra.mxu1 %v12451_v50 }
0x4b82   :  { %11194 = vmatprep.subr.bf16.mxu1 %v12452_v36 }
0x4b85   :  { %11195 = vmatpush3.bf16.msra.mxu1 %v12453_v0 }
0x4b86   :  { %11196 = vmatprep.subr.bf16.mxu1 %v12454_v25 }
0x4b89   :  { %11197 = vmatpush3.bf16.msra.mxu1 %v12455_v26 }
0x4b8a   :  { %11198 = vmatprep.subr.bf16.mxu1 %v12456_v42 }
0x4b8d   :  { %11199 = vmatpush3.bf16.msra.mxu1 %v12457_v33 }
0x4b8e   :  { %11200 = vmatprep.subr.bf16.mxu1 %v12458_v61 }
0x4c47   :  { %v6611_v13 = vpop.f32.mrb[204].mxu1 }
0x4c48   :  { %v6617_v10 = vadd.f32 %v6611_v13, %v6462_v5  ;;  %v11939_v14 = vpop.f32.mrb[205].mxu1  ;;  %v12459_v13 = vld [vmem:[%s14880_s22 + $0x38] sm:$0xff]  }
0x4c49   :  { %v6614_v7 = vpop.f32.mrb[206].mxu1  ;;  %11201 = vmatpush3.bf16.msra.mxu1 %v12459_v13 }
0x4c4a   :  { %v6618_v43 = vadd.f32 %v10687_v29, %v6617_v10  ;;  %v11940_v48 = vpop.f32.mrb[207].mxu1  ;;  %v12443_v29 = vld [vmem:[%s14879_s18 + $0x34] ss:$8 sps:$4 sm:$0xff]   ;;  %11947 = vmatprep.subr.bf16.mxu1 %v12816_v4  ;;  %v6629_v10 = vld [vmem:[%s14883_s28] sm:$0x3] }
0x4c4b   :  { %v6714_v14 = vrot.slane %v6629_v10, %v13042_v15  ;;  %v6718_v7 = vrot.slane %v6629_v10, %v13047_v18  ;;  %v10728_v10 = vld [vmem:[%s14885_s2] ss:$0 sm:$0xff] }
0x4c4c   :  { %v6666_v16 = vadd.f32 %v6618_v43, %v13961_v38  ;;  %v12434_v38 = vld [vmem:[%s14879_s18 + $0x4] ss:$8 sps:$4 sm:$0xff]  }
0x4c4d   :  { %6764 = vmatprep.subr.bf16.mxu0 %v12434_v38 }
0x4c4e   :  { %v6670_v52 = vsel %vm238_vm0, %v6666_v16, 0.0  ;;  %6765 = vmatpush1.bf16.msra.mxu0 %v12432_v6 }
0x4c4f   :  { %6671 = vadd.xlane.f32.xlu1 %v6670_v52  ;;  %6766 = vmatprep.subr.bf16.mxu0 %v12437_v55 }
0x4c52   :  { %6767 = vmatpush1.bf16.msra.mxu0 %v12435_v51  ;;  %v10711_v51 = vld [vmem:[%s14884_s1] ss:$0 sm:$0xff] }
0x4c53   :  { %6680 = vadd.xlane.f32.xlu1 %v6679_v53  ;;  %6768 = vmatprep.subr.bf16.mxu0 %v12440_v8 }
0x4c56   :  { %6769 = vmatpush1.bf16.msra.mxu0 %v12438_v28 }
0x4c57   :  { %6770 = vmatprep.subr.bf16.mxu0 %v12443_v29 }
0x4c5a   :  { %6771 = vmatpush1.bf16.msra.mxu0 %v12441_v58 }
0x4cdc   :  { %v6672_v47 = vpop.xlane.xlu1 %6671 }
0x4cdd   :  { %v6674_v23 = vmul.f32 0.015625, %v6672_v47 }
0x4cdf   :  { %v6676_v62 = vsub.f32 %v6666_v16, %v6674_v23 }
0x4ce0   :  { %v6681_v57 = vpop.xlane.xlu1 %6680 }
0x4ce1   :  { %v6678_v59 = vmul.f32 %v6676_v62, %v6676_v62  ;;  %v6685_v17 = vmul.f32 0.015625, %v6681_v57 }
0x4ce3   :  { %v6682_v41 = vsel %vm238_vm0, %v6678_v59, 0.0  ;;  %v6687_v54 = vadd.f32 1e-05, %v6685_v17 }
0x4ce4   :  { %6683 = vadd.xlane.f32.xlu1 %v6682_v41 }
0x4ce5   :  { %12668 = vrsqrt.f32 %v6687_v54 }
0x4cef   :  { %v12669_v44 = vpop.eup %12668 }
0x4cf0   :  { %v6691_v32 = vmul.f32 %v12669_v44, %v6675_v21  ;;  %v12462_v44 = vld [vmem:[%s14866_s5 + $0x44] ss:$8 sps:$4 sm:$0xff]  }
0x4cf1   :  { %7066 = vmatprep.subr.bf16.mxu0 %v12462_v44 }
0x4cf2   :  { %v6699_v19 = vmul.f32 %v10700_v45, %v6691_v32  ;;  %v12460_v32 = vld [vmem:[%s14866_s5 + $0x40] ss:$8 sps:$4 sm:$0xff]  }
0x4cf4   :  { %v6707_v49 = vadd.f32 %v10701_v31, %v6699_v19  ;;  %v12468_v19 = vld [vmem:[%s14866_s5 + $0x64] ss:$8 sps:$4 sm:$0xff]  }
0x4d71   :  { %v6684_v30 = vpop.xlane.xlu1 %6683 }
0x4d72   :  { %v6686_v5 = vmul.f32 0.015625, %v6684_v30 }
0x4d74   :  { %v6688_v46 = vadd.f32 1e-05, %v6686_v5 }
0x4d76   :  { %12670 = vrsqrt.f32 %v6688_v46 }
0x4d80   :  { %v12671_v9 = vpop.eup %12670 }
0x4d81   :  { %v6692_v27 = vmul.f32 %v12671_v9, %v6676_v62  ;;  %v12463_v9 = vld [vmem:[%s14866_s5 + $0x50] ss:$8 sps:$4 sm:$0xff]  }
0x4d83   :  { %v6700_v20 = vmul.f32 %v10700_v45, %v6692_v27  ;;  %v12465_v45 = vld [vmem:[%s14866_s5 + $0x54] ss:$8 sps:$4 sm:$0xff]   ;;  %v12466_v27 = vld [vmem:[%s14866_s5 + $0x60] ss:$8 sps:$4 sm:$0xff]  }
0x4d85   :  { %v6708_v34 = vadd.f32 %v10701_v31, %v6700_v20  ;;  %v12469_v31 = vld [vmem:[%s14866_s5 + $0x70] ss:$8 sps:$4 sm:$0xff]   ;;  %v12471_v20 = vld [vmem:[%s14866_s5 + $0x74] ss:$8 sps:$4 sm:$0xff]  }
0x4d87   :  { %v6709_v35 = vpack.c.bf16 %v6708_v34, %v6707_v49 }
0x4d89   :  { %10710 = vmatmul.mubr.msk.bf16.vlgmr.msra.gmra.mrb[212].mxu0 %vm238_vm0, %v6709_v35 }
0x4d8a   :  { %7098 = vmatprep.mubr.bf16.mxu0 %v12815_v2  ;;  %7067 = vmatpush1.bf16.msra.mxu0 %v12460_v32 }
0x4d8b   :  { %7068 = vmatprep.subr.bf16.mxu0 %v12465_v45 }
0x4d8e   :  { %7069 = vmatpush1.bf16.msra.mxu0 %v12463_v9 }
0x4d8f   :  { %7070 = vmatprep.subr.bf16.mxu0 %v12468_v19 }
0x4d92   :  { %7071 = vmatpush1.bf16.msra.mxu0 %v12466_v27 }
0x4d93   :  { %7072 = vmatprep.subr.bf16.mxu0 %v12471_v20 }
0x4d96   :  { %7073 = vmatpush1.bf16.msra.mxu0 %v12469_v31 }
0x4d97   :  { %11941 = vmatprep.subr.bf16.mxu0 %v12816_v4 }
0x4e5c   :  { %v6798_v21 = vpop.f32.mrb[212].mxu0 }
0x4e5d   :  { %v6799_v43 = vadd.f32 %v6798_v21, %v6714_v14  ;;  %v6800_v48 = vpop.f32.mrb[213].mxu0 }
0x4e5e   :  { %v6801_v16 = vadd.f32 %v6800_v48, %v6718_v7  ;;  %v6802_v52 = vpop.f32.mrb[214].mxu0 }
0x4e5f   :  { %v6803_v11 = vadd.f32 %v6802_v52, %v6714_v14  ;;  %v6804_v53 = vpop.f32.mrb[215].mxu0  ;;  %v6807_v23 = vmax.f32 %v6799_v43, 0.0  ;;  %v10729_v43 = vld [vmem:[%s13007_s9] ss:$0 sm:$0xff] }
0x4e60   :  { %v6805_v47 = vadd.f32 %v6804_v53, %v6718_v7  ;;  %v6808_v59 = vmax.f32 %v6801_v16, 0.0  ;;  %v10738_v53 = vld [vmem:[%s14868_s21 + $0x2] sm:$0x3] }
0x4e61   :  { %v6809_v62 = vmax.f32 %v6803_v11, 0.0 }
0x4e62   :  { %v6810_v41 = vmax.f32 %v6805_v47, 0.0  ;;  %v7016_v47 = vrot.slane %v10738_v53, %v13042_v15 }
0x4e63   :  { %v6811_v38 = vpack.c.bf16 %v6809_v62, %v6807_v23  ;;  %v7020_v23 = vrot.slane %v10738_v53, %v13047_v18  ;;  %v14316_v53 = vld [vmem:[%s14869_s25 + $0x28] sm:$0xff]  }
0x4e64   :  { %v6812_v6 = vpack.c.bf16 %v6810_v41, %v6808_v59 }
0x4e66   :  { %6947 = vmatprep.mubr.bf16.mxu1 %v6812_v6 }
0x4e67   :  { %6948 = vmatmul.mubr.bf16.vlgmr.msra.gmra.mrb[208].mxu1 %v6811_v38 }
0x4e68   :  { %11949 = vmatprep.mubr.msk.bf16.mxu1 %vm12817_vm1, %v12816_v4 }
0x4f3a   :  { %v11202_v55 = vpop.f32.mrb[208].mxu1 }
0x4f3b   :  { %v11203_v8 = vpop.f32.mrb[209].mxu1 }
0x4f3c   :  { %v11204_v28 = vadd.f32 %v11203_v8, %v11202_v55  ;;  %v11205_v58 = vpop.f32.mrb[210].mxu1 }
0x4f3d   :  { %v11206_v29 = vpop.f32.mrb[211].mxu1 }
0x4f3e   :  { %v6950_v56 = vadd.f32 %v11204_v28, %v10711_v51  ;;  %v11207_v37 = vadd.f32 %v11206_v29, %v11205_v58 }
0x4f40   :  { %v6953_v3 = vadd.f32 %v11207_v37, %v10711_v51  ;;  %v6956_v63 = vadd.f32 %v6950_v56, %v6707_v49 }
0x4f42   :  { %v6958_v60 = vsel %vm238_vm0, %v6956_v63, 0.0  ;;  %v6957_v22 = vadd.f32 %v6953_v3, %v6708_v34 }
0x4f43   :  { %6959 = vadd.xlane.f32.xlu1 %v6958_v60 }
0x4f44   :  { %v6961_v39 = vsel %vm238_vm0, %v6957_v22, 0.0 }
0x4f47   :  { %6962 = vadd.xlane.f32.xlu1 %v6961_v39 }
0x4fd0   :  { %v6960_v50 = vpop.xlane.xlu1 %6959 }
0x4fd1   :  { %v6964_v36 = vmul.f32 0.015625, %v6960_v50 }
0x4fd3   :  { %v6966_v0 = vsub.f32 %v6956_v63, %v6964_v36 }
0x4fd4   :  { %v6963_v25 = vpop.xlane.xlu1 %6962 }
0x4fd5   :  { %v6965_v57 = vmul.f32 0.015625, %v6963_v25  ;;  %v6968_v17 = vmul.f32 %v6966_v0, %v6966_v0 }
0x4fd7   :  { %v6967_v54 = vsub.f32 %v6957_v22, %v6965_v57  ;;  %v6970_v30 = vsel %vm238_vm0, %v6968_v17, 0.0 }
0x4fd8   :  { %6971 = vadd.xlane.f32.xlu0 %v6970_v30 }
0x4fd9   :  { %v6969_v5 = vmul.f32 %v6967_v54, %v6967_v54 }
0x4fdb   :  { %v6973_v46 = vsel %vm238_vm0, %v6969_v5, 0.0 }
0x4fdc   :  { %6974 = vadd.xlane.f32.xlu1 %v6973_v46 }
0x5065   :  { %v6972_v49 = vpop.xlane.xlu0 %6971 }
0x5066   :  { %v6976_v34 = vmul.f32 0.015625, %v6972_v49 }
0x5068   :  { %v6978_v35 = vadd.f32 1e-05, %v6976_v34 }
0x5069   :  { %v6975_v26 = vpop.xlane.xlu1 %6974 }
0x506a   :  { %12672 = vrsqrt.f32 %v6978_v35  ;;  %v6977_v42 = vmul.f32 0.015625, %v6975_v26 }
0x506c   :  { %v6979_v33 = vadd.f32 1e-05, %v6977_v42 }
0x506e   :  { %12674 = vrsqrt.f32 %v6979_v33 }
0x5074   :  { %v12673_v61 = vpop.eup %12672 }
0x5075   :  { %v6982_v13 = vmul.f32 %v12673_v61, %v6966_v0 }
0x5077   :  { %v6990_v7 = vmul.f32 %v10728_v10, %v6982_v13 }
0x5078   :  { %v12675_v14 = vpop.eup %12674 }
0x5079   :  { %v6983_v21 = vmul.f32 %v12675_v14, %v6967_v54  ;;  %v14249_v16 = vadd.f32 %v10729_v43, %v6990_v7 }
0x507b   :  { %v6991_v48 = vmul.f32 %v10728_v10, %v6983_v21 }
0x507d   :  { %v14251_v52 = vadd.f32 %v10729_v43, %v6991_v48 }
0x507f   :  { %v7009_v11 = vpack.c.bf16 %v14251_v52, %v14249_v16 }
0x5081   :  { %10747 = vmatmul.mubr.msk.bf16.vlgmr.msra.gmra.mrb[216].mxu0 %vm238_vm0, %v7009_v11  ;;  %v14312_v11 = vld [vmem:[%s14869_s25 + $0x20] sm:$0xff]  }
0x5082   :  { %11943 = vmatprep.mubr.msk.bf16.mxu0 %vm12817_vm1, %v12816_v4 }
0x5154   :  { %v7100_v62 = vpop.f32.mrb[216].mxu0 }
0x5155   :  { %v7101_v59 = vadd.f32 %v7100_v62, %v7016_v47  ;;  %v7102_v41 = vpop.f32.mrb[217].mxu0 }
0x5156   :  { %v7103_v38 = vadd.f32 %v7102_v41, %v7020_v23  ;;  %v7104_v6 = vpop.f32.mrb[218].mxu0 }
0x5157   :  { %v14261_v55 = vpack.c.bf16 %v7101_v59, %v7101_v59  ;;  %v14263_v51 = vadd.f32 %v7104_v6, %v7016_v47  ;;  %v7106_v8 = vpop.f32.mrb[219].mxu0  ;;  %v7109_v56 = vmul.f32 0.125, %v7101_v59 }
0x5158   :  { %v14265_v28 = vpack.c.bf16 %v7103_v38, %v7103_v38  ;;  %v14267_v58 = vadd.f32 %v7106_v8, %v7020_v23 }
0x5159   :  { %7126 = vrot.lane.b32.xlu1 %v14261_v55, %s12818_s0  ;;  %v14276_v37 = vpack.c.bf16 %v7109_v56, %v7109_v56 }
0x515a   :  { %v7190_v29 = vsel %vm365_vm3, %v14265_v28, 0 }
0x515b   :  { %11948 = vmatpush3.bf16.msra.mxu1 %v7190_v29 }
0x515c   :  { %11959 = vmatprep.subr.bf16.mxu1 %v12816_v4 }
0x515d   :  { %7236 = vrot.lane.b32.xlu1 %v14261_v55, %s12820_s10 }
0x5161   :  { %7234 = vrot.lane.b32.xlu1 %v14276_v37, %s12819_s7 }
0x51cb   :  { %v7127_v3 = vpop.permute.xlu1 %7126 }
0x51cc   :  { %v7132_v63 = vsel %vm302_vm2, %v7127_v3, 0 }
0x51cd   :  { %11942 = vmatpush3.bf16.xpose.msra.mxu0 %v7132_v63 }
0x51ce   :  { %11953 = vmatprep.subr.bf16.mxu0 %v12816_v4 }
0x51cf   :  { %v7237_v60 = vpop.permute.xlu1 %7236 }
0x51d0   :  { %v7242_v22 = vsel %vm302_vm2, %v7237_v60, 0 }
0x51d3   :  { %v7235_v39 = vpop.permute.xlu1 %7234 }
0x51d4   :  { %11944 = vmatmul.mubr.msk.bf16.vlgmr.msra.gmra.mrb[220].mxu0 %vm302_vm2, %v14276_v37 }
0x51d5   :  { %11954 = vmatpush3.bf16.xpose.msra.mxu0 %v7242_v22  ;;  %11955 = vmatprep.mubr.msk.bf16.mxu0 %vm12817_vm1, %v12816_v4 }
0x51d6   :  { %11965 = vmatprep.subr.bf16.mxu0 %v12816_v4 }
0x51dc   :  { %11956 = vmatmul.mubr.msk.bf16.vlgmr.msra.gmra.mrb[224].mxu0 %vm302_vm2, %v7235_v39 }
0x51dd   :  { %11967 = vmatprep.mubr.msk.bf16.mxu0 %vm12817_vm1, %v12816_v4  ;;  %11966 = vmatpush3.bf16.msra.mxu0 %v14316_v53 }
0x51de   :  { %11977 = vmatprep.subr.bf16.mxu0 %v12816_v4 }
0x52a7   :  { %v7168_v50 = vpop.f32.mrb[220].mxu0 }
0x52a8   :  { %v7169_v36 = vadd.f32 %v7168_v50, %v13707_v24  ;;  %v11945_v0 = vpop.f32.mrb[221].mxu0 }
0x52a9   :  { %v7171_v25 = vpop.f32.mrb[222].mxu0 }
0x52aa   :  { %v11946_v57 = vpop.f32.mrb[223].mxu0  ;;  %v7174_v17 = vsel %vm349_vm5, %v7169_v36, -inf }
0x52ab   :  { %7175 = vmax.xlane.f32.xlu0 %v7174_v17 }
0x52af   :  { %v7278_v54 = vpop.f32.mrb[224].mxu0 }
0x52b0   :  { %v7279_v30 = vadd.f32 %v7278_v54, %v13707_v24  ;;  %v11957_v5 = vpop.f32.mrb[225].mxu0 }
0x52b1   :  { %v7281_v46 = vpop.f32.mrb[226].mxu0 }
0x52b2   :  { %v11958_v44 = vpop.f32.mrb[227].mxu0  ;;  %v7284_v32 = vsel %vm349_vm5, %v7279_v30, -inf }
0x52b3   :  { %7285 = vmax.xlane.f32.xlu1 %v7284_v32 }
0x52c4   :  { %7444 = vrot.lane.b32.xlu1 %v14276_v37, %s12822_s11 }
0x5338   :  { %v7176_v45 = vpop.xlane.xlu0 %7175 }
0x5339   :  { %v7177_v9 = vsub.f32 %v7169_v36, %v7176_v45 }
0x533b   :  { %v7178_v19 = vmul.f32 1.442695, %v7177_v9 }
0x533d   :  { %12676 = vpow2.f32 %v7178_v19 }
0x5340   :  { %v7286_v27 = vpop.xlane.xlu1 %7285 }
0x5341   :  { %v7287_v31 = vsub.f32 %v7279_v30, %v7286_v27 }
0x5343   :  { %v7288_v20 = vmul.f32 1.442695, %v7287_v31 }
0x5344   :  { %v7445_v60 = vpop.permute.xlu1 %7444 }
0x5345   :  { %12678 = vpow2.f32 %v7288_v20 }
0x5347   :  { %v12677_v49 = vpop.eup %12676 }
0x5348   :  { %v7180_v34 = vsel %vm349_vm5, %v12677_v49, 0.0 }
0x5349   :  { %7181 = vadd.xlane.f32.xlu0 %v7180_v34 }
0x534f   :  { %v12679_v35 = vpop.eup %12678 }
0x5350   :  { %v7290_v26 = vsel %vm349_vm5, %v12679_v35, 0.0 }
0x5351   :  { %7291 = vadd.xlane.f32.xlu0 %v7290_v26 }
0x5367   :  { %7297 = vrot.lane.b32.xlu0 %v14265_v28, %s12819_s7 }
0x536b   :  { %7446 = vrot.lane.b32.xlu0 %v14261_v55, %s12821_s13 }
0x53d6   :  { %v7182_v42 = vpop.xlane.xlu0 %7181 }
0x53d7   :  { %12680 = vrcp.f32 %v7182_v42 }
0x53de   :  { %v7292_v33 = vpop.xlane.xlu0 %7291 }
0x53df   :  { %12682 = vrcp.f32 %v7292_v33 }
0x53e1   :  { %v12681_v61 = vpop.eup %12680 }
0x53e2   :  { %v7184_v13 = vmul.f32 %v12681_v61, %v12677_v49  ;;  %v7298_v10 = vpop.permute.xlu0 %7297 }
0x53e3   :  { %v7303_v7 = vsel %vm365_vm3, %v7298_v10, 0 }
0x53e4   :  { %v7185_v14 = vpack.c.bf16 %v7184_v13, %v7184_v13 }
0x53e6   :  { %11950 = vmatmul.mubr.msk.bf16.vlgmr.msra.gmra.mrb[212].mxu1 %vm349_vm5, %v7185_v14  ;;  %v7447_v38 = vpop.permute.xlu0 %7446 }
0x53e7   :  { %11960 = vmatpush3.bf16.msra.mxu1 %v7303_v7  ;;  %11961 = vmatprep.mubr.msk.bf16.mxu1 %vm12817_vm1, %v12816_v4  ;;  %v7452_v3 = vsel %vm302_vm2, %v7447_v38, 0  ;;  %v7110_v38 = vmul.f32 0.125, %v14263_v51 }
0x53e8   :  { %11971 = vmatprep.subr.bf16.mxu1 %v12816_v4 }
0x53e9   :  { %v12683_v21 = vpop.eup %12682 }
0x53ea   :  { %v7294_v43 = vmul.f32 %v12683_v21, %v12679_v35 }
0x53ec   :  { %v7295_v48 = vpack.c.bf16 %v7294_v43, %v7294_v43 }
0x53ee   :  { %11962 = vmatmul.mubr.msk.bf16.vlgmr.msra.gmra.mrb[216].mxu1 %vm349_vm5, %v7295_v48 }
0x53ef   :  { %11973 = vmatprep.mubr.msk.bf16.mxu1 %vm12817_vm1, %v12816_v4  ;;  %11972 = vmatpush3.bf16.msra.mxu1 %v14312_v11 }
0x53f0   :  { %11983 = vmatprep.subr.bf16.mxu1 %v12816_v4 }
0x54b9   :  { %v7226_v47 = vpop.f32.mrb[212].mxu1 }
0x54ba   :  { %v7232_v23 = vpack.c.bf16 %v7226_v47, %v7226_v47  ;;  %v11951_v62 = vpop.f32.mrb[213].mxu1 }
0x54bb   :  { %v7229_v59 = vpop.f32.mrb[214].mxu1 }
0x54bc   :  { %v11952_v41 = vpop.f32.mrb[215].mxu1  ;;  %11974 = vmatmul.mubr.msk.bf16.vlgmr.msra.gmra.mrb[220].mxu1 %vm302_vm2, %v7232_v23 }
0x54bd   :  { %11985 = vmatprep.mubr.msk.bf16.mxu1 %vm12817_vm1, %v12816_v4 }
0x54c1   :  { %v7339_v6 = vpop.f32.mrb[216].mxu1 }
0x54c2   :  { %v7345_v8 = vpack.c.bf16 %v7339_v6, %v7339_v6  ;;  %v11963_v29 = vpop.f32.mrb[217].mxu1  ;;  %v14368_v6 = vpack.c.bf16 %v14263_v51, %v14263_v51 }
0x54c3   :  { %v7342_v56 = vpop.f32.mrb[218].mxu1 }
0x54c4   :  { %v11964_v63 = vpop.f32.mrb[219].mxu1  ;;  %11968 = vmatmul.mubr.msk.bf16.vlgmr.msra.gmra.mrb[228].mxu0 %vm302_vm2, %v7345_v8  ;;  %v14372_v8 = vpack.c.bf16 %v7110_v38, %v7110_v38 }
0x54c5   :  { %11978 = vmatpush3.bf16.xpose.msra.mxu0 %v7452_v3  ;;  %11979 = vmatprep.mubr.msk.bf16.mxu0 %vm12817_vm1, %v12816_v4 }
0x54c6   :  { %11989 = vmatprep.subr.bf16.mxu0 %v12816_v4 }
0x54cc   :  { %11980 = vmatmul.mubr.msk.bf16.vlgmr.msra.gmra.mrb[232].mxu0 %vm302_vm2, %v7445_v60 }
0x54cd   :  { %11991 = vmatprep.mubr.msk.bf16.mxu0 %vm12817_vm1, %v12816_v4 }
0x558f   :  { %v7438_v22 = vpop.f32.mrb[220].mxu1 }
0x5590   :  { %v11975_v39 = vpop.f32.mrb[221].mxu1 }
0x5591   :  { %v7441_v50 = vpop.f32.mrb[222].mxu1 }
0x5592   :  { %v11976_v36 = vpop.f32.mrb[223].mxu1 }
0x5593   :  { %v14385_v36 = vld [vmem:[%s14869_s25 + $0x38] sm:$0xff]  }
0x5597   :  { %v7389_v0 = vpop.f32.mrb[228].mxu0 }
0x5598   :  { %v14332_v25 = vadd.f32 %v7438_v22, %v7389_v0  ;;  %v11969_v57 = vpop.f32.mrb[229].mxu0 }
0x5599   :  { %v7392_v17 = vpop.f32.mrb[230].mxu0 }
0x559a   :  { %v11970_v54 = vpop.f32.mrb[231].mxu0 }
0x559f   :  { %v7488_v30 = vpop.f32.mrb[232].mxu0 }
0x55a0   :  { %v7489_v5 = vadd.f32 %v7488_v30, %v13707_v24  ;;  %v11981_v46 = vpop.f32.mrb[233].mxu0 }
0x55a1   :  { %v7491_v44 = vpop.f32.mrb[234].mxu0 }
0x55a2   :  { %v11982_v32 = vpop.f32.mrb[235].mxu0  ;;  %v7494_v45 = vsel %vm349_vm5, %v7489_v5, -inf }
0x55a3   :  { %7495 = vmax.xlane.f32.xlu0 %v7494_v45 }
0x55b9   :  { %7506 = vrot.lane.b32.xlu0 %v14265_v28, %s12822_s11 }
0x55bd   :  { %7605 = vrot.lane.b32.xlu0 %v14276_v37, %s12823_s15 }
0x5630   :  { %v7496_v9 = vpop.xlane.xlu0 %7495 }
0x5631   :  { %v7497_v19 = vsub.f32 %v7489_v5, %v7496_v9  ;;  %v14407_v9 = vpack.c.bf16 %v14267_v58, %v14267_v58 }
0x5633   :  { %v7498_v27 = vmul.f32 1.442695, %v7497_v19 }
0x5634   :  { %v7507_v31 = vpop.permute.xlu0 %7506 }
0x5635   :  { %12684 = vpow2.f32 %v7498_v27  ;;  %v7512_v20 = vsel %vm365_vm3, %v7507_v31, 0 }
0x5636   :  { %11984 = vmatpush3.bf16.msra.mxu1 %v7512_v20 }
0x5637   :  { %11995 = vmatprep.subr.bf16.mxu1 %v12816_v4 }
0x5638   :  { %v7606_v13 = vpop.permute.xlu0 %7605 }
0x563f   :  { %v12685_v49 = vpop.eup %12684 }
0x5640   :  { %v7500_v34 = vsel %vm349_vm5, %v12685_v49, 0.0 }
0x5641   :  { %7501 = vadd.xlane.f32.xlu1 %v7500_v34  ;;  %v7841_v34 = vsel %vm365_vm3, %v14407_v9, 0 }
0x5652   :  { %7607 = vrot.lane.b32.xlu1 %v14261_v55, %s12824_s16  ;;  %v14354_v55 = vld [vmem:[%s14869_s25 + $0x30] sm:$0xff]  }
0x5653   :  { %11990 = vmatpush3.bf16.msra.mxu0 %v14354_v55 }
0x5654   :  { %12001 = vmatprep.subr.bf16.mxu0 %v12816_v4 }
0x56ce   :  { %v7502_v35 = vpop.xlane.xlu1 %7501 }
0x56cf   :  { %12686 = vrcp.f32 %v7502_v35 }
0x56d2   :  { %v7608_v42 = vpop.permute.xlu1 %7607 }
0x56d3   :  { %v7613_v61 = vsel %vm302_vm2, %v7608_v42, 0 }
0x56d9   :  { %v12687_v37 = vpop.eup %12686 }
0x56da   :  { %v7504_v26 = vmul.f32 %v12687_v37, %v12685_v49 }
0x56dc   :  { %v7505_v33 = vpack.c.bf16 %v7504_v26, %v7504_v26 }
0x56de   :  { %11986 = vmatmul.mubr.msk.bf16.vlgmr.msra.gmra.mrb[224].mxu1 %vm349_vm5, %v7505_v33 }
0x56df   :  { %11996 = vmatpush3.bf16.xpose.msra.mxu1 %v7613_v61  ;;  %11997 = vmatprep.mubr.msk.bf16.mxu1 %vm12817_vm1, %v12816_v4 }
0x56e0   :  { %12007 = vmatprep.subr.bf16.mxu1 %v12816_v4 }
0x56e6   :  { %11998 = vmatmul.mubr.msk.bf16.vlgmr.msra.gmra.mrb[228].mxu1 %vm302_vm2, %v7606_v13 }
0x56e7   :  { %12009 = vmatprep.mubr.msk.bf16.mxu1 %vm12817_vm1, %v12816_v4  ;;  %12008 = vmatpush3.bf16.msra.mxu1 %v14385_v36 }
0x56e8   :  { %12019 = vmatprep.subr.bf16.mxu1 %v12816_v4 }
0x57b1   :  { %v7548_v10 = vpop.f32.mrb[224].mxu1 }
0x57b2   :  { %v7554_v14 = vpack.c.bf16 %v7548_v10, %v7548_v10  ;;  %v11987_v7 = vpop.f32.mrb[225].mxu1 }
0x57b3   :  { %v7551_v21 = vpop.f32.mrb[226].mxu1 }
0x57b4   :  { %v11988_v43 = vpop.f32.mrb[227].mxu1  ;;  %11992 = vmatmul.mubr.msk.bf16.vlgmr.msra.gmra.mrb[236].mxu0 %vm302_vm2, %v7554_v14 }
0x57b5   :  { %12003 = vmatprep.mubr.msk.bf16.mxu0 %vm12817_vm1, %v12816_v4 }
0x57b9   :  { %v7649_v48 = vpop.f32.mrb[228].mxu1 }
0x57ba   :  { %v7650_v47 = vadd.f32 %v7649_v48, %v13707_v24  ;;  %v11999_v23 = vpop.f32.mrb[229].mxu1 }
0x57bb   :  { %v7652_v62 = vpop.f32.mrb[230].mxu1 }
0x57bc   :  { %v12000_v59 = vpop.f32.mrb[231].mxu1  ;;  %v7655_v41 = vsel %vm349_vm5, %v7650_v47, -inf }
0x57bd   :  { %7656 = vmax.xlane.f32.xlu0 %v7655_v41 }
0x57d3   :  { %7667 = vrot.lane.b32.xlu0 %v14265_v28, %s12823_s15 }
0x57d7   :  { %7887 = vrot.lane.b32.xlu0 %v14368_v6, %s12820_s10 }
0x57db   :  { %7885 = vrot.lane.b32.xlu0 %v14372_v8, %s12819_s7 }
0x584a   :  { %v7657_v29 = vpop.xlane.xlu0 %7656 }
0x584b   :  { %v7658_v56 = vsub.f32 %v7650_v47, %v7657_v29 }
0x584d   :  { %v7659_v3 = vmul.f32 1.442695, %v7658_v56 }
0x584e   :  { %v7668_v63 = vpop.permute.xlu0 %7667 }
0x584f   :  { %12688 = vpow2.f32 %v7659_v3  ;;  %v7673_v28 = vsel %vm365_vm3, %v7668_v63, 0 }
0x5850   :  { %12002 = vmatpush3.bf16.msra.mxu0 %v7673_v28 }
0x5851   :  { %12013 = vmatprep.subr.bf16.mxu0 %v12816_v4 }
0x5859   :  { %v12689_v51 = vpop.eup %12688 }
0x585a   :  { %v7661_v60 = vsel %vm349_vm5, %v12689_v51, 0.0 }
0x585b   :  { %7662 = vadd.xlane.f32.xlu1 %v7661_v60 }
0x586c   :  { %7777 = vrot.lane.b32.xlu1 %v14368_v6, %s12818_s0 }
0x5887   :  { %v7598_v22 = vpop.f32.mrb[236].mxu0 }
0x5888   :  { %v14382_v39 = vadd.f32 %v7598_v22, %v14332_v25  ;;  %v11993_v50 = vpop.f32.mrb[237].mxu0  ;;  %v7888_v25 = vpop.permute.xlu0 %7887 }
0x5889   :  { %v7601_v0 = vpop.f32.mrb[238].mxu0  ;;  %v7893_v32 = vsel %vm302_vm2, %v7888_v25, 0 }
0x588a   :  { %v11994_v57 = vpop.f32.mrb[239].mxu0 }
0x588c   :  { %v7886_v45 = vpop.permute.xlu0 %7885 }
0x58e8   :  { %v7663_v17 = vpop.xlane.xlu1 %7662 }
0x58e9   :  { %12690 = vrcp.f32 %v7663_v17 }
0x58ec   :  { %v7778_v5 = vpop.permute.xlu1 %7777 }
0x58ed   :  { %v7783_v44 = vsel %vm302_vm2, %v7778_v5, 0 }
0x58f3   :  { %v12691_v54 = vpop.eup %12690 }
0x58f4   :  { %v7665_v30 = vmul.f32 %v12691_v54, %v12689_v51 }
0x58f6   :  { %v7666_v46 = vpack.c.bf16 %v7665_v30, %v7665_v30 }
0x58f8   :  { %12004 = vmatmul.mubr.msk.bf16.vlgmr.msra.gmra.mrb[240].mxu0 %vm349_vm5, %v7666_v46 }
0x58f9   :  { %12014 = vmatpush3.bf16.xpose.msra.mxu0 %v7783_v44  ;;  %12015 = vmatprep.mubr.msk.bf16.mxu0 %vm12817_vm1, %v12816_v4 }
0x58fa   :  { %12025 = vmatprep.subr.bf16.mxu0 %v12816_v4 }
0x5900   :  { %12016 = vmatmul.mubr.msk.bf16.vlgmr.msra.gmra.mrb[244].mxu0 %vm302_vm2, %v14372_v8 }
0x5901   :  { %12026 = vmatpush3.bf16.xpose.msra.mxu0 %v7893_v32  ;;  %12027 = vmatprep.mubr.msk.bf16.mxu0 %vm12817_vm1, %v12816_v4 }
0x5902   :  { %12037 = vmatprep.subr.bf16.mxu0 %v12816_v4 }
0x5908   :  { %12028 = vmatmul.mubr.msk.bf16.vlgmr.msra.gmra.mrb[248].mxu0 %vm302_vm2, %v7886_v45 }
0x5909   :  { %12038 = vmatpush3.bf16.msra.mxu0 %v14316_v53  ;;  %12039 = vmatprep.mubr.msk.bf16.mxu0 %vm12817_vm1, %v12816_v4 }
0x590a   :  { %12049 = vmatprep.subr.bf16.mxu0 %v12816_v4 }
0x59cb   :  { %v7709_v19 = vpop.f32.mrb[240].mxu0 }
0x59cc   :  { %v7715_v27 = vpack.c.bf16 %v7709_v19, %v7709_v19  ;;  %v12005_v31 = vpop.f32.mrb[241].mxu0 }
0x59cd   :  { %v7712_v20 = vpop.f32.mrb[242].mxu0 }
0x59ce   :  { %v12006_v49 = vpop.f32.mrb[243].mxu0  ;;  %12010 = vmatmul.mubr.msk.bf16.vlgmr.msra.gmra.mrb[232].mxu1 %vm302_vm2, %v7715_v27 }
0x59cf   :  { %12020 = vmatpush3.bf16.msra.mxu1 %v7841_v34  ;;  %12021 = vmatprep.mubr.msk.bf16.mxu1 %vm12817_vm1, %v12816_v4 }
0x59d0   :  { %12031 = vmatprep.subr.bf16.mxu1 %v12816_v4 }
0x59d3   :  { %v7819_v53 = vpop.f32.mrb[244].mxu0 }
0x59d4   :  { %v7820_v58 = vadd.f32 %v7819_v53, %v13707_v24  ;;  %v12017_v35 = vpop.f32.mrb[245].mxu0 }
0x59d5   :  { %v7822_v37 = vpop.f32.mrb[246].mxu0 }
0x59d6   :  { %v12018_v26 = vpop.f32.mrb[247].mxu0  ;;  %v7825_v42 = vsel %vm349_vm5, %v7820_v58, -inf }
0x59d7   :  { %7826 = vmax.xlane.f32.xlu0 %v7825_v42 }
0x59db   :  { %v7929_v33 = vpop.f32.mrb[248].mxu0 }
0x59dc   :  { %v7930_v61 = vadd.f32 %v7929_v33, %v13707_v24  ;;  %v12029_v13 = vpop.f32.mrb[249].mxu0 }
0x59dd   :  { %v7932_v10 = vpop.f32.mrb[250].mxu0 }
0x59de   :  { %v12030_v14 = vpop.f32.mrb[251].mxu0  ;;  %v7935_v7 = vsel %vm349_vm5, %v7930_v61, -inf }
0x59df   :  { %7936 = vmax.xlane.f32.xlu1 %v7935_v7 }
0x59f0   :  { %8085 = vrot.lane.b32.xlu1 %v14368_v6, %s12821_s13 }
0x59f4   :  { %8083 = vrot.lane.b32.xlu1 %v14372_v8, %s12822_s11 }
0x5a64   :  { %v7827_v21 = vpop.xlane.xlu0 %7826 }
0x5a65   :  { %v7828_v43 = vsub.f32 %v7820_v58, %v7827_v21 }
0x5a67   :  { %v7829_v48 = vmul.f32 1.442695, %v7828_v43 }
0x5a69   :  { %12692 = vpow2.f32 %v7829_v48 }
0x5a6c   :  { %v7937_v47 = vpop.xlane.xlu1 %7936 }
0x5a6d   :  { %v7938_v23 = vsub.f32 %v7930_v61, %v7937_v47 }
0x5a6f   :  { %v7939_v62 = vmul.f32 1.442695, %v7938_v23 }
0x5a70   :  { %v8086_v19 = vpop.permute.xlu1 %8085 }
0x5a71   :  { %12694 = vpow2.f32 %v7939_v62  ;;  %v8091_v49 = vsel %vm302_vm2, %v8086_v19, 0 }
0x5a73   :  { %v12693_v59 = vpop.eup %12692 }
0x5a74   :  { %v7831_v41 = vsel %vm349_vm5, %v12693_v59, 0.0  ;;  %v8084_v53 = vpop.permute.xlu1 %8083 }
0x5a75   :  { %7832 = vadd.xlane.f32.xlu0 %v7831_v41 }
0x5a7b   :  { %v12695_v38 = vpop.eup %12694 }
0x5a7c   :  { %v7941_v29 = vsel %vm349_vm5, %v12695_v38, 0.0 }
0x5a7d   :  { %7942 = vadd.xlane.f32.xlu0 %v7941_v29 }
0x5a93   :  { %7948 = vrot.lane.b32.xlu0 %v14407_v9, %s12819_s7 }
0x5aa1   :  { %v7759_v56 = vpop.f32.mrb[232].mxu1 }
0x5aa2   :  { %v14428_v3 = vadd.f32 %v7759_v56, %v14382_v39  ;;  %v12011_v63 = vpop.f32.mrb[233].mxu1 }
0x5aa3   :  { %v7762_v28 = vpop.f32.mrb[234].mxu1 }
0x5aa4   :  { %v12012_v51 = vpop.f32.mrb[235].mxu1 }
0x5b02   :  { %v7833_v60 = vpop.xlane.xlu0 %7832 }
0x5b03   :  { %12696 = vrcp.f32 %v7833_v60 }
0x5b0a   :  { %v7943_v22 = vpop.xlane.xlu0 %7942 }
0x5b0b   :  { %12698 = vrcp.f32 %v7943_v22 }
0x5b0d   :  { %v12697_v50 = vpop.eup %12696 }
0x5b0e   :  { %v7835_v0 = vmul.f32 %v12697_v50, %v12693_v59  ;;  %v7949_v57 = vpop.permute.xlu0 %7948 }
0x5b0f   :  { %v7954_v54 = vsel %vm365_vm3, %v7949_v57, 0 }
0x5b10   :  { %v7836_v17 = vpack.c.bf16 %v7835_v0, %v7835_v0 }
0x5b12   :  { %12022 = vmatmul.mubr.msk.bf16.vlgmr.msra.gmra.mrb[236].mxu1 %vm349_vm5, %v7836_v17 }
0x5b13   :  { %12032 = vmatpush3.bf16.msra.mxu1 %v7954_v54  ;;  %12033 = vmatprep.mubr.msk.bf16.mxu1 %vm12817_vm1, %v12816_v4  ;;  %v14478_v54 = vld [vmem:[%s14870_s29 + $0x1] ss:$0 sm:$0xff] }
0x5b14   :  { %12043 = vmatprep.subr.bf16.mxu1 %v12816_v4 }
0x5b15   :  { %v12699_v39 = vpop.eup %12698 }
0x5b16   :  { %v7945_v30 = vmul.f32 %v12699_v39, %v12695_v38 }
0x5b18   :  { %v7946_v5 = vpack.c.bf16 %v7945_v30, %v7945_v30 }
0x5b1a   :  { %12034 = vmatmul.mubr.msk.bf16.vlgmr.msra.gmra.mrb[240].mxu1 %vm349_vm5, %v7946_v5 }
0x5b1b   :  { %12044 = vmatpush3.bf16.msra.mxu1 %v14312_v11  ;;  %12045 = vmatprep.mubr.msk.bf16.mxu1 %vm12817_vm1, %v12816_v4 }
0x5b1c   :  { %12055 = vmatprep.subr.bf16.mxu1 %v12816_v4 }
0x5be5   :  { %v7877_v46 = vpop.f32.mrb[236].mxu1 }
0x5be6   :  { %v7883_v44 = vpack.c.bf16 %v7877_v46, %v7877_v46  ;;  %v12023_v25 = vpop.f32.mrb[237].mxu1 }
0x5be7   :  { %v7880_v32 = vpop.f32.mrb[238].mxu1 }
0x5be8   :  { %v12024_v45 = vpop.f32.mrb[239].mxu1  ;;  %12046 = vmatmul.mubr.msk.bf16.vlgmr.msra.gmra.mrb[244].mxu1 %vm302_vm2, %v7883_v44 }
0x5be9   :  { %12057 = vmatprep.mubr.msk.bf16.mxu1 %vm12817_vm1, %v12816_v4 }
0x5bed   :  { %v7990_v27 = vpop.f32.mrb[240].mxu1 }
0x5bee   :  { %v7996_v31 = vpack.c.bf16 %v7990_v27, %v7990_v27  ;;  %v12035_v20 = vpop.f32.mrb[241].mxu1 }
0x5bef   :  { %v7993_v11 = vpop.f32.mrb[242].mxu1 }
0x5bf0   :  { %v12036_v34 = vpop.f32.mrb[243].mxu1  ;;  %12040 = vmatmul.mubr.msk.bf16.vlgmr.msra.gmra.mrb[252].mxu0 %vm302_vm2, %v7996_v31 }
0x5bf1   :  { %12050 = vmatpush3.bf16.xpose.msra.mxu0 %v8091_v49  ;;  %12051 = vmatprep.mubr.msk.bf16.mxu0 %vm12817_vm1, %v12816_v4 }
0x5bf2   :  { %12061 = vmatprep.subr.bf16.mxu0 %v12816_v4 }
0x5bf8   :  { %12052 = vmatmul.mubr.msk.bf16.vlgmr.msra.gmra.mrb[0].mxu0 %vm302_vm2, %v8084_v53 }
0x5bf9   :  { %12062 = vmatpush3.bf16.msra.mxu0 %v14354_v55  ;;  %12063 = vmatprep.mubr.msk.bf16.mxu0 %vm12817_vm1, %v12816_v4 }
0x5bfa   :  { %12073 = vmatprep.subr.bf16.mxu0 %v12816_v4 }
0x5cbb   :  { %v8077_v58 = vpop.f32.mrb[244].mxu1 }
0x5cbc   :  { %v12047_v35 = vpop.f32.mrb[245].mxu1 }
0x5cbd   :  { %v8080_v37 = vpop.f32.mrb[246].mxu1 }
0x5cbe   :  { %v12048_v26 = vpop.f32.mrb[247].mxu1 }
0x5cc3   :  { %v8034_v42 = vpop.f32.mrb[252].mxu0 }
0x5cc4   :  { %v14453_v33 = vadd.f32 %v8077_v58, %v8034_v42  ;;  %v12041_v61 = vpop.f32.mrb[253].mxu0 }
0x5cc5   :  { %v8037_v13 = vpop.f32.mrb[254].mxu0 }
0x5cc6   :  { %v12042_v10 = vpop.f32.mrb[255].mxu0 }
0x5ccb   :  { %v8127_v14 = vpop.f32.mrb[0].mxu0 }
0x5ccc   :  { %v8128_v7 = vadd.f32 %v8127_v14, %v13707_v24  ;;  %v12053_v21 = vpop.f32.mrb[1].mxu0 }
0x5ccd   :  { %v8130_v55 = vpop.f32.mrb[2].mxu0  ;;  %v12478_v21 = vld [vmem:[%s14871_s3 + $0x30] sm:$0xff]  }
0x5cce   :  { %v12054_v43 = vpop.f32.mrb[3].mxu0  ;;  %v8133_v48 = vsel %vm349_vm5, %v8128_v7, -inf  ;;  %v12479_v55 = vld [vmem:[%s14871_s3 + $0x38] sm:$0xff]  }
0x5ccf   :  { %8134 = vmax.xlane.f32.xlu0 %v8133_v48 }
0x5ce5   :  { %8145 = vrot.lane.b32.xlu0 %v14407_v9, %s12822_s11 }
0x5ce9   :  { %8238 = vrot.lane.b32.xlu0 %v14372_v8, %s12823_s15 }
0x5d5c   :  { %v8135_v47 = vpop.xlane.xlu0 %8134 }
0x5d5d   :  { %v8136_v23 = vsub.f32 %v8128_v7, %v8135_v47  ;;  %v12477_v7 = vld [vmem:[%s14871_s3 + $0x28] sm:$0xff]  }
0x5d5f   :  { %v8137_v62 = vmul.f32 1.442695, %v8136_v23 }
0x5d60   :  { %v8146_v59 = vpop.permute.xlu0 %8145 }
0x5d61   :  { %12700 = vpow2.f32 %v8137_v62  ;;  %v8151_v41 = vsel %vm365_vm3, %v8146_v59, 0 }
0x5d62   :  { %12056 = vmatpush3.bf16.msra.mxu1 %v8151_v41 }
0x5d63   :  { %12067 = vmatprep.subr.bf16.mxu1 %v12816_v4 }
0x5d64   :  { %v8239_v22 = vpop.permute.xlu0 %8238 }
0x5d6b   :  { %v12701_v38 = vpop.eup %12700 }
0x5d6c   :  { %v8139_v29 = vsel %vm349_vm5, %v12701_v38, 0.0 }
0x5d6d   :  { %8140 = vadd.xlane.f32.xlu1 %v8139_v29 }
0x5d7e   :  { %8240 = vrot.lane.b32.xlu1 %v14368_v6, %s12824_s16 }
0x5dfa   :  { %v8141_v56 = vpop.xlane.xlu1 %8140 }
0x5dfb   :  { %12702 = vrcp.f32 %v8141_v56 }
0x5dfe   :  { %v8241_v28 = vpop.permute.xlu1 %8240 }
0x5dff   :  { %v8246_v60 = vsel %vm302_vm2, %v8241_v28, 0 }
0x5e05   :  { %v12703_v8 = vpop.eup %12702 }
0x5e06   :  { %v8143_v63 = vmul.f32 %v12703_v8, %v12701_v38 }
0x5e08   :  { %v8144_v51 = vpack.c.bf16 %v8143_v63, %v8143_v63 }
0x5e0a   :  { %12058 = vmatmul.mubr.msk.bf16.vlgmr.msra.gmra.mrb[248].mxu1 %vm349_vm5, %v8144_v51 }
0x5e0b   :  { %12068 = vmatpush3.bf16.xpose.msra.mxu1 %v8246_v60  ;;  %12069 = vmatprep.mubr.msk.bf16.mxu1 %vm12817_vm1, %v12816_v4  ;;  %v10814_v60 = vld [vmem:[%s14875_s24 + $0x1] ss:$0 sm:$0xff] }
0x5e0c   :  { %12079 = vmatprep.subr.bf16.mxu1 %v12816_v4 }
0x5e12   :  { %12070 = vmatmul.mubr.msk.bf16.vlgmr.msra.gmra.mrb[252].mxu1 %vm302_vm2, %v8239_v22 }
0x5e13   :  { %12080 = vmatpush3.bf16.msra.mxu1 %v14385_v36  ;;  %12081 = vmatprep.mubr.msk.bf16.mxu1 %vm12817_vm1, %v12816_v4  ;;  %v7772_v36 = vadd.f32 %v14478_v54, %v14428_v3 }
0x5e14   :  { %12097 = vmatprep.subr.bf16.mxu1 %v12816_v4 }
0x5e15   :  { %v8394_v32 = vadd.f32 %v7772_v36, %v14249_v16 }
0x5e17   :  { %v8400_v45 = vsel %vm238_vm0, %v8394_v32, 0.0 }
0x5edd   :  { %v8187_v6 = vpop.f32.mrb[248].mxu1 }
0x5ede   :  { %v8193_v50 = vpack.c.bf16 %v8187_v6, %v8187_v6  ;;  %v12059_v0 = vpop.f32.mrb[249].mxu1 }
0x5edf   :  { %v8190_v57 = vpop.f32.mrb[250].mxu1 }
0x5ee0   :  { %v12060_v17 = vpop.f32.mrb[251].mxu1  ;;  %12064 = vmatmul.mubr.msk.bf16.vlgmr.msra.gmra.mrb[4].mxu0 %vm302_vm2, %v8193_v50 }
0x5ee1   :  { %12075 = vmatprep.mubr.msk.bf16.mxu0 %vm12817_vm1, %v12816_v4 }
0x5ee5   :  { %v8282_v39 = vpop.f32.mrb[252].mxu1 }
0x5ee6   :  { %v8283_v30 = vadd.f32 %v8282_v39, %v13707_v24  ;;  %v12071_v5 = vpop.f32.mrb[253].mxu1 }
0x5ee7   :  { %v8285_v46 = vpop.f32.mrb[254].mxu1  ;;  %v12481_v5 = vld [vmem:[%s14872_s8 + $0x28] sm:$0xff]  }
0x5ee8   :  { %v12072_v44 = vpop.f32.mrb[255].mxu1  ;;  %v8288_v25 = vsel %vm349_vm5, %v8283_v30, -inf  ;;  %v12482_v46 = vld [vmem:[%s14872_s8 + $0x30] sm:$0xff]  }
0x5ee9   :  { %8289 = vmax.xlane.f32.xlu1 %v8288_v25  ;;  %v12483_v44 = vld [vmem:[%s14872_s8 + $0x38] sm:$0xff]  }
0x5eed   :  { %8401 = vadd.xlane.f32.xlu1 %v8400_v45 }
0x5f76   :  { %v8290_v19 = vpop.xlane.xlu1 %8289 }
0x5f77   :  { %v8291_v27 = vsub.f32 %v8283_v30, %v8290_v19  ;;  %v12480_v30 = vld [vmem:[%s14872_s8 + $0x20] sm:$0xff]  }
0x5f79   :  { %v8292_v31 = vmul.f32 1.442695, %v8291_v27 }
0x5f7a   :  { %v8402_v43 = vpop.xlane.xlu1 %8401 }
0x5f7b   :  { %12704 = vpow2.f32 %v8292_v31  ;;  %v8406_v48 = vmul.f32 0.015625, %v8402_v43 }
0x5f7d   :  { %v8408_v41 = vsub.f32 %v8394_v32, %v8406_v48 }
0x5f7f   :  { %v8410_v63 = vmul.f32 %v8408_v41, %v8408_v41 }
0x5f85   :  { %v12705_v20 = vpop.eup %12704 }
0x5f86   :  { %v8294_v3 = vsel %vm349_vm5, %v12705_v20, 0.0 }
0x5f87   :  { %8295 = vadd.xlane.f32.xlu0 %v8294_v3 }
0x5f9d   :  { %8300 = vrot.lane.b32.xlu0 %v14407_v9, %s12823_s15 }
0x5fb3   :  { %v8231_v24 = vpop.f32.mrb[4].mxu0 }
0x5fb4   :  { %v8237_v11 = vadd.f32 %v8231_v24, %v14453_v33  ;;  %v12065_v16 = vpop.f32.mrb[5].mxu0  ;;  %v12476_v33 = vld [vmem:[%s14871_s3 + $0x20] sm:$0xff]  }
0x5fb5   :  { %v8234_v49 = vpop.f32.mrb[6].mxu0  ;;  %v10788_v24 = vld [vmem:[%s14873_s14 + $0x1] ss:$0 sm:$0xff] }
0x5fb6   :  { %v12066_v34 = vpop.f32.mrb[7].mxu0 }
0x5fb7   :  { %v10789_v34 = vld [vmem:[%s14874_s19 + $0x1] ss:$0 sm:$0xff] }
0x6014   :  { %v8296_v53 = vpop.xlane.xlu0 %8295 }
0x6015   :  { %12706 = vrcp.f32 %v8296_v53 }
0x6018   :  { %v8301_v58 = vpop.permute.xlu0 %8300 }
0x6019   :  { %v8306_v35 = vsel %vm365_vm3, %v8301_v58, 0 }
0x601a   :  { %12074 = vmatpush3.bf16.msra.mxu0 %v8306_v35 }
0x601b   :  { %12085 = vmatprep.subr.bf16.mxu0 %v12816_v4 }
0x601f   :  { %v12707_v37 = vpop.eup %12706 }
0x6020   :  { %v8298_v26 = vmul.f32 %v12707_v37, %v12705_v20 }
0x6022   :  { %v8299_v9 = vpack.c.bf16 %v8298_v26, %v8298_v26 }
0x6024   :  { %12076 = vmatmul.mubr.msk.bf16.vlgmr.msra.gmra.mrb[8].mxu0 %vm349_vm5, %v8299_v9  ;;  %v10799_v9 = vld [vmem:[%s14876_s30 + $0x1] ss:$0 sm:$0xff] }
0x6025   :  { %12093 = vmatprep.mubr.msk.bf16.mxu0 %vm12817_vm1, %v12816_v4  ;;  %12086 = vmatpush3.bf16.msra.mxu0 %v12480_v30 }
0x6026   :  { %12087 = vmatprep.subr.bf16.mxu0 %v12816_v4 }
0x6029   :  { %12088 = vmatpush3.bf16.msra.mxu0 %v12481_v5 }
0x602a   :  { %12089 = vmatprep.subr.bf16.mxu0 %v12816_v4 }
0x602d   :  { %12090 = vmatpush3.bf16.msra.mxu0 %v12482_v46 }
0x602e   :  { %12091 = vmatprep.subr.bf16.mxu0 %v12816_v4 }
0x6031   :  { %12092 = vmatpush3.bf16.msra.mxu0 %v12483_v44 }
0x6032   :  { %12109 = vmatprep.subr.bf16.mxu0 %v12816_v4 }
0x60f7   :  { %v8342_v42 = vpop.f32.mrb[8].mxu0 }
0x60f8   :  { %v8348_v61 = vpack.c.bf16 %v8342_v42, %v8342_v42  ;;  %v12077_v13 = vpop.f32.mrb[9].mxu0 }
0x60f9   :  { %v8345_v10 = vpop.f32.mrb[10].mxu0 }
0x60fa   :  { %v12078_v14 = vpop.f32.mrb[11].mxu0  ;;  %12082 = vmatmul.mubr.msk.bf16.vlgmr.msra.gmra.mrb[0].mxu1 %vm302_vm2, %v8348_v61 }
0x60fb   :  { %12098 = vmatpush3.bf16.msra.mxu1 %v12476_v33  ;;  %12105 = vmatprep.mubr.msk.bf16.mxu1 %vm12817_vm1, %v12816_v4 }
0x60fc   :  { %12099 = vmatprep.subr.bf16.mxu1 %v12816_v4 }
0x60ff   :  { %12100 = vmatpush3.bf16.msra.mxu1 %v12477_v7 }
0x6100   :  { %12101 = vmatprep.subr.bf16.mxu1 %v12816_v4 }
0x6103   :  { %12102 = vmatpush3.bf16.msra.mxu1 %v12478_v21 }
0x6104   :  { %12103 = vmatprep.subr.bf16.mxu1 %v12816_v4 }
0x6107   :  { %12104 = vmatpush3.bf16.msra.mxu1 %v12479_v55 }
0x6108   :  { %12115 = vmatprep.subr.bf16.mxu1 %v12816_v4 }
0x610a   :  { %12106 = vmatmul.mubr.msk.bf16.vlgmr.msra.gmra.mrb[4].mxu1 %vm238_vm0, %v13943_v1  ;;  %v8412_v1 = vsel %vm238_vm0, %v8410_v63, 0.0 }
0x610b   :  { %12117 = vmatprep.mubr.msk.bf16.mxu1 %vm12817_vm1, %v12816_v4 }
0x61cd   :  { %v8386_v47 = vpop.f32.mrb[0].mxu1 }
0x61ce   :  { %v8392_v23 = vadd.f32 %v8386_v47, %v8237_v11  ;;  %v12083_v62 = vpop.f32.mrb[1].mxu1 }
0x61cf   :  { %v8389_v59 = vpop.f32.mrb[2].mxu1 }
0x61d0   :  { %v8393_v38 = vadd.f32 %v14478_v54, %v8392_v23  ;;  %v12084_v29 = vpop.f32.mrb[3].mxu1 }
0x61d2   :  { %v8395_v56 = vadd.f32 %v8393_v38, %v14251_v52 }
0x61d4   :  { %v8403_v8 = vsel %vm238_vm0, %v8395_v56, 0.0 }
0x61d5   :  { %8404 = vadd.xlane.f32.xlu1 %v8403_v8 }
0x61d9   :  { %8413 = vadd.xlane.f32.xlu1 %v8412_v1 }
0x61dd   :  { %v8605_v28 = vpop.f32.mrb[4].mxu1 }
0x61de   :  { %v12107_v51 = vpop.f32.mrb[5].mxu1  ;;  %v8606_v36 = vadd.f32 %v10814_v60, %v8605_v28 }
0x61df   :  { %v8608_v22 = vpop.f32.mrb[6].mxu1 }
0x61e0   :  { %v14517_v6 = vadd.f32 %v10814_v60, %v8608_v22  ;;  %v12108_v50 = vpop.f32.mrb[7].mxu1  ;;  %v14520_v39 = vpack.c.bf16 %v8606_v36, %v8606_v36 }
0x61e2   :  { %v8629_v26 = vsel %vm302_vm2, %v14520_v39, 0 }
0x6262   :  { %v8405_v0 = vpop.xlane.xlu1 %8404 }
0x6263   :  { %v8407_v57 = vmul.f32 0.015625, %v8405_v0 }
0x6265   :  { %v8409_v52 = vsub.f32 %v8395_v56, %v8407_v57 }
0x6266   :  { %v8414_v25 = vpop.xlane.xlu1 %8413 }
0x6267   :  { %v8411_v17 = vmul.f32 %v8409_v52, %v8409_v52  ;;  %v8418_v32 = vmul.f32 0.015625, %v8414_v25 }
0x6269   :  { %v8415_v54 = vsel %vm238_vm0, %v8411_v17, 0.0  ;;  %v8420_v45 = vadd.f32 1e-05, %v8418_v32 }
0x626a   :  { %8416 = vadd.xlane.f32.xlu1 %v8415_v54 }
0x626b   :  { %12708 = vrsqrt.f32 %v8420_v45 }
0x6275   :  { %v12709_v20 = vpop.eup %12708 }
0x6276   :  { %v8424_v3 = vmul.f32 %v12709_v20, %v8408_v41 }
0x6278   :  { %v8432_v16 = vmul.f32 %v10788_v24, %v8424_v3 }
0x627a   :  { %v14534_v58 = vadd.f32 %v10789_v34, %v8432_v16 }
0x627b   :  { %8736 = vrot.lane.b32.xlu1 %v14520_v39, %s12819_s7 }
0x62f7   :  { %v8417_v19 = vpop.xlane.xlu1 %8416 }
0x62f8   :  { %v8419_v27 = vmul.f32 0.015625, %v8417_v19 }
0x62fa   :  { %v8421_v31 = vadd.f32 1e-05, %v8419_v27 }
0x62fb   :  { %v8737_v21 = vpop.permute.xlu1 %8736 }
0x62fc   :  { %12710 = vrsqrt.f32 %v8421_v31  ;;  %v8742_v43 = vsel %vm302_vm2, %v8737_v21, 0 }
0x6306   :  { %v12711_v11 = vpop.eup %12710 }
0x6307   :  { %v8425_v49 = vmul.f32 %v12711_v11, %v8409_v52  ;;  %v14591_v11 = vld [vmem:[%s14877_s6 + $0x28] sm:$0xff]  }
0x6309   :  { %v8433_v53 = vmul.f32 %v10788_v24, %v8425_v49  ;;  %v14587_v24 = vld [vmem:[%s14877_s6 + $0x20] sm:$0xff]  }
0x630b   :  { %v14536_v35 = vadd.f32 %v10789_v34, %v8433_v53 }
0x630d   :  { %v8451_v37 = vpack.c.bf16 %v14536_v35, %v14534_v58 }
0x630f   :  { %12094 = vmatmul.mubr.msk.bf16.vlgmr.msra.gmra.mrb[12].mxu0 %vm238_vm0, %v8451_v37 }
0x6310   :  { %12110 = vmatpush3.bf16.xpose.msra.mxu0 %v8629_v26  ;;  %12111 = vmatprep.mubr.msk.bf16.mxu0 %vm12817_vm1, %v12816_v4 }
0x6311   :  { %12121 = vmatprep.subr.bf16.mxu0 %v12816_v4 }
0x63e2   :  { %v8521_v42 = vpop.f32.mrb[12].mxu0 }
0x63e3   :  { %v8522_v33 = vadd.f32 %v10799_v9, %v8521_v42  ;;  %v12095_v61 = vpop.f32.mrb[13].mxu0 }
0x63e4   :  { %v8524_v13 = vpop.f32.mrb[14].mxu0 }
0x63e5   :  { %v8528_v10 = vmul.f32 0.125, %v8522_v33  ;;  %v14547_v14 = vadd.f32 %v10799_v9, %v8524_v13  ;;  %v12096_v7 = vpop.f32.mrb[15].mxu0 }
0x63e7   :  { %v14549_v55 = vpack.c.bf16 %v8528_v10, %v8528_v10 }
0x63e9   :  { %8734 = vrot.lane.b32.xlu0 %v14549_v55, %s12819_s7  ;;  %12112 = vmatmul.mubr.msk.bf16.vlgmr.msra.gmra.mrb[16].mxu0 %vm302_vm2, %v14549_v55 }
0x63ea   :  { %12122 = vmatpush3.bf16.xpose.msra.mxu0 %v8742_v43  ;;  %12123 = vmatprep.mubr.msk.bf16.mxu0 %vm12817_vm1, %v12816_v4 }
0x63eb   :  { %12133 = vmatprep.subr.bf16.mxu0 %v12816_v4 }
0x645b   :  { %v8735_v48 = vpop.permute.xlu0 %8734 }
0x645c   :  { %12124 = vmatmul.mubr.msk.bf16.vlgmr.msra.gmra.mrb[20].mxu0 %vm302_vm2, %v8735_v48 }
0x645d   :  { %12135 = vmatprep.mubr.msk.bf16.mxu0 %vm12817_vm1, %v12816_v4  ;;  %12134 = vmatpush3.bf16.msra.mxu0 %v14591_v11 }
0x645e   :  { %12145 = vmatprep.subr.bf16.mxu0 %v12816_v4 }
0x64bc   :  { %v8665_v47 = vpop.f32.mrb[16].mxu0 }
0x64bd   :  { %v8666_v23 = vadd.f32 %v8665_v47, %v13090_v40  ;;  %v12113_v62 = vpop.f32.mrb[17].mxu0 }
0x64be   :  { %v8668_v59 = vpop.f32.mrb[18].mxu0 }
0x64bf   :  { %v12114_v41 = vpop.f32.mrb[19].mxu0  ;;  %v8671_v38 = vsel %vm349_vm5, %v8666_v23, -inf }
0x64c0   :  { %8672 = vmax.xlane.f32.xlu0 %v8671_v38 }
0x652f   :  { %v8778_v29 = vpop.f32.mrb[20].mxu0 }
0x6530   :  { %v8779_v56 = vadd.f32 %v8778_v29, %v13090_v40  ;;  %v12125_v8 = vpop.f32.mrb[21].mxu0 }
0x6531   :  { %v8781_v63 = vpop.f32.mrb[22].mxu0 }
0x6532   :  { %v12126_v1 = vpop.f32.mrb[23].mxu0  ;;  %v8784_v28 = vsel %vm349_vm5, %v8779_v56, -inf }
0x6533   :  { %8785 = vmax.xlane.f32.xlu1 %v8784_v28 }
0x6544   :  { %8796 = vrot.lane.b32.xlu1 %v14520_v39, %s12820_s10 }
0x6548   :  { %8943 = vrot.lane.b32.xlu1 %v14549_v55, %s12822_s11 }
0x654d   :  { %v8673_v51 = vpop.xlane.xlu0 %8672 }
0x654e   :  { %v8674_v60 = vsub.f32 %v8666_v23, %v8673_v51 }
0x6550   :  { %v8675_v22 = vmul.f32 1.442695, %v8674_v60 }
0x6552   :  { %12712 = vpow2.f32 %v8675_v22 }
0x655c   :  { %v12713_v50 = vpop.eup %12712 }
0x655d   :  { %v8677_v0 = vsel %vm349_vm5, %v12713_v50, 0.0 }
0x655e   :  { %8678 = vadd.xlane.f32.xlu0 %v8677_v0 }
0x65c0   :  { %v8786_v57 = vpop.xlane.xlu1 %8785 }
0x65c1   :  { %v8787_v52 = vsub.f32 %v8779_v56, %v8786_v57 }
0x65c3   :  { %v8788_v17 = vmul.f32 1.442695, %v8787_v52 }
0x65c4   :  { %v8797_v45 = vpop.permute.xlu1 %8796 }
0x65c5   :  { %12714 = vpow2.f32 %v8788_v17  ;;  %v8802_v27 = vsel %vm365_vm3, %v8797_v45, 0 }
0x65c8   :  { %v8944_v7 = vpop.permute.xlu1 %8943 }
0x65cf   :  { %v12715_v54 = vpop.eup %12714 }
0x65d0   :  { %v8790_v36 = vsel %vm349_vm5, %v12715_v54, 0.0 }
0x65d1   :  { %8791 = vadd.xlane.f32.xlu0 %v8790_v36 }
0x65e7   :  { %8684 = vrot.lane.b32.xlu0 %v14520_v39, %s12818_s0 }
0x65eb   :  { %8945 = vrot.lane.b32.xlu0 %v14520_v39, %s12822_s11  ;;  %v8679_v30 = vpop.xlane.xlu0 %8678 }
0x65ec   :  { %12716 = vrcp.f32 %v8679_v30 }
0x65f6   :  { %v12717_v5 = vpop.eup %12716 }
0x65f7   :  { %v8681_v44 = vmul.f32 %v12717_v5, %v12713_v50 }
0x65f9   :  { %v8682_v19 = vpack.c.bf16 %v8681_v44, %v8681_v44  ;;  %v14629_v44 = vld [vmem:[%s14877_s6 + $0x30] sm:$0xff]  }
0x665e   :  { %v8792_v46 = vpop.xlane.xlu0 %8791 }
0x665f   :  { %12718 = vrcp.f32 %v8792_v46 }
0x6662   :  { %v8685_v25 = vpop.permute.xlu0 %8684 }
0x6663   :  { %v8690_v32 = vsel %vm365_vm3, %v8685_v25, 0 }
0x6664   :  { %12116 = vmatpush3.bf16.msra.mxu1 %v8690_v32 }
0x6665   :  { %12127 = vmatprep.subr.bf16.mxu1 %v12816_v4 }
0x6666   :  { %v8946_v26 = vpop.permute.xlu0 %8945 }
0x6667   :  { %12118 = vmatmul.mubr.msk.bf16.vlgmr.msra.gmra.mrb[8].mxu1 %vm349_vm5, %v8682_v19  ;;  %v8951_v13 = vsel %vm302_vm2, %v8946_v26, 0 }
0x6668   :  { %12128 = vmatpush3.bf16.msra.mxu1 %v8802_v27  ;;  %12129 = vmatprep.mubr.msk.bf16.mxu1 %vm12817_vm1, %v12816_v4 }
0x6669   :  { %v12719_v31 = vpop.eup %12718  ;;  %12139 = vmatprep.subr.bf16.mxu1 %v12816_v4 }
0x666a   :  { %v8794_v20 = vmul.f32 %v12719_v31, %v12715_v54 }
0x666c   :  { %v8795_v3 = vpack.c.bf16 %v8794_v20, %v8794_v20 }
0x666f   :  { %12130 = vmatmul.mubr.msk.bf16.vlgmr.msra.gmra.mrb[12].mxu1 %vm349_vm5, %v8795_v3 }
0x6670   :  { %12141 = vmatprep.mubr.msk.bf16.mxu1 %vm12817_vm1, %v12816_v4  ;;  %12140 = vmatpush3.bf16.msra.mxu1 %v14587_v24 }
0x6671   :  { %12151 = vmatprep.subr.bf16.mxu1 %v12816_v4 }
0x673a   :  { %v8726_v16 = vpop.f32.mrb[8].mxu1 }
0x673b   :  { %v8732_v49 = vpack.c.bf16 %v8726_v16, %v8726_v16  ;;  %v12119_v34 = vpop.f32.mrb[9].mxu1 }
0x673c   :  { %v8729_v53 = vpop.f32.mrb[10].mxu1 }
0x673d   :  { %v12120_v37 = vpop.f32.mrb[11].mxu1  ;;  %12142 = vmatmul.mubr.msk.bf16.vlgmr.msra.gmra.mrb[16].mxu1 %vm302_vm2, %v8732_v49  ;;  %v14640_v53 = vpack.c.bf16 %v14517_v6, %v14517_v6 }
0x673e   :  { %12153 = vmatprep.mubr.msk.bf16.mxu1 %vm12817_vm1, %v12816_v4  ;;  %v8529_v37 = vmul.f32 0.125, %v14547_v14 }
0x6740   :  { %v14645_v26 = vpack.c.bf16 %v8529_v37, %v8529_v37 }
0x6742   :  { %v8838_v9 = vpop.f32.mrb[12].mxu1 }
0x6743   :  { %v8844_v42 = vpack.c.bf16 %v8838_v9, %v8838_v9  ;;  %v12131_v33 = vpop.f32.mrb[13].mxu1 }
0x6744   :  { %v8841_v61 = vpop.f32.mrb[14].mxu1 }
0x6745   :  { %v12132_v10 = vpop.f32.mrb[15].mxu1  ;;  %12136 = vmatmul.mubr.msk.bf16.vlgmr.msra.gmra.mrb[24].mxu0 %vm302_vm2, %v8844_v42 }
0x6746   :  { %12146 = vmatpush3.bf16.xpose.msra.mxu0 %v8951_v13  ;;  %12147 = vmatprep.mubr.msk.bf16.mxu0 %vm12817_vm1, %v12816_v4 }
0x6747   :  { %12157 = vmatprep.subr.bf16.mxu0 %v12816_v4 }
0x674d   :  { %12148 = vmatmul.mubr.msk.bf16.vlgmr.msra.gmra.mrb[28].mxu0 %vm302_vm2, %v8944_v7 }
0x674e   :  { %12159 = vmatprep.mubr.msk.bf16.mxu0 %vm12817_vm1, %v12816_v4  ;;  %12158 = vmatpush3.bf16.msra.mxu0 %v14629_v44 }
0x674f   :  { %12169 = vmatprep.subr.bf16.mxu0 %v12816_v4 }
0x6810   :  { %v8937_v21 = vpop.f32.mrb[16].mxu1 }
0x6811   :  { %v12143_v43 = vpop.f32.mrb[17].mxu1 }
0x6812   :  { %v8940_v48 = vpop.f32.mrb[18].mxu1 }
0x6813   :  { %v12144_v47 = vpop.f32.mrb[19].mxu1 }
0x6818   :  { %v8888_v23 = vpop.f32.mrb[24].mxu0 }
0x6819   :  { %v14607_v62 = vadd.f32 %v8937_v21, %v8888_v23  ;;  %v12137_v59 = vpop.f32.mrb[25].mxu0 }
0x681a   :  { %v8891_v41 = vpop.f32.mrb[26].mxu0 }
0x681b   :  { %v12138_v38 = vpop.f32.mrb[27].mxu0 }
0x6820   :  { %v8987_v29 = vpop.f32.mrb[28].mxu0 }
0x6821   :  { %v8988_v56 = vadd.f32 %v8987_v29, %v13090_v40  ;;  %v12149_v8 = vpop.f32.mrb[29].mxu0  ;;  %v14675_v29 = vld [vmem:[%s14877_s6 + $0x38] sm:$0xff]  }
0x6822   :  { %v8990_v63 = vpop.f32.mrb[30].mxu0 }
0x6823   :  { %v12150_v1 = vpop.f32.mrb[31].mxu0  ;;  %v8993_v28 = vsel %vm349_vm5, %v8988_v56, -inf }
0x6824   :  { %8994 = vmax.xlane.f32.xlu0 %v8993_v28 }
0x683a   :  { %9005 = vrot.lane.b32.xlu0 %v14520_v39, %s12821_s13 }
0x683e   :  { %9104 = vrot.lane.b32.xlu0 %v14549_v55, %s12823_s15 }
0x68b1   :  { %v8995_v51 = vpop.xlane.xlu0 %8994 }
0x68b2   :  { %v8996_v60 = vsub.f32 %v8988_v56, %v8995_v51 }
0x68b4   :  { %v8997_v22 = vmul.f32 1.442695, %v8996_v60 }
0x68b5   :  { %v9006_v50 = vpop.permute.xlu0 %9005 }
0x68b6   :  { %12720 = vpow2.f32 %v8997_v22  ;;  %v9011_v0 = vsel %vm365_vm3, %v9006_v50, 0 }
0x68b7   :  { %12152 = vmatpush3.bf16.msra.mxu1 %v9011_v0 }
0x68b8   :  { %12163 = vmatprep.subr.bf16.mxu1 %v12816_v4 }
0x68b9   :  { %v9105_v46 = vpop.permute.xlu0 %9104 }
0x68c0   :  { %v12721_v57 = vpop.eup %12720 }
0x68c1   :  { %v8999_v52 = vsel %vm349_vm5, %v12721_v57, 0.0 }
0x68c2   :  { %9000 = vadd.xlane.f32.xlu1 %v8999_v52 }
0x68d3   :  { %9106 = vrot.lane.b32.xlu1 %v14520_v39, %s12823_s15 }
0x694f   :  { %v9001_v17 = vpop.xlane.xlu1 %9000 }
0x6950   :  { %12722 = vrcp.f32 %v9001_v17 }
0x6953   :  { %v9107_v36 = vpop.permute.xlu1 %9106 }
0x6954   :  { %v9112_v5 = vsel %vm302_vm2, %v9107_v36, 0 }
0x695a   :  { %v12723_v55 = vpop.eup %12722 }
0x695b   :  { %v9003_v54 = vmul.f32 %v12723_v55, %v12721_v57 }
0x695d   :  { %v9004_v30 = vpack.c.bf16 %v9003_v54, %v9003_v54 }
0x695f   :  { %12154 = vmatmul.mubr.msk.bf16.vlgmr.msra.gmra.mrb[20].mxu1 %vm349_vm5, %v9004_v30 }
0x6960   :  { %12164 = vmatpush3.bf16.xpose.msra.mxu1 %v9112_v5  ;;  %12165 = vmatprep.mubr.msk.bf16.mxu1 %vm12817_vm1, %v12816_v4 }
0x6961   :  { %12175 = vmatprep.subr.bf16.mxu1 %v12816_v4 }
0x6967   :  { %12166 = vmatmul.mubr.msk.bf16.vlgmr.msra.gmra.mrb[24].mxu1 %vm302_vm2, %v9105_v46 }
0x6968   :  { %12177 = vmatprep.mubr.msk.bf16.mxu1 %vm12817_vm1, %v12816_v4  ;;  %12176 = vmatpush3.bf16.msra.mxu1 %v14675_v29 }
0x6969   :  { %12187 = vmatprep.subr.bf16.mxu1 %v12816_v4 }
0x6a32   :  { %v9047_v25 = vpop.f32.mrb[20].mxu1 }
0x6a33   :  { %v9053_v32 = vpack.c.bf16 %v9047_v25, %v9047_v25  ;;  %v12155_v45 = vpop.f32.mrb[21].mxu1 }
0x6a34   :  { %v9050_v19 = vpop.f32.mrb[22].mxu1 }
0x6a35   :  { %v12156_v27 = vpop.f32.mrb[23].mxu1  ;;  %12160 = vmatmul.mubr.msk.bf16.vlgmr.msra.gmra.mrb[32].mxu0 %vm302_vm2, %v9053_v32 }
0x6a36   :  { %12171 = vmatprep.mubr.msk.bf16.mxu0 %vm12817_vm1, %v12816_v4 }
0x6a3a   :  { %v9148_v31 = vpop.f32.mrb[24].mxu1 }
0x6a3b   :  { %v9149_v20 = vadd.f32 %v9148_v31, %v13090_v40  ;;  %v12167_v3 = vpop.f32.mrb[25].mxu1 }
0x6a3c   :  { %v9151_v16 = vpop.f32.mrb[26].mxu1 }
0x6a3d   :  { %v12168_v49 = vpop.f32.mrb[27].mxu1  ;;  %v9154_v34 = vsel %vm349_vm5, %v9149_v20, -inf }
0x6a3e   :  { %9155 = vmax.xlane.f32.xlu1 %v9154_v34 }
0x6a4f   :  { %9385 = vrot.lane.b32.xlu1 %v14640_v53, %s12819_s7 }
0x6a53   :  { %9383 = vrot.lane.b32.xlu1 %v14645_v26, %s12819_s7 }
0x6acb   :  { %v9156_v40 = vpop.xlane.xlu1 %9155 }
0x6acc   :  { %v9157_v9 = vsub.f32 %v9149_v20, %v9156_v40 }
0x6ace   :  { %v9158_v42 = vmul.f32 1.442695, %v9157_v9 }
0x6ad0   :  { %12724 = vpow2.f32 %v9158_v42 }
0x6ada   :  { %v12725_v33 = vpop.eup %12724 }
0x6adb   :  { %v9160_v61 = vsel %vm349_vm5, %v12725_v33, 0.0 }
0x6adc   :  { %9161 = vadd.xlane.f32.xlu0 %v9160_v61 }
0x6af2   :  { %9166 = vrot.lane.b32.xlu0 %v14520_v39, %s12824_s16  ;;  %v9278_v39 = vsel %vm302_vm2, %v14640_v53, 0 }
0x6b08   :  { %v9097_v6 = vpop.f32.mrb[32].mxu0 }
0x6b09   :  { %v14653_v14 = vadd.f32 %v9097_v6, %v14607_v62  ;;  %v12161_v13 = vpop.f32.mrb[33].mxu0  ;;  %v9386_v62 = vpop.permute.xlu1 %9385 }
0x6b0a   :  { %v9100_v10 = vpop.f32.mrb[34].mxu0  ;;  %v9391_v41 = vsel %vm302_vm2, %v9386_v62, 0 }
0x6b0b   :  { %v12162_v7 = vpop.f32.mrb[35].mxu0 }
0x6b0d   :  { %v9384_v38 = vpop.permute.xlu1 %9383 }
0x6b69   :  { %v9162_v21 = vpop.xlane.xlu0 %9161 }
0x6b6a   :  { %12726 = vrcp.f32 %v9162_v21 }
0x6b6d   :  { %v9167_v43 = vpop.permute.xlu0 %9166 }
0x6b6e   :  { %v9172_v48 = vsel %vm365_vm3, %v9167_v43, 0 }
0x6b6f   :  { %12170 = vmatpush3.bf16.msra.mxu0 %v9172_v48 }
0x6b70   :  { %12181 = vmatprep.subr.bf16.mxu0 %v12816_v4 }
0x6b74   :  { %v12727_v47 = vpop.eup %12726 }
0x6b75   :  { %v9164_v23 = vmul.f32 %v12727_v47, %v12725_v33 }
0x6b77   :  { %v9165_v59 = vpack.c.bf16 %v9164_v23, %v9164_v23 }
0x6b79   :  { %12172 = vmatmul.mubr.msk.bf16.vlgmr.msra.gmra.mrb[36].mxu0 %vm349_vm5, %v9165_v59 }
0x6b7a   :  { %12182 = vmatpush3.bf16.xpose.msra.mxu0 %v9278_v39  ;;  %12183 = vmatprep.mubr.msk.bf16.mxu0 %vm12817_vm1, %v12816_v4 }
0x6b7b   :  { %12193 = vmatprep.subr.bf16.mxu0 %v12816_v4 }
0x6b81   :  { %12184 = vmatmul.mubr.msk.bf16.vlgmr.msra.gmra.mrb[40].mxu0 %vm302_vm2, %v14645_v26 }
0x6b82   :  { %12194 = vmatpush3.bf16.xpose.msra.mxu0 %v9391_v41  ;;  %12195 = vmatprep.mubr.msk.bf16.mxu0 %vm12817_vm1, %v12816_v4 }
0x6b83   :  { %12205 = vmatprep.subr.bf16.mxu0 %v12816_v4 }
0x6b89   :  { %12196 = vmatmul.mubr.msk.bf16.vlgmr.msra.gmra.mrb[44].mxu0 %vm302_vm2, %v9384_v38 }
0x6b8a   :  { %12206 = vmatpush3.bf16.msra.mxu0 %v14591_v11  ;;  %12207 = vmatprep.mubr.msk.bf16.mxu0 %vm12817_vm1, %v12816_v4 }
0x6b8b   :  { %12217 = vmatprep.subr.bf16.mxu0 %v12816_v4 }
0x6c4c   :  { %v9208_v56 = vpop.f32.mrb[36].mxu0 }
0x6c4d   :  { %v9214_v8 = vpack.c.bf16 %v9208_v56, %v9208_v56  ;;  %v12173_v63 = vpop.f32.mrb[37].mxu0 }
0x6c4e   :  { %v9211_v1 = vpop.f32.mrb[38].mxu0 }
0x6c4f   :  { %v12174_v28 = vpop.f32.mrb[39].mxu0  ;;  %12178 = vmatmul.mubr.msk.bf16.vlgmr.msra.gmra.mrb[28].mxu1 %vm302_vm2, %v9214_v8 }
0x6c50   :  { %12189 = vmatprep.mubr.msk.bf16.mxu1 %vm12817_vm1, %v12816_v4 }
0x6c54   :  { %v9314_v11 = vpop.f32.mrb[40].mxu0 }
0x6c55   :  { %v9315_v51 = vadd.f32 %v9314_v11, %v13217_v12  ;;  %v12185_v60 = vpop.f32.mrb[41].mxu0 }
0x6c56   :  { %v9317_v22 = vpop.f32.mrb[42].mxu0 }
0x6c57   :  { %v12186_v50 = vpop.f32.mrb[43].mxu0  ;;  %v9320_v0 = vsel %vm349_vm5, %v9315_v51, -inf }
0x6c58   :  { %9321 = vmax.xlane.f32.xlu0 %v9320_v0 }
0x6c5c   :  { %v9427_v57 = vpop.f32.mrb[44].mxu0 }
0x6c5d   :  { %v9428_v52 = vadd.f32 %v9427_v57, %v13217_v12  ;;  %v12197_v17 = vpop.f32.mrb[45].mxu0 }
0x6c5e   :  { %v9430_v55 = vpop.f32.mrb[46].mxu0 }
0x6c5f   :  { %v12198_v54 = vpop.f32.mrb[47].mxu0  ;;  %v9433_v36 = vsel %vm349_vm5, %v9428_v52, -inf }
0x6c60   :  { %9434 = vmax.xlane.f32.xlu1 %v9433_v36 }
0x6c71   :  { %9333 = vrot.lane.b32.xlu1 %v14640_v53, %s12818_s0 }
0x6c75   :  { %9582 = vrot.lane.b32.xlu1 %v14640_v53, %s12822_s11 }
0x6c79   :  { %9580 = vrot.lane.b32.xlu1 %v14645_v26, %s12822_s11 }
0x6ce5   :  { %v9322_v30 = vpop.xlane.xlu0 %9321 }
0x6ce6   :  { %v9323_v5 = vsub.f32 %v9315_v51, %v9322_v30 }
0x6ce8   :  { %v9324_v46 = vmul.f32 1.442695, %v9323_v5 }
0x6cea   :  { %12728 = vpow2.f32 %v9324_v46 }
0x6ced   :  { %v9435_v25 = vpop.xlane.xlu1 %9434 }
0x6cee   :  { %v9436_v32 = vsub.f32 %v9428_v52, %v9435_v25 }
0x6cf0   :  { %v9437_v45 = vmul.f32 1.442695, %v9436_v32 }
0x6cf1   :  { %v9334_v19 = vpop.permute.xlu1 %9333 }
0x6cf2   :  { %12730 = vpow2.f32 %v9437_v45  ;;  %v9339_v27 = vsel %vm365_vm3, %v9334_v19, 0 }
0x6cf3   :  { %12188 = vmatpush3.bf16.msra.mxu1 %v9339_v27 }
0x6cf4   :  { %v12729_v31 = vpop.eup %12728  ;;  %12199 = vmatprep.subr.bf16.mxu1 %v12816_v4 }
0x6cf5   :  { %v9326_v20 = vsel %vm349_vm5, %v12729_v31, 0.0  ;;  %v9583_v62 = vpop.permute.xlu1 %9582 }
0x6cf6   :  { %9327 = vadd.xlane.f32.xlu0 %v9326_v20  ;;  %v9588_v8 = vsel %vm302_vm2, %v9583_v62, 0 }
0x6cf9   :  { %v9581_v1 = vpop.permute.xlu1 %9580 }
0x6cfc   :  { %v12731_v3 = vpop.eup %12730 }
0x6cfd   :  { %v9439_v16 = vsel %vm349_vm5, %v12731_v3, 0.0 }
0x6cfe   :  { %9440 = vadd.xlane.f32.xlu0 %v9439_v16 }
0x6d14   :  { %9445 = vrot.lane.b32.xlu0 %v14640_v53, %s12820_s10 }
0x6d22   :  { %v9258_v49 = vpop.f32.mrb[28].mxu1 }
0x6d23   :  { %v14699_v34 = vadd.f32 %v9258_v49, %v14653_v14  ;;  %v12179_v37 = vpop.f32.mrb[29].mxu1 }
0x6d24   :  { %v9261_v40 = vpop.f32.mrb[30].mxu1 }
0x6d25   :  { %v12180_v9 = vpop.f32.mrb[31].mxu1 }
0x6d83   :  { %v9328_v42 = vpop.xlane.xlu0 %9327 }
0x6d84   :  { %12732 = vrcp.f32 %v9328_v42 }
0x6d8b   :  { %v9441_v33 = vpop.xlane.xlu0 %9440 }
0x6d8c   :  { %12734 = vrcp.f32 %v9441_v33 }
0x6d8e   :  { %v12733_v61 = vpop.eup %12732 }
0x6d8f   :  { %v9330_v6 = vmul.f32 %v12733_v61, %v12729_v31  ;;  %v9446_v13 = vpop.permute.xlu0 %9445 }
0x6d90   :  { %v9451_v7 = vsel %vm365_vm3, %v9446_v13, 0 }
0x6d91   :  { %v9331_v10 = vpack.c.bf16 %v9330_v6, %v9330_v6  ;;  %v10845_v6 = vld [vmem:[%s14878_s12 + $0x1] ss:$0 sm:$0xff] }
0x6d92   :  { %v9271_v13 = vadd.f32 %v10845_v6, %v14699_v34 }
0x6d93   :  { %12190 = vmatmul.mubr.msk.bf16.vlgmr.msra.gmra.mrb[32].mxu1 %vm349_vm5, %v9331_v10 }
0x6d94   :  { %12200 = vmatpush3.bf16.msra.mxu1 %v9451_v7  ;;  %12201 = vmatprep.mubr.msk.bf16.mxu1 %vm12817_vm1, %v12816_v4 }
0x6d95   :  { %12211 = vmatprep.subr.bf16.mxu1 %v12816_v4 }
0x6d96   :  { %v12735_v14 = vpop.eup %12734 }
0x6d97   :  { %v9443_v21 = vmul.f32 %v12735_v14, %v12731_v3 }
0x6d99   :  { %v9444_v43 = vpack.c.bf16 %v9443_v21, %v9443_v21 }
0x6d9b   :  { %12202 = vmatmul.mubr.msk.bf16.vlgmr.msra.gmra.mrb[36].mxu1 %vm349_vm5, %v9444_v43 }
0x6d9c   :  { %12212 = vmatpush3.bf16.msra.mxu1 %v14587_v24  ;;  %12213 = vmatprep.mubr.msk.bf16.mxu1 %vm12817_vm1, %v12816_v4 }
0x6d9d   :  { %12223 = vmatprep.subr.bf16.mxu1 %v12816_v4 }
0x6e66   :  { %v9375_v48 = vpop.f32.mrb[32].mxu1 }
0x6e67   :  { %v9381_v47 = vpack.c.bf16 %v9375_v48, %v9375_v48  ;;  %v12191_v23 = vpop.f32.mrb[33].mxu1  ;;  %v9945_v48 = vadd.f32 %v9271_v13, %v14534_v58  ;;  %v12505_v13 = vld [vmem:[%s14880_s22 + $0x90] sm:$0xff]  }
0x6e68   :  { %v9378_v59 = vpop.f32.mrb[34].mxu1 }
0x6e69   :  { %v12192_v39 = vpop.f32.mrb[35].mxu1  ;;  %12214 = vmatmul.mubr.msk.bf16.vlgmr.msra.gmra.mrb[40].mxu1 %vm302_vm2, %v9381_v47  ;;  %v9947_v47 = vsel %vm238_vm0, %v9945_v48, 0.0 }
0x6e6a   :  { %12225 = vmatprep.mubr.msk.bf16.mxu1 %vm12817_vm1, %v12816_v4 }
0x6e6e   :  { %v9487_v41 = vpop.f32.mrb[36].mxu1 }
0x6e6f   :  { %v9493_v38 = vpack.c.bf16 %v9487_v41, %v9487_v41  ;;  %v12203_v56 = vpop.f32.mrb[37].mxu1 }
0x6e70   :  { %v9490_v24 = vpop.f32.mrb[38].mxu1 }
0x6e71   :  { %v12204_v63 = vpop.f32.mrb[39].mxu1  ;;  %12208 = vmatmul.mubr.msk.bf16.vlgmr.msra.gmra.mrb[48].mxu0 %vm302_vm2, %v9493_v38 }
0x6e72   :  { %12218 = vmatpush3.bf16.xpose.msra.mxu0 %v9588_v8  ;;  %12219 = vmatprep.mubr.msk.bf16.mxu0 %vm12817_vm1, %v12816_v4 }
0x6e73   :  { %12229 = vmatprep.subr.bf16.mxu0 %v12816_v4 }
0x6e79   :  { %12220 = vmatmul.mubr.msk.bf16.vlgmr.msra.gmra.mrb[52].mxu0 %vm302_vm2, %v9581_v1 }
0x6e7a   :  { %12230 = vmatpush3.bf16.msra.mxu0 %v14629_v44  ;;  %12231 = vmatprep.mubr.msk.bf16.mxu0 %vm12817_vm1, %v12816_v4 }
0x6e7b   :  { %12241 = vmatprep.subr.bf16.mxu0 %v12816_v4 }
0x6f3c   :  { %v9574_v28 = vpop.f32.mrb[40].mxu1 }
0x6f3d   :  { %v12215_v11 = vpop.f32.mrb[41].mxu1 }
0x6f3e   :  { %v9577_v51 = vpop.f32.mrb[42].mxu1 }
0x6f3f   :  { %v12216_v60 = vpop.f32.mrb[43].mxu1 }
0x6f44   :  { %v9531_v22 = vpop.f32.mrb[48].mxu0 }
0x6f45   :  { %v14724_v50 = vadd.f32 %v9574_v28, %v9531_v22  ;;  %v12209_v0 = vpop.f32.mrb[49].mxu0 }
0x6f46   :  { %v9534_v57 = vpop.f32.mrb[50].mxu0 }
0x6f47   :  { %v12210_v52 = vpop.f32.mrb[51].mxu0 }
0x6f4c   :  { %v9624_v17 = vpop.f32.mrb[52].mxu0 }
0x6f4d   :  { %v9625_v55 = vadd.f32 %v9624_v17, %v13217_v12  ;;  %v12221_v54 = vpop.f32.mrb[53].mxu0 }
0x6f4e   :  { %v9627_v44 = vpop.f32.mrb[54].mxu0 }
0x6f4f   :  { %v12222_v36 = vpop.f32.mrb[55].mxu0  ;;  %v9630_v30 = vsel %vm349_vm5, %v9625_v55, -inf }
0x6f50   :  { %9631 = vmax.xlane.f32.xlu0 %v9630_v30 }
0x6f66   :  { %9642 = vrot.lane.b32.xlu0 %v14640_v53, %s12821_s13 }
0x6f6a   :  { %9735 = vrot.lane.b32.xlu0 %v14645_v26, %s12823_s15 }
0x6fdd   :  { %v9632_v5 = vpop.xlane.xlu0 %9631 }
0x6fde   :  { %v9633_v46 = vsub.f32 %v9625_v55, %v9632_v5 }
0x6fe0   :  { %v9634_v25 = vmul.f32 1.442695, %v9633_v46 }
0x6fe1   :  { %v9643_v32 = vpop.permute.xlu0 %9642 }
0x6fe2   :  { %12736 = vpow2.f32 %v9634_v25  ;;  %v9648_v45 = vsel %vm365_vm3, %v9643_v32, 0 }
0x6fe3   :  { %12224 = vmatpush3.bf16.msra.mxu1 %v9648_v45 }
0x6fe4   :  { %12235 = vmatprep.subr.bf16.mxu1 %v12816_v4 }
0x6fe5   :  { %v9736_v37 = vpop.permute.xlu0 %9735 }
0x6fec   :  { %v12737_v19 = vpop.eup %12736 }
0x6fed   :  { %v9636_v27 = vsel %vm349_vm5, %v12737_v19, 0.0 }
0x6fee   :  { %9637 = vadd.xlane.f32.xlu1 %v9636_v27 }
0x6fff   :  { %9737 = vrot.lane.b32.xlu1 %v14640_v53, %s12823_s15 }
0x707b   :  { %v9638_v31 = vpop.xlane.xlu1 %9637 }
0x707c   :  { %12738 = vrcp.f32 %v9638_v31  ;;  %v12490_v31 = vld [vmem:[%s14879_s18 + $0x44] ss:$8 sps:$4 sm:$0xff]  }
0x707f   :  { %v9738_v3 = vpop.permute.xlu1 %9737 }
0x7080   :  { %v9743_v49 = vsel %vm302_vm2, %v9738_v3, 0  ;;  %v12491_v3 = vld [vmem:[%s14879_s18 + $0x50] ss:$8 sps:$4 sm:$0xff]  }
0x7086   :  { %v12739_v26 = vpop.eup %12738 }
0x7087   :  { %v9640_v20 = vmul.f32 %v12739_v26, %v12737_v19  ;;  %v12488_v26 = vld [vmem:[%s14879_s18 + $0x40] ss:$8 sps:$4 sm:$0xff]  }
0x7089   :  { %v9641_v16 = vpack.c.bf16 %v9640_v20, %v9640_v20  ;;  %v12493_v20 = vld [vmem:[%s14879_s18 + $0x54] ss:$8 sps:$4 sm:$0xff]  }
0x708b   :  { %12226 = vmatmul.mubr.msk.bf16.vlgmr.msra.gmra.mrb[44].mxu1 %vm349_vm5, %v9641_v16  ;;  %v12496_v16 = vld [vmem:[%s14879_s18 + $0x64] ss:$8 sps:$4 sm:$0xff]  }
0x708c   :  { %12236 = vmatpush3.bf16.xpose.msra.mxu1 %v9743_v49  ;;  %12237 = vmatprep.mubr.msk.bf16.mxu1 %vm12817_vm1, %v12816_v4  ;;  %v12494_v49 = vld [vmem:[%s14879_s18 + $0x60] ss:$8 sps:$4 sm:$0xff]  }
0x708d   :  { %12247 = vmatprep.subr.bf16.mxu1 %v12816_v4 }
0x7093   :  { %12238 = vmatmul.mubr.msk.bf16.vlgmr.msra.gmra.mrb[48].mxu1 %vm302_vm2, %v9736_v37  ;;  %v12499_v37 = vld [vmem:[%s14879_s18 + $0x74] ss:$8 sps:$4 sm:$0xff]  }
0x7094   :  { %12248 = vmatpush3.bf16.msra.mxu1 %v14675_v29  ;;  %12249 = vmatprep.mubr.msk.bf16.mxu1 %vm12817_vm1, %v12816_v4 }
0x715e   :  { %v9684_v40 = vpop.f32.mrb[44].mxu1 }
0x715f   :  { %v9690_v9 = vpack.c.bf16 %v9684_v40, %v9684_v40  ;;  %v12227_v42 = vpop.f32.mrb[45].mxu1  ;;  %v12497_v40 = vld [vmem:[%s14879_s18 + $0x70] ss:$8 sps:$4 sm:$0xff]  }
0x7160   :  { %v9687_v33 = vpop.f32.mrb[46].mxu1  ;;  %v12501_v42 = vld [vmem:[%s14880_s22 + $0x80] sm:$0xff]  }
0x7161   :  { %v12228_v61 = vpop.f32.mrb[47].mxu1  ;;  %12232 = vmatmul.mubr.msk.bf16.vlgmr.msra.gmra.mrb[56].mxu0 %vm302_vm2, %v9690_v9  ;;  %v12500_v9 = vld [vmem:[%s14880_s22 + $0xc0] sm:$0xff]   ;;  %v12502_v33 = vld [vmem:[%s14880_s22 + $0xc8] sm:$0xff]  }
0x7162   :  { %12243 = vmatprep.mubr.msk.bf16.mxu0 %vm12817_vm1, %v12816_v4  ;;  %11314 = vmatprep.subr.bf16.mxu1 %v12500_v9  ;;  %v12503_v61 = vld [vmem:[%s14880_s22 + $0x88] sm:$0xff]  }
0x7166   :  { %v9779_v10 = vpop.f32.mrb[48].mxu1 }
0x7167   :  { %v9780_v7 = vadd.f32 %v9779_v10, %v13217_v12  ;;  %v12239_v29 = vpop.f32.mrb[49].mxu1  ;;  %v12506_v10 = vld [vmem:[%s14880_s22 + $0xd8] sm:$0xff]  }
0x7168   :  { %v9782_v14 = vpop.f32.mrb[50].mxu1  ;;  %v12508_v29 = vld [vmem:[%s14880_s22 + $0xe0] sm:$0xff]  }
0x7169   :  { %v12240_v21 = vpop.f32.mrb[51].mxu1  ;;  %v9785_v43 = vsel %vm349_vm5, %v9780_v7, -inf  ;;  %v12509_v14 = vld [vmem:[%s14880_s22 + $0xa0] sm:$0xff]  }
0x716a   :  { %9786 = vmax.xlane.f32.xlu1 %v9785_v43  ;;  %v12510_v21 = vld [vmem:[%s14880_s22 + $0xe8] sm:$0xff]  }
0x716e   :  { %9948 = vadd.xlane.f32.xlu1 %v9947_v47 }
0x71f7   :  { %v9787_v23 = vpop.xlane.xlu1 %9786 }
0x71f8   :  { %v9788_v59 = vsub.f32 %v9780_v7, %v9787_v23  ;;  %v12507_v7 = vld [vmem:[%s14880_s22 + $0x98] sm:$0xff]  }
0x71fa   :  { %v9789_v39 = vmul.f32 1.442695, %v9788_v59 }
0x71fb   :  { %v9949_v0 = vpop.xlane.xlu1 %9948 }
0x71fc   :  { %12740 = vpow2.f32 %v9789_v39  ;;  %v9953_v57 = vmul.f32 0.015625, %v9949_v0 }
0x71fe   :  { %v14763_v44 = vsub.f32 %v9945_v48, %v9953_v57 }
0x7200   :  { %v9957_v46 = vmul.f32 %v14763_v44, %v14763_v44 }
0x7202   :  { %v9959_v25 = vsel %vm238_vm0, %v9957_v46, 0.0 }
0x7206   :  { %v12741_v62 = vpop.eup %12740 }
0x7207   :  { %v9791_v34 = vsel %vm349_vm5, %v12741_v62, 0.0 }
0x7208   :  { %9792 = vadd.xlane.f32.xlu0 %v9791_v34 }
0x721e   :  { %9797 = vrot.lane.b32.xlu0 %v14640_v53, %s12824_s16 }
0x7234   :  { %v9728_v12 = vpop.f32.mrb[56].mxu0 }
0x7235   :  { %v9734_v41 = vadd.f32 %v9728_v12, %v14724_v50  ;;  %v12233_v38 = vpop.f32.mrb[57].mxu0  ;;  %v10904_v12 = vld [vmem:[%s14881_s23 + $0x1] ss:$0 sm:$0xff] }
0x7236   :  { %v9731_v58 = vpop.f32.mrb[58].mxu0 }
0x7237   :  { %v12234_v56 = vpop.f32.mrb[59].mxu0 }
0x7238   :  { %v10905_v56 = vld [vmem:[%s14882_s26 + $0x1] ss:$0 sm:$0xff] }
0x7295   :  { %v9793_v24 = vpop.xlane.xlu0 %9792 }
0x7296   :  { %12742 = vrcp.f32 %v9793_v24 }
0x7299   :  { %v9798_v8 = vpop.permute.xlu0 %9797 }
0x729a   :  { %v9803_v63 = vsel %vm365_vm3, %v9798_v8, 0 }
0x729b   :  { %12242 = vmatpush3.bf16.msra.mxu0 %v9803_v63 }
0x729c   :  { %10044 = vmatprep.subr.bf16.mxu0 %v12490_v31 }
0x72a0   :  { %v12743_v1 = vpop.eup %12742 }
0x72a1   :  { %v9795_v28 = vmul.f32 %v12743_v1, %v12741_v62 }
0x72a3   :  { %v9796_v11 = vpack.c.bf16 %v9795_v28, %v9795_v28  ;;  %v12511_v28 = vld [vmem:[%s14880_s22 + $0xa8] sm:$0xff]  }
0x72a5   :  { %12244 = vmatmul.mubr.msk.bf16.vlgmr.msra.gmra.mrb[60].mxu0 %vm349_vm5, %v9796_v11  ;;  %v12512_v11 = vld [vmem:[%s14880_s22 + $0xf0] sm:$0xff]  }
0x72a6   :  { %10076 = vmatprep.mubr.bf16.mxu0 %v12815_v2  ;;  %10045 = vmatpush1.bf16.msra.mxu0 %v12488_v26 }
0x72a7   :  { %10046 = vmatprep.subr.bf16.mxu0 %v12493_v20 }
0x72aa   :  { %10047 = vmatpush1.bf16.msra.mxu0 %v12491_v3 }
0x72ab   :  { %10048 = vmatprep.subr.bf16.mxu0 %v12496_v16 }
0x72ae   :  { %10049 = vmatpush1.bf16.msra.mxu0 %v12494_v49 }
0x72af   :  { %10050 = vmatprep.subr.bf16.mxu0 %v12499_v37 }
0x72b2   :  { %10051 = vmatpush1.bf16.msra.mxu0 %v12497_v40 }
0x72b3   :  { %12253 = vmatprep.subr.bf16.mxu0 %v12816_v4 }
0x7378   :  { %v9839_v53 = vpop.f32.mrb[60].mxu0 }
0x7379   :  { %v9845_v51 = vpack.c.bf16 %v9839_v53, %v9839_v53  ;;  %v12245_v60 = vpop.f32.mrb[61].mxu0  ;;  %v12513_v53 = vld [vmem:[%s14880_s22 + $0xb0] sm:$0xff]  }
0x737a   :  { %v9842_v22 = vpop.f32.mrb[62].mxu0  ;;  %v12515_v60 = vld [vmem:[%s14880_s22 + $0xb8] sm:$0xff]  }
0x737b   :  { %v12246_v50 = vpop.f32.mrb[63].mxu0  ;;  %12250 = vmatmul.mubr.msk.bf16.vlgmr.msra.gmra.mrb[52].mxu1 %vm302_vm2, %v9845_v51  ;;  %v12514_v51 = vld [vmem:[%s14880_s22 + $0xf8] sm:$0xff]   ;;  %v10868_v22 = vld [vmem:[%s14883_s28 + $0x2] sm:$0x3] }
0x737c   :  { %11315 = vmatpush3.bf16.msra.mxu1 %v12501_v42  ;;  %v9994_v50 = vrot.slane %v10868_v22, %v13042_v15  ;;  %v9998_v0 = vrot.slane %v10868_v22, %v13047_v18 }
0x737d   :  { %11316 = vmatprep.subr.bf16.mxu1 %v12502_v33 }
0x7380   :  { %11317 = vmatpush3.bf16.msra.mxu1 %v12503_v61 }
0x744e   :  { %v9883_v52 = vpop.f32.mrb[52].mxu1 }
0x744f   :  { %v9889_v17 = vadd.f32 %v9883_v52, %v9734_v41  ;;  %v12251_v55 = vpop.f32.mrb[53].mxu1 }
0x7450   :  { %v9886_v54 = vpop.f32.mrb[54].mxu1 }
0x7451   :  { %v9890_v36 = vadd.f32 %v10845_v6, %v9889_v17  ;;  %v12252_v30 = vpop.f32.mrb[55].mxu1  ;;  %v12504_v6 = vld [vmem:[%s14880_s22 + $0xd0] sm:$0xff]  }
0x7452   :  { %11318 = vmatprep.subr.bf16.mxu1 %v12504_v6 }
0x7453   :  { %v9946_v2 = vadd.f32 %v9890_v36, %v14536_v35  ;;  %11319 = vmatpush3.bf16.msra.mxu1 %v12505_v13 }
0x7454   :  { %11320 = vmatprep.subr.bf16.mxu1 %v12506_v10 }
0x7455   :  { %v9950_v5 = vsel %vm238_vm0, %v9946_v2, 0.0 }
0x7456   :  { %9951 = vadd.xlane.f32.xlu1 %v9950_v5 }
0x7457   :  { %11321 = vmatpush3.bf16.msra.mxu1 %v12507_v7 }
0x7458   :  { %11322 = vmatprep.subr.bf16.mxu1 %v12508_v29 }
0x745a   :  { %9960 = vadd.xlane.f32.xlu1 %v9959_v25 }
0x745b   :  { %11323 = vmatpush3.bf16.msra.mxu1 %v12509_v14 }
0x745c   :  { %11324 = vmatprep.subr.bf16.mxu1 %v12510_v21  ;;  %v12516_v21 = vld [vmem:[%s13012_s20] sm:$0xff]  }
0x745f   :  { %11325 = vmatpush3.bf16.msra.mxu1 %v12511_v28 }
0x7460   :  { %11326 = vmatprep.subr.bf16.mxu1 %v12512_v11 }
0x7463   :  { %11327 = vmatpush3.bf16.msra.mxu1 %v12513_v53  ;;  %v10934_v53 = vld [vmem:[%s13017_s27] ss:$0 sm:$0xff] }
0x7464   :  { %11328 = vmatprep.subr.bf16.mxu1 %v12514_v51 }
0x7467   :  { %11329 = vmatpush3.bf16.msra.mxu1 %v12515_v60 }
0x74e3   :  { %v9952_v32 = vpop.xlane.xlu1 %9951 }
0x74e4   :  { %v9954_v45 = vmul.f32 0.015625, %v9952_v32 }
0x74e6   :  { %v9956_v19 = vsub.f32 %v9946_v2, %v9954_v45 }
0x74e7   :  { %v9961_v43 = vpop.xlane.xlu1 %9960 }
0x74e8   :  { %v9958_v27 = vmul.f32 %v9956_v19, %v9956_v19  ;;  %v9965_v48 = vmul.f32 0.015625, %v9961_v43  ;;  %v12517_v43 = vld [vmem:[%s13012_s20 + $0x8] sm:$0xff]  }
0x74ea   :  { %v9962_v35 = vsel %vm238_vm0, %v9958_v27, 0.0  ;;  %v9967_v47 = vadd.f32 1e-05, %v9965_v48  ;;  %v12518_v48 = vld [vmem:[%s13012_s20 + $0x10] sm:$0xff]  }
0x74eb   :  { %9963 = vadd.xlane.f32.xlu1 %v9962_v35 }
0x74ec   :  { %12744 = vrsqrt.f32 %v9967_v47  ;;  %v12519_v47 = vld [vmem:[%s13012_s20 + $0x18] sm:$0xff]   ;;  %s12826_s20 = smov [#allocation2]  }
0x74ed   :  { %s10371_s0 = sshll.u32 %s12826_s20, 4  ;;  %s10372_s0 = int_to_ptr.vmem [resolvable:$true] %s10371_s0 }
0x74ee   :  { %s12754_s7 = scalar_lea.vmem %s10372_s0, 256  ;;  %p12759_p1 = scmp.lt.s32.totalorder %s10372_s0, %s10372_s0 }
0x74ef   :  { %p12755_p0 = scmp.ne.s32.totalorder %s10372_s0, %s12754_s7  ;;  %p12760_p2 = scmp.lt.s32.totalorder %s12754_s7, %s12754_s7 }
0x74f1   :  { %p12761_p3 = por %p12760_p2, %p12759_p1 }
0x74f3   :  { %p12762_p4 = pnand %p12761_p3, %p12755_p0 }
0x74f6   :  { %v12745_v62 = vpop.eup %12744 }
0x74f7   :  { %v9971_v34 = vmul.f32 %v12745_v62, %v14763_v44 }
0x74f9   :  { %v9979_v38 = vmul.f32 %v10904_v12, %v9971_v34 }
0x74fb   :  { %v9987_v8 = vadd.f32 %v10905_v56, %v9979_v38 }
0x7578   :  { %v9964_v23 = vpop.xlane.xlu1 %9963 }
0x7579   :  { %v9966_v59 = vmul.f32 0.015625, %v9964_v23 }
0x757b   :  { %v9968_v39 = vadd.f32 1e-05, %v9966_v59 }
0x757d   :  { %12746 = vrsqrt.f32 %v9968_v39 }
0x7587   :  { %v12747_v41 = vpop.eup %12746 }
0x7588   :  { %v9972_v58 = vmul.f32 %v12747_v41, %v9956_v19  ;;  %v10915_v19 = vld [vmem:[%s14884_s1 + $0x1] ss:$0 sm:$0xff] }
0x758a   :  { %v9980_v24 = vmul.f32 %v10904_v12, %v9972_v58  ;;  %v10932_v58 = vld [vmem:[%s14885_s2 + $0x1] ss:$0 sm:$0xff] }
0x758c   :  { %v9988_v63 = vadd.f32 %v10905_v56, %v9980_v24 }
0x758e   :  { %v9989_v1 = vpack.c.bf16 %v9988_v63, %v9987_v8 }
0x7590   :  { %10914 = vmatmul.mubr.msk.bf16.vlgmr.msra.gmra.mrb[64].mxu0 %vm238_vm0, %v9989_v1 }
0x7591   :  { %12261 = vmatprep.mubr.msk.bf16.mxu0 %vm12817_vm1, %v12816_v4  ;;  %12254 = vmatpush3.bf16.msra.mxu0 %v12516_v21 }
0x7592   :  { %12255 = vmatprep.subr.bf16.mxu0 %v12816_v4 }
0x7595   :  { %12256 = vmatpush3.bf16.msra.mxu0 %v12517_v43 }
0x7596   :  { %12257 = vmatprep.subr.bf16.mxu0 %v12816_v4 }
0x7599   :  { %12258 = vmatpush3.bf16.msra.mxu0 %v12518_v48 }
0x759a   :  { %12259 = vmatprep.subr.bf16.mxu0 %v12816_v4 }
0x759d   :  { %12260 = vmatpush3.bf16.msra.mxu0 %v12519_v47 }
0x7663   :  { %v10078_v57 = vpop.f32.mrb[64].mxu0 }
0x7664   :  { %v10079_v52 = vadd.f32 %v10078_v57, %v9994_v50  ;;  %v10080_v17 = vpop.f32.mrb[65].mxu0 }
0x7665   :  { %v10081_v55 = vadd.f32 %v10080_v17, %v9998_v0  ;;  %v10082_v54 = vpop.f32.mrb[66].mxu0 }
0x7666   :  { %v10083_v44 = vadd.f32 %v10082_v54, %v9994_v50  ;;  %v10084_v36 = vpop.f32.mrb[67].mxu0  ;;  %v10087_v2 = vmax.f32 %v10079_v52, 0.0 }
0x7667   :  { %v10085_v30 = vadd.f32 %v10084_v36, %v9998_v0  ;;  %v10088_v46 = vmax.f32 %v10081_v55, 0.0 }
0x7668   :  { %v10089_v5 = vmax.f32 %v10083_v44, 0.0 }
0x7669   :  { %v10090_v25 = vmax.f32 %v10085_v30, 0.0 }
0x766a   :  { %v10091_v32 = vpack.c.bf16 %v10089_v5, %v10087_v2 }
0x766b   :  { %v10092_v45 = vpack.c.bf16 %v10090_v25, %v10088_v46 }
0x766d   :  { %10227 = vmatprep.mubr.bf16.mxu1 %v10092_v45 }
0x766e   :  { %10228 = vmatmul.mubr.bf16.vlgmr.msra.gmra.mrb[56].mxu1 %v10091_v32 }
0x7741   :  { %v11330_v15 = vpop.f32.mrb[56].mxu1 }
0x7742   :  { %v11331_v18 = vpop.f32.mrb[57].mxu1 }
0x7743   :  { %v11332_v27 = vadd.f32 %v11331_v18, %v11330_v15  ;;  %v11333_v35 = vpop.f32.mrb[58].mxu1 }
0x7744   :  { %v11334_v31 = vpop.f32.mrb[59].mxu1 }
0x7745   :  { %v10230_v26 = vadd.f32 %v11332_v27, %v10915_v19  ;;  %v11335_v20 = vadd.f32 %v11334_v31, %v11333_v35 }
0x7747   :  { %v10233_v3 = vadd.f32 %v11335_v20, %v10915_v19  ;;  %v10236_v16 = vadd.f32 %v10230_v26, %v9987_v8 }
0x7749   :  { %v10238_v49 = vsel %vm238_vm0, %v10236_v16, 0.0  ;;  %v10237_v37 = vadd.f32 %v10233_v3, %v9988_v63  ;;  %v10933_v63 = vld [vmem:[%s13007_s9 + $0x1] ss:$0 sm:$0xff] }
0x774a   :  { %10239 = vadd.xlane.f32.xlu1 %v10238_v49 }
0x774b   :  { %v10241_v40 = vsel %vm238_vm0, %v10237_v37, 0.0 }
0x774e   :  { %10242 = vadd.xlane.f32.xlu1 %v10241_v40 }
0x77d7   :  { %v10240_v9 = vpop.xlane.xlu1 %10239 }
0x77d8   :  { %v10244_v42 = vmul.f32 0.015625, %v10240_v9 }
0x77da   :  { %v10246_v33 = vsub.f32 %v10236_v16, %v10244_v42 }
0x77db   :  { %v10243_v61 = vpop.xlane.xlu1 %10242 }
0x77dc   :  { %v10245_v6 = vmul.f32 0.015625, %v10243_v61  ;;  %v10248_v13 = vmul.f32 %v10246_v33, %v10246_v33 }
0x77de   :  { %v10247_v10 = vsub.f32 %v10237_v37, %v10245_v6  ;;  %v10250_v7 = vsel %vm238_vm0, %v10248_v13, 0.0 }
0x77df   :  { %10251 = vadd.xlane.f32.xlu0 %v10250_v7 }
0x77e0   :  { %v10249_v29 = vmul.f32 %v10247_v10, %v10247_v10 }
0x77e2   :  { %v10253_v14 = vsel %vm238_vm0, %v10249_v29, 0.0 }
0x77e3   :  { %10254 = vadd.xlane.f32.xlu1 %v10253_v14 }
0x786c   :  { %v10252_v23 = vpop.xlane.xlu0 %10251 }
0x786d   :  { %v10256_v59 = vmul.f32 0.015625, %v10252_v23 }
0x786f   :  { %v10258_v39 = vadd.f32 1e-05, %v10256_v59 }
0x7870   :  { %v10255_v62 = vpop.xlane.xlu1 %10254 }
0x7871   :  { %12748 = vrsqrt.f32 %v10258_v39  ;;  %v10257_v34 = vmul.f32 0.015625, %v10255_v62 }
0x7873   :  { %v10259_v12 = vadd.f32 1e-05, %v10257_v34 }
0x7875   :  { %12750 = vrsqrt.f32 %v10259_v12 }
0x787b   :  { %v12749_v41 = vpop.eup %12748 }
0x787c   :  { %v10262_v38 = vmul.f32 %v12749_v41, %v10246_v33 }
0x787e   :  { %v10270_v24 = vmul.f32 %v10932_v58, %v10262_v38 }
0x787f   :  { %v12751_v56 = vpop.eup %12750 }
0x7880   :  { %v10263_v8 = vmul.f32 %v12751_v56, %v10247_v10  ;;  %v10278_v1 = vadd.f32 %v10933_v63, %v10270_v24 }
0x7882   :  { %v10271_v4 = vmul.f32 %v10932_v58, %v10263_v8 }
0x7884   :  { %v10279_v28 = vadd.f32 %v10933_v63, %v10271_v4 }
0x7886   :  { %v10288_v11 = vpack.c.bf16 %v10279_v28, %v10278_v1 }
0x7888   :  { %12262 = vmatmul.mubr.msk.bf16.vlgmr.msra.gmra.mrb[68].mxu0 %vm238_vm0, %v10288_v11 }
0x795b   :  { %v10357_v51 = vpop.f32.mrb[68].mxu0 }
0x795c   :  { %v10358_v60 = vadd.f32 %v10934_v53, %v10357_v51  ;;  %v12263_v22 = vpop.f32.mrb[69].mxu0 }
0x795d   :  { %v10360_v50 = vpop.f32.mrb[70].mxu0 }
0x795e   :  { %10364 = vst [vmem:[#allocation2] sm:$0xff] %v10358_v60  ;;  %v10361_v0 = vadd.f32 %v10934_v53, %v10360_v50  ;;  %v12264_v57 = vpop.f32.mrb[71].mxu0 }
0x7960   :  { %10365 = vst [vmem:[#allocation2 + $0x8] sm:$0xff] %v10361_v0 }
0x7961   :  { %12765 = shalt.err (!%p12762_p4)
}
0x7962   :  { %s12766_s9 = scalar_lea.hbm %s13022_s4, 256 }
0x7963   :  { %p12767_p5 = scmp.ne.s32.totalorder %s13022_s4, %s12766_s9  ;;  %p12770_p6 = scmp.lt.u32.totalorder %s12766_s9, %s13022_s4 }
0x7965   :  { %p12772_p7 = pnand %p12770_p6, %p12767_p5 }
0x7967   :  { %12775 = shalt.err (!%p12772_p7)
}
0x7968   :  { %s12827_s27 = smov 128   ;;  %s12828_s10 = smov 8  }
0x7969   :  { %10377 = dma.vmem_to_hbm [thread:$0]  %s10372_s0, 256, %s13022_s4, [#allocation3], %s12827_s27, %s12827_s27, %s12828_s10  }
0x796a   :  { %12776 = dma.done.wait [#allocation3], 256  }
0x796b   :  { %12777 = vsyncadd [#allocation3], 4294967040 }
0x796c   :  { %10381 = vsyncpa [#allocation3], 1 }

</bundles_post_ra>
